<compile_context>
chip_gen: v7x
topology: tpu7x:2x2x1
jax: 0.10.0
libtpu: 0.0.40
codegen_flags: <defaults>
</compile_context>

<pallas_src>
import math

import jax
import jax.numpy as jnp
from jax.experimental import pallas as pl
from jax.experimental.pallas import tpu as pltpu


_VMEM_LIMIT = 48 << 20        # <= 64 MiB (v7x per-TC VMEM), headroom on v5e/v6e
_BN_EPS = 1e-5
# conv0..conv5 run as tiled Pallas matmuls; conv6/conv7 (1x1 spatial) live in
# the fused tail kernel.
_CONV_CFG = [(2, 64), (64, 128), (128, 256), (256, 256), (256, 512), (512, 512)]
_TAIL_CFG = [(512, 512), (512, 512)]          # conv6, conv7
_POOL_AFTER = (1, 3, 5)       # AvgPool2d(2) folded into these convs (0-based)


# ----------------------------------------------------------------------------
# Kernel 1: fused Conv2d(3x3, pad=1, no bias) [as im2col matmul] + BatchNorm2d
#   grid = (Cout // tn,)  -- batch folded into M, full K per step, BN epilogue.
# ----------------------------------------------------------------------------
def _mm_bn_kernel(x_ref, w_ref, s_ref, b_ref, o_ref):
    # x_ref: (M, K) bf16 im2col rows (possibly pre-pooled)
    # w_ref: (K, tn) bf16 ; s_ref / b_ref: (1, tn) f32 folded BN scale / bias
    # o_ref: (M, tn) bf16
    acc = jnp.dot(x_ref[...], w_ref[...], preferred_element_type=jnp.float32)
    o_ref[...] = (acc * s_ref[...] + b_ref[...]).astype(o_ref.dtype)


def conv_bn(x2d, w2d, scale, bias):
    """Conv2d(3x3,1,1,bias=False) + BatchNorm2d (inference), im2col form."""
    M, K = x2d.shape
    Cout = w2d.shape[1]
    assert w2d.shape[0] == K
    # tn = min(Cout, 256): the heavy 512-out layers get 2 parallel Cout steps
    # (both v7x TensorCores busy, weight blocks still 1.2-2.4 MiB); smaller
    # layers stay at a single big step (best for single-TC v5e/v6e).
    tn = min(Cout, 256)
    assert Cout % tn == 0
    return pl.pallas_call(
        _mm_bn_kernel,
        out_shape=jax.ShapeDtypeStruct((M, Cout), jnp.bfloat16),
        grid=(Cout // tn,),
        in_specs=[
            pl.BlockSpec((M, K), lambda j: (0, 0)),        # same block every j
            pl.BlockSpec((K, tn), lambda j: (0, j)),       # full-K weight slab
            pl.BlockSpec((1, tn), lambda j: (0, j)),
            pl.BlockSpec((1, tn), lambda j: (0, j)),
        ],
        out_specs=pl.BlockSpec((M, tn), lambda j: (0, j)),
        compiler_params=pltpu.CompilerParams(
            dimension_semantics=("parallel",),
            vmem_limit_bytes=_VMEM_LIMIT),
    )(x2d, w2d, scale, bias)


# ----------------------------------------------------------------------------
# Kernel 2: fused tail = conv6(1x1-spatial, center tap) + BN6 + conv7 + BN7
#           + AdaptiveAvgPool2d(1) (identity at 1x1) + flatten + Linear.
#   Single grid step; FC weight lane-padded to a multiple of 128 (f32, per the
#   review's precision note) and unpadded with a wrapper slice.
# ----------------------------------------------------------------------------
def _tail_kernel(x_ref, w6_ref, s6_ref, b6_ref, w7_ref, s7_ref, b7_ref,
                 wfc_ref, o_ref):
    h = jnp.dot(x_ref[...], w6_ref[...], preferred_element_type=jnp.float32)
    h = h * s6_ref[...] + b6_ref[...]
    h = jnp.dot(h.astype(jnp.bfloat16), w7_ref[...],
                preferred_element_type=jnp.float32)
    h = h * s7_ref[...] + b7_ref[...]
    # AdaptiveAvgPool2d(1) and flatten are identities at 1x1 spatial.
    o_ref[...] = jnp.dot(h, wfc_ref[...], preferred_element_type=jnp.float32)


def tail(x, tail_params, w_fc_padded):
    (w6, s6, b6), (w7, s7, b7) = tail_params
    N, _ = x.shape
    ncp = w_fc_padded.shape[1]

    def full(a):
        return pl.BlockSpec(a.shape, lambda i: tuple(0 for _ in a.shape))

    return pl.pallas_call(
        _tail_kernel,
        out_shape=jax.ShapeDtypeStruct((N, ncp), jnp.float32),
        grid=(1,),
        in_specs=[full(x), full(w6), full(s6), full(b6),
                  full(w7), full(s7), full(b7), full(w_fc_padded)],
        out_specs=pl.BlockSpec((N, ncp), lambda i: (0, 0)),
        compiler_params=pltpu.CompilerParams(vmem_limit_bytes=_VMEM_LIMIT),
    )(x, w6, s6, b6, w7, s7, b7, w_fc_padded)


# ----------------------------------------------------------------------------
# Wrapper-side im2col (activations are tiny vs. weights) with the following
# AvgPool2d(2) optionally folded in:  P @ (X @ W) == (P @ X) @ W and the BN
# affine commutes with P (row sums = 1), so pre-pooling the im2col rows is
# exactly equivalent to pooling the conv output -- and 4x less MXU work.
# ----------------------------------------------------------------------------
def _im2col(x, pool):
    N, H, W, C = x.shape
    xp = jnp.pad(x, ((0, 0), (1, 1), (1, 1), (0, 0)))
    cols = jnp.concatenate(
        [xp[:, kh:kh + H, kw:kw + W, :] for kh in range(3) for kw in range(3)],
        axis=-1)                                            # (N, H, W, 9*C)
    if pool:
        assert H % 2 == 0 and W % 2 == 0
        cols = cols.astype(jnp.float32).reshape(N, H // 2, 2, W // 2, 2, 9 * C)
        cols = cols.mean(axis=(2, 4)).astype(jnp.bfloat16)
        H, W = H // 2, W // 2
    return cols.reshape(N * H * W, 9 * C), H, W


# ----------------------------------------------------------------------------
# Parameter init (deterministic, kaiming_normal style) and forward pass
# ----------------------------------------------------------------------------
def _fold_bn(key, cout):
    kg, kb, km, kv = jax.random.split(key, 4)
    gamma = 1.0 + 0.1 * jax.random.normal(kg, (cout,), jnp.float32)
    beta = 0.1 * jax.random.normal(kb, (cout,), jnp.float32)
    rmean = 0.1 * jax.random.normal(km, (cout,), jnp.float32)
    rvar = 1.0 + 0.1 * jax.random.uniform(kv, (cout,), jnp.float32)
    scale = gamma / jnp.sqrt(rvar + _BN_EPS)                # inference fold
    bias = beta - rmean * scale
    return scale.reshape(1, cout).astype(jnp.float32), \
           bias.reshape(1, cout).astype(jnp.float32)


def init_params(key, num_classes=10, inchannel=2):
    cfg = [(inchannel, _CONV_CFG[0][1])] + _CONV_CFG[1:]
    convs = []
    for cin, cout in cfg:
        key, kw_, kbn = jax.random.split(key, 3)
        w = jax.random.normal(kw_, (3, 3, cin, cout), jnp.float32) * math.sqrt(
            2.0 / (cin * 9))
        scale, bias = _fold_bn(kbn, cout)
        # (3,3,Cin,Cout) -> (9*Cin, Cout), rows ordered (kh, kw, ci) to match
        # the wrapper im2col column order.
        convs.append((w.reshape(9 * cin, cout).astype(jnp.bfloat16),
                      scale, bias))
    tail_p = []
    for cin, cout in _TAIL_CFG:
        key, kw_, kbn = jax.random.split(key, 3)
        w = jax.random.normal(kw_, (3, 3, cin, cout), jnp.float32) * math.sqrt(
            2.0 / (cin * 9))
        scale, bias = _fold_bn(kbn, cout)
        # 1x1 spatial input with pad=1: only the center tap w[1,1] ever
        # multiplies non-zero data -> prune the other 8 taps (exact).
        tail_p.append((w[1, 1].astype(jnp.bfloat16), scale, bias))
    key, kfc = jax.random.split(key)
    w_fc = jax.random.normal(kfc, (512, num_classes), jnp.float32) * math.sqrt(
        2.0 / 512.0)
    ncp = ((num_classes + 127) // 128) * 128                # lane-pad to 128
    w_fc_p = jnp.zeros((512, ncp), jnp.float32).at[:, :num_classes].set(w_fc)
    return {"convs": convs, "tail": tail_p, "fc": w_fc_p,
            "num_classes": num_classes}


def vgg9_forward(x_nchw, params, use_avg=True):
    x = x_nchw.astype(jnp.float32)
    if use_avg:
        # nn.AvgPool2d(4, 4): plain JAX on the tiny 2-channel input (a Pallas
        # kernel here would be fully lane-starved).
        N, C, H, W = x.shape
        x = x.reshape(N, C, H // 4, 4, W // 4, 4).mean(axis=(3, 5))
    # NCHW (PyTorch) -> NHWC, bf16 activations for the MXU.
    x = jnp.transpose(x, (0, 2, 3, 1)).astype(jnp.bfloat16)
    N, H, W, _ = x.shape
    for i, (w2d, scale, bias) in enumerate(params["convs"]):
        x2d, H, W = _im2col(x, pool=(i in _POOL_AFTER))
        out = conv_bn(x2d, w2d, scale, bias)    # Conv2d + BatchNorm2d (+ pool)
        # TODO(synk): DropBlockLIFS applied here in the reference; identity.
        x = out.reshape(N, H, W, -1)
    xt = x.reshape(N, x.shape[-1])              # H == W == 1 here
    logits = tail(xt, params["tail"], params["fc"])
    return logits[:, :params["num_classes"]]


if __name__ == "__main__":
    key = jax.random.PRNGKey(0)
    kx, kp = jax.random.split(key)

    num_classes = 10
    params = init_params(kp, num_classes=num_classes, inchannel=2)

    # Small NCHW input: batch=2, channels=2, spatial=32 (useAvg pools 32 -> 8)
    x = jax.random.normal(kx, (2, 2, 32, 32), jnp.float32)

    fwd = jax.jit(lambda inp: vgg9_forward(inp, params, use_avg=True))
    logits = fwd(x)
    jax.block_until_ready(logits)

    assert logits.shape == (2, num_classes)
    assert bool(jnp.all(jnp.isfinite(logits)))
    print("KERNEL_OK")
</pallas_src>

<mosaic_0001>
module attributes {stable_mosaic.version = 11 : i64} {
  func.func @_mm_bn_kernel(%arg0: i32, %arg1: memref<128x18xbf16, #tpu.memory_space<vmem>>, %arg2: memref<18x64xbf16, #tpu.memory_space<vmem>>, %arg3: memref<1x64xf32, #tpu.memory_space<vmem>>, %arg4: memref<1x64xf32, #tpu.memory_space<vmem>>, %arg5: memref<128x64xbf16, #tpu.memory_space<vmem>>) attributes {dimension_semantics = [#tpu.dimension_semantics<parallel>], iteration_bounds = array<i64: 1>, scalar_prefetch = 0 : i64, scratch_operands = 0 : i64, tpu.core_type = #tpu.core_type<tc>, window_params = [{pipeline_mode = #tpu.pipeline_mode<synchronous>, transform_indices = @transform_0, window_bounds = array<i64: 128, 18>}, {transform_indices = @transform_1, window_bounds = array<i64: 18, 64>}, {transform_indices = @transform_2, window_bounds = array<i64: 1, 64>}, {transform_indices = @transform_3, window_bounds = array<i64: 1, 64>}, {transform_indices = @transform_4, window_bounds = array<i64: 128, 64>}]} {
    %c0 = arith.constant 0 : index
    %c0_0 = arith.constant 0 : index
    %0 = vector.load %arg1[%c0, %c0_0] : memref<128x18xbf16, #tpu.memory_space<vmem>>, vector<128x18xbf16>
    %c0_1 = arith.constant 0 : index
    %c0_2 = arith.constant 0 : index
    %1 = vector.load %arg2[%c0_1, %c0_2] : memref<18x64xbf16, #tpu.memory_space<vmem>>, vector<18x64xbf16>
    %cst = arith.constant dense<0.000000e+00> : vector<128x64xf32>
    %2 = tpu.matmul %0, %1, %cst {dimension_numbers = #tpu.dot_dimension_numbers<[1], [0], [0], [1], [0, 0, 1, 1], [], []>} : vector<128x18xbf16>, vector<18x64xbf16>, vector<128x64xf32> -> vector<128x64xf32>
    %c0_3 = arith.constant 0 : index
    %c0_4 = arith.constant 0 : index
    %3 = vector.load %arg3[%c0_3, %c0_4] : memref<1x64xf32, #tpu.memory_space<vmem>>, vector<1x64xf32>
    %4 = vector.broadcast %3 : vector<1x64xf32> to vector<128x64xf32>
    %5 = arith.mulf %2, %4 : vector<128x64xf32>
    %c0_5 = arith.constant 0 : index
    %c0_6 = arith.constant 0 : index
    %6 = vector.load %arg4[%c0_5, %c0_6] : memref<1x64xf32, #tpu.memory_space<vmem>>, vector<1x64xf32>
    %7 = vector.broadcast %6 : vector<1x64xf32> to vector<128x64xf32>
    %8 = arith.addf %5, %7 : vector<128x64xf32>
    %9 = arith.truncf %8 : vector<128x64xf32> to vector<128x64xbf16>
    %c0_7 = arith.constant 0 : index
    %c0_8 = arith.constant 0 : index
    %10 = vector.load %arg5[%c0_7, %c0_8] : memref<128x64xbf16, #tpu.memory_space<vmem>>, vector<128x64xbf16>
    tpu.vector_store %arg5[%c0_7, %c0_8], %9 {strides = array<i32>} : memref<128x64xbf16, #tpu.memory_space<vmem>>, vector<128x64xbf16>,
    return
  }
  func.func @transform_0(%arg0: i32) -> (i32, i32) {
    %c0_i32 = arith.constant 0 : i32
    %c0_i32_0 = arith.constant 0 : i32
    %c0_i32_1 = arith.constant 0 : i32
    return %c0_i32, %c0_i32_0 : i32, i32
  }
  func.func @transform_1(%arg0: i32) -> (i32, i32) {
    %c0_i32 = arith.constant 0 : i32
    %c0_i32_0 = arith.constant 0 : i32
    return %c0_i32, %arg0 : i32, i32
  }
  func.func @transform_2(%arg0: i32) -> (i32, i32) {
    %c0_i32 = arith.constant 0 : i32
    %c0_i32_0 = arith.constant 0 : i32
    return %c0_i32, %arg0 : i32, i32
  }
  func.func @transform_3(%arg0: i32) -> (i32, i32) {
    %c0_i32 = arith.constant 0 : i32
    %c0_i32_0 = arith.constant 0 : i32
    return %c0_i32, %arg0 : i32, i32
  }
  func.func @transform_4(%arg0: i32) -> (i32, i32) {
    %c0_i32 = arith.constant 0 : i32
    %c0_i32_0 = arith.constant 0 : i32
    return %c0_i32, %arg0 : i32, i32
  }
}

module attributes {stable_mosaic.version = 11 : i64} {
  func.func @_mm_bn_kernel(%arg0: i32, %arg1: memref<32x576xbf16, #tpu.memory_space<vmem>>, %arg2: memref<576x128xbf16, #tpu.memory_space<vmem>>, %arg3: memref<1x128xf32, #tpu.memory_space<vmem>>, %arg4: memref<1x128xf32, #tpu.memory_space<vmem>>, %arg5: memref<32x128xbf16, #tpu.memory_space<vmem>>) attributes {dimension_semantics = [#tpu.dimension_semantics<parallel>], iteration_bounds = array<i64: 1>, scalar_prefetch = 0 : i64, scratch_operands = 0 : i64, tpu.core_type = #tpu.core_type<tc>, window_params = [{pipeline_mode = #tpu.pipeline_mode<synchronous>, transform_indices = @transform_0, window_bounds = array<i64: 32, 576>}, {transform_indices = @transform_1, window_bounds = array<i64: 576, 128>}, {transform_indices = @transform_2, window_bounds = array<i64: 1, 128>}, {transform_indices = @transform_3, window_bounds = array<i64: 1, 128>}, {transform_indices = @transform_4, window_bounds = array<i64: 32, 128>}]} {
    %c0 = arith.constant 0 : index
    %c0_0 = arith.constant 0 : index
    %0 = vector.load %arg1[%c0, %c0_0] : memref<32x576xbf16, #tpu.memory_space<vmem>>, vector<32x576xbf16>
    %c0_1 = arith.constant 0 : index
    %c0_2 = arith.constant 0 : index
    %1 = vector.load %arg2[%c0_1, %c0_2] : memref<576x128xbf16, #tpu.memory_space<vmem>>, vector<576x128xbf16>
    %cst = arith.constant dense<0.000000e+00> : vector<32x128xf32>
    %2 = tpu.matmul %0, %1, %cst {dimension_numbers = #tpu.dot_dimension_numbers<[1], [0], [0], [1], [0, 0, 1, 1], [], []>} : vector<32x576xbf16>, vector<576x128xbf16>, vector<32x128xf32> -> vector<32x128xf32>
    %c0_3 = arith.constant 0 : index
    %c0_4 = arith.constant 0 : index
    %3 = vector.load %arg3[%c0_3, %c0_4] : memref<1x128xf32, #tpu.memory_space<vmem>>, vector<1x128xf32>
    %4 = vector.broadcast %3 : vector<1x128xf32> to vector<32x128xf32>
    %5 = arith.mulf %2, %4 : vector<32x128xf32>
    %c0_5 = arith.constant 0 : index
    %c0_6 = arith.constant 0 : index
    %6 = vector.load %arg4[%c0_5, %c0_6] : memref<1x128xf32, #tpu.memory_space<vmem>>, vector<1x128xf32>
    %7 = vector.broadcast %6 : vector<1x128xf32> to vector<32x128xf32>
    %8 = arith.addf %5, %7 : vector<32x128xf32>
    %9 = arith.truncf %8 : vector<32x128xf32> to vector<32x128xbf16>
    %c0_7 = arith.constant 0 : index
    %c0_8 = arith.constant 0 : index
    %10 = vector.load %arg5[%c0_7, %c0_8] : memref<32x128xbf16, #tpu.memory_space<vmem>>, vector<32x128xbf16>
    tpu.vector_store %arg5[%c0_7, %c0_8], %9 {strides = array<i32>} : memref<32x128xbf16, #tpu.memory_space<vmem>>, vector<32x128xbf16>,
    return
  }
  func.func @transform_0(%arg0: i32) -> (i32, i32) {
    %c0_i32 = arith.constant 0 : i32
    %c0_i32_0 = arith.constant 0 : i32
    %c0_i32_1 = arith.constant 0 : i32
    return %c0_i32, %c0_i32_0 : i32, i32
  }
  func.func @transform_1(%arg0: i32) -> (i32, i32) {
    %c0_i32 = arith.constant 0 : i32
    %c0_i32_0 = arith.constant 0 : i32
    return %c0_i32, %arg0 : i32, i32
  }
  func.func @transform_2(%arg0: i32) -> (i32, i32) {
    %c0_i32 = arith.constant 0 : i32
    %c0_i32_0 = arith.constant 0 : i32
    return %c0_i32, %arg0 : i32, i32
  }
  func.func @transform_3(%arg0: i32) -> (i32, i32) {
    %c0_i32 = arith.constant 0 : i32
    %c0_i32_0 = arith.constant 0 : i32
    return %c0_i32, %arg0 : i32, i32
  }
  func.func @transform_4(%arg0: i32) -> (i32, i32) {
    %c0_i32 = arith.constant 0 : i32
    %c0_i32_0 = arith.constant 0 : i32
    return %c0_i32, %arg0 : i32, i32
  }
}

module attributes {stable_mosaic.version = 11 : i64} {
  func.func @_mm_bn_kernel(%arg0: i32, %arg1: memref<32x1152xbf16, #tpu.memory_space<vmem>>, %arg2: memref<1152x256xbf16, #tpu.memory_space<vmem>>, %arg3: memref<1x256xf32, #tpu.memory_space<vmem>>, %arg4: memref<1x256xf32, #tpu.memory_space<vmem>>, %arg5: memref<32x256xbf16, #tpu.memory_space<vmem>>) attributes {dimension_semantics = [#tpu.dimension_semantics<parallel>], iteration_bounds = array<i64: 1>, scalar_prefetch = 0 : i64, scratch_operands = 0 : i64, tpu.core_type = #tpu.core_type<tc>, window_params = [{pipeline_mode = #tpu.pipeline_mode<synchronous>, transform_indices = @transform_0, window_bounds = array<i64: 32, 1152>}, {transform_indices = @transform_1, window_bounds = array<i64: 1152, 256>}, {transform_indices = @transform_2, window_bounds = array<i64: 1, 256>}, {transform_indices = @transform_3, window_bounds = array<i64: 1, 256>}, {transform_indices = @transform_4, window_bounds = array<i64: 32, 256>}]} {
    %c0 = arith.constant 0 : index
    %c0_0 = arith.constant 0 : index
    %0 = vector.load %arg1[%c0, %c0_0] : memref<32x1152xbf16, #tpu.memory_space<vmem>>, vector<32x1152xbf16>
    %c0_1 = arith.constant 0 : index
    %c0_2 = arith.constant 0 : index
    %1 = vector.load %arg2[%c0_1, %c0_2] : memref<1152x256xbf16, #tpu.memory_space<vmem>>, vector<1152x256xbf16>
    %cst = arith.constant dense<0.000000e+00> : vector<32x256xf32>
    %2 = tpu.matmul %0, %1, %cst {dimension_numbers = #tpu.dot_dimension_numbers<[1], [0], [0], [1], [0, 0, 1, 1], [], []>} : vector<32x1152xbf16>, vector<1152x256xbf16>, vector<32x256xf32> -> vector<32x256xf32>
    %c0_3 = arith.constant 0 : index
    %c0_4 = arith.constant 0 : index
    %3 = vector.load %arg3[%c0_3, %c0_4] : memref<1x256xf32, #tpu.memory_space<vmem>>, vector<1x256xf32>
    %4 = vector.broadcast %3 : vector<1x256xf32> to vector<32x256xf32>
    %5 = arith.mulf %2, %4 : vector<32x256xf32>
    %c0_5 = arith.constant 0 : index
    %c0_6 = arith.constant 0 : index
    %6 = vector.load %arg4[%c0_5, %c0_6] : memref<1x256xf32, #tpu.memory_space<vmem>>, vector<1x256xf32>
    %7 = vector.broadcast %6 : vector<1x256xf32> to vector<32x256xf32>
    %8 = arith.addf %5, %7 : vector<32x256xf32>
    %9 = arith.truncf %8 : vector<32x256xf32> to vector<32x256xbf16>
    %c0_7 = arith.constant 0 : index
    %c0_8 = arith.constant 0 : index
    %10 = vector.load %arg5[%c0_7, %c0_8] : memref<32x256xbf16, #tpu.memory_space<vmem>>, vector<32x256xbf16>
    tpu.vector_store %arg5[%c0_7, %c0_8], %9 {strides = array<i32>} : memref<32x256xbf16, #tpu.memory_space<vmem>>, vector<32x256xbf16>,
    return
  }
  func.func @transform_0(%arg0: i32) -> (i32, i32) {
    %c0_i32 = arith.constant 0 : i32
    %c0_i32_0 = arith.constant 0 : i32
    %c0_i32_1 = arith.constant 0 : i32
    return %c0_i32, %c0_i32_0 : i32, i32
  }
  func.func @transform_1(%arg0: i32) -> (i32, i32) {
    %c0_i32 = arith.constant 0 : i32
    %c0_i32_0 = arith.constant 0 : i32
    return %c0_i32, %arg0 : i32, i32
  }
  func.func @transform_2(%arg0: i32) -> (i32, i32) {
    %c0_i32 = arith.constant 0 : i32
    %c0_i32_0 = arith.constant 0 : i32
    return %c0_i32, %arg0 : i32, i32
  }
  func.func @transform_3(%arg0: i32) -> (i32, i32) {
    %c0_i32 = arith.constant 0 : i32
    %c0_i32_0 = arith.constant 0 : i32
    return %c0_i32, %arg0 : i32, i32
  }
  func.func @transform_4(%arg0: i32) -> (i32, i32) {
    %c0_i32 = arith.constant 0 : i32
    %c0_i32_0 = arith.constant 0 : i32
    return %c0_i32, %arg0 : i32, i32
  }
}

module attributes {stable_mosaic.version = 11 : i64} {
  func.func @_mm_bn_kernel(%arg0: i32, %arg1: memref<8x2304xbf16, #tpu.memory_space<vmem>>, %arg2: memref<2304x256xbf16, #tpu.memory_space<vmem>>, %arg3: memref<1x256xf32, #tpu.memory_space<vmem>>, %arg4: memref<1x256xf32, #tpu.memory_space<vmem>>, %arg5: memref<8x256xbf16, #tpu.memory_space<vmem>>) attributes {dimension_semantics = [#tpu.dimension_semantics<parallel>], iteration_bounds = array<i64: 1>, scalar_prefetch = 0 : i64, scratch_operands = 0 : i64, tpu.core_type = #tpu.core_type<tc>, window_params = [{pipeline_mode = #tpu.pipeline_mode<synchronous>, transform_indices = @transform_0, window_bounds = array<i64: 8, 2304>}, {transform_indices = @transform_1, window_bounds = array<i64: 2304, 256>}, {transform_indices = @transform_2, window_bounds = array<i64: 1, 256>}, {transform_indices = @transform_3, window_bounds = array<i64: 1, 256>}, {transform_indices = @transform_4, window_bounds = array<i64: 8, 256>}]} {
    %c0 = arith.constant 0 : index
    %c0_0 = arith.constant 0 : index
    %0 = vector.load %arg1[%c0, %c0_0] : memref<8x2304xbf16, #tpu.memory_space<vmem>>, vector<8x2304xbf16>
    %c0_1 = arith.constant 0 : index
    %c0_2 = arith.constant 0 : index
    %1 = vector.load %arg2[%c0_1, %c0_2] : memref<2304x256xbf16, #tpu.memory_space<vmem>>, vector<2304x256xbf16>
    %cst = arith.constant dense<0.000000e+00> : vector<8x256xf32>
    %2 = tpu.matmul %0, %1, %cst {dimension_numbers = #tpu.dot_dimension_numbers<[1], [0], [0], [1], [0, 0, 1, 1], [], []>} : vector<8x2304xbf16>, vector<2304x256xbf16>, vector<8x256xf32> -> vector<8x256xf32>
    %c0_3 = arith.constant 0 : index
    %c0_4 = arith.constant 0 : index
    %3 = vector.load %arg3[%c0_3, %c0_4] : memref<1x256xf32, #tpu.memory_space<vmem>>, vector<1x256xf32>
    %4 = vector.broadcast %3 : vector<1x256xf32> to vector<8x256xf32>
    %5 = arith.mulf %2, %4 : vector<8x256xf32>
    %c0_5 = arith.constant 0 : index
    %c0_6 = arith.constant 0 : index
    %6 = vector.load %arg4[%c0_5, %c0_6] : memref<1x256xf32, #tpu.memory_space<vmem>>, vector<1x256xf32>
    %7 = vector.broadcast %6 : vector<1x256xf32> to vector<8x256xf32>
    %8 = arith.addf %5, %7 : vector<8x256xf32>
    %9 = arith.truncf %8 : vector<8x256xf32> to vector<8x256xbf16>
    %c0_7 = arith.constant 0 : index
    %c0_8 = arith.constant 0 : index
    %10 = vector.load %arg5[%c0_7, %c0_8] : memref<8x256xbf16, #tpu.memory_space<vmem>>, vector<8x256xbf16>
    tpu.vector_store %arg5[%c0_7, %c0_8], %9 {strides = array<i32>} : memref<8x256xbf16, #tpu.memory_space<vmem>>, vector<8x256xbf16>,
    return
  }
  func.func @transform_0(%arg0: i32) -> (i32, i32) {
    %c0_i32 = arith.constant 0 : i32
    %c0_i32_0 = arith.constant 0 : i32
    %c0_i32_1 = arith.constant 0 : i32
    return %c0_i32, %c0_i32_0 : i32, i32
  }
  func.func @transform_1(%arg0: i32) -> (i32, i32) {
    %c0_i32 = arith.constant 0 : i32
    %c0_i32_0 = arith.constant 0 : i32
    return %c0_i32, %arg0 : i32, i32
  }
  func.func @transform_2(%arg0: i32) -> (i32, i32) {
    %c0_i32 = arith.constant 0 : i32
    %c0_i32_0 = arith.constant 0 : i32
    return %c0_i32, %arg0 : i32, i32
  }
  func.func @transform_3(%arg0: i32) -> (i32, i32) {
    %c0_i32 = arith.constant 0 : i32
    %c0_i32_0 = arith.constant 0 : i32
    return %c0_i32, %arg0 : i32, i32
  }
  func.func @transform_4(%arg0: i32) -> (i32, i32) {
    %c0_i32 = arith.constant 0 : i32
    %c0_i32_0 = arith.constant 0 : i32
    return %c0_i32, %arg0 : i32, i32
  }
}

module attributes {stable_mosaic.version = 11 : i64} {
  func.func @_mm_bn_kernel(%arg0: i32, %arg1: memref<8x2304xbf16, #tpu.memory_space<vmem>>, %arg2: memref<2304x256xbf16, #tpu.memory_space<vmem>>, %arg3: memref<1x256xf32, #tpu.memory_space<vmem>>, %arg4: memref<1x256xf32, #tpu.memory_space<vmem>>, %arg5: memref<8x256xbf16, #tpu.memory_space<vmem>>) attributes {dimension_semantics = [#tpu.dimension_semantics<parallel>], iteration_bounds = array<i64: 2>, scalar_prefetch = 0 : i64, scratch_operands = 0 : i64, tpu.core_type = #tpu.core_type<tc>, window_params = [{pipeline_mode = #tpu.pipeline_mode<synchronous>, transform_indices = @transform_0, window_bounds = array<i64: 8, 2304>}, {transform_indices = @transform_1, window_bounds = array<i64: 2304, 256>}, {transform_indices = @transform_2, window_bounds = array<i64: 1, 256>}, {transform_indices = @transform_3, window_bounds = array<i64: 1, 256>}, {transform_indices = @transform_4, window_bounds = array<i64: 8, 256>}]} {
    %c0 = arith.constant 0 : index
    %c0_0 = arith.constant 0 : index
    %0 = vector.load %arg1[%c0, %c0_0] : memref<8x2304xbf16, #tpu.memory_space<vmem>>, vector<8x2304xbf16>
    %c0_1 = arith.constant 0 : index
    %c0_2 = arith.constant 0 : index
    %1 = vector.load %arg2[%c0_1, %c0_2] : memref<2304x256xbf16, #tpu.memory_space<vmem>>, vector<2304x256xbf16>
    %cst = arith.constant dense<0.000000e+00> : vector<8x256xf32>
    %2 = tpu.matmul %0, %1, %cst {dimension_numbers = #tpu.dot_dimension_numbers<[1], [0], [0], [1], [0, 0, 1, 1], [], []>} : vector<8x2304xbf16>, vector<2304x256xbf16>, vector<8x256xf32> -> vector<8x256xf32>
    %c0_3 = arith.constant 0 : index
    %c0_4 = arith.constant 0 : index
    %3 = vector.load %arg3[%c0_3, %c0_4] : memref<1x256xf32, #tpu.memory_space<vmem>>, vector<1x256xf32>
    %4 = vector.broadcast %3 : vector<1x256xf32> to vector<8x256xf32>
    %5 = arith.mulf %2, %4 : vector<8x256xf32>
    %c0_5 = arith.constant 0 : index
    %c0_6 = arith.constant 0 : index
    %6 = vector.load %arg4[%c0_5, %c0_6] : memref<1x256xf32, #tpu.memory_space<vmem>>, vector<1x256xf32>
    %7 = vector.broadcast %6 : vector<1x256xf32> to vector<8x256xf32>
    %8 = arith.addf %5, %7 : vector<8x256xf32>
    %9 = arith.truncf %8 : vector<8x256xf32> to vector<8x256xbf16>
    %c0_7 = arith.constant 0 : index
    %c0_8 = arith.constant 0 : index
    %10 = vector.load %arg5[%c0_7, %c0_8] : memref<8x256xbf16, #tpu.memory_space<vmem>>, vector<8x256xbf16>
    tpu.vector_store %arg5[%c0_7, %c0_8], %9 {strides = array<i32>} : memref<8x256xbf16, #tpu.memory_space<vmem>>, vector<8x256xbf16>,
    return
  }
  func.func @transform_0(%arg0: i32) -> (i32, i32) {
    %c0_i32 = arith.constant 0 : i32
    %c0_i32_0 = arith.constant 0 : i32
    %c0_i32_1 = arith.constant 0 : i32
    return %c0_i32, %c0_i32_0 : i32, i32
  }
  func.func @transform_1(%arg0: i32) -> (i32, i32) {
    %c0_i32 = arith.constant 0 : i32
    %c0_i32_0 = arith.constant 0 : i32
    return %c0_i32, %arg0 : i32, i32
  }
  func.func @transform_2(%arg0: i32) -> (i32, i32) {
    %c0_i32 = arith.constant 0 : i32
    %c0_i32_0 = arith.constant 0 : i32
    return %c0_i32, %arg0 : i32, i32
  }
  func.func @transform_3(%arg0: i32) -> (i32, i32) {
    %c0_i32 = arith.constant 0 : i32
    %c0_i32_0 = arith.constant 0 : i32
    return %c0_i32, %arg0 : i32, i32
  }
  func.func @transform_4(%arg0: i32) -> (i32, i32) {
    %c0_i32 = arith.constant 0 : i32
    %c0_i32_0 = arith.constant 0 : i32
    return %c0_i32, %arg0 : i32, i32
  }
}

module attributes {stable_mosaic.version = 11 : i64} {
  func.func @_mm_bn_kernel(%arg0: i32, %arg1: memref<2x4608xbf16, #tpu.memory_space<vmem>>, %arg2: memref<4608x256xbf16, #tpu.memory_space<vmem>>, %arg3: memref<1x256xf32, #tpu.memory_space<vmem>>, %arg4: memref<1x256xf32, #tpu.memory_space<vmem>>, %arg5: memref<2x256xbf16, #tpu.memory_space<vmem>>) attributes {dimension_semantics = [#tpu.dimension_semantics<parallel>], iteration_bounds = array<i64: 2>, scalar_prefetch = 0 : i64, scratch_operands = 0 : i64, tpu.core_type = #tpu.core_type<tc>, window_params = [{pipeline_mode = #tpu.pipeline_mode<synchronous>, transform_indices = @transform_0, window_bounds = array<i64: 2, 4608>}, {transform_indices = @transform_1, window_bounds = array<i64: 4608, 256>}, {transform_indices = @transform_2, window_bounds = array<i64: 1, 256>}, {transform_indices = @transform_3, window_bounds = array<i64: 1, 256>}, {transform_indices = @transform_4, window_bounds = array<i64: 2, 256>}]} {
    %c0 = arith.constant 0 : index
    %c0_0 = arith.constant 0 : index
    %0 = vector.load %arg1[%c0, %c0_0] : memref<2x4608xbf16, #tpu.memory_space<vmem>>, vector<2x4608xbf16>
    %c0_1 = arith.constant 0 : index
    %c0_2 = arith.constant 0 : index
    %1 = vector.load %arg2[%c0_1, %c0_2] : memref<4608x256xbf16, #tpu.memory_space<vmem>>, vector<4608x256xbf16>
    %cst = arith.constant dense<0.000000e+00> : vector<2x256xf32>
    %2 = tpu.matmul %0, %1, %cst {dimension_numbers = #tpu.dot_dimension_numbers<[1], [0], [0], [1], [0, 0, 1, 1], [], []>} : vector<2x4608xbf16>, vector<4608x256xbf16>, vector<2x256xf32> -> vector<2x256xf32>
    %c0_3 = arith.constant 0 : index
    %c0_4 = arith.constant 0 : index
    %3 = vector.load %arg3[%c0_3, %c0_4] : memref<1x256xf32, #tpu.memory_space<vmem>>, vector<1x256xf32>
    %4 = vector.broadcast %3 : vector<1x256xf32> to vector<2x256xf32>
    %5 = arith.mulf %2, %4 : vector<2x256xf32>
    %c0_5 = arith.constant 0 : index
    %c0_6 = arith.constant 0 : index
    %6 = vector.load %arg4[%c0_5, %c0_6] : memref<1x256xf32, #tpu.memory_space<vmem>>, vector<1x256xf32>
    %7 = vector.broadcast %6 : vector<1x256xf32> to vector<2x256xf32>
    %8 = arith.addf %5, %7 : vector<2x256xf32>
    %9 = arith.truncf %8 : vector<2x256xf32> to vector<2x256xbf16>
    %c0_7 = arith.constant 0 : index
    %c0_8 = arith.constant 0 : index
    %10 = vector.load %arg5[%c0_7, %c0_8] : memref<2x256xbf16, #tpu.memory_space<vmem>>, vector<2x256xbf16>
    tpu.vector_store %arg5[%c0_7, %c0_8], %9 {strides = array<i32>} : memref<2x256xbf16, #tpu.memory_space<vmem>>, vector<2x256xbf16>,
    return
  }
  func.func @transform_0(%arg0: i32) -> (i32, i32) {
    %c0_i32 = arith.constant 0 : i32
    %c0_i32_0 = arith.constant 0 : i32
    %c0_i32_1 = arith.constant 0 : i32
    return %c0_i32, %c0_i32_0 : i32, i32
  }
  func.func @transform_1(%arg0: i32) -> (i32, i32) {
    %c0_i32 = arith.constant 0 : i32
    %c0_i32_0 = arith.constant 0 : i32
    return %c0_i32, %arg0 : i32, i32
  }
  func.func @transform_2(%arg0: i32) -> (i32, i32) {
    %c0_i32 = arith.constant 0 : i32
    %c0_i32_0 = arith.constant 0 : i32
    return %c0_i32, %arg0 : i32, i32
  }
  func.func @transform_3(%arg0: i32) -> (i32, i32) {
    %c0_i32 = arith.constant 0 : i32
    %c0_i32_0 = arith.constant 0 : i32
    return %c0_i32, %arg0 : i32, i32
  }
  func.func @transform_4(%arg0: i32) -> (i32, i32) {
    %c0_i32 = arith.constant 0 : i32
    %c0_i32_0 = arith.constant 0 : i32
    return %c0_i32, %arg0 : i32, i32
  }
}

module attributes {stable_mosaic.version = 11 : i64} {
  func.func @_tail_kernel(%arg0: i32, %arg1: memref<2x512xbf16, #tpu.memory_space<vmem>>, %arg2: memref<512x512xbf16, #tpu.memory_space<vmem>>, %arg3: memref<1x512xf32, #tpu.memory_space<vmem>>, %arg4: memref<1x512xf32, #tpu.memory_space<vmem>>, %arg5: memref<512x512xbf16, #tpu.memory_space<vmem>>, %arg6: memref<1x512xf32, #tpu.memory_space<vmem>>, %arg7: memref<1x512xf32, #tpu.memory_space<vmem>>, %arg8: memref<512x128xf32, #tpu.memory_space<vmem>>, %arg9: memref<2x128xf32, #tpu.memory_space<vmem>>) attributes {dimension_semantics = [#tpu.dimension_semantics<arbitrary>], iteration_bounds = array<i64: 1>, scalar_prefetch = 0 : i64, scratch_operands = 0 : i64, tpu.core_type = #tpu.core_type<tc>, window_params = [{pipeline_mode = #tpu.pipeline_mode<synchronous>, transform_indices = @transform_0, window_bounds = array<i64: 2, 512>}, {pipeline_mode = #tpu.pipeline_mode<synchronous>, transform_indices = @transform_1, window_bounds = array<i64: 512, 512>}, {pipeline_mode = #tpu.pipeline_mode<synchronous>, transform_indices = @transform_2, window_bounds = array<i64: 1, 512>}, {pipeline_mode = #tpu.pipeline_mode<synchronous>, transform_indices = @transform_3, window_bounds = array<i64: 1, 512>}, {pipeline_mode = #tpu.pipeline_mode<synchronous>, transform_indices = @transform_4, window_bounds = array<i64: 512, 512>}, {pipeline_mode = #tpu.pipeline_mode<synchronous>, transform_indices = @transform_5, window_bounds = array<i64: 1, 512>}, {pipeline_mode = #tpu.pipeline_mode<synchronous>, transform_indices = @transform_6, window_bounds = array<i64: 1, 512>}, {pipeline_mode = #tpu.pipeline_mode<synchronous>, transform_indices = @transform_7, window_bounds = array<i64: 512, 128>}, {pipeline_mode = #tpu.pipeline_mode<synchronous>, transform_indices = @transform_8, window_bounds = array<i64: 2, 128>}]} {
    %c0 = arith.constant 0 : index
    %c0_0 = arith.constant 0 : index
    %0 = vector.load %arg1[%c0, %c0_0] : memref<2x512xbf16, #tpu.memory_space<vmem>>, vector<2x512xbf16>
    %c0_1 = arith.constant 0 : index
    %c0_2 = arith.constant 0 : index
    %1 = vector.load %arg2[%c0_1, %c0_2] : memref<512x512xbf16, #tpu.memory_space<vmem>>, vector<512x512xbf16>
    %cst = arith.constant dense<0.000000e+00> : vector<2x512xf32>
    %2 = tpu.matmul %0, %1, %cst {dimension_numbers = #tpu.dot_dimension_numbers<[1], [0], [0], [1], [0, 0, 1, 1], [], []>} : vector<2x512xbf16>, vector<512x512xbf16>, vector<2x512xf32> -> vector<2x512xf32>
    %c0_3 = arith.constant 0 : index
    %c0_4 = arith.constant 0 : index
    %3 = vector.load %arg3[%c0_3, %c0_4] : memref<1x512xf32, #tpu.memory_space<vmem>>, vector<1x512xf32>
    %4 = vector.broadcast %3 : vector<1x512xf32> to vector<2x512xf32>
    %5 = arith.mulf %2, %4 : vector<2x512xf32>
    %c0_5 = arith.constant 0 : index
    %c0_6 = arith.constant 0 : index
    %6 = vector.load %arg4[%c0_5, %c0_6] : memref<1x512xf32, #tpu.memory_space<vmem>>, vector<1x512xf32>
    %7 = vector.broadcast %6 : vector<1x512xf32> to vector<2x512xf32>
    %8 = arith.addf %5, %7 : vector<2x512xf32>
    %9 = arith.truncf %8 : vector<2x512xf32> to vector<2x512xbf16>
    %c0_7 = arith.constant 0 : index
    %c0_8 = arith.constant 0 : index
    %10 = vector.load %arg5[%c0_7, %c0_8] : memref<512x512xbf16, #tpu.memory_space<vmem>>, vector<512x512xbf16>
    %cst_9 = arith.constant dense<0.000000e+00> : vector<2x512xf32>
    %11 = tpu.matmul %9, %10, %cst_9 {dimension_numbers = #tpu.dot_dimension_numbers<[1], [0], [0], [1], [0, 0, 1, 1], [], []>} : vector<2x512xbf16>, vector<512x512xbf16>, vector<2x512xf32> -> vector<2x512xf32>
    %c0_10 = arith.constant 0 : index
    %c0_11 = arith.constant 0 : index
    %12 = vector.load %arg6[%c0_10, %c0_11] : memref<1x512xf32, #tpu.memory_space<vmem>>, vector<1x512xf32>
    %13 = vector.broadcast %12 : vector<1x512xf32> to vector<2x512xf32>
    %14 = arith.mulf %11, %13 : vector<2x512xf32>
    %c0_12 = arith.constant 0 : index
    %c0_13 = arith.constant 0 : index
    %15 = vector.load %arg7[%c0_12, %c0_13] : memref<1x512xf32, #tpu.memory_space<vmem>>, vector<1x512xf32>
    %16 = vector.broadcast %15 : vector<1x512xf32> to vector<2x512xf32>
    %17 = arith.addf %14, %16 : vector<2x512xf32>
    %c0_14 = arith.constant 0 : index
    %c0_15 = arith.constant 0 : index
    %18 = vector.load %arg8[%c0_14, %c0_15] : memref<512x128xf32, #tpu.memory_space<vmem>>, vector<512x128xf32>
    %cst_16 = arith.constant dense<0.000000e+00> : vector<2x128xf32>
    %19 = tpu.matmul %17, %18, %cst_16 {dimension_numbers = #tpu.dot_dimension_numbers<[1], [0], [0], [1], [0, 0, 1, 1], [], []>} : vector<2x512xf32>, vector<512x128xf32>, vector<2x128xf32> -> vector<2x128xf32>
    %c0_17 = arith.constant 0 : index
    %c0_18 = arith.constant 0 : index
    %20 = vector.load %arg9[%c0_17, %c0_18] : memref<2x128xf32, #tpu.memory_space<vmem>>, vector<2x128xf32>
    tpu.vector_store %arg9[%c0_17, %c0_18], %19 {strides = array<i32>} : memref<2x128xf32, #tpu.memory_space<vmem>>, vector<2x128xf32>,
    return
  }
  func.func @transform_0(%arg0: i32) -> (i32, i32) {
    %c0_i32 = arith.constant 0 : i32
    %c0_i32_0 = arith.constant 0 : i32
    %c0_i32_1 = arith.constant 0 : i32
    return %c0_i32, %c0_i32_0 : i32, i32
  }
  func.func @transform_1(%arg0: i32) -> (i32, i32) {
    %c0_i32 = arith.constant 0 : i32
    %c0_i32_0 = arith.constant 0 : i32
    %c0_i32_1 = arith.constant 0 : i32
    return %c0_i32, %c0_i32_0 : i32, i32
  }
  func.func @transform_2(%arg0: i32) -> (i32, i32) {
    %c0_i32 = arith.constant 0 : i32
    %c0_i32_0 = arith.constant 0 : i32
    %c0_i32_1 = arith.constant 0 : i32
    return %c0_i32, %c0_i32_0 : i32, i32
  }
  func.func @transform_3(%arg0: i32) -> (i32, i32) {
    %c0_i32 = arith.constant 0 : i32
    %c0_i32_0 = arith.constant 0 : i32
    %c0_i32_1 = arith.constant 0 : i32
    return %c0_i32, %c0_i32_0 : i32, i32
  }
  func.func @transform_4(%arg0: i32) -> (i32, i32) {
    %c0_i32 = arith.constant 0 : i32
    %c0_i32_0 = arith.constant 0 : i32
    %c0_i32_1 = arith.constant 0 : i32
    return %c0_i32, %c0_i32_0 : i32, i32
  }
  func.func @transform_5(%arg0: i32) -> (i32, i32) {
    %c0_i32 = arith.constant 0 : i32
    %c0_i32_0 = arith.constant 0 : i32
    %c0_i32_1 = arith.constant 0 : i32
    return %c0_i32, %c0_i32_0 : i32, i32
  }
  func.func @transform_6(%arg0: i32) -> (i32, i32) {
    %c0_i32 = arith.constant 0 : i32
    %c0_i32_0 = arith.constant 0 : i32
    %c0_i32_1 = arith.constant 0 : i32
    return %c0_i32, %c0_i32_0 : i32, i32
  }
  func.func @transform_7(%arg0: i32) -> (i32, i32) {
    %c0_i32 = arith.constant 0 : i32
    %c0_i32_0 = arith.constant 0 : i32
    %c0_i32_1 = arith.constant 0 : i32
    return %c0_i32, %c0_i32_0 : i32, i32
  }
  func.func @transform_8(%arg0: i32) -> (i32, i32) {
    %c0_i32 = arith.constant 0 : i32
    %c0_i32_0 = arith.constant 0 : i32
    %c0_i32_1 = arith.constant 0 : i32
    return %c0_i32, %c0_i32_0 : i32, i32
  }
}

</mosaic_0001>

<bundles_post_ra>
// kernel: _lambda_.7
= control target key start
LH: loop header
LB: loop body
LE: loop exit
PB: predicated region body
PF: predicated region fallthrough
CT: control target
= control target key end

     0   :  { %9 = vsyncpa [#allocation3], 0  ;;  %s742_s0 = inlined_call_operand.vmem [shape: bf16[128,18], index: 0, kind: input, shape index: {}]   ;;  %s743_s1 = inlined_call_operand.hbm [shape: bf16[18,64], index: 1, kind: input, shape index: {}]   ;;  %s744_s2 = inlined_call_operand.hbm [shape: f32[1,64], index: 2, kind: input, shape index: {}]   ;;  %s745_s3 = inlined_call_operand.hbm [shape: f32[1,64], index: 3, kind: input, shape index: {}]   ;;  %s746_s4 = inlined_call_operand.vmem [shape: bf16[128,64], index: 4, kind: output, shape index: {}]  }
   0x1   :  { %10 = vsyncpa [#allocation5], 0  ;;  %s555_s15 = smov [#allocation4]   ;;  %s556_s17 = smov [#allocation2]  }
   0x2   :  { %s31_s16 = sshll.u32 %s555_s15, 4  ;;  %s18_s18 = sshll.u32 %s556_s17, 4  ;;  %s32_s16 = int_to_ptr.vmem [resolvable:$true] %s31_s16  ;;  %s585_s18 = int_to_ptr.vmem [resolvable:$true] %s18_s18 }
   0x3   :  { %s485_s21 = scalar_lea.hbm %s744_s2, 16 }
   0x4   :  { %p486_p0 = scmp.ne.s32.totalorder %s744_s2, %s485_s21  ;;  %p489_p1 = scmp.lt.u32.totalorder %s485_s21, %s744_s2 }
   0x6   :  { %p491_p2 = pnand %p489_p1, %p486_p0 }
   0x8   :  { %494 = shalt.err (!%p491_p2)
}
   0x9   :  { %s495_s26 = scalar_lea.vmem %s32_s16, 16  ;;  %s499_s27 = scalar_lea.vmem %s32_s16, 32 }
   0xa   :  { %p496_p3 = scmp.ne.s32.totalorder %s32_s16, %s495_s26  ;;  %p500_p4 = scmp.lt.s32.totalorder %s32_s16, %s32_s16 }
   0xb   :  { %p501_p5 = scmp.lt.s32.totalorder %s499_s27, %s495_s26 }
   0xd   :  { %p502_p6 = por %p501_p5, %p500_p4 }
   0xf   :  { %p503_p7 = pnand %p502_p6, %p496_p3 }
  0x11   :  { %506 = shalt.err (!%p503_p7)
}
  0x12   :  { %34 = dma.hbm_to_vmem [thread:$0]  %s744_s2, 16, %s32_s16, [#allocation5]  }
  0x13   :  { %s507_s6 = scalar_lea.hbm %s743_s1, 192 }
  0x14   :  { %p508_p8 = scmp.ne.s32.totalorder %s743_s1, %s507_s6  ;;  %p511_p9 = scmp.lt.u32.totalorder %s507_s6, %s743_s1 }
  0x16   :  { %p513_p10 = pnand %p511_p9, %p508_p8 }
  0x18   :  { %516 = shalt.err (!%p513_p10)
}
  0x19   :  { %s517_s11 = scalar_lea.vmem %s585_s18, 192  ;;  %p522_p12 = scmp.lt.s32.totalorder %s585_s18, %s585_s18 }
  0x1a   :  { %p518_p11 = scmp.ne.s32.totalorder %s585_s18, %s517_s11  ;;  %p523_p13 = scmp.lt.s32.totalorder %s517_s11, %s517_s11 }
  0x1c   :  { %p524_p0 = por %p523_p13, %p522_p12 }
  0x1e   :  { %p525_p1 = pnand %p524_p0, %p518_p11 }
  0x20   :  { %528 = shalt.err (!%p525_p1)
}
  0x21   :  { %s557_s2 = smov 64   ;;  %s558_s12 = smov 4  }
  0x22   :  { %24 = dma.hbm_to_vmem [thread:$0]  %s743_s1, 192, %s585_s18, [#allocation3], %s557_s2, %s557_s2, %s558_s12  }
  0x23   :  { %s559_s15 = smov [#allocation6]   ;;  %s529_s20 = scalar_lea.hbm %s745_s3, 16 }
  0x24   :  { %s41_s16 = sshll.u32 %s559_s15, 4  ;;  %p530_p2 = scmp.ne.s32.totalorder %s745_s3, %s529_s20  ;;  %s42_s16 = int_to_ptr.vmem [resolvable:$true] %s41_s16 }
  0x25   :  { %p533_p3 = scmp.lt.u32.totalorder %s529_s20, %s745_s3 }
  0x27   :  { %p535_p4 = pnand %p533_p3, %p530_p2 }
  0x29   :  { %538 = shalt.err (!%p535_p4)
}
  0x2a   :  { %s539_s25 = scalar_lea.vmem %s42_s16, 16  ;;  %s543_s1 = scalar_lea.vmem %s42_s16, 32 }
  0x2b   :  { %p540_p5 = scmp.ne.s32.totalorder %s42_s16, %s539_s25  ;;  %p544_p6 = scmp.lt.s32.totalorder %s42_s16, %s42_s16 }
  0x2c   :  { %p545_p7 = scmp.lt.s32.totalorder %s543_s1, %s539_s25 }
  0x2e   :  { %p546_p8 = por %p545_p7, %p544_p6 }
  0x30   :  { %p547_p9 = pnand %p546_p8, %p540_p5 }
  0x32   :  { %550 = shalt.err (!%p547_p9)
}
  0x33   :  { %44 = dma.hbm_to_vmem [thread:$0]  %s745_s3, 16, %s42_s16, [#allocation5]  }
  0x34   :  { %551 = dma.done.wait [#allocation3], 192  }
  0x35   :  { %552 = vsyncadd [#allocation3], 4294967104 }
  0x36   :  { %553 = dma.done.wait [#allocation5], 32  }
  0x37   :  { %554 = vsyncadd [#allocation5], 4294967264  ;;  %vm148_vm0 = vcmask 1040384   ;;  %v475_v0 = vld [vmem:[#allocation2] sm:$0xff]   ;;  %vm123_vm1 = vcmask 146432   ;;  %v479_v5 = vld [vmem:[%s742_s0 + $0x8] sm:$0xff]  }
  0x38   :  { %v476_v1 = vld [vmem:[#allocation2 + $0x8] ss:$0 sps:$4 sm:$0x11]   ;;  %v477_v2 = vld [vmem:[%s742_s0] sm:$0xff]   ;;  %444 = vmatprep.subr.bf16.mxu0 %v475_v0  ;;  %464 = vmatprep.subr.bf16.mxu1 %v475_v0  ;;  %v481_v7 = vld [vmem:[%s742_s0 + $0x10] sm:$0xff]   ;;  %vm359_vm2 = vcmask 519168  }
  0x39   :  { %445 = vmatpush3.bf16.msra.mxu0 %v475_v0  ;;  %466 = vmatpush3.bf16.msra.mxu1 %v475_v0  ;;  %v478_v3 = vld [vmem:[%s742_s0 + $0x20] sm:$0xff]   ;;  %v150_v4 = vsel %vm148_vm0, %v476_v1, 0  ;;  %v480_v6 = vld [vmem:[%s742_s0 + $0x28] sm:$0xff]   ;;  %v482_v8 = vld [vmem:[%s742_s0 + $0x30] sm:$0xff]  }
  0x3a   :  { %468 = vmatprep.subr.msk.bf16.mxu0 %vm148_vm0, %v476_v1  ;;  %469 = vmatprep.subr.msk.bf16.mxu1 %vm148_vm0, %v476_v1  ;;  %v483_v9 = vld [vmem:[%s742_s0 + $0x18] sm:$0xff]   ;;  %v400_v11 = vld [vmem:[#allocation4] ss:$0 sm:$0xff]  ;;  %v660_v13 = vld [vmem:[#allocation6] ss:$0 sm:$0xff] }
  0x3b   :  { %448 = vmatprep.mubr.msk.bf16.mxu0 %vm123_vm1, %v477_v2  ;;  %456 = vmatprep.mubr.msk.bf16.mxu1 %vm123_vm1, %v478_v3  ;;  %v484_v10 = vld [vmem:[%s742_s0 + $0x38] sm:$0xff]  }
  0x3d   :  { %447 = vmatpush3.bf16.msra.mxu0 %v150_v4  ;;  %467 = vmatpush3.bf16.msra.mxu1 %v150_v4 }
  0x40   :  { %449 = vmatmul.mubr.msk.bf16.vlgmr.msra.gmra.mrb[0].mxu0 %vm123_vm1, %v479_v5  ;;  %457 = vmatmul.mubr.msk.bf16.vlgmr.msra.gmra.mrb[0].mxu1 %vm123_vm1, %v480_v6 }
  0x41   :  { %452 = vmatprep.mubr.msk.bf16.mxu0 %vm123_vm1, %v481_v7  ;;  %460 = vmatprep.mubr.msk.bf16.mxu1 %vm123_vm1, %v482_v8 }
  0x48   :  { %453 = vmatmul.mubr.msk.bf16.gmra.mrb[4].mxu0 %vm123_vm1, %v483_v9  ;;  %461 = vmatmul.mubr.msk.bf16.gmra.mrb[4].mxu1 %vm123_vm1, %v484_v10 }
 0x113   :  { %v450_v12 = vpop.f32.mrb[0].mxu0  ;;  %v458_v14 = vpop.f32.mrb[0].mxu1 }
 0x114   :  { %v258_v15 = vmul.f32 %v450_v12, %v400_v11  ;;  %v266_v16 = vmul.f32 %v458_v14, %v400_v11  ;;  %v186_v17 = vpop.f32.mrb[1].mxu0  ;;  %v218_v18 = vpop.f32.mrb[1].mxu1 }
 0x115   :  { %v256_v19 = vmul.f32 %v400_v11, %v186_v17  ;;  %v264_v20 = vmul.f32 %v400_v11, %v218_v18  ;;  %v451_v21 = vpop.f32.mrb[2].mxu0  ;;  %v459_v22 = vpop.f32.mrb[2].mxu1 }
 0x116   :  { %v281_v23 = vadd.f32 %v660_v13, %v258_v15  ;;  %v289_v24 = vadd.f32 %v660_v13, %v266_v16  ;;  %v259_v25 = vmul.f32 %v451_v21, %v400_v11  ;;  %v267_v26 = vmul.f32 %v459_v22, %v400_v11  ;;  %v189_v27 = vpop.f32.mrb[3].mxu0  ;;  %v221_v28 = vpop.f32.mrb[3].mxu1 }
 0x117   :  { %v279_v29 = vadd.f32 %v660_v13, %v256_v19  ;;  %v287_v30 = vadd.f32 %v660_v13, %v264_v20  ;;  %v257_v31 = vmul.f32 %v400_v11, %v189_v27  ;;  %v265_v32 = vmul.f32 %v400_v11, %v221_v28 }
 0x118   :  { %v420_v33 = vpack.c.bf16 %v281_v23, %v281_v23  ;;  %v428_v34 = vpack.c.bf16 %v289_v24, %v289_v24  ;;  %v282_v35 = vadd.f32 %v660_v13, %v259_v25  ;;  %v290_v36 = vadd.f32 %v660_v13, %v267_v26 }
 0x119   :  { %v418_v37 = vpack.c.bf16 %v279_v29, %v279_v29  ;;  %v426_v38 = vpack.c.bf16 %v287_v30, %v287_v30  ;;  %v280_v39 = vadd.f32 %v660_v13, %v257_v31  ;;  %v288_v40 = vadd.f32 %v660_v13, %v265_v32 }
 0x11a   :  { %362 = vst.msk [vmem:[%s746_s4 + $0x8] sm:$0xf] %vm359_vm2, %v420_v33  ;;  %370 = vst.msk [vmem:[%s746_s4 + $0x28] sm:$0xf] %vm359_vm2, %v428_v34  ;;  %v421_v41 = vpack.c.bf16 %v282_v35, %v282_v35  ;;  %v429_v42 = vpack.c.bf16 %v290_v36, %v290_v36 }
 0x11b   :  { %360 = vst.msk [vmem:[%s746_s4] sm:$0xf] %vm359_vm2, %v418_v37  ;;  %368 = vst.msk [vmem:[%s746_s4 + $0x20] sm:$0xf] %vm359_vm2, %v426_v38  ;;  %v419_v43 = vpack.c.bf16 %v280_v39, %v280_v39  ;;  %v427_v44 = vpack.c.bf16 %v288_v40, %v288_v40  ;;  %v454_v45 = vpop.f32.mrb[4].mxu0  ;;  %v462_v46 = vpop.f32.mrb[4].mxu1 }
 0x11c   :  { %363 = vst.msk [vmem:[%s746_s4 + $0xc] sm:$0xf] %vm359_vm2, %v421_v41  ;;  %371 = vst.msk [vmem:[%s746_s4 + $0x2c] sm:$0xf] %vm359_vm2, %v429_v42  ;;  %v262_v47 = vmul.f32 %v454_v45, %v400_v11  ;;  %v270_v48 = vmul.f32 %v462_v46, %v400_v11  ;;  %v202_v49 = vpop.f32.mrb[5].mxu0  ;;  %v234_v50 = vpop.f32.mrb[5].mxu1 }
 0x11d   :  { %361 = vst.msk [vmem:[%s746_s4 + $0x4] sm:$0xf] %vm359_vm2, %v419_v43  ;;  %369 = vst.msk [vmem:[%s746_s4 + $0x24] sm:$0xf] %vm359_vm2, %v427_v44  ;;  %v260_v51 = vmul.f32 %v400_v11, %v202_v49  ;;  %v268_v52 = vmul.f32 %v400_v11, %v234_v50  ;;  %v455_v53 = vpop.f32.mrb[6].mxu0  ;;  %v463_v54 = vpop.f32.mrb[6].mxu1 }
 0x11e   :  { %v285_v55 = vadd.f32 %v660_v13, %v262_v47  ;;  %v293_v56 = vadd.f32 %v660_v13, %v270_v48  ;;  %v263_v57 = vmul.f32 %v455_v53, %v400_v11  ;;  %v271_v58 = vmul.f32 %v463_v54, %v400_v11  ;;  %v205_v59 = vpop.f32.mrb[7].mxu0  ;;  %v237_v60 = vpop.f32.mrb[7].mxu1 }
 0x11f   :  { %v283_v61 = vadd.f32 %v660_v13, %v260_v51  ;;  %v291_v62 = vadd.f32 %v660_v13, %v268_v52  ;;  %v261_v63 = vmul.f32 %v400_v11, %v205_v59  ;;  %v269_v0 = vmul.f32 %v400_v11, %v237_v60 }
 0x120   :  { %v424_v1 = vpack.c.bf16 %v285_v55, %v285_v55  ;;  %v432_v2 = vpack.c.bf16 %v293_v56, %v293_v56  ;;  %v286_v3 = vadd.f32 %v660_v13, %v263_v57  ;;  %v294_v4 = vadd.f32 %v660_v13, %v271_v58 }
 0x121   :  { %v422_v5 = vpack.c.bf16 %v283_v61, %v283_v61  ;;  %v430_v6 = vpack.c.bf16 %v291_v62, %v291_v62  ;;  %v284_v7 = vadd.f32 %v660_v13, %v261_v63  ;;  %v292_v8 = vadd.f32 %v660_v13, %v269_v0 }
 0x122   :  { %366 = vst.msk [vmem:[%s746_s4 + $0x18] sm:$0xf] %vm359_vm2, %v424_v1  ;;  %374 = vst.msk [vmem:[%s746_s4 + $0x38] sm:$0xf] %vm359_vm2, %v432_v2  ;;  %v425_v9 = vpack.c.bf16 %v286_v3, %v286_v3  ;;  %v433_v10 = vpack.c.bf16 %v294_v4, %v294_v4 }
 0x123   :  { %364 = vst.msk [vmem:[%s746_s4 + $0x10] sm:$0xf] %vm359_vm2, %v422_v5  ;;  %372 = vst.msk [vmem:[%s746_s4 + $0x30] sm:$0xf] %vm359_vm2, %v430_v6  ;;  %v423_v11 = vpack.c.bf16 %v284_v7, %v284_v7  ;;  %v431_v12 = vpack.c.bf16 %v292_v8, %v292_v8 }
 0x124   :  { %367 = vst.msk [vmem:[%s746_s4 + $0x1c] sm:$0xf] %vm359_vm2, %v425_v9  ;;  %375 = vst.msk [vmem:[%s746_s4 + $0x3c] sm:$0xf] %vm359_vm2, %v433_v10 }
 0x125   :  { %365 = vst.msk [vmem:[%s746_s4 + $0x14] sm:$0xf] %vm359_vm2, %v423_v11  ;;  %373 = vst.msk [vmem:[%s746_s4 + $0x34] sm:$0xf] %vm359_vm2, %v431_v12 }
 0x126   :  { %380 = vsyncpa [#allocation3], 1 }
 0x127   :  { %381 = vsyncpa [#allocation5], 1 }

// kernel: _lambda_.8
= control target key start
LH: loop header
LB: loop body
LE: loop exit
PB: predicated region body
PF: predicated region fallthrough
CT: control target
= control target key end

     0   :  { %vm368_vm0 = vcmask 523264   ;;  %s936_s1 = inlined_call_operand.vmem [shape: bf16[576,128], index: 1, kind: input, shape index: {}]   ;;  %s937_s0 = inlined_call_operand.vmem [shape: bf16[32,576], index: 0, kind: input, shape index: {}]   ;;  %s938_s2 = inlined_call_operand.vmem [shape: f32[1,128], index: 2, kind: input, shape index: {}]   ;;  %s939_s3 = inlined_call_operand.vmem [shape: f32[1,128], index: 3, kind: input, shape index: {}]   ;;  %s940_s4 = inlined_call_operand.vmem [shape: bf16[32,128], index: 4, kind: output, shape index: {}]  }
   0x1   :  { %v711_v0 = vld [vmem:[%s936_s1 + $0x40] sm:$0xff]   ;;  %v715_v4 = vld [vmem:[%s936_s1 + $0x48] sm:$0xff]   ;;  %v719_v8 = vld [vmem:[%s936_s1 + $0x50] sm:$0xff]  }
   0x2   :  { %v712_v1 = vld [vmem:[%s936_s1 + $0xc0] sm:$0xff]   ;;  %637 = vmatprep.subr.bf16.mxu0 %v711_v0  ;;  %v716_v5 = vld [vmem:[%s936_s1 + $0xc8] sm:$0xff]   ;;  %v720_v9 = vld [vmem:[%s936_s1 + $0xd0] sm:$0xff]  }
   0x3   :  { %v713_v2 = vld [vmem:[%s936_s1] sm:$0xff]   ;;  %665 = vmatprep.subr.bf16.mxu1 %v712_v1  ;;  %v717_v6 = vld [vmem:[%s936_s1 + $0x8] sm:$0xff]   ;;  %v721_v10 = vld [vmem:[%s936_s1 + $0x10] sm:$0xff]  }
   0x4   :  { %v714_v3 = vld [vmem:[%s936_s1 + $0x80] sm:$0xff]   ;;  %638 = vmatpush3.bf16.msra.mxu0 %v713_v2  ;;  %v718_v7 = vld [vmem:[%s936_s1 + $0x88] sm:$0xff]   ;;  %v722_v11 = vld [vmem:[%s936_s1 + $0x90] sm:$0xff]  }
   0x5   :  { %666 = vmatpush3.bf16.msra.mxu1 %v714_v3  ;;  %639 = vmatprep.subr.bf16.mxu0 %v715_v4  ;;  %v723_v12 = vld [vmem:[%s936_s1 + $0x58] sm:$0xff]   ;;  %v727_v16 = vld [vmem:[%s936_s1 + $0x60] sm:$0xff]   ;;  %v731_v20 = vld [vmem:[%s936_s1 + $0x68] sm:$0xff]  }
   0x6   :  { %667 = vmatprep.subr.bf16.mxu1 %v716_v5  ;;  %v724_v13 = vld [vmem:[%s936_s1 + $0xd8] sm:$0xff]   ;;  %v728_v17 = vld [vmem:[%s936_s1 + $0xe0] sm:$0xff]   ;;  %v732_v21 = vld [vmem:[%s936_s1 + $0xe8] sm:$0xff]  }
   0x7   :  { %v725_v14 = vld [vmem:[%s936_s1 + $0x18] sm:$0xff]   ;;  %v729_v18 = vld [vmem:[%s936_s1 + $0x20] sm:$0xff]   ;;  %v733_v22 = vld [vmem:[%s936_s1 + $0x28] sm:$0xff]  }
   0x8   :  { %640 = vmatpush3.bf16.msra.mxu0 %v717_v6  ;;  %v726_v15 = vld [vmem:[%s936_s1 + $0x98] sm:$0xff]   ;;  %v730_v19 = vld [vmem:[%s936_s1 + $0xa0] sm:$0xff]   ;;  %v734_v23 = vld [vmem:[%s936_s1 + $0xa8] sm:$0xff]  }
   0x9   :  { %668 = vmatpush3.bf16.msra.mxu1 %v718_v7  ;;  %641 = vmatprep.subr.bf16.mxu0 %v719_v8  ;;  %v735_v24 = vld [vmem:[%s936_s1 + $0x70] sm:$0xff]   ;;  %v739_v28 = vld [vmem:[%s936_s1 + $0x78] sm:$0xff]   ;;  %v748_v35 = vld [vmem:[%s937_s0 + $0xc] ss:$20 sps:$4 sm:$0xff]  }
   0xa   :  { %669 = vmatprep.subr.bf16.mxu1 %v720_v9  ;;  %v736_v25 = vld [vmem:[%s936_s1 + $0xf0] sm:$0xff]   ;;  %v740_v29 = vld [vmem:[%s936_s1 + $0xf8] sm:$0xff]   ;;  %v749_v36 = vld [vmem:[%s936_s1 + $0x100] sm:$0xff]   ;;  %456 = vmatprep.mubr.bf16.mxu1 %v748_v35 }
   0xb   :  { %v737_v26 = vld [vmem:[%s936_s1 + $0x30] sm:$0xff]   ;;  %v741_v30 = vld [vmem:[%s936_s1 + $0x38] sm:$0xff]   ;;  %v750_v37 = vld [vmem:[%s936_s1 + $0x108] sm:$0xff]  }
   0xc   :  { %642 = vmatpush3.bf16.msra.mxu0 %v721_v10  ;;  %v738_v27 = vld [vmem:[%s936_s1 + $0xb0] sm:$0xff]   ;;  %v742_v31 = vld [vmem:[%s936_s1 + $0xb8] sm:$0xff]   ;;  %v751_v38 = vld [vmem:[%s937_s0 + $0x2c] ss:$20 sps:$4 sm:$0xff]  }
   0xd   :  { %670 = vmatpush3.bf16.msra.mxu1 %v722_v11  ;;  %643 = vmatprep.subr.bf16.mxu0 %v723_v12  ;;  %v743_v32 = vld [vmem:[%s937_s0] ss:$20 sps:$4 sm:$0xff]   ;;  %v745_v33 = vld [vmem:[%s937_s0 + $0x4] ss:$20 sps:$4 sm:$0xff]   ;;  %v746_v34 = vld [vmem:[%s937_s0 + $0x8] ss:$20 sps:$4 sm:$0xff]  }
   0xe   :  { %671 = vmatprep.subr.bf16.mxu1 %v724_v13  ;;  %407 = vmatprep.mubr.bf16.mxu0 %v745_v33  ;;  %v753_v39 = vld [vmem:[%s937_s0 + $0x34] ss:$20 sps:$4 sm:$0xff]   ;;  %v756_v42 = vld [vmem:[%s937_s0 + $0x30] ss:$20 sps:$4 sm:$0xff]   ;;  %v758_v44 = vld [vmem:[%s936_s1 + $0x118] sm:$0xff]  }
   0xf   :  { %v755_v40 = vld [vmem:[%s937_s0 + $0x28] ss:$20 sps:$4 sm:$0xff]   ;;  %v757_v41 = vld [vmem:[%s936_s1 + $0x110] sm:$0xff]   ;;  %v760_v45 = vld [vmem:[%s937_s0 + $0x38] ss:$20 sps:$4 sm:$0xff]  }
  0x10   :  { %644 = vmatpush3.bf16.msra.mxu0 %v725_v14  ;;  %v759_v43 = vld [vmem:[%s937_s0 + $0x10] ss:$20 sps:$4 sm:$0xff]   ;;  %v616_v11 = vld [vmem:[%s938_s2] ss:$0 sm:$0xff] }
  0x11   :  { %672 = vmatpush3.bf16.msra.mxu1 %v726_v15  ;;  %645 = vmatprep.subr.bf16.mxu0 %v727_v16 }
  0x12   :  { %673 = vmatprep.subr.bf16.mxu1 %v728_v17 }
  0x14   :  { %646 = vmatpush3.bf16.msra.mxu0 %v729_v18 }
  0x15   :  { %674 = vmatpush3.bf16.msra.mxu1 %v730_v19  ;;  %647 = vmatprep.subr.bf16.mxu0 %v731_v20  ;;  %v617_v19 = vld [vmem:[%s939_s3] ss:$0 sm:$0xff] }
  0x16   :  { %675 = vmatprep.subr.bf16.mxu1 %v732_v21 }
  0x18   :  { %648 = vmatpush3.bf16.msra.mxu0 %v733_v22 }
  0x19   :  { %676 = vmatpush3.bf16.msra.mxu1 %v734_v23  ;;  %649 = vmatprep.subr.bf16.mxu0 %v735_v24 }
  0x1a   :  { %677 = vmatprep.subr.bf16.mxu1 %v736_v25 }
  0x1c   :  { %650 = vmatpush3.bf16.msra.mxu0 %v737_v26 }
  0x1d   :  { %678 = vmatpush3.bf16.msra.mxu1 %v738_v27  ;;  %651 = vmatprep.subr.bf16.mxu0 %v739_v28 }
  0x1e   :  { %679 = vmatprep.subr.bf16.mxu1 %v740_v29 }
  0x20   :  { %652 = vmatpush3.bf16.msra.mxu0 %v741_v30 }
  0x21   :  { %680 = vmatpush3.bf16.msra.mxu1 %v742_v31  ;;  %699 = vmatprep.subr.bf16.mxu0 %v749_v36 }
  0x23   :  { %408 = vmatmul.mubr.bf16.vlgmr.msra.gmra.mrb[0].mxu0 %v743_v32 }
  0x24   :  { %457 = vmatmul.mubr.bf16.vlgmr.msra.gmra.mrb[0].mxu1 %v746_v34  ;;  %700 = vmatpush3.bf16.msra.mxu0 %v749_v36 }
  0x25   :  { %701 = vmatprep.subr.bf16.mxu0 %v750_v37  ;;  %415 = vmatprep.mubr.bf16.mxu0 %v751_v38 }
  0x26   :  { %464 = vmatprep.mubr.bf16.mxu1 %v753_v39 }
  0x28   :  { %702 = vmatpush3.bf16.msra.mxu0 %v750_v37 }
  0x29   :  { %703 = vmatprep.subr.bf16.mxu0 %v757_v41 }
  0x2b   :  { %416 = vmatmul.mubr.bf16.gmra.mrb[4].mxu0 %v755_v40 }
  0x2c   :  { %465 = vmatmul.mubr.bf16.gmra.mrb[4].mxu1 %v756_v42  ;;  %707 = vmatprep.mubr.msk.bf16.mxu0 %vm368_vm0, %v759_v43 }
  0x2d   :  { %704 = vmatpush3.bf16.msra.mxu0 %v757_v41 }
  0x2e   :  { %705 = vmatprep.subr.bf16.mxu0 %v758_v44 }
  0x31   :  { %706 = vmatpush3.bf16.msra.mxu0 %v758_v44 }
  0x34   :  { %708 = vmatmul.mubr.msk.bf16.vlgmr.msra.gmra.mrb[8].mxu0 %vm368_vm0, %v760_v45 }
  0xf6   :  { %v653_v46 = vpop.f32.mrb[0].mxu0 }
  0xf7   :  { %v681_v47 = vpop.f32.mrb[0].mxu1  ;;  %v654_v48 = vpop.f32.mrb[1].mxu0 }
  0xf8   :  { %v655_v49 = vadd.f32 %v654_v48, %v653_v46  ;;  %v682_v50 = vpop.f32.mrb[1].mxu1  ;;  %v656_v51 = vpop.f32.mrb[2].mxu0 }
  0xf9   :  { %v683_v52 = vadd.f32 %v682_v50, %v681_v47  ;;  %v684_v53 = vpop.f32.mrb[2].mxu1  ;;  %v657_v54 = vpop.f32.mrb[3].mxu0 }
  0xfa   :  { %v658_v55 = vadd.f32 %v657_v54, %v656_v51  ;;  %v685_v56 = vpop.f32.mrb[3].mxu1 }
  0xfb   :  { %v686_v57 = vadd.f32 %v685_v56, %v684_v53  ;;  %v459_v58 = vadd.f32 %v683_v52, %v655_v49 }
  0xfd   :  { %v462_v59 = vadd.f32 %v686_v57, %v658_v55 }
  0xfe   :  { %v659_v60 = vpop.f32.mrb[4].mxu0 }
  0xff   :  { %v687_v61 = vpop.f32.mrb[4].mxu1  ;;  %v660_v62 = vpop.f32.mrb[5].mxu0 }
 0x100   :  { %v661_v63 = vadd.f32 %v660_v62, %v659_v60  ;;  %v688_v0 = vpop.f32.mrb[5].mxu1  ;;  %v662_v1 = vpop.f32.mrb[6].mxu0 }
 0x101   :  { %v689_v2 = vadd.f32 %v688_v0, %v687_v61  ;;  %v690_v3 = vpop.f32.mrb[6].mxu1  ;;  %v663_v4 = vpop.f32.mrb[7].mxu0 }
 0x102   :  { %v664_v5 = vadd.f32 %v663_v4, %v662_v1  ;;  %v691_v6 = vpop.f32.mrb[7].mxu1 }
 0x103   :  { %v692_v7 = vadd.f32 %v691_v6, %v690_v3  ;;  %v467_v8 = vadd.f32 %v689_v2, %v661_v63 }
 0x105   :  { %v470_v9 = vadd.f32 %v692_v7, %v664_v5 }
 0x107   :  { %v709_v10 = vpop.f32.mrb[8].mxu0 }
 0x108   :  { %v516_v12 = vadd.f32 %v709_v10, %v467_v8  ;;  %v507_v13 = vpop.f32.mrb[9].mxu0 }
 0x109   :  { %v508_v14 = vadd.f32 %v507_v13, %v459_v58  ;;  %v710_v15 = vpop.f32.mrb[10].mxu0 }
 0x10a   :  { %v531_v16 = vmul.f32 %v616_v11, %v516_v12  ;;  %v519_v17 = vadd.f32 %v710_v15, %v470_v9  ;;  %v510_v18 = vpop.f32.mrb[11].mxu0 }
 0x10b   :  { %v529_v20 = vmul.f32 %v616_v11, %v508_v14  ;;  %v511_v21 = vadd.f32 %v510_v18, %v462_v59 }
 0x10c   :  { %v532_v22 = vmul.f32 %v616_v11, %v519_v17  ;;  %v542_v24 = vadd.f32 %v617_v19, %v531_v16 }
 0x10d   :  { %v530_v23 = vmul.f32 %v616_v11, %v511_v21  ;;  %v540_v26 = vadd.f32 %v617_v19, %v529_v20 }
 0x10e   :  { %v543_v25 = vadd.f32 %v617_v19, %v532_v22 }
 0x10f   :  { %v541_v27 = vadd.f32 %v617_v19, %v530_v23 }
 0x110   :  { %v634_v28 = vpack.c.bf16 %v543_v25, %v542_v24 }
 0x111   :  { %v629_v29 = vpack.c.bf16 %v541_v27, %v540_v26 }
 0x112   :  { %636 = vst [vmem:[%s940_s4 + $0x8] sm:$0xff] %v634_v28  }
 0x113   :  { %630 = vst [vmem:[%s940_s4] sm:$0xff] %v629_v29  }

// kernel: _lambda_.9
= control target key start
LH: loop header
LB: loop body
LE: loop exit
PB: predicated region body
PF: predicated region fallthrough
CT: control target
= control target key end

     0   :  { %s2322_s1 = inlined_call_operand.vmem [shape: bf16[1152,256], index: 1, kind: input, shape index: {}]   ;;  %s2323_s0 = inlined_call_operand.vmem [shape: bf16[32,1152], index: 0, kind: input, shape index: {}]   ;;  %s2324_s2 = inlined_call_operand.vmem [shape: f32[1,256], index: 2, kind: input, shape index: {}]   ;;  %s2325_s3 = inlined_call_operand.vmem [shape: f32[1,256], index: 3, kind: input, shape index: {}]   ;;  %s2326_s4 = inlined_call_operand.vmem [shape: bf16[32,256], index: 4, kind: output, shape index: {}]  }
   0x1   :  { %v1550_v0 = vld [vmem:[%s2322_s1 + $0x4] ss:$8 sps:$4 sm:$0xff]   ;;  %v1554_v2 = vld [vmem:[%s2322_s1] ss:$8 sps:$4 sm:$0xff]   ;;  %v1556_v4 = vld [vmem:[%s2322_s1 + $0x14] ss:$8 sps:$4 sm:$0xff]  }
   0x2   :  { %v1552_v1 = vld [vmem:[%s2322_s1 + $0x204] ss:$8 sps:$4 sm:$0xff]   ;;  %994 = vmatprep.subr.bf16.mxu1 %v1550_v0  ;;  %v1555_v3 = vld [vmem:[%s2322_s1 + $0x200] ss:$8 sps:$4 sm:$0xff]   ;;  %v1558_v5 = vld [vmem:[%s2322_s1 + $0x214] ss:$8 sps:$4 sm:$0xff]  }
   0x3   :  { %1100 = vmatprep.subr.bf16.mxu0 %v1552_v1  ;;  %995 = vmatpush1.bf16.msra.mxu1 %v1554_v2  ;;  %v1560_v6 = vld [vmem:[%s2322_s1 + $0x10] ss:$8 sps:$4 sm:$0xff]   ;;  %v1562_v8 = vld [vmem:[%s2322_s1 + $0x24] ss:$8 sps:$4 sm:$0xff]   ;;  %v1566_v10 = vld [vmem:[%s2322_s1 + $0x20] ss:$8 sps:$4 sm:$0xff]  }
   0x4   :  { %1101 = vmatpush1.bf16.msra.mxu0 %v1555_v3  ;;  %996 = vmatprep.subr.bf16.mxu1 %v1556_v4  ;;  %v1561_v7 = vld [vmem:[%s2322_s1 + $0x210] ss:$8 sps:$4 sm:$0xff]   ;;  %v1564_v9 = vld [vmem:[%s2322_s1 + $0x224] ss:$8 sps:$4 sm:$0xff]   ;;  %v1567_v11 = vld [vmem:[%s2322_s1 + $0x220] ss:$8 sps:$4 sm:$0xff]  }
   0x5   :  { %1102 = vmatprep.subr.bf16.mxu0 %v1558_v5  ;;  %v1568_v12 = vld [vmem:[%s2322_s1 + $0x34] ss:$8 sps:$4 sm:$0xff]   ;;  %v1572_v14 = vld [vmem:[%s2322_s1 + $0x30] ss:$8 sps:$4 sm:$0xff]   ;;  %v1574_v16 = vld [vmem:[%s2322_s1 + $0x44] ss:$8 sps:$4 sm:$0xff]  }
   0x6   :  { %v1570_v13 = vld [vmem:[%s2322_s1 + $0x234] ss:$8 sps:$4 sm:$0xff]   ;;  %v1573_v15 = vld [vmem:[%s2322_s1 + $0x230] ss:$8 sps:$4 sm:$0xff]   ;;  %v1576_v17 = vld [vmem:[%s2322_s1 + $0x244] ss:$8 sps:$4 sm:$0xff]  }
   0x7   :  { %997 = vmatpush1.bf16.msra.mxu1 %v1560_v6  ;;  %v1578_v18 = vld [vmem:[%s2322_s1 + $0x40] ss:$8 sps:$4 sm:$0xff]   ;;  %v1580_v20 = vld [vmem:[%s2322_s1 + $0x54] ss:$8 sps:$4 sm:$0xff]   ;;  %v1584_v22 = vld [vmem:[%s2322_s1 + $0x50] ss:$8 sps:$4 sm:$0xff]  }
   0x8   :  { %1103 = vmatpush1.bf16.msra.mxu0 %v1561_v7  ;;  %998 = vmatprep.subr.bf16.mxu1 %v1562_v8  ;;  %v1579_v19 = vld [vmem:[%s2322_s1 + $0x240] ss:$8 sps:$4 sm:$0xff]   ;;  %v1582_v21 = vld [vmem:[%s2322_s1 + $0x254] ss:$8 sps:$4 sm:$0xff]   ;;  %v1585_v23 = vld [vmem:[%s2322_s1 + $0x250] ss:$8 sps:$4 sm:$0xff]  }
   0x9   :  { %1104 = vmatprep.subr.bf16.mxu0 %v1564_v9  ;;  %v1586_v24 = vld [vmem:[%s2322_s1 + $0x64] ss:$8 sps:$4 sm:$0xff]   ;;  %v1590_v26 = vld [vmem:[%s2322_s1 + $0x60] ss:$8 sps:$4 sm:$0xff]   ;;  %v1592_v28 = vld [vmem:[%s2322_s1 + $0x74] ss:$8 sps:$4 sm:$0xff]  }
   0xa   :  { %v1588_v25 = vld [vmem:[%s2322_s1 + $0x264] ss:$8 sps:$4 sm:$0xff]   ;;  %v1591_v27 = vld [vmem:[%s2322_s1 + $0x260] ss:$8 sps:$4 sm:$0xff]   ;;  %v1594_v29 = vld [vmem:[%s2322_s1 + $0x274] ss:$8 sps:$4 sm:$0xff]  }
   0xb   :  { %999 = vmatpush1.bf16.msra.mxu1 %v1566_v10  ;;  %v1596_v30 = vld [vmem:[%s2322_s1 + $0x70] ss:$8 sps:$4 sm:$0xff]   ;;  %v1598_v32 = vld [vmem:[%s2322_s1 + $0x84] ss:$8 sps:$4 sm:$0xff]   ;;  %v1602_v34 = vld [vmem:[%s2322_s1 + $0x80] ss:$8 sps:$4 sm:$0xff]  }
   0xc   :  { %1105 = vmatpush1.bf16.msra.mxu0 %v1567_v11  ;;  %1000 = vmatprep.subr.bf16.mxu1 %v1568_v12  ;;  %v1597_v31 = vld [vmem:[%s2322_s1 + $0x270] ss:$8 sps:$4 sm:$0xff]   ;;  %v1600_v33 = vld [vmem:[%s2322_s1 + $0x284] ss:$8 sps:$4 sm:$0xff]   ;;  %v1603_v35 = vld [vmem:[%s2322_s1 + $0x280] ss:$8 sps:$4 sm:$0xff]  }
   0xd   :  { %1106 = vmatprep.subr.bf16.mxu0 %v1570_v13  ;;  %v1604_v36 = vld [vmem:[%s2322_s1 + $0x94] ss:$8 sps:$4 sm:$0xff]   ;;  %v1608_v38 = vld [vmem:[%s2322_s1 + $0x90] ss:$8 sps:$4 sm:$0xff]   ;;  %v1610_v40 = vld [vmem:[%s2322_s1 + $0xa4] ss:$8 sps:$4 sm:$0xff]  }
   0xe   :  { %v1606_v37 = vld [vmem:[%s2322_s1 + $0x294] ss:$8 sps:$4 sm:$0xff]   ;;  %v1609_v39 = vld [vmem:[%s2322_s1 + $0x290] ss:$8 sps:$4 sm:$0xff]   ;;  %v1612_v41 = vld [vmem:[%s2322_s1 + $0x2a4] ss:$8 sps:$4 sm:$0xff]  }
   0xf   :  { %1001 = vmatpush1.bf16.msra.mxu1 %v1572_v14  ;;  %v1614_v42 = vld [vmem:[%s2322_s1 + $0xa0] ss:$8 sps:$4 sm:$0xff]   ;;  %v1616_v44 = vld [vmem:[%s2322_s1 + $0xb4] ss:$8 sps:$4 sm:$0xff]   ;;  %v1620_v46 = vld [vmem:[%s2322_s1 + $0xb0] ss:$8 sps:$4 sm:$0xff]  }
  0x10   :  { %1107 = vmatpush1.bf16.msra.mxu0 %v1573_v15  ;;  %1002 = vmatprep.subr.bf16.mxu1 %v1574_v16  ;;  %v1615_v43 = vld [vmem:[%s2322_s1 + $0x2a0] ss:$8 sps:$4 sm:$0xff]   ;;  %v1618_v45 = vld [vmem:[%s2322_s1 + $0x2b4] ss:$8 sps:$4 sm:$0xff]   ;;  %v1621_v47 = vld [vmem:[%s2322_s1 + $0x2b0] ss:$8 sps:$4 sm:$0xff]  }
  0x11   :  { %1108 = vmatprep.subr.bf16.mxu0 %v1576_v17  ;;  %v1648_v48 = vld [vmem:[%s2323_s0 + $0x4] ss:$36 sps:$4 sm:$0xff]   ;;  %v1654_v51 = vld [vmem:[%s2323_s0 + $0x14] ss:$36 sps:$4 sm:$0xff]  }
  0x12   :  { %v1622_v49 = vld [vmem:[%s2322_s1 + $0xc4] ss:$8 sps:$4 sm:$0xff]   ;;  %1026 = vmatprep.mubr.bf16.mxu1 %v1648_v48  ;;  %v1626_v52 = vld [vmem:[%s2322_s1 + $0xc0] ss:$8 sps:$4 sm:$0xff]   ;;  %v1628_v54 = vld [vmem:[%s2322_s1 + $0xd4] ss:$8 sps:$4 sm:$0xff]   ;;  %1132 = vmatprep.mubr.bf16.mxu0 %v1654_v51 }
  0x13   :  { %1003 = vmatpush1.bf16.msra.mxu1 %v1578_v18  ;;  %v1624_v50 = vld [vmem:[%s2322_s1 + $0x2c4] ss:$8 sps:$4 sm:$0xff]   ;;  %v1627_v53 = vld [vmem:[%s2322_s1 + $0x2c0] ss:$8 sps:$4 sm:$0xff]   ;;  %v1630_v55 = vld [vmem:[%s2322_s1 + $0x2d4] ss:$8 sps:$4 sm:$0xff]  }
  0x14   :  { %1109 = vmatpush1.bf16.msra.mxu0 %v1579_v19  ;;  %1004 = vmatprep.subr.bf16.mxu1 %v1580_v20  ;;  %v1632_v56 = vld [vmem:[%s2322_s1 + $0xd0] ss:$8 sps:$4 sm:$0xff]   ;;  %v1634_v58 = vld [vmem:[%s2322_s1 + $0xe4] ss:$8 sps:$4 sm:$0xff]   ;;  %v1638_v60 = vld [vmem:[%s2322_s1 + $0xe0] ss:$8 sps:$4 sm:$0xff]  }
  0x15   :  { %1110 = vmatprep.subr.bf16.mxu0 %v1582_v21  ;;  %v1633_v57 = vld [vmem:[%s2322_s1 + $0x2d0] ss:$8 sps:$4 sm:$0xff]   ;;  %v1636_v59 = vld [vmem:[%s2322_s1 + $0x2e4] ss:$8 sps:$4 sm:$0xff]   ;;  %v1639_v61 = vld [vmem:[%s2322_s1 + $0x2e0] ss:$8 sps:$4 sm:$0xff]  }
  0x16   :  { %v1640_v62 = vld [vmem:[%s2322_s1 + $0xf4] ss:$8 sps:$4 sm:$0xff]   ;;  %v1644_v0 = vld [vmem:[%s2322_s1 + $0xf0] ss:$8 sps:$4 sm:$0xff]   ;;  %v1651_v2 = vld [vmem:[%s2322_s1 + $0x104] ss:$8 sps:$4 sm:$0xff]  }
  0x17   :  { %1005 = vmatpush1.bf16.msra.mxu1 %v1584_v22  ;;  %v1642_v63 = vld [vmem:[%s2322_s1 + $0x2f4] ss:$8 sps:$4 sm:$0xff]   ;;  %v1645_v1 = vld [vmem:[%s2322_s1 + $0x2f0] ss:$8 sps:$4 sm:$0xff]   ;;  %v1657_v3 = vld [vmem:[%s2322_s1 + $0x304] ss:$8 sps:$4 sm:$0xff]  }
  0x18   :  { %1111 = vmatpush1.bf16.msra.mxu0 %v1585_v23  ;;  %1006 = vmatprep.subr.bf16.mxu1 %v1586_v24  ;;  %v1646_v4 = vld [vmem:[%s2323_s0] ss:$36 sps:$4 sm:$0xff]   ;;  %v1652_v6 = vld [vmem:[%s2323_s0 + $0x10] ss:$36 sps:$4 sm:$0xff]  }
  0x19   :  { %1112 = vmatprep.subr.bf16.mxu0 %v1588_v25  ;;  %v1649_v5 = vld [vmem:[%s2322_s1 + $0x100] ss:$8 sps:$4 sm:$0xff]   ;;  %v1660_v8 = vld [vmem:[%s2322_s1 + $0x114] ss:$8 sps:$4 sm:$0xff]   ;;  %v1658_v10 = vld [vmem:[%s2322_s1 + $0x110] ss:$8 sps:$4 sm:$0xff]  }
  0x1a   :  { %v1655_v7 = vld [vmem:[%s2322_s1 + $0x300] ss:$8 sps:$4 sm:$0xff]   ;;  %v1663_v9 = vld [vmem:[%s2322_s1 + $0x314] ss:$8 sps:$4 sm:$0xff]   ;;  %v1661_v11 = vld [vmem:[%s2322_s1 + $0x310] ss:$8 sps:$4 sm:$0xff]  }
  0x1b   :  { %1007 = vmatpush1.bf16.msra.mxu1 %v1590_v26  ;;  %v1666_v12 = vld [vmem:[%s2322_s1 + $0x124] ss:$8 sps:$4 sm:$0xff]   ;;  %v1664_v14 = vld [vmem:[%s2322_s1 + $0x120] ss:$8 sps:$4 sm:$0xff]   ;;  %v1672_v16 = vld [vmem:[%s2322_s1 + $0x134] ss:$8 sps:$4 sm:$0xff]  }
  0x1c   :  { %1113 = vmatpush1.bf16.msra.mxu0 %v1591_v27  ;;  %1008 = vmatprep.subr.bf16.mxu1 %v1592_v28  ;;  %v1669_v13 = vld [vmem:[%s2322_s1 + $0x324] ss:$8 sps:$4 sm:$0xff]   ;;  %v1667_v15 = vld [vmem:[%s2322_s1 + $0x320] ss:$8 sps:$4 sm:$0xff]   ;;  %v1675_v17 = vld [vmem:[%s2322_s1 + $0x334] ss:$8 sps:$4 sm:$0xff]  }
  0x1d   :  { %1114 = vmatprep.subr.bf16.mxu0 %v1594_v29  ;;  %v1670_v18 = vld [vmem:[%s2322_s1 + $0x130] ss:$8 sps:$4 sm:$0xff]   ;;  %v1678_v20 = vld [vmem:[%s2322_s1 + $0x144] ss:$8 sps:$4 sm:$0xff]   ;;  %v1676_v22 = vld [vmem:[%s2322_s1 + $0x140] ss:$8 sps:$4 sm:$0xff]  }
  0x1e   :  { %v1673_v19 = vld [vmem:[%s2322_s1 + $0x330] ss:$8 sps:$4 sm:$0xff]   ;;  %v1681_v21 = vld [vmem:[%s2322_s1 + $0x344] ss:$8 sps:$4 sm:$0xff]   ;;  %v1679_v23 = vld [vmem:[%s2322_s1 + $0x340] ss:$8 sps:$4 sm:$0xff]  }
  0x1f   :  { %1009 = vmatpush1.bf16.msra.mxu1 %v1596_v30  ;;  %v1684_v24 = vld [vmem:[%s2322_s1 + $0x154] ss:$8 sps:$4 sm:$0xff]   ;;  %v1682_v26 = vld [vmem:[%s2322_s1 + $0x150] ss:$8 sps:$4 sm:$0xff]   ;;  %v1690_v28 = vld [vmem:[%s2322_s1 + $0x164] ss:$8 sps:$4 sm:$0xff]  }
  0x20   :  { %1115 = vmatpush1.bf16.msra.mxu0 %v1597_v31  ;;  %1010 = vmatprep.subr.bf16.mxu1 %v1598_v32  ;;  %v1687_v25 = vld [vmem:[%s2322_s1 + $0x354] ss:$8 sps:$4 sm:$0xff]   ;;  %v1685_v27 = vld [vmem:[%s2322_s1 + $0x350] ss:$8 sps:$4 sm:$0xff]   ;;  %v1740_v31 = vld [vmem:[%s2323_s0 + $0x48] ss:$36 sps:$4 sm:$0xff]  }
  0x21   :  { %1116 = vmatprep.subr.bf16.mxu0 %v1600_v33  ;;  %v1736_v29 = vld [vmem:[%s2323_s0 + $0x4c] ss:$36 sps:$4 sm:$0xff]   ;;  %v1738_v30 = vld [vmem:[%s2323_s0 + $0x5c] ss:$36 sps:$4 sm:$0xff]  }
  0x22   :  { %v1693_v32 = vld [vmem:[%s2322_s1 + $0x364] ss:$8 sps:$4 sm:$0xff]   ;;  %v1744_v33 = vld [vmem:[%s2323_s0 + $0x58] ss:$36 sps:$4 sm:$0xff]  }
  0x23   :  { %1011 = vmatpush1.bf16.msra.mxu1 %v1602_v34  ;;  %v1688_v34 = vld [vmem:[%s2322_s1 + $0x160] ss:$8 sps:$4 sm:$0xff]   ;;  %v1706_v48 = vld [vmem:[%s2322_s1 + $0x190] ss:$8 sps:$4 sm:$0xff]   ;;  %v1717_v51 = vld [vmem:[%s2322_s1 + $0x3a4] ss:$8 sps:$4 sm:$0xff]  }
  0x24   :  { %1117 = vmatpush1.bf16.msra.mxu0 %v1603_v35  ;;  %1012 = vmatprep.subr.bf16.mxu1 %v1604_v36  ;;  %v1691_v35 = vld [vmem:[%s2322_s1 + $0x360] ss:$8 sps:$4 sm:$0xff]   ;;  %v1696_v36 = vld [vmem:[%s2322_s1 + $0x174] ss:$8 sps:$4 sm:$0xff]  }
  0x25   :  { %1118 = vmatprep.subr.bf16.mxu0 %v1606_v37  ;;  %v1699_v37 = vld [vmem:[%s2322_s1 + $0x374] ss:$8 sps:$4 sm:$0xff]  }
  0x27   :  { %1013 = vmatpush1.bf16.msra.mxu1 %v1608_v38  ;;  %v1694_v38 = vld [vmem:[%s2322_s1 + $0x170] ss:$8 sps:$4 sm:$0xff]  }
  0x28   :  { %1119 = vmatpush1.bf16.msra.mxu0 %v1609_v39  ;;  %1014 = vmatprep.subr.bf16.mxu1 %v1610_v40  ;;  %v1697_v39 = vld [vmem:[%s2322_s1 + $0x370] ss:$8 sps:$4 sm:$0xff]   ;;  %v1702_v40 = vld [vmem:[%s2322_s1 + $0x184] ss:$8 sps:$4 sm:$0xff]  }
  0x29   :  { %1120 = vmatprep.subr.bf16.mxu0 %v1612_v41  ;;  %v1756_v41 = vld [vmem:[%s2323_s0 + $0xc] ss:$36 sps:$4 sm:$0xff]  }
  0x2b   :  { %1015 = vmatpush1.bf16.msra.mxu1 %v1614_v42  ;;  %v1705_v42 = vld [vmem:[%s2322_s1 + $0x384] ss:$8 sps:$4 sm:$0xff]  }
  0x2c   :  { %1121 = vmatpush1.bf16.msra.mxu0 %v1615_v43  ;;  %1016 = vmatprep.subr.bf16.mxu1 %v1616_v44  ;;  %v1759_v43 = vld [vmem:[%s2323_s0 + $0x1c] ss:$36 sps:$4 sm:$0xff]  }
  0x2d   :  { %1122 = vmatprep.subr.bf16.mxu0 %v1618_v45  ;;  %v1700_v44 = vld [vmem:[%s2322_s1 + $0x180] ss:$8 sps:$4 sm:$0xff]  }
  0x2e   :  { %v1703_v45 = vld [vmem:[%s2322_s1 + $0x380] ss:$8 sps:$4 sm:$0xff]  }
  0x2f   :  { %1017 = vmatpush1.bf16.msra.mxu1 %v1620_v46  ;;  %v1708_v46 = vld [vmem:[%s2322_s1 + $0x194] ss:$8 sps:$4 sm:$0xff]  }
  0x30   :  { %1123 = vmatpush1.bf16.msra.mxu0 %v1621_v47  ;;  %1018 = vmatprep.subr.bf16.mxu1 %v1622_v49  ;;  %v1711_v47 = vld [vmem:[%s2322_s1 + $0x394] ss:$8 sps:$4 sm:$0xff]   ;;  %v1709_v49 = vld [vmem:[%s2322_s1 + $0x390] ss:$8 sps:$4 sm:$0xff]  }
  0x31   :  { %1124 = vmatprep.subr.bf16.mxu0 %v1624_v50  ;;  %v1714_v50 = vld [vmem:[%s2322_s1 + $0x1a4] ss:$8 sps:$4 sm:$0xff]  }
  0x33   :  { %1019 = vmatpush1.bf16.msra.mxu1 %v1626_v52  ;;  %v1712_v52 = vld [vmem:[%s2322_s1 + $0x1a0] ss:$8 sps:$4 sm:$0xff]  }
  0x34   :  { %1125 = vmatpush1.bf16.msra.mxu0 %v1627_v53  ;;  %1020 = vmatprep.subr.bf16.mxu1 %v1628_v54  ;;  %v1715_v53 = vld [vmem:[%s2322_s1 + $0x3a0] ss:$8 sps:$4 sm:$0xff]   ;;  %v1720_v54 = vld [vmem:[%s2322_s1 + $0x1b4] ss:$8 sps:$4 sm:$0xff]  }
  0x35   :  { %1126 = vmatprep.subr.bf16.mxu0 %v1630_v55  ;;  %v1723_v55 = vld [vmem:[%s2322_s1 + $0x3b4] ss:$8 sps:$4 sm:$0xff]  }
  0x37   :  { %1021 = vmatpush1.bf16.msra.mxu1 %v1632_v56  ;;  %v1718_v56 = vld [vmem:[%s2322_s1 + $0x1b0] ss:$8 sps:$4 sm:$0xff]  }
  0x38   :  { %1127 = vmatpush1.bf16.msra.mxu0 %v1633_v57  ;;  %1022 = vmatprep.subr.bf16.mxu1 %v1634_v58  ;;  %v1721_v57 = vld [vmem:[%s2322_s1 + $0x3b0] ss:$8 sps:$4 sm:$0xff]   ;;  %v1726_v58 = vld [vmem:[%s2322_s1 + $0x1c4] ss:$8 sps:$4 sm:$0xff]  }
  0x39   :  { %1128 = vmatprep.subr.bf16.mxu0 %v1636_v59  ;;  %v1729_v59 = vld [vmem:[%s2322_s1 + $0x3c4] ss:$8 sps:$4 sm:$0xff]  }
  0x3b   :  { %1023 = vmatpush1.bf16.msra.mxu1 %v1638_v60  ;;  %v1724_v60 = vld [vmem:[%s2322_s1 + $0x1c0] ss:$8 sps:$4 sm:$0xff]  }
  0x3c   :  { %1129 = vmatpush1.bf16.msra.mxu0 %v1639_v61  ;;  %1024 = vmatprep.subr.bf16.mxu1 %v1640_v62  ;;  %v1727_v61 = vld [vmem:[%s2322_s1 + $0x3c0] ss:$8 sps:$4 sm:$0xff]   ;;  %v1732_v62 = vld [vmem:[%s2322_s1 + $0x1d4] ss:$8 sps:$4 sm:$0xff]  }
  0x3d   :  { %1130 = vmatprep.subr.bf16.mxu0 %v1642_v63  ;;  %v1735_v63 = vld [vmem:[%s2322_s1 + $0x3d4] ss:$8 sps:$4 sm:$0xff]  }
  0x3f   :  { %1025 = vmatpush1.bf16.msra.mxu1 %v1644_v0  ;;  %v1730_v0 = vld [vmem:[%s2322_s1 + $0x1d0] ss:$8 sps:$4 sm:$0xff]  }
  0x40   :  { %1131 = vmatpush1.bf16.msra.mxu0 %v1645_v1  ;;  %1047 = vmatprep.subr.bf16.mxu1 %v1651_v2  ;;  %v1733_v1 = vld [vmem:[%s2322_s1 + $0x3d0] ss:$8 sps:$4 sm:$0xff]   ;;  %v1743_v2 = vld [vmem:[%s2322_s1 + $0x1e4] ss:$8 sps:$4 sm:$0xff]  }
  0x41   :  { %1153 = vmatprep.subr.bf16.mxu0 %v1657_v3  ;;  %v1747_v3 = vld [vmem:[%s2322_s1 + $0x3e4] ss:$8 sps:$4 sm:$0xff]  }
  0x42   :  { %1027 = vmatmul.mubr.bf16.vlgmr.msra.gmra.mrb[0].mxu1 %v1646_v4  ;;  %v1741_v4 = vld [vmem:[%s2322_s1 + $0x1e0] ss:$8 sps:$4 sm:$0xff]  }
  0x43   :  { %1133 = vmatmul.mubr.bf16.vlgmr.msra.gmra.mrb[0].mxu0 %v1652_v6  ;;  %1048 = vmatpush1.bf16.msra.mxu1 %v1649_v5  ;;  %v1745_v5 = vld [vmem:[%s2322_s1 + $0x3e0] ss:$8 sps:$4 sm:$0xff]   ;;  %v1750_v6 = vld [vmem:[%s2322_s1 + $0x1f4] ss:$8 sps:$4 sm:$0xff]  }
  0x44   :  { %1154 = vmatpush1.bf16.msra.mxu0 %v1655_v7  ;;  %1049 = vmatprep.subr.bf16.mxu1 %v1660_v8  ;;  %v1753_v7 = vld [vmem:[%s2322_s1 + $0x3f4] ss:$8 sps:$4 sm:$0xff]   ;;  %v1748_v8 = vld [vmem:[%s2322_s1 + $0x1f0] ss:$8 sps:$4 sm:$0xff]  }
  0x45   :  { %1155 = vmatprep.subr.bf16.mxu0 %v1663_v9  ;;  %1036 = vmatprep.mubr.bf16.mxu1 %v1736_v29  ;;  %v1751_v9 = vld [vmem:[%s2322_s1 + $0x3f0] ss:$8 sps:$4 sm:$0xff]   ;;  %v1786_v29 = vld [vmem:[%s2322_s1 + $0x464] ss:$8 sps:$4 sm:$0xff]  }
  0x46   :  { %1142 = vmatprep.mubr.bf16.mxu0 %v1738_v30  ;;  %v1784_v30 = vld [vmem:[%s2322_s1 + $0x460] ss:$8 sps:$4 sm:$0xff]  }
  0x47   :  { %1050 = vmatpush1.bf16.msra.mxu1 %v1658_v10  ;;  %v1762_v10 = vld [vmem:[%s2322_s1 + $0x404] ss:$8 sps:$4 sm:$0xff]  }
  0x48   :  { %1156 = vmatpush1.bf16.msra.mxu0 %v1661_v11  ;;  %1051 = vmatprep.subr.bf16.mxu1 %v1666_v12  ;;  %v1754_v11 = vld [vmem:[%s2323_s0 + $0x8] ss:$36 sps:$4 sm:$0xff]   ;;  %v1757_v12 = vld [vmem:[%s2323_s0 + $0x18] ss:$36 sps:$4 sm:$0xff]  }
  0x49   :  { %1157 = vmatprep.subr.bf16.mxu0 %v1669_v13  ;;  %v1760_v13 = vld [vmem:[%s2322_s1 + $0x400] ss:$8 sps:$4 sm:$0xff]  }
  0x4a   :  { %1037 = vmatmul.mubr.bf16.gmra.mrb[4].mxu1 %v1740_v31  ;;  %v1789_v31 = vld [vmem:[%s2322_s1 + $0x474] ss:$8 sps:$4 sm:$0xff]  }
  0x4b   :  { %1052 = vmatpush1.bf16.msra.mxu1 %v1664_v14  ;;  %1143 = vmatmul.mubr.bf16.gmra.mrb[4].mxu0 %v1744_v33  ;;  %v1765_v14 = vld [vmem:[%s2322_s1 + $0x414] ss:$8 sps:$4 sm:$0xff]   ;;  %v1790_v33 = vld [vmem:[%s2323_s0 + $0x20] ss:$36 sps:$4 sm:$0xff]  }
  0x4c   :  { %1158 = vmatpush1.bf16.msra.mxu0 %v1667_v15  ;;  %1053 = vmatprep.subr.bf16.mxu1 %v1672_v16  ;;  %v1766_v15 = vld [vmem:[%s2323_s0 + $0x54] ss:$36 sps:$4 sm:$0xff]   ;;  %v1768_v16 = vld [vmem:[%s2323_s0 + $0x64] ss:$36 sps:$4 sm:$0xff]  }
  0x4d   :  { %1159 = vmatprep.subr.bf16.mxu0 %v1675_v17  ;;  %1079 = vmatprep.mubr.bf16.mxu1 %v1756_v41  ;;  %v1763_v17 = vld [vmem:[%s2322_s1 + $0x410] ss:$8 sps:$4 sm:$0xff]  }
  0x4e   :  { %1185 = vmatprep.mubr.bf16.mxu0 %v1759_v43 }
  0x4f   :  { %1054 = vmatpush1.bf16.msra.mxu1 %v1670_v18  ;;  %v1774_v18 = vld [vmem:[%s2322_s1 + $0x424] ss:$8 sps:$4 sm:$0xff]  }
  0x50   :  { %1160 = vmatpush1.bf16.msra.mxu0 %v1673_v19  ;;  %1055 = vmatprep.subr.bf16.mxu1 %v1678_v20  ;;  %v1770_v19 = vld [vmem:[%s2323_s0 + $0x50] ss:$36 sps:$4 sm:$0xff]   ;;  %v1771_v20 = vld [vmem:[%s2323_s0 + $0x60] ss:$36 sps:$4 sm:$0xff]  }
  0x51   :  { %1161 = vmatprep.subr.bf16.mxu0 %v1681_v21  ;;  %v1772_v21 = vld [vmem:[%s2322_s1 + $0x420] ss:$8 sps:$4 sm:$0xff]  }
  0x53   :  { %1056 = vmatpush1.bf16.msra.mxu1 %v1676_v22  ;;  %v1777_v22 = vld [vmem:[%s2322_s1 + $0x434] ss:$8 sps:$4 sm:$0xff]  }
  0x54   :  { %1162 = vmatpush1.bf16.msra.mxu0 %v1679_v23  ;;  %1057 = vmatprep.subr.bf16.mxu1 %v1684_v24  ;;  %v1775_v23 = vld [vmem:[%s2322_s1 + $0x430] ss:$8 sps:$4 sm:$0xff]   ;;  %v1780_v24 = vld [vmem:[%s2322_s1 + $0x444] ss:$8 sps:$4 sm:$0xff]  }
  0x55   :  { %1163 = vmatprep.subr.bf16.mxu0 %v1687_v25  ;;  %v1792_v25 = vmov 0  }
  0x57   :  { %1058 = vmatpush1.bf16.msra.mxu1 %v1682_v26  ;;  %v1778_v26 = vld [vmem:[%s2322_s1 + $0x440] ss:$8 sps:$4 sm:$0xff]  }
  0x58   :  { %1164 = vmatpush1.bf16.msra.mxu0 %v1685_v27  ;;  %1059 = vmatprep.subr.bf16.mxu1 %v1690_v28  ;;  %v1783_v27 = vld [vmem:[%s2322_s1 + $0x454] ss:$8 sps:$4 sm:$0xff]   ;;  %v1781_v28 = vld [vmem:[%s2322_s1 + $0x450] ss:$8 sps:$4 sm:$0xff]  }
  0x59   :  { %1165 = vmatprep.subr.bf16.mxu0 %v1693_v32  ;;  %v1787_v32 = vld [vmem:[%s2322_s1 + $0x470] ss:$8 sps:$4 sm:$0xff]  }
  0x5b   :  { %1060 = vmatpush1.bf16.msra.mxu1 %v1688_v34  ;;  %v1791_v34 = vld [vmem:[%s2323_s0 + $0x68] ss:$36 sps:$4 sm:$0xff]  }
  0x5c   :  { %1166 = vmatpush1.bf16.msra.mxu0 %v1691_v35  ;;  %1061 = vmatprep.subr.bf16.mxu1 %v1696_v36 }
  0x5d   :  { %1167 = vmatprep.subr.bf16.mxu0 %v1699_v37 }
  0x5f   :  { %1062 = vmatpush1.bf16.msra.mxu1 %v1694_v38 }
  0x60   :  { %1168 = vmatpush1.bf16.msra.mxu0 %v1697_v39  ;;  %1063 = vmatprep.subr.bf16.mxu1 %v1702_v40 }
  0x61   :  { %1169 = vmatprep.subr.bf16.mxu0 %v1705_v42 }
  0x63   :  { %1064 = vmatpush1.bf16.msra.mxu1 %v1700_v44 }
  0x64   :  { %1170 = vmatpush1.bf16.msra.mxu0 %v1703_v45  ;;  %1065 = vmatprep.subr.bf16.mxu1 %v1708_v46 }
  0x65   :  { %1171 = vmatprep.subr.bf16.mxu0 %v1711_v47 }
  0x67   :  { %1066 = vmatpush1.bf16.msra.mxu1 %v1706_v48 }
  0x68   :  { %1172 = vmatpush1.bf16.msra.mxu0 %v1709_v49  ;;  %1067 = vmatprep.subr.bf16.mxu1 %v1714_v50 }
  0x69   :  { %1173 = vmatprep.subr.bf16.mxu0 %v1717_v51  ;;  %v1261_v51 = vlaneseq }
  0x6b   :  { %1068 = vmatpush1.bf16.msra.mxu1 %v1712_v52  ;;  %v1262_v52 = vshrl.u32 %v1261_v51, 7 }
  0x6c   :  { %1174 = vmatpush1.bf16.msra.mxu0 %v1715_v53  ;;  %1069 = vmatprep.subr.bf16.mxu1 %v1720_v54  ;;  %v1259_v54 = vld [vmem:[%s2324_s2] sm:$0x3] }
  0x6d   :  { %1175 = vmatprep.subr.bf16.mxu0 %v1723_v55  ;;  %v1263_v53 = vsub.s32 0, %v1262_v52  ;;  %v1267_v55 = vsub.s32 1, %v1262_v52 }
  0x6f   :  { %1070 = vmatpush1.bf16.msra.mxu1 %v1718_v56  ;;  %v1279_v56 = vld [vmem:[%s2325_s3] sm:$0x3] }
  0x70   :  { %1176 = vmatpush1.bf16.msra.mxu0 %v1721_v57  ;;  %1071 = vmatprep.subr.bf16.mxu1 %v1726_v58  ;;  %v1264_v57 = vrot.slane %v1259_v54, %v1263_v53 }
  0x71   :  { %1177 = vmatprep.subr.bf16.mxu0 %v1729_v59 }
  0x73   :  { %1072 = vmatpush1.bf16.msra.mxu1 %v1724_v60  ;;  %v1268_v60 = vrot.slane %v1259_v54, %v1267_v55 }
  0x74   :  { %1178 = vmatpush1.bf16.msra.mxu0 %v1727_v61  ;;  %1073 = vmatprep.subr.bf16.mxu1 %v1732_v62  ;;  %v1284_v62 = vrot.slane %v1279_v56, %v1263_v53 }
  0x75   :  { %1179 = vmatprep.subr.bf16.mxu0 %v1735_v63 }
  0x77   :  { %1074 = vmatpush1.bf16.msra.mxu1 %v1730_v0 }
  0x78   :  { %1180 = vmatpush1.bf16.msra.mxu0 %v1733_v1  ;;  %1075 = vmatprep.subr.bf16.mxu1 %v1743_v2 }
  0x79   :  { %1181 = vmatprep.subr.bf16.mxu0 %v1747_v3  ;;  %v1288_v3 = vrot.slane %v1279_v56, %v1267_v55 }
  0x7b   :  { %1076 = vmatpush1.bf16.msra.mxu1 %v1741_v4 }
  0x7c   :  { %1182 = vmatpush1.bf16.msra.mxu0 %v1745_v5  ;;  %1077 = vmatprep.subr.bf16.mxu1 %v1750_v6 }
  0x7d   :  { %1183 = vmatprep.subr.bf16.mxu0 %v1753_v7 }
  0x7f   :  { %1078 = vmatpush1.bf16.msra.mxu1 %v1748_v8 }
  0x80   :  { %1184 = vmatpush1.bf16.msra.mxu0 %v1751_v9  ;;  %1501 = vmatprep.subr.bf16.mxu1 %v1762_v10 }
  0x81   :  { %1206 = vmatprep.subr.bf16.mxu0 %v1762_v10 }
  0x82   :  { %1080 = vmatmul.mubr.bf16.vlgmr.msra.gmra.mrb[0].mxu1 %v1754_v11 }
  0x83   :  { %1186 = vmatmul.mubr.bf16.vlgmr.msra.gmra.mrb[0].mxu0 %v1757_v12  ;;  %1509 = vmatpush1.bf16.msra.mxu1 %v1760_v13 }
  0x84   :  { %1207 = vmatpush1.bf16.msra.mxu0 %v1760_v13  ;;  %1502 = vmatprep.subr.bf16.mxu1 %v1765_v14 }
  0x85   :  { %1208 = vmatprep.subr.bf16.mxu0 %v1765_v14  ;;  %1089 = vmatprep.mubr.bf16.mxu1 %v1766_v15 }
  0x86   :  { %1195 = vmatprep.mubr.bf16.mxu0 %v1768_v16 }
  0x87   :  { %1510 = vmatpush1.bf16.msra.mxu1 %v1763_v17 }
  0x88   :  { %1209 = vmatpush1.bf16.msra.mxu0 %v1763_v17  ;;  %1503 = vmatprep.subr.bf16.mxu1 %v1774_v18 }
  0x89   :  { %1210 = vmatprep.subr.bf16.mxu0 %v1774_v18 }
  0x8a   :  { %1090 = vmatmul.mubr.bf16.gmra.mrb[4].mxu1 %v1770_v19 }
  0x8b   :  { %1196 = vmatmul.mubr.bf16.gmra.mrb[4].mxu0 %v1771_v20  ;;  %1511 = vmatpush1.bf16.msra.mxu1 %v1772_v21 }
  0x8c   :  { %1211 = vmatpush1.bf16.msra.mxu0 %v1772_v21  ;;  %1504 = vmatprep.subr.bf16.mxu1 %v1777_v22 }
  0x8d   :  { %1212 = vmatprep.subr.bf16.mxu0 %v1777_v22  ;;  %1238 = vmatprep.mubr.bf16.mxu0 %v1792_v25 }
  0x8e   :  { %1248 = vmatprep.mubr.bf16.mxu1 %v1792_v25 }
  0x8f   :  { %1512 = vmatpush1.bf16.msra.mxu1 %v1775_v23 }
  0x90   :  { %1213 = vmatpush1.bf16.msra.mxu0 %v1775_v23  ;;  %1505 = vmatprep.subr.bf16.mxu1 %v1780_v24 }
  0x91   :  { %1214 = vmatprep.subr.bf16.mxu0 %v1780_v24 }
  0x93   :  { %1513 = vmatpush1.bf16.msra.mxu1 %v1778_v26 }
  0x94   :  { %1215 = vmatpush1.bf16.msra.mxu0 %v1778_v26  ;;  %1506 = vmatprep.subr.bf16.mxu1 %v1783_v27 }
  0x95   :  { %1216 = vmatprep.subr.bf16.mxu0 %v1783_v27 }
  0x97   :  { %1514 = vmatpush1.bf16.msra.mxu1 %v1781_v28 }
  0x98   :  { %1217 = vmatpush1.bf16.msra.mxu0 %v1781_v28  ;;  %1507 = vmatprep.subr.bf16.mxu1 %v1786_v29 }
  0x99   :  { %1218 = vmatprep.subr.bf16.mxu0 %v1786_v29 }
  0x9b   :  { %1515 = vmatpush1.bf16.msra.mxu1 %v1784_v30 }
  0x9c   :  { %1219 = vmatpush1.bf16.msra.mxu0 %v1784_v30  ;;  %1508 = vmatprep.subr.bf16.mxu1 %v1789_v31 }
  0x9d   :  { %1220 = vmatprep.subr.bf16.mxu0 %v1789_v31 }
  0x9f   :  { %1516 = vmatpush1.bf16.msra.mxu1 %v1787_v32 }
  0xa0   :  { %1221 = vmatpush1.bf16.msra.mxu0 %v1787_v32 }
  0xa2   :  { %1249 = vmatmul.mubr.bf16.vlgmr.msra.gmra.mrb[8].mxu1 %v1791_v34 }
  0xa3   :  { %1239 = vmatmul.mubr.bf16.vlgmr.msra.gmra.mrb[0].mxu0 %v1790_v33 }
 0x155   :  { %v1081_v35 = vpop.f32.mrb[0].mxu1 }
 0x156   :  { %v1083_v36 = vpop.f32.mrb[1].mxu1 }
 0x157   :  { %v1085_v37 = vpop.f32.mrb[2].mxu1 }
 0x158   :  { %v1087_v38 = vpop.f32.mrb[3].mxu1 }
 0x15d   :  { %v1091_v39 = vpop.f32.mrb[4].mxu1 }
 0x15e   :  { %v1197_v40 = vpop.f32.mrb[4].mxu0  ;;  %v1093_v42 = vpop.f32.mrb[5].mxu1 }
 0x15f   :  { %v1521_v41 = vadd.f32 %v1197_v40, %v1091_v39  ;;  %v1199_v43 = vpop.f32.mrb[5].mxu0  ;;  %v1095_v45 = vpop.f32.mrb[6].mxu1 }
 0x160   :  { %v1523_v44 = vadd.f32 %v1199_v43, %v1093_v42  ;;  %v1201_v46 = vpop.f32.mrb[6].mxu0  ;;  %v1097_v48 = vpop.f32.mrb[7].mxu1 }
 0x161   :  { %v1525_v47 = vadd.f32 %v1201_v46, %v1095_v45  ;;  %v1203_v49 = vpop.f32.mrb[7].mxu0 }
 0x162   :  { %v1527_v50 = vadd.f32 %v1203_v49, %v1097_v48 }
 0x175   :  { %v1250_v59 = vpop.f32.mrb[8].mxu1 }
 0x176   :  { %v1240_v58 = vpop.f32.mrb[0].mxu0  ;;  %v1522_v63 = vadd.f32 %v1521_v41, %v1250_v59  ;;  %v1252_v1 = vpop.f32.mrb[9].mxu1 }
 0x177   :  { %v1517_v61 = vadd.f32 %v1240_v58, %v1081_v35  ;;  %v1242_v0 = vpop.f32.mrb[1].mxu0  ;;  %v1524_v4 = vadd.f32 %v1523_v44, %v1252_v1  ;;  %v1254_v6 = vpop.f32.mrb[10].mxu1 }
 0x178   :  { %v1518_v2 = vadd.f32 %v1242_v0, %v1083_v36  ;;  %v1244_v5 = vpop.f32.mrb[2].mxu0  ;;  %v1275_v8 = vmul.f32 %v1522_v63, %v1264_v57  ;;  %v1526_v10 = vadd.f32 %v1525_v47, %v1254_v6  ;;  %v1256_v12 = vpop.f32.mrb[11].mxu1 }
 0x179   :  { %v1271_v7 = vmul.f32 %v1517_v61, %v1264_v57  ;;  %v1519_v9 = vadd.f32 %v1244_v5, %v1085_v37  ;;  %v1246_v11 = vpop.f32.mrb[3].mxu0  ;;  %v1276_v14 = vmul.f32 %v1524_v4, %v1268_v60  ;;  %v1528_v16 = vadd.f32 %v1527_v50, %v1256_v12 }
 0x17a   :  { %v1272_v13 = vmul.f32 %v1518_v2, %v1268_v60  ;;  %v1520_v15 = vadd.f32 %v1246_v11, %v1087_v38  ;;  %v1295_v18 = vadd.f32 %v1284_v62, %v1275_v8  ;;  %v1277_v20 = vmul.f32 %v1526_v10, %v1264_v57 }
 0x17b   :  { %v1291_v17 = vadd.f32 %v1284_v62, %v1271_v7  ;;  %v1273_v19 = vmul.f32 %v1519_v9, %v1264_v57  ;;  %v1296_v22 = vadd.f32 %v1288_v3, %v1276_v14  ;;  %v1278_v24 = vmul.f32 %v1528_v16, %v1268_v60 }
 0x17c   :  { %v1292_v21 = vadd.f32 %v1288_v3, %v1272_v13  ;;  %v1274_v23 = vmul.f32 %v1520_v15, %v1268_v60  ;;  %v1297_v26 = vadd.f32 %v1284_v62, %v1277_v20 }
 0x17d   :  { %v1293_v25 = vadd.f32 %v1284_v62, %v1273_v19  ;;  %v1499_v28 = vpack.c.bf16 %v1296_v22, %v1295_v18  ;;  %v1298_v30 = vadd.f32 %v1288_v3, %v1278_v24 }
 0x17e   :  { %v1497_v27 = vpack.c.bf16 %v1292_v21, %v1291_v17  ;;  %v1294_v29 = vadd.f32 %v1288_v3, %v1274_v23 }
 0x17f   :  { %1325 = vst [vmem:[%s2326_s4 + $0x10] sm:$0xff] %v1499_v28  ;;  %v1500_v32 = vpack.c.bf16 %v1298_v30, %v1297_v26 }
 0x180   :  { %1323 = vst [vmem:[%s2326_s4] sm:$0xff] %v1497_v27  ;;  %v1498_v31 = vpack.c.bf16 %v1294_v29, %v1293_v25 }
 0x181   :  { %1326 = vst [vmem:[%s2326_s4 + $0x18] sm:$0xff] %v1500_v32 }
 0x182   :  { %1324 = vst [vmem:[%s2326_s4 + $0x8] sm:$0xff] %v1498_v31 }

// kernel: _lambda_.10
= control target key start
LH: loop header
LB: loop body
LE: loop exit
PB: predicated region body
PF: predicated region fallthrough
CT: control target
= control target key end

     0   :  { %s3982_s1 = inlined_call_operand.vmem [shape: bf16[2304,256], index: 1, kind: input, shape index: {}]   ;;  %s3983_s0 = inlined_call_operand.vmem [shape: bf16[8,2304], index: 0, kind: input, shape index: {}]   ;;  %s3984_s2 = inlined_call_operand.vmem [shape: f32[1,256], index: 2, kind: input, shape index: {}]   ;;  %s3985_s3 = inlined_call_operand.vmem [shape: f32[1,256], index: 3, kind: input, shape index: {}]   ;;  %s3986_s4 = inlined_call_operand.vmem [shape: bf16[8,256], index: 4, kind: output, shape index: {}]  }
   0x1   :  { %v2565_v0 = vld [vmem:[%s3982_s1 + $0x4] ss:$8 sps:$4 sm:$0xff]   ;;  %v2569_v2 = vld [vmem:[%s3982_s1] ss:$8 sps:$4 sm:$0xff]   ;;  %v2571_v4 = vld [vmem:[%s3982_s1 + $0x14] ss:$8 sps:$4 sm:$0xff]  }
   0x2   :  { %v2567_v1 = vld [vmem:[%s3982_s1 + $0x404] ss:$8 sps:$4 sm:$0xff]   ;;  %1817 = vmatprep.subr.bf16.mxu1 %v2565_v0  ;;  %v2570_v3 = vld [vmem:[%s3982_s1 + $0x400] ss:$8 sps:$4 sm:$0xff]   ;;  %v2573_v5 = vld [vmem:[%s3982_s1 + $0x414] ss:$8 sps:$4 sm:$0xff]  }
   0x3   :  { %1981 = vmatprep.subr.bf16.mxu0 %v2567_v1  ;;  %1818 = vmatpush1.bf16.msra.mxu1 %v2569_v2  ;;  %v2575_v6 = vld [vmem:[%s3982_s1 + $0x10] ss:$8 sps:$4 sm:$0xff]   ;;  %v2577_v8 = vld [vmem:[%s3982_s1 + $0x24] ss:$8 sps:$4 sm:$0xff]   ;;  %v2581_v10 = vld [vmem:[%s3982_s1 + $0x20] ss:$8 sps:$4 sm:$0xff]  }
   0x4   :  { %1982 = vmatpush1.bf16.msra.mxu0 %v2570_v3  ;;  %1819 = vmatprep.subr.bf16.mxu1 %v2571_v4  ;;  %v2576_v7 = vld [vmem:[%s3982_s1 + $0x410] ss:$8 sps:$4 sm:$0xff]   ;;  %v2579_v9 = vld [vmem:[%s3982_s1 + $0x424] ss:$8 sps:$4 sm:$0xff]   ;;  %v2582_v11 = vld [vmem:[%s3982_s1 + $0x420] ss:$8 sps:$4 sm:$0xff]  }
   0x5   :  { %1983 = vmatprep.subr.bf16.mxu0 %v2573_v5  ;;  %v2583_v12 = vld [vmem:[%s3982_s1 + $0x34] ss:$8 sps:$4 sm:$0xff]   ;;  %v2587_v14 = vld [vmem:[%s3982_s1 + $0x30] ss:$8 sps:$4 sm:$0xff]   ;;  %v2589_v16 = vld [vmem:[%s3982_s1 + $0x44] ss:$8 sps:$4 sm:$0xff]  }
   0x6   :  { %v2585_v13 = vld [vmem:[%s3982_s1 + $0x434] ss:$8 sps:$4 sm:$0xff]   ;;  %v2588_v15 = vld [vmem:[%s3982_s1 + $0x430] ss:$8 sps:$4 sm:$0xff]   ;;  %v2591_v17 = vld [vmem:[%s3982_s1 + $0x444] ss:$8 sps:$4 sm:$0xff]  }
   0x7   :  { %1820 = vmatpush1.bf16.msra.mxu1 %v2575_v6  ;;  %v2593_v18 = vld [vmem:[%s3982_s1 + $0x40] ss:$8 sps:$4 sm:$0xff]   ;;  %v2595_v20 = vld [vmem:[%s3982_s1 + $0x54] ss:$8 sps:$4 sm:$0xff]   ;;  %v2599_v22 = vld [vmem:[%s3982_s1 + $0x50] ss:$8 sps:$4 sm:$0xff]  }
   0x8   :  { %1984 = vmatpush1.bf16.msra.mxu0 %v2576_v7  ;;  %1821 = vmatprep.subr.bf16.mxu1 %v2577_v8  ;;  %v2594_v19 = vld [vmem:[%s3982_s1 + $0x440] ss:$8 sps:$4 sm:$0xff]   ;;  %v2597_v21 = vld [vmem:[%s3982_s1 + $0x454] ss:$8 sps:$4 sm:$0xff]   ;;  %v2600_v23 = vld [vmem:[%s3982_s1 + $0x450] ss:$8 sps:$4 sm:$0xff]  }
   0x9   :  { %1985 = vmatprep.subr.bf16.mxu0 %v2579_v9  ;;  %v2601_v24 = vld [vmem:[%s3982_s1 + $0x64] ss:$8 sps:$4 sm:$0xff]   ;;  %v2605_v26 = vld [vmem:[%s3982_s1 + $0x60] ss:$8 sps:$4 sm:$0xff]   ;;  %v2607_v28 = vld [vmem:[%s3982_s1 + $0x74] ss:$8 sps:$4 sm:$0xff]  }
   0xa   :  { %v2603_v25 = vld [vmem:[%s3982_s1 + $0x464] ss:$8 sps:$4 sm:$0xff]   ;;  %v2606_v27 = vld [vmem:[%s3982_s1 + $0x460] ss:$8 sps:$4 sm:$0xff]   ;;  %v2609_v29 = vld [vmem:[%s3982_s1 + $0x474] ss:$8 sps:$4 sm:$0xff]  }
   0xb   :  { %1822 = vmatpush1.bf16.msra.mxu1 %v2581_v10  ;;  %v2611_v30 = vld [vmem:[%s3982_s1 + $0x70] ss:$8 sps:$4 sm:$0xff]   ;;  %v2613_v32 = vld [vmem:[%s3982_s1 + $0x84] ss:$8 sps:$4 sm:$0xff]   ;;  %v2617_v34 = vld [vmem:[%s3982_s1 + $0x80] ss:$8 sps:$4 sm:$0xff]  }
   0xc   :  { %1986 = vmatpush1.bf16.msra.mxu0 %v2582_v11  ;;  %1823 = vmatprep.subr.bf16.mxu1 %v2583_v12  ;;  %v2612_v31 = vld [vmem:[%s3982_s1 + $0x470] ss:$8 sps:$4 sm:$0xff]   ;;  %v2615_v33 = vld [vmem:[%s3982_s1 + $0x484] ss:$8 sps:$4 sm:$0xff]   ;;  %v2618_v35 = vld [vmem:[%s3982_s1 + $0x480] ss:$8 sps:$4 sm:$0xff]  }
   0xd   :  { %1987 = vmatprep.subr.bf16.mxu0 %v2585_v13  ;;  %v2619_v36 = vld [vmem:[%s3982_s1 + $0x94] ss:$8 sps:$4 sm:$0xff]   ;;  %v2623_v38 = vld [vmem:[%s3982_s1 + $0x90] ss:$8 sps:$4 sm:$0xff]   ;;  %v2625_v40 = vld [vmem:[%s3982_s1 + $0xa4] ss:$8 sps:$4 sm:$0xff]  }
   0xe   :  { %v2621_v37 = vld [vmem:[%s3982_s1 + $0x494] ss:$8 sps:$4 sm:$0xff]   ;;  %v2624_v39 = vld [vmem:[%s3982_s1 + $0x490] ss:$8 sps:$4 sm:$0xff]   ;;  %v2627_v41 = vld [vmem:[%s3982_s1 + $0x4a4] ss:$8 sps:$4 sm:$0xff]  }
   0xf   :  { %1824 = vmatpush1.bf16.msra.mxu1 %v2587_v14  ;;  %v2629_v42 = vld [vmem:[%s3982_s1 + $0xa0] ss:$8 sps:$4 sm:$0xff]   ;;  %v2631_v44 = vld [vmem:[%s3982_s1 + $0xb4] ss:$8 sps:$4 sm:$0xff]   ;;  %v2635_v47 = vld [vmem:[%s3982_s1 + $0xb0] ss:$8 sps:$4 sm:$0xff]  }
  0x10   :  { %1988 = vmatpush1.bf16.msra.mxu0 %v2588_v15  ;;  %1825 = vmatprep.subr.bf16.mxu1 %v2589_v16  ;;  %v2630_v43 = vld [vmem:[%s3982_s1 + $0x4a0] ss:$8 sps:$4 sm:$0xff]   ;;  %v2633_v45 = vld [vmem:[%s3982_s1 + $0x4b4] ss:$8 sps:$4 sm:$0xff]   ;;  %v2636_v49 = vld [vmem:[%s3982_s1 + $0x4b0] ss:$8 sps:$4 sm:$0xff]  }
  0x11   :  { %1989 = vmatprep.subr.bf16.mxu0 %v2591_v17  ;;  %v17_v46 = vld [vmem:[%s3983_s0] sm:$0xff]  ;;  %v2643_v56 = vld [vmem:[%s3982_s1 + $0xd4] ss:$8 sps:$4 sm:$0xff]   ;;  %v2647_v58 = vld [vmem:[%s3982_s1 + $0xd0] ss:$8 sps:$4 sm:$0xff]  }
  0x12   :  { %v2228_v48 = vcombine.high %v17_v46, %v17_v46  ;;  %v21_v50 = vld [vmem:[%s3983_s0 + $0x20] sm:$0xff]  ;;  %v2645_v57 = vld [vmem:[%s3982_s1 + $0x4d4] ss:$8 sps:$4 sm:$0xff]   ;;  %v2648_v59 = vld [vmem:[%s3982_s1 + $0x4d0] ss:$8 sps:$4 sm:$0xff]   ;;  %v2227_v6 = vcombine.low %v17_v46, %v17_v46 }
  0x13   :  { %1826 = vmatpush1.bf16.msra.mxu1 %v2593_v18  ;;  %v2637_v51 = vld [vmem:[%s3982_s1 + $0xc4] ss:$8 sps:$4 sm:$0xff]   ;;  %v2236_v53 = vcombine.high %v21_v50, %v21_v50  ;;  %v2641_v54 = vld [vmem:[%s3982_s1 + $0xc0] ss:$8 sps:$4 sm:$0xff]   ;;  %v2655_v0 = vld [vmem:[%s3982_s1 + $0xf4] ss:$8 sps:$4 sm:$0xff]   ;;  %v2235_v7 = vcombine.low %v21_v50, %v21_v50 }
  0x14   :  { %1990 = vmatpush1.bf16.msra.mxu0 %v2594_v19  ;;  %1827 = vmatprep.subr.bf16.mxu1 %v2595_v20  ;;  %v2639_v52 = vld [vmem:[%s3982_s1 + $0x4c4] ss:$8 sps:$4 sm:$0xff]   ;;  %v2642_v55 = vld [vmem:[%s3982_s1 + $0x4c0] ss:$8 sps:$4 sm:$0xff]   ;;  %v2657_v1 = vld [vmem:[%s3982_s1 + $0x4f4] ss:$8 sps:$4 sm:$0xff]  }
  0x15   :  { %1991 = vmatprep.subr.bf16.mxu0 %v2597_v21  ;;  %1849 = vmatprep.mubr.bf16.mxu1 %v2228_v48  ;;  %v2649_v60 = vld [vmem:[%s3982_s1 + $0xe4] ss:$8 sps:$4 sm:$0xff]   ;;  %v2653_v62 = vld [vmem:[%s3982_s1 + $0xe0] ss:$8 sps:$4 sm:$0xff]   ;;  %v2659_v2 = vld [vmem:[%s3982_s1 + $0xf0] ss:$8 sps:$4 sm:$0xff]  }
  0x16   :  { %2013 = vmatprep.mubr.bf16.mxu0 %v2236_v53  ;;  %v2651_v61 = vld [vmem:[%s3982_s1 + $0x4e4] ss:$8 sps:$4 sm:$0xff]   ;;  %v2654_v63 = vld [vmem:[%s3982_s1 + $0x4e0] ss:$8 sps:$4 sm:$0xff]   ;;  %v2660_v3 = vld [vmem:[%s3982_s1 + $0x4f0] ss:$8 sps:$4 sm:$0xff]  }
  0x17   :  { %1828 = vmatpush1.bf16.msra.mxu1 %v2599_v22  ;;  %v2665_v4 = vld [vmem:[%s3982_s1 + $0x104] ss:$8 sps:$4 sm:$0xff]   ;;  %v2663_v8 = vld [vmem:[%s3982_s1 + $0x100] ss:$8 sps:$4 sm:$0xff]   ;;  %v2673_v10 = vld [vmem:[%s3982_s1 + $0x114] ss:$8 sps:$4 sm:$0xff]  }
  0x18   :  { %1992 = vmatpush1.bf16.msra.mxu0 %v2600_v23  ;;  %1829 = vmatprep.subr.bf16.mxu1 %v2601_v24  ;;  %v2670_v5 = vld [vmem:[%s3982_s1 + $0x504] ss:$8 sps:$4 sm:$0xff]   ;;  %v2668_v9 = vld [vmem:[%s3982_s1 + $0x500] ss:$8 sps:$4 sm:$0xff]   ;;  %v2676_v11 = vld [vmem:[%s3982_s1 + $0x514] ss:$8 sps:$4 sm:$0xff]  }
  0x19   :  { %1993 = vmatprep.subr.bf16.mxu0 %v2603_v25  ;;  %v2671_v12 = vld [vmem:[%s3982_s1 + $0x110] ss:$8 sps:$4 sm:$0xff]   ;;  %v2679_v14 = vld [vmem:[%s3982_s1 + $0x124] ss:$8 sps:$4 sm:$0xff]   ;;  %v2677_v16 = vld [vmem:[%s3982_s1 + $0x120] ss:$8 sps:$4 sm:$0xff]  }
  0x1a   :  { %v2674_v13 = vld [vmem:[%s3982_s1 + $0x510] ss:$8 sps:$4 sm:$0xff]   ;;  %v2682_v15 = vld [vmem:[%s3982_s1 + $0x524] ss:$8 sps:$4 sm:$0xff]   ;;  %v2680_v17 = vld [vmem:[%s3982_s1 + $0x520] ss:$8 sps:$4 sm:$0xff]  }
  0x1b   :  { %1830 = vmatpush1.bf16.msra.mxu1 %v2605_v26  ;;  %v2685_v18 = vld [vmem:[%s3982_s1 + $0x134] ss:$8 sps:$4 sm:$0xff]   ;;  %v2683_v20 = vld [vmem:[%s3982_s1 + $0x130] ss:$8 sps:$4 sm:$0xff]   ;;  %v2691_v22 = vld [vmem:[%s3982_s1 + $0x144] ss:$8 sps:$4 sm:$0xff]  }
  0x1c   :  { %1994 = vmatpush1.bf16.msra.mxu0 %v2606_v27  ;;  %1831 = vmatprep.subr.bf16.mxu1 %v2607_v28  ;;  %v2688_v19 = vld [vmem:[%s3982_s1 + $0x534] ss:$8 sps:$4 sm:$0xff]   ;;  %v2686_v21 = vld [vmem:[%s3982_s1 + $0x530] ss:$8 sps:$4 sm:$0xff]   ;;  %v2694_v23 = vld [vmem:[%s3982_s1 + $0x544] ss:$8 sps:$4 sm:$0xff]  }
  0x1d   :  { %1995 = vmatprep.subr.bf16.mxu0 %v2609_v29  ;;  %v2689_v24 = vld [vmem:[%s3982_s1 + $0x140] ss:$8 sps:$4 sm:$0xff]   ;;  %v2697_v26 = vld [vmem:[%s3982_s1 + $0x154] ss:$8 sps:$4 sm:$0xff]   ;;  %v2695_v28 = vld [vmem:[%s3982_s1 + $0x150] ss:$8 sps:$4 sm:$0xff]  }
  0x1e   :  { %v2692_v25 = vld [vmem:[%s3982_s1 + $0x540] ss:$8 sps:$4 sm:$0xff]   ;;  %v2700_v27 = vld [vmem:[%s3982_s1 + $0x554] ss:$8 sps:$4 sm:$0xff]   ;;  %v2698_v29 = vld [vmem:[%s3982_s1 + $0x550] ss:$8 sps:$4 sm:$0xff]  }
  0x1f   :  { %1832 = vmatpush1.bf16.msra.mxu1 %v2611_v30  ;;  %v2703_v30 = vld [vmem:[%s3982_s1 + $0x164] ss:$8 sps:$4 sm:$0xff]   ;;  %v2721_v46 = vld [vmem:[%s3982_s1 + $0x194] ss:$8 sps:$4 sm:$0xff]   ;;  %v2719_v48 = vld [vmem:[%s3982_s1 + $0x190] ss:$8 sps:$4 sm:$0xff]  }
  0x20   :  { %1996 = vmatpush1.bf16.msra.mxu0 %v2612_v31  ;;  %1833 = vmatprep.subr.bf16.mxu1 %v2613_v32  ;;  %v2706_v31 = vld [vmem:[%s3982_s1 + $0x564] ss:$8 sps:$4 sm:$0xff]   ;;  %v2728_v53 = vld [vmem:[%s3982_s1 + $0x5a0] ss:$8 sps:$4 sm:$0xff]  }
  0x21   :  { %1997 = vmatprep.subr.bf16.mxu0 %v2615_v33  ;;  %v3319_v32 = vld [vmem:[%s3983_s0 + $0x8] sm:$0xff] }
  0x22   :  { %v2701_v33 = vld [vmem:[%s3982_s1 + $0x160] ss:$8 sps:$4 sm:$0xff]   ;;  %v2727_v50 = vld [vmem:[%s3982_s1 + $0x1a4] ss:$8 sps:$4 sm:$0xff]  }
  0x23   :  { %1834 = vmatpush1.bf16.msra.mxu1 %v2617_v34  ;;  %v2704_v34 = vld [vmem:[%s3982_s1 + $0x560] ss:$8 sps:$4 sm:$0xff]  }
  0x24   :  { %1998 = vmatpush1.bf16.msra.mxu0 %v2618_v35  ;;  %1835 = vmatprep.subr.bf16.mxu1 %v2619_v36  ;;  %v2230_v35 = vcombine.high %v3319_v32, %v3319_v32  ;;  %v3332_v36 = vld [vmem:[%s3983_s0 + $0x28] sm:$0xff] }
  0x25   :  { %1999 = vmatprep.subr.bf16.mxu0 %v2621_v37  ;;  %v2709_v37 = vld [vmem:[%s3982_s1 + $0x174] ss:$8 sps:$4 sm:$0xff]  }
  0x27   :  { %1836 = vmatpush1.bf16.msra.mxu1 %v2623_v38  ;;  %v2238_v38 = vcombine.high %v3332_v36, %v3332_v36 }
  0x28   :  { %2000 = vmatpush1.bf16.msra.mxu0 %v2624_v39  ;;  %1837 = vmatprep.subr.bf16.mxu1 %v2625_v40  ;;  %v2712_v39 = vld [vmem:[%s3982_s1 + $0x574] ss:$8 sps:$4 sm:$0xff]   ;;  %v2707_v40 = vld [vmem:[%s3982_s1 + $0x170] ss:$8 sps:$4 sm:$0xff]  }
  0x29   :  { %2001 = vmatprep.subr.bf16.mxu0 %v2627_v41  ;;  %v2710_v41 = vld [vmem:[%s3982_s1 + $0x570] ss:$8 sps:$4 sm:$0xff]  }
  0x2b   :  { %1838 = vmatpush1.bf16.msra.mxu1 %v2629_v42  ;;  %v2715_v42 = vld [vmem:[%s3982_s1 + $0x184] ss:$8 sps:$4 sm:$0xff]  }
  0x2c   :  { %2002 = vmatpush1.bf16.msra.mxu0 %v2630_v43  ;;  %1839 = vmatprep.subr.bf16.mxu1 %v2631_v44  ;;  %v2718_v43 = vld [vmem:[%s3982_s1 + $0x584] ss:$8 sps:$4 sm:$0xff]   ;;  %v2713_v44 = vld [vmem:[%s3982_s1 + $0x180] ss:$8 sps:$4 sm:$0xff]  }
  0x2d   :  { %2003 = vmatprep.subr.bf16.mxu0 %v2633_v45  ;;  %v2716_v45 = vld [vmem:[%s3982_s1 + $0x580] ss:$8 sps:$4 sm:$0xff]  }
  0x2f   :  { %1840 = vmatpush1.bf16.msra.mxu1 %v2635_v47  ;;  %v2724_v47 = vld [vmem:[%s3982_s1 + $0x594] ss:$8 sps:$4 sm:$0xff]  }
  0x30   :  { %2004 = vmatpush1.bf16.msra.mxu0 %v2636_v49  ;;  %1841 = vmatprep.subr.bf16.mxu1 %v2637_v51  ;;  %v2722_v49 = vld [vmem:[%s3982_s1 + $0x590] ss:$8 sps:$4 sm:$0xff]   ;;  %v2730_v51 = vld [vmem:[%s3982_s1 + $0x5a4] ss:$8 sps:$4 sm:$0xff]  }
  0x31   :  { %2005 = vmatprep.subr.bf16.mxu0 %v2639_v52  ;;  %v2725_v52 = vld [vmem:[%s3982_s1 + $0x1a0] ss:$8 sps:$4 sm:$0xff]  }
  0x33   :  { %1842 = vmatpush1.bf16.msra.mxu1 %v2641_v54  ;;  %v2733_v54 = vld [vmem:[%s3982_s1 + $0x1b4] ss:$8 sps:$4 sm:$0xff]  }
  0x34   :  { %2006 = vmatpush1.bf16.msra.mxu0 %v2642_v55  ;;  %1843 = vmatprep.subr.bf16.mxu1 %v2643_v56  ;;  %v2736_v55 = vld [vmem:[%s3982_s1 + $0x5b4] ss:$8 sps:$4 sm:$0xff]   ;;  %v2731_v56 = vld [vmem:[%s3982_s1 + $0x1b0] ss:$8 sps:$4 sm:$0xff]  }
  0x35   :  { %2007 = vmatprep.subr.bf16.mxu0 %v2645_v57  ;;  %v2734_v57 = vld [vmem:[%s3982_s1 + $0x5b0] ss:$8 sps:$4 sm:$0xff]  }
  0x37   :  { %1844 = vmatpush1.bf16.msra.mxu1 %v2647_v58  ;;  %v2739_v58 = vld [vmem:[%s3982_s1 + $0x1c4] ss:$8 sps:$4 sm:$0xff]  }
  0x38   :  { %2008 = vmatpush1.bf16.msra.mxu0 %v2648_v59  ;;  %1845 = vmatprep.subr.bf16.mxu1 %v2649_v60  ;;  %v2742_v59 = vld [vmem:[%s3982_s1 + $0x5c4] ss:$8 sps:$4 sm:$0xff]   ;;  %v2737_v60 = vld [vmem:[%s3982_s1 + $0x1c0] ss:$8 sps:$4 sm:$0xff]  }
  0x39   :  { %2009 = vmatprep.subr.bf16.mxu0 %v2651_v61  ;;  %v2740_v61 = vld [vmem:[%s3982_s1 + $0x5c0] ss:$8 sps:$4 sm:$0xff]  }
  0x3b   :  { %1846 = vmatpush1.bf16.msra.mxu1 %v2653_v62  ;;  %v2745_v62 = vld [vmem:[%s3982_s1 + $0x1d4] ss:$8 sps:$4 sm:$0xff]  }
  0x3c   :  { %2010 = vmatpush1.bf16.msra.mxu0 %v2654_v63  ;;  %1847 = vmatprep.subr.bf16.mxu1 %v2655_v0  ;;  %v2748_v63 = vld [vmem:[%s3982_s1 + $0x5d4] ss:$8 sps:$4 sm:$0xff]   ;;  %v2743_v0 = vld [vmem:[%s3982_s1 + $0x1d0] ss:$8 sps:$4 sm:$0xff]  }
  0x3d   :  { %2011 = vmatprep.subr.bf16.mxu0 %v2657_v1  ;;  %v2746_v1 = vld [vmem:[%s3982_s1 + $0x5d0] ss:$8 sps:$4 sm:$0xff]  }
  0x3f   :  { %1848 = vmatpush1.bf16.msra.mxu1 %v2659_v2  ;;  %v2751_v2 = vld [vmem:[%s3982_s1 + $0x1e4] ss:$8 sps:$4 sm:$0xff]  }
  0x40   :  { %2012 = vmatpush1.bf16.msra.mxu0 %v2660_v3  ;;  %1858 = vmatprep.subr.bf16.mxu1 %v2665_v4  ;;  %v2754_v3 = vld [vmem:[%s3982_s1 + $0x5e4] ss:$8 sps:$4 sm:$0xff]   ;;  %v2749_v4 = vld [vmem:[%s3982_s1 + $0x1e0] ss:$8 sps:$4 sm:$0xff]  }
  0x41   :  { %2022 = vmatprep.subr.bf16.mxu0 %v2670_v5  ;;  %v2752_v5 = vld [vmem:[%s3982_s1 + $0x5e0] ss:$8 sps:$4 sm:$0xff]  }
  0x42   :  { %1850 = vmatmul.mubr.bf16.vlgmr.msra.gmra.mrb[0].mxu1 %v2227_v6  ;;  %v2757_v6 = vld [vmem:[%s3982_s1 + $0x1f4] ss:$8 sps:$4 sm:$0xff]  }
  0x43   :  { %2014 = vmatmul.mubr.bf16.vlgmr.msra.gmra.mrb[0].mxu0 %v2235_v7  ;;  %1859 = vmatpush1.bf16.msra.mxu1 %v2663_v8  ;;  %v2760_v7 = vld [vmem:[%s3982_s1 + $0x5f4] ss:$8 sps:$4 sm:$0xff]   ;;  %v2755_v8 = vld [vmem:[%s3982_s1 + $0x1f0] ss:$8 sps:$4 sm:$0xff]  }
  0x44   :  { %2023 = vmatpush1.bf16.msra.mxu0 %v2668_v9  ;;  %1860 = vmatprep.subr.bf16.mxu1 %v2673_v10  ;;  %v2758_v9 = vld [vmem:[%s3982_s1 + $0x5f0] ss:$8 sps:$4 sm:$0xff]   ;;  %v2765_v10 = vld [vmem:[%s3982_s1 + $0x204] ss:$8 sps:$4 sm:$0xff]  }
  0x45   :  { %2024 = vmatprep.subr.bf16.mxu0 %v2676_v11  ;;  %1890 = vmatprep.mubr.bf16.mxu1 %v2230_v35  ;;  %v2770_v11 = vld [vmem:[%s3982_s1 + $0x604] ss:$8 sps:$4 sm:$0xff]   ;;  %v2792_v35 = vld [vmem:[%s3982_s1 + $0x640] ss:$8 sps:$4 sm:$0xff]  }
  0x46   :  { %2054 = vmatprep.mubr.bf16.mxu0 %v2238_v38  ;;  %v2795_v38 = vld [vmem:[%s3982_s1 + $0x250] ss:$8 sps:$4 sm:$0xff]  }
  0x47   :  { %1861 = vmatpush1.bf16.msra.mxu1 %v2671_v12  ;;  %v2229_v12 = vcombine.low %v3319_v32, %v3319_v32  ;;  %v2791_v32 = vld [vmem:[%s3982_s1 + $0x244] ss:$8 sps:$4 sm:$0xff]  }
  0x48   :  { %2025 = vmatpush1.bf16.msra.mxu0 %v2674_v13  ;;  %1862 = vmatprep.subr.bf16.mxu1 %v2679_v14  ;;  %v2763_v13 = vld [vmem:[%s3982_s1 + $0x200] ss:$8 sps:$4 sm:$0xff]   ;;  %v2237_v14 = vcombine.low %v3332_v36, %v3332_v36  ;;  %v2797_v36 = vld [vmem:[%s3982_s1 + $0x254] ss:$8 sps:$4 sm:$0xff]  }
  0x49   :  { %2026 = vmatprep.subr.bf16.mxu0 %v2682_v15  ;;  %v2768_v15 = vld [vmem:[%s3982_s1 + $0x600] ss:$8 sps:$4 sm:$0xff]  }
  0x4b   :  { %1863 = vmatpush1.bf16.msra.mxu1 %v2677_v16  ;;  %v2773_v16 = vld [vmem:[%s3982_s1 + $0x214] ss:$8 sps:$4 sm:$0xff]  }
  0x4c   :  { %2027 = vmatpush1.bf16.msra.mxu0 %v2680_v17  ;;  %1864 = vmatprep.subr.bf16.mxu1 %v2685_v18  ;;  %v2776_v17 = vld [vmem:[%s3982_s1 + $0x614] ss:$8 sps:$4 sm:$0xff]  }
  0x4d   :  { %2028 = vmatprep.subr.bf16.mxu0 %v2688_v19  ;;  %v3469_v18 = vld [vmem:[%s3983_s0 + $0x10] sm:$0xff] }
  0x4e   :  { %v2232_v19 = vcombine.high %v3469_v18, %v3469_v18 }
  0x4f   :  { %1865 = vmatpush1.bf16.msra.mxu1 %v2683_v20  ;;  %v3476_v20 = vld [vmem:[%s3983_s0 + $0x30] sm:$0xff] }
  0x50   :  { %2029 = vmatpush1.bf16.msra.mxu0 %v2686_v21  ;;  %1866 = vmatprep.subr.bf16.mxu1 %v2691_v22  ;;  %v2771_v21 = vld [vmem:[%s3982_s1 + $0x210] ss:$8 sps:$4 sm:$0xff]  }
  0x51   :  { %2030 = vmatprep.subr.bf16.mxu0 %v2694_v23  ;;  %v2774_v22 = vld [vmem:[%s3982_s1 + $0x610] ss:$8 sps:$4 sm:$0xff]   ;;  %v2240_v23 = vcombine.high %v3476_v20, %v3476_v20 }
  0x53   :  { %1867 = vmatpush1.bf16.msra.mxu1 %v2689_v24  ;;  %v2779_v24 = vld [vmem:[%s3982_s1 + $0x224] ss:$8 sps:$4 sm:$0xff]  }
  0x54   :  { %2031 = vmatpush1.bf16.msra.mxu0 %v2692_v25  ;;  %1868 = vmatprep.subr.bf16.mxu1 %v2697_v26  ;;  %v2782_v25 = vld [vmem:[%s3982_s1 + $0x624] ss:$8 sps:$4 sm:$0xff]   ;;  %v2777_v26 = vld [vmem:[%s3982_s1 + $0x220] ss:$8 sps:$4 sm:$0xff]  }
  0x55   :  { %2032 = vmatprep.subr.bf16.mxu0 %v2700_v27  ;;  %v2780_v27 = vld [vmem:[%s3982_s1 + $0x620] ss:$8 sps:$4 sm:$0xff]  }
  0x57   :  { %1869 = vmatpush1.bf16.msra.mxu1 %v2695_v28  ;;  %v2785_v28 = vld [vmem:[%s3982_s1 + $0x234] ss:$8 sps:$4 sm:$0xff]  }
  0x58   :  { %2033 = vmatpush1.bf16.msra.mxu0 %v2698_v29  ;;  %1870 = vmatprep.subr.bf16.mxu1 %v2703_v30  ;;  %v2788_v29 = vld [vmem:[%s3982_s1 + $0x634] ss:$8 sps:$4 sm:$0xff]   ;;  %v2783_v30 = vld [vmem:[%s3982_s1 + $0x230] ss:$8 sps:$4 sm:$0xff]  }
  0x59   :  { %2034 = vmatprep.subr.bf16.mxu0 %v2706_v31  ;;  %v2786_v31 = vld [vmem:[%s3982_s1 + $0x630] ss:$8 sps:$4 sm:$0xff]  }
  0x5b   :  { %1871 = vmatpush1.bf16.msra.mxu1 %v2701_v33  ;;  %v2794_v33 = vld [vmem:[%s3982_s1 + $0x644] ss:$8 sps:$4 sm:$0xff]  }
  0x5c   :  { %2035 = vmatpush1.bf16.msra.mxu0 %v2704_v34  ;;  %1872 = vmatprep.subr.bf16.mxu1 %v2709_v37  ;;  %v2789_v34 = vld [vmem:[%s3982_s1 + $0x240] ss:$8 sps:$4 sm:$0xff]   ;;  %v2800_v37 = vld [vmem:[%s3982_s1 + $0x654] ss:$8 sps:$4 sm:$0xff]  }
  0x5d   :  { %2036 = vmatprep.subr.bf16.mxu0 %v2712_v39  ;;  %v2798_v39 = vld [vmem:[%s3982_s1 + $0x650] ss:$8 sps:$4 sm:$0xff]  }
  0x5f   :  { %1873 = vmatpush1.bf16.msra.mxu1 %v2707_v40  ;;  %v2803_v40 = vld [vmem:[%s3982_s1 + $0x264] ss:$8 sps:$4 sm:$0xff]  }
  0x60   :  { %2037 = vmatpush1.bf16.msra.mxu0 %v2710_v41  ;;  %1874 = vmatprep.subr.bf16.mxu1 %v2715_v42  ;;  %v2806_v41 = vld [vmem:[%s3982_s1 + $0x664] ss:$8 sps:$4 sm:$0xff]   ;;  %v2801_v42 = vld [vmem:[%s3982_s1 + $0x260] ss:$8 sps:$4 sm:$0xff]  }
  0x61   :  { %2038 = vmatprep.subr.bf16.mxu0 %v2718_v43  ;;  %v2804_v43 = vld [vmem:[%s3982_s1 + $0x660] ss:$8 sps:$4 sm:$0xff]  }
  0x63   :  { %1875 = vmatpush1.bf16.msra.mxu1 %v2713_v44  ;;  %v2809_v44 = vld [vmem:[%s3982_s1 + $0x274] ss:$8 sps:$4 sm:$0xff]  }
  0x64   :  { %2039 = vmatpush1.bf16.msra.mxu0 %v2716_v45  ;;  %1876 = vmatprep.subr.bf16.mxu1 %v2721_v46  ;;  %v2812_v45 = vld [vmem:[%s3982_s1 + $0x674] ss:$8 sps:$4 sm:$0xff]   ;;  %v2807_v46 = vld [vmem:[%s3982_s1 + $0x270] ss:$8 sps:$4 sm:$0xff]  }
  0x65   :  { %2040 = vmatprep.subr.bf16.mxu0 %v2724_v47  ;;  %v2810_v47 = vld [vmem:[%s3982_s1 + $0x670] ss:$8 sps:$4 sm:$0xff]  }
  0x67   :  { %1877 = vmatpush1.bf16.msra.mxu1 %v2719_v48  ;;  %v2815_v48 = vld [vmem:[%s3982_s1 + $0x284] ss:$8 sps:$4 sm:$0xff]  }
  0x68   :  { %2041 = vmatpush1.bf16.msra.mxu0 %v2722_v49  ;;  %1878 = vmatprep.subr.bf16.mxu1 %v2727_v50  ;;  %v2818_v49 = vld [vmem:[%s3982_s1 + $0x684] ss:$8 sps:$4 sm:$0xff]   ;;  %v2813_v50 = vld [vmem:[%s3982_s1 + $0x280] ss:$8 sps:$4 sm:$0xff]  }
  0x69   :  { %2042 = vmatprep.subr.bf16.mxu0 %v2730_v51  ;;  %v2816_v51 = vld [vmem:[%s3982_s1 + $0x680] ss:$8 sps:$4 sm:$0xff]  }
  0x6b   :  { %1879 = vmatpush1.bf16.msra.mxu1 %v2725_v52  ;;  %v2821_v52 = vld [vmem:[%s3982_s1 + $0x294] ss:$8 sps:$4 sm:$0xff]  }
  0x6c   :  { %2043 = vmatpush1.bf16.msra.mxu0 %v2728_v53  ;;  %1880 = vmatprep.subr.bf16.mxu1 %v2733_v54  ;;  %v2824_v53 = vld [vmem:[%s3982_s1 + $0x694] ss:$8 sps:$4 sm:$0xff]   ;;  %v2819_v54 = vld [vmem:[%s3982_s1 + $0x290] ss:$8 sps:$4 sm:$0xff]  }
  0x6d   :  { %2044 = vmatprep.subr.bf16.mxu0 %v2736_v55  ;;  %v2822_v55 = vld [vmem:[%s3982_s1 + $0x690] ss:$8 sps:$4 sm:$0xff]  }
  0x6f   :  { %1881 = vmatpush1.bf16.msra.mxu1 %v2731_v56  ;;  %v2827_v56 = vld [vmem:[%s3982_s1 + $0x2a4] ss:$8 sps:$4 sm:$0xff]  }
  0x70   :  { %2045 = vmatpush1.bf16.msra.mxu0 %v2734_v57  ;;  %1882 = vmatprep.subr.bf16.mxu1 %v2739_v58  ;;  %v2830_v57 = vld [vmem:[%s3982_s1 + $0x6a4] ss:$8 sps:$4 sm:$0xff]   ;;  %v2825_v58 = vld [vmem:[%s3982_s1 + $0x2a0] ss:$8 sps:$4 sm:$0xff]  }
  0x71   :  { %2046 = vmatprep.subr.bf16.mxu0 %v2742_v59  ;;  %v2828_v59 = vld [vmem:[%s3982_s1 + $0x6a0] ss:$8 sps:$4 sm:$0xff]  }
  0x73   :  { %1883 = vmatpush1.bf16.msra.mxu1 %v2737_v60  ;;  %v2833_v60 = vld [vmem:[%s3982_s1 + $0x2b4] ss:$8 sps:$4 sm:$0xff]  }
  0x74   :  { %2047 = vmatpush1.bf16.msra.mxu0 %v2740_v61  ;;  %1884 = vmatprep.subr.bf16.mxu1 %v2745_v62  ;;  %v2836_v61 = vld [vmem:[%s3982_s1 + $0x6b4] ss:$8 sps:$4 sm:$0xff]   ;;  %v2831_v62 = vld [vmem:[%s3982_s1 + $0x2b0] ss:$8 sps:$4 sm:$0xff]  }
  0x75   :  { %2048 = vmatprep.subr.bf16.mxu0 %v2748_v63  ;;  %v2834_v63 = vld [vmem:[%s3982_s1 + $0x6b0] ss:$8 sps:$4 sm:$0xff]  }
  0x77   :  { %1885 = vmatpush1.bf16.msra.mxu1 %v2743_v0  ;;  %v2839_v0 = vld [vmem:[%s3982_s1 + $0x2c4] ss:$8 sps:$4 sm:$0xff]  }
  0x78   :  { %2049 = vmatpush1.bf16.msra.mxu0 %v2746_v1  ;;  %1886 = vmatprep.subr.bf16.mxu1 %v2751_v2  ;;  %v2842_v1 = vld [vmem:[%s3982_s1 + $0x6c4] ss:$8 sps:$4 sm:$0xff]   ;;  %v2837_v2 = vld [vmem:[%s3982_s1 + $0x2c0] ss:$8 sps:$4 sm:$0xff]  }
  0x79   :  { %2050 = vmatprep.subr.bf16.mxu0 %v2754_v3  ;;  %v2840_v3 = vld [vmem:[%s3982_s1 + $0x6c0] ss:$8 sps:$4 sm:$0xff]  }
  0x7b   :  { %1887 = vmatpush1.bf16.msra.mxu1 %v2749_v4  ;;  %v2845_v4 = vld [vmem:[%s3982_s1 + $0x2d4] ss:$8 sps:$4 sm:$0xff]  }
  0x7c   :  { %2051 = vmatpush1.bf16.msra.mxu0 %v2752_v5  ;;  %1888 = vmatprep.subr.bf16.mxu1 %v2757_v6  ;;  %v2848_v5 = vld [vmem:[%s3982_s1 + $0x6d4] ss:$8 sps:$4 sm:$0xff]   ;;  %v2843_v6 = vld [vmem:[%s3982_s1 + $0x2d0] ss:$8 sps:$4 sm:$0xff]  }
  0x7d   :  { %2052 = vmatprep.subr.bf16.mxu0 %v2760_v7  ;;  %v2846_v7 = vld [vmem:[%s3982_s1 + $0x6d0] ss:$8 sps:$4 sm:$0xff]  }
  0x7f   :  { %1889 = vmatpush1.bf16.msra.mxu1 %v2755_v8  ;;  %v2851_v8 = vld [vmem:[%s3982_s1 + $0x2e4] ss:$8 sps:$4 sm:$0xff]  }
  0x80   :  { %2053 = vmatpush1.bf16.msra.mxu0 %v2758_v9  ;;  %1899 = vmatprep.subr.bf16.mxu1 %v2765_v10  ;;  %v2854_v9 = vld [vmem:[%s3982_s1 + $0x6e4] ss:$8 sps:$4 sm:$0xff]   ;;  %v2849_v10 = vld [vmem:[%s3982_s1 + $0x2e0] ss:$8 sps:$4 sm:$0xff]  }
  0x81   :  { %2063 = vmatprep.subr.bf16.mxu0 %v2770_v11  ;;  %v2852_v11 = vld [vmem:[%s3982_s1 + $0x6e0] ss:$8 sps:$4 sm:$0xff]  }
  0x82   :  { %1891 = vmatmul.mubr.bf16.vlgmr.msra.gmra.mrb[0].mxu1 %v2229_v12  ;;  %v2857_v12 = vld [vmem:[%s3982_s1 + $0x2f4] ss:$8 sps:$4 sm:$0xff]  }
  0x83   :  { %2055 = vmatmul.mubr.bf16.vlgmr.msra.gmra.mrb[0].mxu0 %v2237_v14  ;;  %1900 = vmatpush1.bf16.msra.mxu1 %v2763_v13  ;;  %v2860_v13 = vld [vmem:[%s3982_s1 + $0x6f4] ss:$8 sps:$4 sm:$0xff]   ;;  %v2855_v14 = vld [vmem:[%s3982_s1 + $0x2f0] ss:$8 sps:$4 sm:$0xff]  }
  0x84   :  { %2064 = vmatpush1.bf16.msra.mxu0 %v2768_v15  ;;  %1901 = vmatprep.subr.bf16.mxu1 %v2773_v16  ;;  %v2858_v15 = vld [vmem:[%s3982_s1 + $0x6f0] ss:$8 sps:$4 sm:$0xff]   ;;  %v2865_v16 = vld [vmem:[%s3982_s1 + $0x304] ss:$8 sps:$4 sm:$0xff]  }
  0x85   :  { %2065 = vmatprep.subr.bf16.mxu0 %v2776_v17  ;;  %1931 = vmatprep.mubr.bf16.mxu1 %v2232_v19  ;;  %v2870_v17 = vld [vmem:[%s3982_s1 + $0x704] ss:$8 sps:$4 sm:$0xff]   ;;  %v2863_v19 = vld [vmem:[%s3982_s1 + $0x300] ss:$8 sps:$4 sm:$0xff]  }
  0x86   :  { %2095 = vmatprep.mubr.bf16.mxu0 %v2240_v23  ;;  %v2239_v23 = vcombine.low %v3476_v20, %v3476_v20 }
  0x87   :  { %1902 = vmatpush1.bf16.msra.mxu1 %v2771_v21  ;;  %v2868_v21 = vld [vmem:[%s3982_s1 + $0x700] ss:$8 sps:$4 sm:$0xff]  }
  0x88   :  { %2066 = vmatpush1.bf16.msra.mxu0 %v2774_v22  ;;  %1903 = vmatprep.subr.bf16.mxu1 %v2779_v24  ;;  %v2231_v22 = vcombine.low %v3469_v18, %v3469_v18  ;;  %v3673_v24 = vld [vmem:[%s3983_s0 + $0x18] sm:$0xff] }
  0x89   :  { %2067 = vmatprep.subr.bf16.mxu0 %v2782_v25  ;;  %v3678_v25 = vld [vmem:[%s3983_s0 + $0x38] sm:$0xff]  ;;  %v2234_v20 = vcombine.high %v3673_v24, %v3673_v24 }
  0x8a   :  { %v2876_v18 = vld [vmem:[%s3982_s1 + $0x714] ss:$8 sps:$4 sm:$0xff]  }
  0x8b   :  { %1904 = vmatpush1.bf16.msra.mxu1 %v2777_v26  ;;  %v2873_v26 = vld [vmem:[%s3982_s1 + $0x314] ss:$8 sps:$4 sm:$0xff]  }
  0x8c   :  { %2068 = vmatpush1.bf16.msra.mxu0 %v2780_v27  ;;  %1905 = vmatprep.subr.bf16.mxu1 %v2785_v28  ;;  %v2242_v27 = vcombine.high %v3678_v25, %v3678_v25  ;;  %v2871_v28 = vld [vmem:[%s3982_s1 + $0x310] ss:$8 sps:$4 sm:$0xff]  }
  0x8d   :  { %2069 = vmatprep.subr.bf16.mxu0 %v2788_v29  ;;  %v2874_v29 = vld [vmem:[%s3982_s1 + $0x710] ss:$8 sps:$4 sm:$0xff]  }
  0x8f   :  { %1906 = vmatpush1.bf16.msra.mxu1 %v2783_v30  ;;  %v2879_v30 = vld [vmem:[%s3982_s1 + $0x324] ss:$8 sps:$4 sm:$0xff]  }
  0x90   :  { %2070 = vmatpush1.bf16.msra.mxu0 %v2786_v31  ;;  %1907 = vmatprep.subr.bf16.mxu1 %v2791_v32  ;;  %v2882_v31 = vld [vmem:[%s3982_s1 + $0x724] ss:$8 sps:$4 sm:$0xff]   ;;  %v2877_v32 = vld [vmem:[%s3982_s1 + $0x320] ss:$8 sps:$4 sm:$0xff]  }
  0x91   :  { %2071 = vmatprep.subr.bf16.mxu0 %v2794_v33  ;;  %v2880_v33 = vld [vmem:[%s3982_s1 + $0x720] ss:$8 sps:$4 sm:$0xff]  }
  0x93   :  { %1908 = vmatpush1.bf16.msra.mxu1 %v2789_v34  ;;  %v2885_v34 = vld [vmem:[%s3982_s1 + $0x334] ss:$8 sps:$4 sm:$0xff]  }
  0x94   :  { %2072 = vmatpush1.bf16.msra.mxu0 %v2792_v35  ;;  %1909 = vmatprep.subr.bf16.mxu1 %v2797_v36  ;;  %v2888_v35 = vld [vmem:[%s3982_s1 + $0x734] ss:$8 sps:$4 sm:$0xff]   ;;  %v2883_v36 = vld [vmem:[%s3982_s1 + $0x330] ss:$8 sps:$4 sm:$0xff]  }
  0x95   :  { %2073 = vmatprep.subr.bf16.mxu0 %v2800_v37  ;;  %v2886_v37 = vld [vmem:[%s3982_s1 + $0x730] ss:$8 sps:$4 sm:$0xff]  }
  0x97   :  { %1910 = vmatpush1.bf16.msra.mxu1 %v2795_v38  ;;  %v2891_v38 = vld [vmem:[%s3982_s1 + $0x344] ss:$8 sps:$4 sm:$0xff]  }
  0x98   :  { %2074 = vmatpush1.bf16.msra.mxu0 %v2798_v39  ;;  %1911 = vmatprep.subr.bf16.mxu1 %v2803_v40  ;;  %v2894_v39 = vld [vmem:[%s3982_s1 + $0x744] ss:$8 sps:$4 sm:$0xff]   ;;  %v2889_v40 = vld [vmem:[%s3982_s1 + $0x340] ss:$8 sps:$4 sm:$0xff]  }
  0x99   :  { %2075 = vmatprep.subr.bf16.mxu0 %v2806_v41  ;;  %v2892_v41 = vld [vmem:[%s3982_s1 + $0x740] ss:$8 sps:$4 sm:$0xff]  }
  0x9b   :  { %1912 = vmatpush1.bf16.msra.mxu1 %v2801_v42  ;;  %v2897_v42 = vld [vmem:[%s3982_s1 + $0x354] ss:$8 sps:$4 sm:$0xff]  }
  0x9c   :  { %2076 = vmatpush1.bf16.msra.mxu0 %v2804_v43  ;;  %1913 = vmatprep.subr.bf16.mxu1 %v2809_v44  ;;  %v2900_v43 = vld [vmem:[%s3982_s1 + $0x754] ss:$8 sps:$4 sm:$0xff]   ;;  %v2895_v44 = vld [vmem:[%s3982_s1 + $0x350] ss:$8 sps:$4 sm:$0xff]  }
  0x9d   :  { %2077 = vmatprep.subr.bf16.mxu0 %v2812_v45  ;;  %v2898_v45 = vld [vmem:[%s3982_s1 + $0x750] ss:$8 sps:$4 sm:$0xff]  }
  0x9f   :  { %1914 = vmatpush1.bf16.msra.mxu1 %v2807_v46  ;;  %v2903_v46 = vld [vmem:[%s3982_s1 + $0x364] ss:$8 sps:$4 sm:$0xff]  }
  0xa0   :  { %2078 = vmatpush1.bf16.msra.mxu0 %v2810_v47  ;;  %1915 = vmatprep.subr.bf16.mxu1 %v2815_v48  ;;  %v2906_v47 = vld [vmem:[%s3982_s1 + $0x764] ss:$8 sps:$4 sm:$0xff]   ;;  %v2901_v48 = vld [vmem:[%s3982_s1 + $0x360] ss:$8 sps:$4 sm:$0xff]  }
  0xa1   :  { %2079 = vmatprep.subr.bf16.mxu0 %v2818_v49  ;;  %v2904_v49 = vld [vmem:[%s3982_s1 + $0x760] ss:$8 sps:$4 sm:$0xff]  }
  0xa3   :  { %1916 = vmatpush1.bf16.msra.mxu1 %v2813_v50  ;;  %v2909_v50 = vld [vmem:[%s3982_s1 + $0x374] ss:$8 sps:$4 sm:$0xff]  }
  0xa4   :  { %2080 = vmatpush1.bf16.msra.mxu0 %v2816_v51  ;;  %1917 = vmatprep.subr.bf16.mxu1 %v2821_v52  ;;  %v2912_v51 = vld [vmem:[%s3982_s1 + $0x774] ss:$8 sps:$4 sm:$0xff]   ;;  %v2907_v52 = vld [vmem:[%s3982_s1 + $0x370] ss:$8 sps:$4 sm:$0xff]  }
  0xa5   :  { %2081 = vmatprep.subr.bf16.mxu0 %v2824_v53  ;;  %v2910_v53 = vld [vmem:[%s3982_s1 + $0x770] ss:$8 sps:$4 sm:$0xff]  }
  0xa7   :  { %1918 = vmatpush1.bf16.msra.mxu1 %v2819_v54  ;;  %v2915_v54 = vld [vmem:[%s3982_s1 + $0x384] ss:$8 sps:$4 sm:$0xff]  }
  0xa8   :  { %2082 = vmatpush1.bf16.msra.mxu0 %v2822_v55  ;;  %1919 = vmatprep.subr.bf16.mxu1 %v2827_v56  ;;  %v2918_v55 = vld [vmem:[%s3982_s1 + $0x784] ss:$8 sps:$4 sm:$0xff]   ;;  %v2913_v56 = vld [vmem:[%s3982_s1 + $0x380] ss:$8 sps:$4 sm:$0xff]  }
  0xa9   :  { %2083 = vmatprep.subr.bf16.mxu0 %v2830_v57  ;;  %v2916_v57 = vld [vmem:[%s3982_s1 + $0x780] ss:$8 sps:$4 sm:$0xff]  }
  0xab   :  { %1920 = vmatpush1.bf16.msra.mxu1 %v2825_v58  ;;  %v2921_v58 = vld [vmem:[%s3982_s1 + $0x394] ss:$8 sps:$4 sm:$0xff]  }
  0xac   :  { %2084 = vmatpush1.bf16.msra.mxu0 %v2828_v59  ;;  %1921 = vmatprep.subr.bf16.mxu1 %v2833_v60  ;;  %v2924_v59 = vld [vmem:[%s3982_s1 + $0x794] ss:$8 sps:$4 sm:$0xff]   ;;  %v2919_v60 = vld [vmem:[%s3982_s1 + $0x390] ss:$8 sps:$4 sm:$0xff]  }
  0xad   :  { %2085 = vmatprep.subr.bf16.mxu0 %v2836_v61  ;;  %v2922_v61 = vld [vmem:[%s3982_s1 + $0x790] ss:$8 sps:$4 sm:$0xff]  }
  0xaf   :  { %1922 = vmatpush1.bf16.msra.mxu1 %v2831_v62  ;;  %v2927_v62 = vld [vmem:[%s3982_s1 + $0x3a4] ss:$8 sps:$4 sm:$0xff]  }
  0xb0   :  { %2086 = vmatpush1.bf16.msra.mxu0 %v2834_v63  ;;  %1923 = vmatprep.subr.bf16.mxu1 %v2839_v0  ;;  %v2930_v63 = vld [vmem:[%s3982_s1 + $0x7a4] ss:$8 sps:$4 sm:$0xff]   ;;  %v2925_v0 = vld [vmem:[%s3982_s1 + $0x3a0] ss:$8 sps:$4 sm:$0xff]  }
  0xb1   :  { %2087 = vmatprep.subr.bf16.mxu0 %v2842_v1  ;;  %v2928_v1 = vld [vmem:[%s3982_s1 + $0x7a0] ss:$8 sps:$4 sm:$0xff]  }
  0xb3   :  { %1924 = vmatpush1.bf16.msra.mxu1 %v2837_v2  ;;  %v2933_v2 = vld [vmem:[%s3982_s1 + $0x3b4] ss:$8 sps:$4 sm:$0xff]  }
  0xb4   :  { %2088 = vmatpush1.bf16.msra.mxu0 %v2840_v3  ;;  %1925 = vmatprep.subr.bf16.mxu1 %v2845_v4  ;;  %v2936_v3 = vld [vmem:[%s3982_s1 + $0x7b4] ss:$8 sps:$4 sm:$0xff]   ;;  %v2931_v4 = vld [vmem:[%s3982_s1 + $0x3b0] ss:$8 sps:$4 sm:$0xff]  }
  0xb5   :  { %2089 = vmatprep.subr.bf16.mxu0 %v2848_v5  ;;  %v2934_v5 = vld [vmem:[%s3982_s1 + $0x7b0] ss:$8 sps:$4 sm:$0xff]  }
  0xb7   :  { %1926 = vmatpush1.bf16.msra.mxu1 %v2843_v6  ;;  %v2939_v6 = vld [vmem:[%s3982_s1 + $0x3c4] ss:$8 sps:$4 sm:$0xff]  }
  0xb8   :  { %2090 = vmatpush1.bf16.msra.mxu0 %v2846_v7  ;;  %1927 = vmatprep.subr.bf16.mxu1 %v2851_v8  ;;  %v2942_v7 = vld [vmem:[%s3982_s1 + $0x7c4] ss:$8 sps:$4 sm:$0xff]   ;;  %v2937_v8 = vld [vmem:[%s3982_s1 + $0x3c0] ss:$8 sps:$4 sm:$0xff]  }
  0xb9   :  { %2091 = vmatprep.subr.bf16.mxu0 %v2854_v9  ;;  %v2940_v9 = vld [vmem:[%s3982_s1 + $0x7c0] ss:$8 sps:$4 sm:$0xff]  }
  0xbb   :  { %1928 = vmatpush1.bf16.msra.mxu1 %v2849_v10  ;;  %v2945_v10 = vld [vmem:[%s3982_s1 + $0x3d4] ss:$8 sps:$4 sm:$0xff]  }
  0xbc   :  { %2092 = vmatpush1.bf16.msra.mxu0 %v2852_v11  ;;  %1929 = vmatprep.subr.bf16.mxu1 %v2857_v12  ;;  %v2948_v11 = vld [vmem:[%s3982_s1 + $0x7d4] ss:$8 sps:$4 sm:$0xff]   ;;  %v2943_v12 = vld [vmem:[%s3982_s1 + $0x3d0] ss:$8 sps:$4 sm:$0xff]  }
  0xbd   :  { %2093 = vmatprep.subr.bf16.mxu0 %v2860_v13  ;;  %v2946_v13 = vld [vmem:[%s3982_s1 + $0x7d0] ss:$8 sps:$4 sm:$0xff]  }
  0xbf   :  { %1930 = vmatpush1.bf16.msra.mxu1 %v2855_v14  ;;  %v2951_v14 = vld [vmem:[%s3982_s1 + $0x3e4] ss:$8 sps:$4 sm:$0xff]  }
  0xc0   :  { %2094 = vmatpush1.bf16.msra.mxu0 %v2858_v15  ;;  %1940 = vmatprep.subr.bf16.mxu1 %v2865_v16  ;;  %v2954_v15 = vld [vmem:[%s3982_s1 + $0x7e4] ss:$8 sps:$4 sm:$0xff]   ;;  %v2949_v16 = vld [vmem:[%s3982_s1 + $0x3e0] ss:$8 sps:$4 sm:$0xff]  }
  0xc1   :  { %2104 = vmatprep.subr.bf16.mxu0 %v2870_v17  ;;  %v2952_v17 = vld [vmem:[%s3982_s1 + $0x7e0] ss:$8 sps:$4 sm:$0xff]  }
  0xc2   :  { %1932 = vmatmul.mubr.bf16.vlgmr.msra.gmra.mrb[0].mxu1 %v2231_v22  ;;  %v2955_v22 = vld [vmem:[%s3982_s1 + $0x3f0] ss:$8 sps:$4 sm:$0xff]  }
  0xc3   :  { %2096 = vmatmul.mubr.bf16.vlgmr.msra.gmra.mrb[0].mxu0 %v2239_v23  ;;  %1941 = vmatpush1.bf16.msra.mxu1 %v2863_v19  ;;  %v2957_v19 = vld [vmem:[%s3982_s1 + $0x3f4] ss:$8 sps:$4 sm:$0xff]   ;;  %v2958_v23 = vld [vmem:[%s3982_s1 + $0x7f0] ss:$8 sps:$4 sm:$0xff]  }
  0xc4   :  { %2105 = vmatpush1.bf16.msra.mxu0 %v2868_v21  ;;  %1942 = vmatprep.subr.bf16.mxu1 %v2873_v26  ;;  %v2960_v21 = vld [vmem:[%s3982_s1 + $0x7f4] ss:$8 sps:$4 sm:$0xff]   ;;  %v2967_v26 = vld [vmem:[%s3982_s1 + $0x804] ss:$8 sps:$4 sm:$0xff]  }
  0xc5   :  { %2106 = vmatprep.subr.bf16.mxu0 %v2876_v18  ;;  %1972 = vmatprep.mubr.bf16.mxu1 %v2234_v20  ;;  %v3870_v18 = vld [vmem:[%s3983_s0 + $0x40] sm:$0xff]  ;;  %v2233_v20 = vcombine.low %v3673_v24, %v3673_v24  ;;  %v2968_v24 = vld [vmem:[%s3982_s1 + $0x810] ss:$8 sps:$4 sm:$0xff]  }
  0xc6   :  { %2136 = vmatprep.mubr.bf16.mxu0 %v2242_v27  ;;  %v2241_v27 = vcombine.low %v3678_v25, %v3678_v25  ;;  %v2973_v25 = vld [vmem:[%s3982_s1 + $0x824] ss:$8 sps:$4 sm:$0xff]  }
  0xc7   :  { %1943 = vmatpush1.bf16.msra.mxu1 %v2871_v28  ;;  %v2965_v28 = vld [vmem:[%s3982_s1 + $0x800] ss:$8 sps:$4 sm:$0xff]  }
  0xc8   :  { %2107 = vmatpush1.bf16.msra.mxu0 %v2874_v29  ;;  %1944 = vmatprep.subr.bf16.mxu1 %v2879_v30  ;;  %v2244_v29 = vcombine.high %v3870_v18, %v3870_v18  ;;  %v2970_v30 = vld [vmem:[%s3982_s1 + $0x814] ss:$8 sps:$4 sm:$0xff]  }
  0xc9   :  { %2108 = vmatprep.subr.bf16.mxu0 %v2882_v31  ;;  %v2971_v31 = vld [vmem:[%s3982_s1 + $0x820] ss:$8 sps:$4 sm:$0xff]  }
  0xcb   :  { %1945 = vmatpush1.bf16.msra.mxu1 %v2877_v32  ;;  %v2976_v32 = vld [vmem:[%s3982_s1 + $0x834] ss:$8 sps:$4 sm:$0xff]  }
  0xcc   :  { %2109 = vmatpush1.bf16.msra.mxu0 %v2880_v33  ;;  %1946 = vmatprep.subr.bf16.mxu1 %v2885_v34  ;;  %v2974_v33 = vld [vmem:[%s3982_s1 + $0x830] ss:$8 sps:$4 sm:$0xff]   ;;  %v2979_v34 = vld [vmem:[%s3982_s1 + $0x844] ss:$8 sps:$4 sm:$0xff]  }
  0xcd   :  { %2110 = vmatprep.subr.bf16.mxu0 %v2888_v35  ;;  %v2977_v35 = vld [vmem:[%s3982_s1 + $0x840] ss:$8 sps:$4 sm:$0xff]  }
  0xcf   :  { %1947 = vmatpush1.bf16.msra.mxu1 %v2883_v36  ;;  %v2982_v36 = vld [vmem:[%s3982_s1 + $0x854] ss:$8 sps:$4 sm:$0xff]  }
  0xd0   :  { %2111 = vmatpush1.bf16.msra.mxu0 %v2886_v37  ;;  %1948 = vmatprep.subr.bf16.mxu1 %v2891_v38  ;;  %v2980_v37 = vld [vmem:[%s3982_s1 + $0x850] ss:$8 sps:$4 sm:$0xff]   ;;  %v2985_v38 = vld [vmem:[%s3982_s1 + $0x864] ss:$8 sps:$4 sm:$0xff]  }
  0xd1   :  { %2112 = vmatprep.subr.bf16.mxu0 %v2894_v39  ;;  %v2983_v39 = vld [vmem:[%s3982_s1 + $0x860] ss:$8 sps:$4 sm:$0xff]  }
  0xd3   :  { %1949 = vmatpush1.bf16.msra.mxu1 %v2889_v40  ;;  %v2988_v40 = vld [vmem:[%s3982_s1 + $0x874] ss:$8 sps:$4 sm:$0xff]  }
  0xd4   :  { %2113 = vmatpush1.bf16.msra.mxu0 %v2892_v41  ;;  %1950 = vmatprep.subr.bf16.mxu1 %v2897_v42  ;;  %v2986_v41 = vld [vmem:[%s3982_s1 + $0x870] ss:$8 sps:$4 sm:$0xff]   ;;  %v2991_v42 = vld [vmem:[%s3982_s1 + $0x884] ss:$8 sps:$4 sm:$0xff]  }
  0xd5   :  { %2114 = vmatprep.subr.bf16.mxu0 %v2900_v43  ;;  %v2989_v43 = vld [vmem:[%s3982_s1 + $0x880] ss:$8 sps:$4 sm:$0xff]  }
  0xd7   :  { %1951 = vmatpush1.bf16.msra.mxu1 %v2895_v44  ;;  %v2994_v44 = vld [vmem:[%s3982_s1 + $0x894] ss:$8 sps:$4 sm:$0xff]  }
  0xd8   :  { %2115 = vmatpush1.bf16.msra.mxu0 %v2898_v45  ;;  %1952 = vmatprep.subr.bf16.mxu1 %v2903_v46  ;;  %v2992_v45 = vld [vmem:[%s3982_s1 + $0x890] ss:$8 sps:$4 sm:$0xff]   ;;  %v2997_v46 = vld [vmem:[%s3982_s1 + $0x8a4] ss:$8 sps:$4 sm:$0xff]  }
  0xd9   :  { %2116 = vmatprep.subr.bf16.mxu0 %v2906_v47  ;;  %v2995_v47 = vld [vmem:[%s3982_s1 + $0x8a0] ss:$8 sps:$4 sm:$0xff]  }
  0xdb   :  { %1953 = vmatpush1.bf16.msra.mxu1 %v2901_v48  ;;  %v3000_v48 = vld [vmem:[%s3982_s1 + $0x8b4] ss:$8 sps:$4 sm:$0xff]  }
  0xdc   :  { %2117 = vmatpush1.bf16.msra.mxu0 %v2904_v49  ;;  %1954 = vmatprep.subr.bf16.mxu1 %v2909_v50  ;;  %v2998_v49 = vld [vmem:[%s3982_s1 + $0x8b0] ss:$8 sps:$4 sm:$0xff]   ;;  %v3003_v50 = vld [vmem:[%s3982_s1 + $0x8c4] ss:$8 sps:$4 sm:$0xff]  }
  0xdd   :  { %2118 = vmatprep.subr.bf16.mxu0 %v2912_v51  ;;  %v3001_v51 = vld [vmem:[%s3982_s1 + $0x8c0] ss:$8 sps:$4 sm:$0xff]  }
  0xdf   :  { %1955 = vmatpush1.bf16.msra.mxu1 %v2907_v52  ;;  %v3006_v52 = vld [vmem:[%s3982_s1 + $0x8d4] ss:$8 sps:$4 sm:$0xff]  }
  0xe0   :  { %2119 = vmatpush1.bf16.msra.mxu0 %v2910_v53  ;;  %1956 = vmatprep.subr.bf16.mxu1 %v2915_v54  ;;  %v3004_v53 = vld [vmem:[%s3982_s1 + $0x8d0] ss:$8 sps:$4 sm:$0xff]   ;;  %v3009_v54 = vld [vmem:[%s3982_s1 + $0x8e4] ss:$8 sps:$4 sm:$0xff]  }
  0xe1   :  { %2120 = vmatprep.subr.bf16.mxu0 %v2918_v55  ;;  %v3007_v55 = vld [vmem:[%s3982_s1 + $0x8e0] ss:$8 sps:$4 sm:$0xff]  }
  0xe3   :  { %1957 = vmatpush1.bf16.msra.mxu1 %v2913_v56  ;;  %v3012_v56 = vld [vmem:[%s3982_s1 + $0x8f4] ss:$8 sps:$4 sm:$0xff]  }
  0xe4   :  { %2121 = vmatpush1.bf16.msra.mxu0 %v2916_v57  ;;  %1958 = vmatprep.subr.bf16.mxu1 %v2921_v58  ;;  %v3010_v57 = vld [vmem:[%s3982_s1 + $0x8f0] ss:$8 sps:$4 sm:$0xff]   ;;  %v2243_v58 = vcombine.low %v3870_v18, %v3870_v18 }
  0xe5   :  { %2122 = vmatprep.subr.bf16.mxu0 %v2924_v59 }
  0xe7   :  { %1959 = vmatpush1.bf16.msra.mxu1 %v2919_v60 }
  0xe8   :  { %2123 = vmatpush1.bf16.msra.mxu0 %v2922_v61  ;;  %1960 = vmatprep.subr.bf16.mxu1 %v2927_v62 }
  0xe9   :  { %2124 = vmatprep.subr.bf16.mxu0 %v2930_v63  ;;  %v2188_v63 = vlaneseq }
  0xeb   :  { %1961 = vmatpush1.bf16.msra.mxu1 %v2925_v0  ;;  %v2189_v0 = vshrl.u32 %v2188_v63, 7 }
  0xec   :  { %2125 = vmatpush1.bf16.msra.mxu0 %v2928_v1  ;;  %1962 = vmatprep.subr.bf16.mxu1 %v2933_v2  ;;  %v2186_v2 = vld [vmem:[%s3984_s2] sm:$0x3] }
  0xed   :  { %2126 = vmatprep.subr.bf16.mxu0 %v2936_v3  ;;  %v2190_v1 = vsub.s32 0, %v2189_v0  ;;  %v2194_v3 = vsub.s32 1, %v2189_v0 }
  0xef   :  { %1963 = vmatpush1.bf16.msra.mxu1 %v2931_v4  ;;  %v2200_v4 = vld [vmem:[%s3985_s3] sm:$0x3] }
  0xf0   :  { %2127 = vmatpush1.bf16.msra.mxu0 %v2934_v5  ;;  %1964 = vmatprep.subr.bf16.mxu1 %v2939_v6  ;;  %v2191_v5 = vrot.slane %v2186_v2, %v2190_v1 }
  0xf1   :  { %2128 = vmatprep.subr.bf16.mxu0 %v2942_v7  ;;  %v2195_v7 = vrot.slane %v2186_v2, %v2194_v3 }
  0xf3   :  { %1965 = vmatpush1.bf16.msra.mxu1 %v2937_v8 }
  0xf4   :  { %2129 = vmatpush1.bf16.msra.mxu0 %v2940_v9  ;;  %1966 = vmatprep.subr.bf16.mxu1 %v2945_v10  ;;  %v2205_v9 = vrot.slane %v2200_v4, %v2190_v1 }
  0xf5   :  { %2130 = vmatprep.subr.bf16.mxu0 %v2948_v11 }
  0xf7   :  { %1967 = vmatpush1.bf16.msra.mxu1 %v2943_v12  ;;  %v2209_v12 = vrot.slane %v2200_v4, %v2194_v3 }
  0xf8   :  { %2131 = vmatpush1.bf16.msra.mxu0 %v2946_v13  ;;  %1968 = vmatprep.subr.bf16.mxu1 %v2951_v14 }
  0xf9   :  { %2132 = vmatprep.subr.bf16.mxu0 %v2954_v15 }
  0xfb   :  { %1969 = vmatpush1.bf16.msra.mxu1 %v2949_v16 }
  0xfc   :  { %2133 = vmatpush1.bf16.msra.mxu0 %v2952_v17  ;;  %1970 = vmatprep.subr.bf16.mxu1 %v2957_v19 }
  0xfd   :  { %2134 = vmatprep.subr.bf16.mxu0 %v2960_v21 }
  0xff   :  { %1971 = vmatpush1.bf16.msra.mxu1 %v2955_v22 }
 0x100   :  { %2135 = vmatpush1.bf16.msra.mxu0 %v2958_v23 }
 0x101   :  { %2145 = vmatprep.subr.bf16.mxu0 %v2967_v26 }
 0x102   :  { %1973 = vmatmul.mubr.bf16.vlgmr.msra.gmra.mrb[0].mxu1 %v2233_v20 }
 0x103   :  { %2137 = vmatmul.mubr.bf16.vlgmr.msra.gmra.mrb[0].mxu0 %v2241_v27 }
 0x104   :  { %2146 = vmatpush1.bf16.msra.mxu0 %v2965_v28  ;;  %2177 = vmatprep.mubr.bf16.mxu0 %v2244_v29 }
 0x105   :  { %2147 = vmatprep.subr.bf16.mxu0 %v2970_v30 }
 0x108   :  { %2148 = vmatpush1.bf16.msra.mxu0 %v2968_v24 }
 0x109   :  { %2149 = vmatprep.subr.bf16.mxu0 %v2973_v25 }
 0x10c   :  { %2150 = vmatpush1.bf16.msra.mxu0 %v2971_v31 }
 0x10d   :  { %2151 = vmatprep.subr.bf16.mxu0 %v2976_v32 }
 0x110   :  { %2152 = vmatpush1.bf16.msra.mxu0 %v2974_v33 }
 0x111   :  { %2153 = vmatprep.subr.bf16.mxu0 %v2979_v34 }
 0x114   :  { %2154 = vmatpush1.bf16.msra.mxu0 %v2977_v35 }
 0x115   :  { %2155 = vmatprep.subr.bf16.mxu0 %v2982_v36 }
 0x118   :  { %2156 = vmatpush1.bf16.msra.mxu0 %v2980_v37 }
 0x119   :  { %2157 = vmatprep.subr.bf16.mxu0 %v2985_v38 }
 0x11c   :  { %2158 = vmatpush1.bf16.msra.mxu0 %v2983_v39 }
 0x11d   :  { %2159 = vmatprep.subr.bf16.mxu0 %v2988_v40 }
 0x120   :  { %2160 = vmatpush1.bf16.msra.mxu0 %v2986_v41 }
 0x121   :  { %2161 = vmatprep.subr.bf16.mxu0 %v2991_v42 }
 0x124   :  { %2162 = vmatpush1.bf16.msra.mxu0 %v2989_v43 }
 0x125   :  { %2163 = vmatprep.subr.bf16.mxu0 %v2994_v44 }
 0x128   :  { %2164 = vmatpush1.bf16.msra.mxu0 %v2992_v45 }
 0x129   :  { %2165 = vmatprep.subr.bf16.mxu0 %v2997_v46 }
 0x12c   :  { %2166 = vmatpush1.bf16.msra.mxu0 %v2995_v47 }
 0x12d   :  { %2167 = vmatprep.subr.bf16.mxu0 %v3000_v48 }
 0x130   :  { %2168 = vmatpush1.bf16.msra.mxu0 %v2998_v49 }
 0x131   :  { %2169 = vmatprep.subr.bf16.mxu0 %v3003_v50 }
 0x134   :  { %2170 = vmatpush1.bf16.msra.mxu0 %v3001_v51 }
 0x135   :  { %2171 = vmatprep.subr.bf16.mxu0 %v3006_v52 }
 0x138   :  { %2172 = vmatpush1.bf16.msra.mxu0 %v3004_v53 }
 0x139   :  { %2173 = vmatprep.subr.bf16.mxu0 %v3009_v54 }
 0x13c   :  { %2174 = vmatpush1.bf16.msra.mxu0 %v3007_v55 }
 0x13d   :  { %2175 = vmatprep.subr.bf16.mxu0 %v3012_v56 }
 0x140   :  { %2176 = vmatpush1.bf16.msra.mxu0 %v3010_v57 }
 0x143   :  { %2178 = vmatmul.mubr.bf16.vlgmr.msra.gmra.mrb[0].mxu0 %v2243_v58 }
 0x1d5   :  { %v1974_v59 = vpop.f32.mrb[0].mxu1 }
 0x1d6   :  { %v1976_v60 = vpop.f32.mrb[1].mxu1 }
 0x1d7   :  { %v1978_v61 = vpop.f32.mrb[2].mxu1 }
 0x1d8   :  { %v1979_v62 = vpop.f32.mrb[3].mxu1 }
 0x216   :  { %v2179_v6 = vpop.f32.mrb[0].mxu0 }
 0x217   :  { %v2535_v8 = vadd.f32 %v2179_v6, %v1974_v59  ;;  %v2181_v10 = vpop.f32.mrb[1].mxu0 }
 0x218   :  { %v2536_v11 = vadd.f32 %v2181_v10, %v1976_v60  ;;  %v2183_v13 = vpop.f32.mrb[2].mxu0 }
 0x219   :  { %v2198_v14 = vmul.f32 %v2535_v8, %v2191_v5  ;;  %v2184_v15 = vpop.f32.mrb[3].mxu0 }
 0x21a   :  { %v2199_v16 = vmul.f32 %v2536_v11, %v2195_v7 }
 0x21b   :  { %v2212_v17 = vadd.f32 %v2205_v9, %v2198_v14 }
 0x21c   :  { %v2213_v19 = vadd.f32 %v2209_v12, %v2199_v16 }
 0x21e   :  { %v2534_v21 = vpack.c.bf16 %v2213_v19, %v2212_v17 }
 0x220   :  { %2222 = vst [vmem:[%s3986_s4] sm:$0xff] %v2534_v21 }

// kernel: _lambda_.11
= control target key start
LH: loop header
LB: loop body
LE: loop exit
PB: predicated region body
PF: predicated region fallthrough
CT: control target
= control target key end

     0   :  { %s4584_s15 = smov 0   ;;  %s4586_s16 = smov 0   ;;  %s5593_s0 = inlined_call_operand.vmem [shape: bf16[8,2304], index: 0, kind: input, shape index: {}]   ;;  %s5594_s1 = inlined_call_operand.vmem [shape: bf16[2304,512], index: 1, kind: input, shape index: {}]   ;;  %s5595_s2 = inlined_call_operand.vmem [shape: f32[1,512], index: 2, kind: input, shape index: {}]   ;;  %s5596_s3 = inlined_call_operand.vmem [shape: f32[1,512], index: 3, kind: input, shape index: {}]   ;;  %s5597_s4 = inlined_call_operand.vmem [shape: bf16[8,512], index: 4, kind: output, shape index: {}]  }
   0x1   :  { %s4588_s17 = smov 0  }
   0x2 LB: > { %s3707_s18 = sadd.s32 4294967295, %s4557_s17   ;;  %s4601_s19 = sadd.s32 1, %s4557_s17   ;;  %s4557_s17 = sphi %s4588_s17, %s5600_s17   ;;  %s4553_s16 = sphi %s4586_s16, %s5599_s16   ;;  %s4549_s15 = sphi %s4584_s15, %s5598_s15  }
   0x3   : > { %s39_s20 = ssub.s32 %s4557_s17, %s4601_s19  ;;  %s42_s21 = sadd.s32 1, %s4553_s16 }
   0x4   : > { %p40_p0 = scmp.eq.s32.totalorder %s39_s20, 0  ;;  %p49_p1 = scmp.ne.s32.totalorder %s4553_s16, %s4549_s15 }
   0x5   : > { %p50_p2 = scmp.eq.s32.totalorder %s4557_s17, 0  ;;  %p3710_p4 = scmp.ge.s32.totalorder %s4557_s17, 2 }
   0x6   : > { %s4610_s22 = scalar_select %p40_p0, %s4553_s16, %s42_s21  }
   0x7   : > { %p51_p3 = por %p50_p2, %p49_p1  ;;  %156 = sbr.rel (%p3710_p4) target bundleno = 162 (0xa2), region = 20 }
   0xe   : > { %159 = sbr.rel (!%p51_p3) target bundleno = 162 (0xa2), region = 24  ;;  %s161_s23 = sand.u32 (%p51_p3), 1, %s4553_s16  }
   0xf   : > { %s4027_s24 = sshll.u32 (%p51_p3), %s4557_s17, 3  ;;  %s4059_s25 = smul.u32 (%p51_p3), 2304, %s161_s23 }
  0x10   : > { %s4618_s28 = scalar_lea.vmem (%p51_p3), %s5594_s1, %s4027_s24 }
  0x11   : > { %v768_v0 = vld [vmem:[%s4618_s28] sm:$0xff] (%p51_p3)  ;;  %v770_v1 = vld [vmem:[%s4618_s28 + $0x10] sm:$0xff] (%p51_p3)  ;;  %s4626_s29 = scalar_lea.vmem (%p51_p3), [#allocation2], %s4059_s25 }
  0x12   : > { %v772_v2 = vld [vmem:[%s4618_s28 + $0x20] sm:$0xff] (%p51_p3)  ;;  %v774_v3 = vld [vmem:[%s4618_s28 + $0x30] sm:$0xff] (%p51_p3)  ;;  %769 = vst [vmem:[%s4626_s29] sm:$0xff] (%p51_p3), %v768_v0  ;;  %771 = vst [vmem:[%s4626_s29 + $0x8] sm:$0xff] (%p51_p3), %v770_v1 }
  0x13   : > { %v776_v4 = vld [vmem:[%s4618_s28 + $0x40] sm:$0xff] (%p51_p3)  ;;  %v778_v5 = vld [vmem:[%s4618_s28 + $0x50] sm:$0xff] (%p51_p3)  ;;  %773 = vst [vmem:[%s4626_s29 + $0x10] sm:$0xff] (%p51_p3), %v772_v2  ;;  %775 = vst [vmem:[%s4626_s29 + $0x18] sm:$0xff] (%p51_p3), %v774_v3 }
  0x14   : > { %777 = vst [vmem:[%s4626_s29 + $0x20] sm:$0xff] (%p51_p3), %v776_v4  ;;  %779 = vst [vmem:[%s4626_s29 + $0x28] sm:$0xff] (%p51_p3), %v778_v5  ;;  %v780_v6 = vld [vmem:[%s4618_s28 + $0x60] sm:$0xff] (%p51_p3)  ;;  %v782_v7 = vld [vmem:[%s4618_s28 + $0x70] sm:$0xff] (%p51_p3) }
  0x15   : > { %v784_v8 = vld [vmem:[%s4618_s28 + $0x80] sm:$0xff]  ;;  %781 = vst [vmem:[%s4626_s29 + $0x30] sm:$0xff] %v780_v6  ;;  %783 = vst [vmem:[%s4626_s29 + $0x38] sm:$0xff] %v782_v7  ;;  %v786_v9 = vld [vmem:[%s4618_s28 + $0x90] sm:$0xff] }
  0x16   : > { %785 = vst [vmem:[%s4626_s29 + $0x40] sm:$0xff] %v784_v8  ;;  %v788_v10 = vld [vmem:[%s4618_s28 + $0xa0] sm:$0xff]  ;;  %v790_v11 = vld [vmem:[%s4618_s28 + $0xb0] sm:$0xff]  ;;  %787 = vst [vmem:[%s4626_s29 + $0x48] sm:$0xff] %v786_v9 }
  0x17   : > { %789 = vst [vmem:[%s4626_s29 + $0x50] sm:$0xff] %v788_v10  ;;  %791 = vst [vmem:[%s4626_s29 + $0x58] sm:$0xff] %v790_v11  ;;  %v792_v12 = vld [vmem:[%s4618_s28 + $0xc0] sm:$0xff]  ;;  %v794_v13 = vld [vmem:[%s4618_s28 + $0xd0] sm:$0xff] }
  0x18   : > { %v796_v14 = vld [vmem:[%s4618_s28 + $0xe0] sm:$0xff]  ;;  %793 = vst [vmem:[%s4626_s29 + $0x60] sm:$0xff] %v792_v12  ;;  %795 = vst [vmem:[%s4626_s29 + $0x68] sm:$0xff] %v794_v13  ;;  %v798_v15 = vld [vmem:[%s4618_s28 + $0xf0] sm:$0xff] }
  0x19   : > { %797 = vst [vmem:[%s4626_s29 + $0x70] sm:$0xff] %v796_v14  ;;  %v800_v16 = vld [vmem:[%s4618_s28 + $0x100] sm:$0xff]  ;;  %v802_v17 = vld [vmem:[%s4618_s28 + $0x110] sm:$0xff]  ;;  %799 = vst [vmem:[%s4626_s29 + $0x78] sm:$0xff] %v798_v15 }
  0x1a   : > { %801 = vst [vmem:[%s4626_s29 + $0x80] sm:$0xff] %v800_v16  ;;  %803 = vst [vmem:[%s4626_s29 + $0x88] sm:$0xff] %v802_v17  ;;  %v804_v18 = vld [vmem:[%s4618_s28 + $0x120] sm:$0xff]  ;;  %v806_v19 = vld [vmem:[%s4618_s28 + $0x130] sm:$0xff] }
  0x1b   : > { %v808_v20 = vld [vmem:[%s4618_s28 + $0x140] sm:$0xff]  ;;  %805 = vst [vmem:[%s4626_s29 + $0x90] sm:$0xff] %v804_v18  ;;  %807 = vst [vmem:[%s4626_s29 + $0x98] sm:$0xff] %v806_v19  ;;  %v810_v21 = vld [vmem:[%s4618_s28 + $0x150] sm:$0xff] }
  0x1c   : > { %809 = vst [vmem:[%s4626_s29 + $0xa0] sm:$0xff] %v808_v20  ;;  %v812_v22 = vld [vmem:[%s4618_s28 + $0x160] sm:$0xff]  ;;  %v814_v23 = vld [vmem:[%s4618_s28 + $0x170] sm:$0xff]  ;;  %811 = vst [vmem:[%s4626_s29 + $0xa8] sm:$0xff] %v810_v21 }
  0x1d   : > { %813 = vst [vmem:[%s4626_s29 + $0xb0] sm:$0xff] %v812_v22  ;;  %815 = vst [vmem:[%s4626_s29 + $0xb8] sm:$0xff] %v814_v23  ;;  %v816_v24 = vld [vmem:[%s4618_s28 + $0x180] sm:$0xff]  ;;  %v818_v25 = vld [vmem:[%s4618_s28 + $0x190] sm:$0xff] }
  0x1e   : > { %v820_v26 = vld [vmem:[%s4618_s28 + $0x1a0] sm:$0xff]  ;;  %817 = vst [vmem:[%s4626_s29 + $0xc0] sm:$0xff] %v816_v24  ;;  %819 = vst [vmem:[%s4626_s29 + $0xc8] sm:$0xff] %v818_v25  ;;  %v822_v27 = vld [vmem:[%s4618_s28 + $0x1b0] sm:$0xff] }
  0x1f   : > { %821 = vst [vmem:[%s4626_s29 + $0xd0] sm:$0xff] %v820_v26  ;;  %v824_v28 = vld [vmem:[%s4618_s28 + $0x1c0] sm:$0xff]  ;;  %v826_v29 = vld [vmem:[%s4618_s28 + $0x1d0] sm:$0xff]  ;;  %823 = vst [vmem:[%s4626_s29 + $0xd8] sm:$0xff] %v822_v27 }
  0x20   : > { %825 = vst [vmem:[%s4626_s29 + $0xe0] sm:$0xff] %v824_v28  ;;  %827 = vst [vmem:[%s4626_s29 + $0xe8] sm:$0xff] %v826_v29  ;;  %v828_v30 = vld [vmem:[%s4618_s28 + $0x1e0] sm:$0xff]  ;;  %v830_v31 = vld [vmem:[%s4618_s28 + $0x1f0] sm:$0xff] }
  0x21   : > { %v832_v32 = vld [vmem:[%s4618_s28 + $0x200] sm:$0xff]  ;;  %829 = vst [vmem:[%s4626_s29 + $0xf0] sm:$0xff] %v828_v30  ;;  %831 = vst [vmem:[%s4626_s29 + $0xf8] sm:$0xff] %v830_v31  ;;  %v834_v33 = vld [vmem:[%s4618_s28 + $0x210] sm:$0xff] }
  0x22   : > { %833 = vst [vmem:[%s4626_s29 + $0x100] sm:$0xff] %v832_v32  ;;  %v836_v34 = vld [vmem:[%s4618_s28 + $0x220] sm:$0xff]  ;;  %v838_v35 = vld [vmem:[%s4618_s28 + $0x230] sm:$0xff]  ;;  %835 = vst [vmem:[%s4626_s29 + $0x108] sm:$0xff] %v834_v33 }
  0x23   : > { %837 = vst [vmem:[%s4626_s29 + $0x110] sm:$0xff] %v836_v34  ;;  %839 = vst [vmem:[%s4626_s29 + $0x118] sm:$0xff] %v838_v35  ;;  %v840_v36 = vld [vmem:[%s4618_s28 + $0x240] sm:$0xff]  ;;  %v842_v37 = vld [vmem:[%s4618_s28 + $0x250] sm:$0xff] }
  0x24   : > { %v844_v38 = vld [vmem:[%s4618_s28 + $0x260] sm:$0xff]  ;;  %841 = vst [vmem:[%s4626_s29 + $0x120] sm:$0xff] %v840_v36  ;;  %843 = vst [vmem:[%s4626_s29 + $0x128] sm:$0xff] %v842_v37  ;;  %v846_v39 = vld [vmem:[%s4618_s28 + $0x270] sm:$0xff] }
  0x25   : > { %845 = vst [vmem:[%s4626_s29 + $0x130] sm:$0xff] %v844_v38  ;;  %v848_v40 = vld [vmem:[%s4618_s28 + $0x280] sm:$0xff]  ;;  %v850_v41 = vld [vmem:[%s4618_s28 + $0x290] sm:$0xff]  ;;  %847 = vst [vmem:[%s4626_s29 + $0x138] sm:$0xff] %v846_v39 }
  0x26   : > { %849 = vst [vmem:[%s4626_s29 + $0x140] sm:$0xff] %v848_v40  ;;  %851 = vst [vmem:[%s4626_s29 + $0x148] sm:$0xff] %v850_v41  ;;  %v852_v42 = vld [vmem:[%s4618_s28 + $0x2a0] sm:$0xff]  ;;  %v854_v43 = vld [vmem:[%s4618_s28 + $0x2b0] sm:$0xff] }
  0x27   : > { %v856_v44 = vld [vmem:[%s4618_s28 + $0x2c0] sm:$0xff]  ;;  %853 = vst [vmem:[%s4626_s29 + $0x150] sm:$0xff] %v852_v42  ;;  %855 = vst [vmem:[%s4626_s29 + $0x158] sm:$0xff] %v854_v43  ;;  %v858_v45 = vld [vmem:[%s4618_s28 + $0x2d0] sm:$0xff] }
  0x28   : > { %857 = vst [vmem:[%s4626_s29 + $0x160] sm:$0xff] %v856_v44  ;;  %v860_v46 = vld [vmem:[%s4618_s28 + $0x2e0] sm:$0xff]  ;;  %v862_v47 = vld [vmem:[%s4618_s28 + $0x2f0] sm:$0xff]  ;;  %859 = vst [vmem:[%s4626_s29 + $0x168] sm:$0xff] %v858_v45 }
  0x29   : > { %861 = vst [vmem:[%s4626_s29 + $0x170] sm:$0xff] %v860_v46  ;;  %863 = vst [vmem:[%s4626_s29 + $0x178] sm:$0xff] %v862_v47  ;;  %v864_v48 = vld [vmem:[%s4618_s28 + $0x300] sm:$0xff]  ;;  %v866_v49 = vld [vmem:[%s4618_s28 + $0x310] sm:$0xff] }
  0x2a   : > { %v868_v50 = vld [vmem:[%s4618_s28 + $0x320] sm:$0xff]  ;;  %865 = vst [vmem:[%s4626_s29 + $0x180] sm:$0xff] %v864_v48  ;;  %867 = vst [vmem:[%s4626_s29 + $0x188] sm:$0xff] %v866_v49  ;;  %v870_v51 = vld [vmem:[%s4618_s28 + $0x330] sm:$0xff] }
  0x2b   : > { %869 = vst [vmem:[%s4626_s29 + $0x190] sm:$0xff] %v868_v50  ;;  %v872_v52 = vld [vmem:[%s4618_s28 + $0x340] sm:$0xff]  ;;  %v874_v53 = vld [vmem:[%s4618_s28 + $0x350] sm:$0xff]  ;;  %871 = vst [vmem:[%s4626_s29 + $0x198] sm:$0xff] %v870_v51 }
  0x2c   : > { %873 = vst [vmem:[%s4626_s29 + $0x1a0] sm:$0xff] %v872_v52  ;;  %875 = vst [vmem:[%s4626_s29 + $0x1a8] sm:$0xff] %v874_v53  ;;  %v876_v54 = vld [vmem:[%s4618_s28 + $0x360] sm:$0xff]  ;;  %v878_v55 = vld [vmem:[%s4618_s28 + $0x370] sm:$0xff] }
  0x2d   : > { %v880_v56 = vld [vmem:[%s4618_s28 + $0x380] sm:$0xff]  ;;  %877 = vst [vmem:[%s4626_s29 + $0x1b0] sm:$0xff] %v876_v54  ;;  %879 = vst [vmem:[%s4626_s29 + $0x1b8] sm:$0xff] %v878_v55  ;;  %v882_v57 = vld [vmem:[%s4618_s28 + $0x390] sm:$0xff] }
  0x2e   : > { %881 = vst [vmem:[%s4626_s29 + $0x1c0] sm:$0xff] %v880_v56  ;;  %v884_v58 = vld [vmem:[%s4618_s28 + $0x3a0] sm:$0xff]  ;;  %v886_v59 = vld [vmem:[%s4618_s28 + $0x3b0] sm:$0xff]  ;;  %883 = vst [vmem:[%s4626_s29 + $0x1c8] sm:$0xff] %v882_v57 }
  0x2f   : > { %885 = vst [vmem:[%s4626_s29 + $0x1d0] sm:$0xff] %v884_v58  ;;  %887 = vst [vmem:[%s4626_s29 + $0x1d8] sm:$0xff] %v886_v59  ;;  %v888_v60 = vld [vmem:[%s4618_s28 + $0x3c0] sm:$0xff]  ;;  %v890_v61 = vld [vmem:[%s4618_s28 + $0x3d0] sm:$0xff] }
  0x30   : > { %v892_v62 = vld [vmem:[%s4618_s28 + $0x3e0] sm:$0xff]  ;;  %889 = vst [vmem:[%s4626_s29 + $0x1e0] sm:$0xff] %v888_v60  ;;  %891 = vst [vmem:[%s4626_s29 + $0x1e8] sm:$0xff] %v890_v61  ;;  %v894_v63 = vld [vmem:[%s4618_s28 + $0x3f0] sm:$0xff] }
  0x31   : > { %893 = vst [vmem:[%s4626_s29 + $0x1f0] sm:$0xff] %v892_v62  ;;  %v896_v0 = vld [vmem:[%s4618_s28 + $0x400] sm:$0xff]  ;;  %v898_v1 = vld [vmem:[%s4618_s28 + $0x410] sm:$0xff]  ;;  %895 = vst [vmem:[%s4626_s29 + $0x1f8] sm:$0xff] %v894_v63 }
  0x32   : > { %897 = vst [vmem:[%s4626_s29 + $0x200] sm:$0xff] %v896_v0  ;;  %899 = vst [vmem:[%s4626_s29 + $0x208] sm:$0xff] %v898_v1  ;;  %v900_v2 = vld [vmem:[%s4618_s28 + $0x420] sm:$0xff]  ;;  %v902_v3 = vld [vmem:[%s4618_s28 + $0x430] sm:$0xff] }
  0x33   : > { %v904_v4 = vld [vmem:[%s4618_s28 + $0x440] sm:$0xff]  ;;  %901 = vst [vmem:[%s4626_s29 + $0x210] sm:$0xff] %v900_v2  ;;  %903 = vst [vmem:[%s4626_s29 + $0x218] sm:$0xff] %v902_v3  ;;  %v906_v5 = vld [vmem:[%s4618_s28 + $0x450] sm:$0xff] }
  0x34   : > { %905 = vst [vmem:[%s4626_s29 + $0x220] sm:$0xff] %v904_v4  ;;  %v908_v6 = vld [vmem:[%s4618_s28 + $0x460] sm:$0xff]  ;;  %v910_v7 = vld [vmem:[%s4618_s28 + $0x470] sm:$0xff]  ;;  %907 = vst [vmem:[%s4626_s29 + $0x228] sm:$0xff] %v906_v5 }
  0x35   : > { %909 = vst [vmem:[%s4626_s29 + $0x230] sm:$0xff] %v908_v6  ;;  %911 = vst [vmem:[%s4626_s29 + $0x238] sm:$0xff] %v910_v7  ;;  %v912_v8 = vld [vmem:[%s4618_s28 + $0x480] sm:$0xff]  ;;  %v914_v9 = vld [vmem:[%s4618_s28 + $0x490] sm:$0xff] }
  0x36   : > { %v916_v10 = vld [vmem:[%s4618_s28 + $0x4a0] sm:$0xff]  ;;  %913 = vst [vmem:[%s4626_s29 + $0x240] sm:$0xff] %v912_v8  ;;  %915 = vst [vmem:[%s4626_s29 + $0x248] sm:$0xff] %v914_v9  ;;  %v918_v11 = vld [vmem:[%s4618_s28 + $0x4b0] sm:$0xff] }
  0x37   : > { %917 = vst [vmem:[%s4626_s29 + $0x250] sm:$0xff] %v916_v10  ;;  %v920_v12 = vld [vmem:[%s4618_s28 + $0x4c0] sm:$0xff]  ;;  %v922_v13 = vld [vmem:[%s4618_s28 + $0x4d0] sm:$0xff]  ;;  %919 = vst [vmem:[%s4626_s29 + $0x258] sm:$0xff] %v918_v11 }
  0x38   : > { %921 = vst [vmem:[%s4626_s29 + $0x260] sm:$0xff] %v920_v12  ;;  %923 = vst [vmem:[%s4626_s29 + $0x268] sm:$0xff] %v922_v13  ;;  %v924_v14 = vld [vmem:[%s4618_s28 + $0x4e0] sm:$0xff]  ;;  %v926_v15 = vld [vmem:[%s4618_s28 + $0x4f0] sm:$0xff] }
  0x39   : > { %v928_v16 = vld [vmem:[%s4618_s28 + $0x500] sm:$0xff]  ;;  %925 = vst [vmem:[%s4626_s29 + $0x270] sm:$0xff] %v924_v14  ;;  %927 = vst [vmem:[%s4626_s29 + $0x278] sm:$0xff] %v926_v15  ;;  %v930_v17 = vld [vmem:[%s4618_s28 + $0x510] sm:$0xff] }
  0x3a   : > { %929 = vst [vmem:[%s4626_s29 + $0x280] sm:$0xff] %v928_v16  ;;  %v932_v18 = vld [vmem:[%s4618_s28 + $0x520] sm:$0xff]  ;;  %v934_v19 = vld [vmem:[%s4618_s28 + $0x530] sm:$0xff]  ;;  %931 = vst [vmem:[%s4626_s29 + $0x288] sm:$0xff] %v930_v17 }
  0x3b   : > { %933 = vst [vmem:[%s4626_s29 + $0x290] sm:$0xff] %v932_v18  ;;  %935 = vst [vmem:[%s4626_s29 + $0x298] sm:$0xff] %v934_v19  ;;  %v936_v20 = vld [vmem:[%s4618_s28 + $0x540] sm:$0xff]  ;;  %v938_v21 = vld [vmem:[%s4618_s28 + $0x550] sm:$0xff] }
  0x3c   : > { %v940_v22 = vld [vmem:[%s4618_s28 + $0x560] sm:$0xff]  ;;  %937 = vst [vmem:[%s4626_s29 + $0x2a0] sm:$0xff] %v936_v20  ;;  %939 = vst [vmem:[%s4626_s29 + $0x2a8] sm:$0xff] %v938_v21  ;;  %v942_v23 = vld [vmem:[%s4618_s28 + $0x570] sm:$0xff] }
  0x3d   : > { %941 = vst [vmem:[%s4626_s29 + $0x2b0] sm:$0xff] %v940_v22  ;;  %v944_v24 = vld [vmem:[%s4618_s28 + $0x580] sm:$0xff]  ;;  %v946_v25 = vld [vmem:[%s4618_s28 + $0x590] sm:$0xff]  ;;  %943 = vst [vmem:[%s4626_s29 + $0x2b8] sm:$0xff] %v942_v23 }
  0x3e   : > { %945 = vst [vmem:[%s4626_s29 + $0x2c0] sm:$0xff] %v944_v24  ;;  %947 = vst [vmem:[%s4626_s29 + $0x2c8] sm:$0xff] %v946_v25  ;;  %v948_v26 = vld [vmem:[%s4618_s28 + $0x5a0] sm:$0xff]  ;;  %v950_v27 = vld [vmem:[%s4618_s28 + $0x5b0] sm:$0xff] }
  0x3f   : > { %v952_v28 = vld [vmem:[%s4618_s28 + $0x5c0] sm:$0xff]  ;;  %949 = vst [vmem:[%s4626_s29 + $0x2d0] sm:$0xff] %v948_v26  ;;  %951 = vst [vmem:[%s4626_s29 + $0x2d8] sm:$0xff] %v950_v27  ;;  %v954_v29 = vld [vmem:[%s4618_s28 + $0x5d0] sm:$0xff] }
  0x40   : > { %953 = vst [vmem:[%s4626_s29 + $0x2e0] sm:$0xff] %v952_v28  ;;  %v956_v30 = vld [vmem:[%s4618_s28 + $0x5e0] sm:$0xff]  ;;  %v958_v31 = vld [vmem:[%s4618_s28 + $0x5f0] sm:$0xff]  ;;  %955 = vst [vmem:[%s4626_s29 + $0x2e8] sm:$0xff] %v954_v29 }
  0x41   : > { %957 = vst [vmem:[%s4626_s29 + $0x2f0] sm:$0xff] %v956_v30  ;;  %959 = vst [vmem:[%s4626_s29 + $0x2f8] sm:$0xff] %v958_v31  ;;  %v960_v32 = vld [vmem:[%s4618_s28 + $0x600] sm:$0xff]  ;;  %v962_v33 = vld [vmem:[%s4618_s28 + $0x610] sm:$0xff] }
  0x42   : > { %v964_v34 = vld [vmem:[%s4618_s28 + $0x620] sm:$0xff]  ;;  %961 = vst [vmem:[%s4626_s29 + $0x300] sm:$0xff] %v960_v32  ;;  %963 = vst [vmem:[%s4626_s29 + $0x308] sm:$0xff] %v962_v33  ;;  %v966_v35 = vld [vmem:[%s4618_s28 + $0x630] sm:$0xff] }
  0x43   : > { %965 = vst [vmem:[%s4626_s29 + $0x310] sm:$0xff] %v964_v34  ;;  %v968_v36 = vld [vmem:[%s4618_s28 + $0x640] sm:$0xff]  ;;  %v970_v37 = vld [vmem:[%s4618_s28 + $0x650] sm:$0xff]  ;;  %967 = vst [vmem:[%s4626_s29 + $0x318] sm:$0xff] %v966_v35 }
  0x44   : > { %969 = vst [vmem:[%s4626_s29 + $0x320] sm:$0xff] %v968_v36  ;;  %971 = vst [vmem:[%s4626_s29 + $0x328] sm:$0xff] %v970_v37  ;;  %v972_v38 = vld [vmem:[%s4618_s28 + $0x660] sm:$0xff]  ;;  %v974_v39 = vld [vmem:[%s4618_s28 + $0x670] sm:$0xff] }
  0x45   : > { %v976_v40 = vld [vmem:[%s4618_s28 + $0x680] sm:$0xff]  ;;  %973 = vst [vmem:[%s4626_s29 + $0x330] sm:$0xff] %v972_v38  ;;  %975 = vst [vmem:[%s4626_s29 + $0x338] sm:$0xff] %v974_v39  ;;  %v978_v41 = vld [vmem:[%s4618_s28 + $0x690] sm:$0xff] }
  0x46   : > { %977 = vst [vmem:[%s4626_s29 + $0x340] sm:$0xff] %v976_v40  ;;  %v980_v42 = vld [vmem:[%s4618_s28 + $0x6a0] sm:$0xff]  ;;  %v982_v43 = vld [vmem:[%s4618_s28 + $0x6b0] sm:$0xff]  ;;  %979 = vst [vmem:[%s4626_s29 + $0x348] sm:$0xff] %v978_v41 }
  0x47   : > { %981 = vst [vmem:[%s4626_s29 + $0x350] sm:$0xff] %v980_v42  ;;  %983 = vst [vmem:[%s4626_s29 + $0x358] sm:$0xff] %v982_v43  ;;  %v984_v44 = vld [vmem:[%s4618_s28 + $0x6c0] sm:$0xff]  ;;  %v986_v45 = vld [vmem:[%s4618_s28 + $0x6d0] sm:$0xff] }
  0x48   : > { %v988_v46 = vld [vmem:[%s4618_s28 + $0x6e0] sm:$0xff]  ;;  %985 = vst [vmem:[%s4626_s29 + $0x360] sm:$0xff] %v984_v44  ;;  %987 = vst [vmem:[%s4626_s29 + $0x368] sm:$0xff] %v986_v45  ;;  %v990_v47 = vld [vmem:[%s4618_s28 + $0x6f0] sm:$0xff] }
  0x49   : > { %989 = vst [vmem:[%s4626_s29 + $0x370] sm:$0xff] %v988_v46  ;;  %v992_v48 = vld [vmem:[%s4618_s28 + $0x700] sm:$0xff]  ;;  %v994_v49 = vld [vmem:[%s4618_s28 + $0x710] sm:$0xff]  ;;  %991 = vst [vmem:[%s4626_s29 + $0x378] sm:$0xff] %v990_v47 }
  0x4a   : > { %993 = vst [vmem:[%s4626_s29 + $0x380] sm:$0xff] %v992_v48  ;;  %995 = vst [vmem:[%s4626_s29 + $0x388] sm:$0xff] %v994_v49  ;;  %v996_v50 = vld [vmem:[%s4618_s28 + $0x720] sm:$0xff]  ;;  %v998_v51 = vld [vmem:[%s4618_s28 + $0x730] sm:$0xff] }
  0x4b   : > { %v1000_v52 = vld [vmem:[%s4618_s28 + $0x740] sm:$0xff]  ;;  %997 = vst [vmem:[%s4626_s29 + $0x390] sm:$0xff] %v996_v50  ;;  %999 = vst [vmem:[%s4626_s29 + $0x398] sm:$0xff] %v998_v51  ;;  %v1002_v53 = vld [vmem:[%s4618_s28 + $0x750] sm:$0xff] }
  0x4c   : > { %1001 = vst [vmem:[%s4626_s29 + $0x3a0] sm:$0xff] %v1000_v52  ;;  %v1004_v54 = vld [vmem:[%s4618_s28 + $0x760] sm:$0xff]  ;;  %v1006_v55 = vld [vmem:[%s4618_s28 + $0x770] sm:$0xff]  ;;  %1003 = vst [vmem:[%s4626_s29 + $0x3a8] sm:$0xff] %v1002_v53 }
  0x4d   : > { %1005 = vst [vmem:[%s4626_s29 + $0x3b0] sm:$0xff] %v1004_v54  ;;  %1007 = vst [vmem:[%s4626_s29 + $0x3b8] sm:$0xff] %v1006_v55  ;;  %v1008_v56 = vld [vmem:[%s4618_s28 + $0x780] sm:$0xff]  ;;  %v1010_v57 = vld [vmem:[%s4618_s28 + $0x790] sm:$0xff] }
  0x4e   : > { %v1012_v58 = vld [vmem:[%s4618_s28 + $0x7a0] sm:$0xff]  ;;  %1009 = vst [vmem:[%s4626_s29 + $0x3c0] sm:$0xff] %v1008_v56  ;;  %1011 = vst [vmem:[%s4626_s29 + $0x3c8] sm:$0xff] %v1010_v57  ;;  %v1014_v59 = vld [vmem:[%s4618_s28 + $0x7b0] sm:$0xff] }
  0x4f   : > { %1013 = vst [vmem:[%s4626_s29 + $0x3d0] sm:$0xff] %v1012_v58  ;;  %v1016_v60 = vld [vmem:[%s4618_s28 + $0x7c0] sm:$0xff]  ;;  %v1018_v61 = vld [vmem:[%s4618_s28 + $0x7d0] sm:$0xff]  ;;  %1015 = vst [vmem:[%s4626_s29 + $0x3d8] sm:$0xff] %v1014_v59 }
  0x50   : > { %1017 = vst [vmem:[%s4626_s29 + $0x3e0] sm:$0xff] %v1016_v60  ;;  %1019 = vst [vmem:[%s4626_s29 + $0x3e8] sm:$0xff] %v1018_v61  ;;  %v1020_v62 = vld [vmem:[%s4618_s28 + $0x7e0] sm:$0xff]  ;;  %v1022_v63 = vld [vmem:[%s4618_s28 + $0x7f0] sm:$0xff] }
  0x51   : > { %v1024_v0 = vld [vmem:[%s4618_s28 + $0x800] sm:$0xff]  ;;  %1021 = vst [vmem:[%s4626_s29 + $0x3f0] sm:$0xff] %v1020_v62  ;;  %1023 = vst [vmem:[%s4626_s29 + $0x3f8] sm:$0xff] %v1022_v63  ;;  %v1026_v1 = vld [vmem:[%s4618_s28 + $0x810] sm:$0xff] }
  0x52   : > { %1025 = vst [vmem:[%s4626_s29 + $0x400] sm:$0xff] %v1024_v0  ;;  %v1028_v2 = vld [vmem:[%s4618_s28 + $0x820] sm:$0xff]  ;;  %v1030_v3 = vld [vmem:[%s4618_s28 + $0x830] sm:$0xff]  ;;  %1027 = vst [vmem:[%s4626_s29 + $0x408] sm:$0xff] %v1026_v1 }
  0x53   : > { %1029 = vst [vmem:[%s4626_s29 + $0x410] sm:$0xff] %v1028_v2  ;;  %1031 = vst [vmem:[%s4626_s29 + $0x418] sm:$0xff] %v1030_v3  ;;  %v1032_v4 = vld [vmem:[%s4618_s28 + $0x840] sm:$0xff]  ;;  %v1034_v5 = vld [vmem:[%s4618_s28 + $0x850] sm:$0xff] }
  0x54   : > { %v1036_v6 = vld [vmem:[%s4618_s28 + $0x860] sm:$0xff]  ;;  %1033 = vst [vmem:[%s4626_s29 + $0x420] sm:$0xff] %v1032_v4  ;;  %1035 = vst [vmem:[%s4626_s29 + $0x428] sm:$0xff] %v1034_v5  ;;  %v1038_v7 = vld [vmem:[%s4618_s28 + $0x870] sm:$0xff] }
  0x55   : > { %1037 = vst [vmem:[%s4626_s29 + $0x430] sm:$0xff] %v1036_v6  ;;  %v1040_v8 = vld [vmem:[%s4618_s28 + $0x880] sm:$0xff]  ;;  %v1042_v9 = vld [vmem:[%s4618_s28 + $0x890] sm:$0xff]  ;;  %1039 = vst [vmem:[%s4626_s29 + $0x438] sm:$0xff] %v1038_v7 }
  0x56   : > { %1041 = vst [vmem:[%s4626_s29 + $0x440] sm:$0xff] %v1040_v8  ;;  %1043 = vst [vmem:[%s4626_s29 + $0x448] sm:$0xff] %v1042_v9  ;;  %v1044_v10 = vld [vmem:[%s4618_s28 + $0x8a0] sm:$0xff]  ;;  %v1046_v11 = vld [vmem:[%s4618_s28 + $0x8b0] sm:$0xff] }
  0x57   : > { %v1048_v12 = vld [vmem:[%s4618_s28 + $0x8c0] sm:$0xff]  ;;  %1045 = vst [vmem:[%s4626_s29 + $0x450] sm:$0xff] %v1044_v10  ;;  %1047 = vst [vmem:[%s4626_s29 + $0x458] sm:$0xff] %v1046_v11  ;;  %v1050_v13 = vld [vmem:[%s4618_s28 + $0x8d0] sm:$0xff] }
  0x58   : > { %1049 = vst [vmem:[%s4626_s29 + $0x460] sm:$0xff] %v1048_v12  ;;  %v1052_v14 = vld [vmem:[%s4618_s28 + $0x8e0] sm:$0xff]  ;;  %v1054_v15 = vld [vmem:[%s4618_s28 + $0x8f0] sm:$0xff]  ;;  %1051 = vst [vmem:[%s4626_s29 + $0x468] sm:$0xff] %v1050_v13 }
  0x59   : > { %1053 = vst [vmem:[%s4626_s29 + $0x470] sm:$0xff] %v1052_v14  ;;  %1055 = vst [vmem:[%s4626_s29 + $0x478] sm:$0xff] %v1054_v15  ;;  %v1056_v16 = vld [vmem:[%s4618_s28 + $0x900] sm:$0xff]  ;;  %v1058_v17 = vld [vmem:[%s4618_s28 + $0x910] sm:$0xff] }
  0x5a   : > { %v1060_v18 = vld [vmem:[%s4618_s28 + $0x920] sm:$0xff]  ;;  %1057 = vst [vmem:[%s4626_s29 + $0x480] sm:$0xff] %v1056_v16  ;;  %1059 = vst [vmem:[%s4626_s29 + $0x488] sm:$0xff] %v1058_v17  ;;  %v1062_v19 = vld [vmem:[%s4618_s28 + $0x930] sm:$0xff] }
  0x5b   : > { %1061 = vst [vmem:[%s4626_s29 + $0x490] sm:$0xff] %v1060_v18  ;;  %v1064_v20 = vld [vmem:[%s4618_s28 + $0x940] sm:$0xff]  ;;  %v1066_v21 = vld [vmem:[%s4618_s28 + $0x950] sm:$0xff]  ;;  %1063 = vst [vmem:[%s4626_s29 + $0x498] sm:$0xff] %v1062_v19 }
  0x5c   : > { %1065 = vst [vmem:[%s4626_s29 + $0x4a0] sm:$0xff] %v1064_v20  ;;  %1067 = vst [vmem:[%s4626_s29 + $0x4a8] sm:$0xff] %v1066_v21  ;;  %v1068_v22 = vld [vmem:[%s4618_s28 + $0x960] sm:$0xff]  ;;  %v1070_v23 = vld [vmem:[%s4618_s28 + $0x970] sm:$0xff] }
  0x5d   : > { %v1072_v24 = vld [vmem:[%s4618_s28 + $0x980] sm:$0xff]  ;;  %1069 = vst [vmem:[%s4626_s29 + $0x4b0] sm:$0xff] %v1068_v22  ;;  %1071 = vst [vmem:[%s4626_s29 + $0x4b8] sm:$0xff] %v1070_v23  ;;  %v1074_v25 = vld [vmem:[%s4618_s28 + $0x990] sm:$0xff] }
  0x5e   : > { %1073 = vst [vmem:[%s4626_s29 + $0x4c0] sm:$0xff] %v1072_v24  ;;  %v1076_v26 = vld [vmem:[%s4618_s28 + $0x9a0] sm:$0xff]  ;;  %v1078_v27 = vld [vmem:[%s4618_s28 + $0x9b0] sm:$0xff]  ;;  %1075 = vst [vmem:[%s4626_s29 + $0x4c8] sm:$0xff] %v1074_v25 }
  0x5f   : > { %1077 = vst [vmem:[%s4626_s29 + $0x4d0] sm:$0xff] %v1076_v26  ;;  %1079 = vst [vmem:[%s4626_s29 + $0x4d8] sm:$0xff] %v1078_v27  ;;  %v1080_v28 = vld [vmem:[%s4618_s28 + $0x9c0] sm:$0xff]  ;;  %v1082_v29 = vld [vmem:[%s4618_s28 + $0x9d0] sm:$0xff] }
  0x60   : > { %v1084_v30 = vld [vmem:[%s4618_s28 + $0x9e0] sm:$0xff]  ;;  %1081 = vst [vmem:[%s4626_s29 + $0x4e0] sm:$0xff] %v1080_v28  ;;  %1083 = vst [vmem:[%s4626_s29 + $0x4e8] sm:$0xff] %v1082_v29  ;;  %v1086_v31 = vld [vmem:[%s4618_s28 + $0x9f0] sm:$0xff] }
  0x61   : > { %1085 = vst [vmem:[%s4626_s29 + $0x4f0] sm:$0xff] %v1084_v30  ;;  %v1088_v32 = vld [vmem:[%s4618_s28 + $0xa00] sm:$0xff]  ;;  %v1090_v33 = vld [vmem:[%s4618_s28 + $0xa10] sm:$0xff]  ;;  %1087 = vst [vmem:[%s4626_s29 + $0x4f8] sm:$0xff] %v1086_v31 }
  0x62   : > { %1089 = vst [vmem:[%s4626_s29 + $0x500] sm:$0xff] %v1088_v32  ;;  %1091 = vst [vmem:[%s4626_s29 + $0x508] sm:$0xff] %v1090_v33  ;;  %v1092_v34 = vld [vmem:[%s4618_s28 + $0xa20] sm:$0xff]  ;;  %v1094_v35 = vld [vmem:[%s4618_s28 + $0xa30] sm:$0xff] }
  0x63   : > { %v1096_v36 = vld [vmem:[%s4618_s28 + $0xa40] sm:$0xff]  ;;  %1093 = vst [vmem:[%s4626_s29 + $0x510] sm:$0xff] %v1092_v34  ;;  %1095 = vst [vmem:[%s4626_s29 + $0x518] sm:$0xff] %v1094_v35  ;;  %v1098_v37 = vld [vmem:[%s4618_s28 + $0xa50] sm:$0xff] }
  0x64   : > { %1097 = vst [vmem:[%s4626_s29 + $0x520] sm:$0xff] %v1096_v36  ;;  %v1100_v38 = vld [vmem:[%s4618_s28 + $0xa60] sm:$0xff]  ;;  %v1102_v39 = vld [vmem:[%s4618_s28 + $0xa70] sm:$0xff]  ;;  %1099 = vst [vmem:[%s4626_s29 + $0x528] sm:$0xff] %v1098_v37 }
  0x65   : > { %1101 = vst [vmem:[%s4626_s29 + $0x530] sm:$0xff] %v1100_v38  ;;  %1103 = vst [vmem:[%s4626_s29 + $0x538] sm:$0xff] %v1102_v39  ;;  %v1104_v40 = vld [vmem:[%s4618_s28 + $0xa80] sm:$0xff]  ;;  %v1106_v41 = vld [vmem:[%s4618_s28 + $0xa90] sm:$0xff] }
  0x66   : > { %v1108_v42 = vld [vmem:[%s4618_s28 + $0xaa0] sm:$0xff]  ;;  %1105 = vst [vmem:[%s4626_s29 + $0x540] sm:$0xff] %v1104_v40  ;;  %1107 = vst [vmem:[%s4626_s29 + $0x548] sm:$0xff] %v1106_v41  ;;  %v1110_v43 = vld [vmem:[%s4618_s28 + $0xab0] sm:$0xff] }
  0x67   : > { %1109 = vst [vmem:[%s4626_s29 + $0x550] sm:$0xff] %v1108_v42  ;;  %v1112_v44 = vld [vmem:[%s4618_s28 + $0xac0] sm:$0xff]  ;;  %v1114_v45 = vld [vmem:[%s4618_s28 + $0xad0] sm:$0xff]  ;;  %1111 = vst [vmem:[%s4626_s29 + $0x558] sm:$0xff] %v1110_v43 }
  0x68   : > { %1113 = vst [vmem:[%s4626_s29 + $0x560] sm:$0xff] %v1112_v44  ;;  %1115 = vst [vmem:[%s4626_s29 + $0x568] sm:$0xff] %v1114_v45  ;;  %v1116_v46 = vld [vmem:[%s4618_s28 + $0xae0] sm:$0xff]  ;;  %v1118_v47 = vld [vmem:[%s4618_s28 + $0xaf0] sm:$0xff] }
  0x69   : > { %v1120_v48 = vld [vmem:[%s4618_s28 + $0xb00] sm:$0xff]  ;;  %1117 = vst [vmem:[%s4626_s29 + $0x570] sm:$0xff] %v1116_v46  ;;  %1119 = vst [vmem:[%s4626_s29 + $0x578] sm:$0xff] %v1118_v47  ;;  %v1122_v49 = vld [vmem:[%s4618_s28 + $0xb10] sm:$0xff] }
  0x6a   : > { %1121 = vst [vmem:[%s4626_s29 + $0x580] sm:$0xff] %v1120_v48  ;;  %v1124_v50 = vld [vmem:[%s4618_s28 + $0xb20] sm:$0xff]  ;;  %v1126_v51 = vld [vmem:[%s4618_s28 + $0xb30] sm:$0xff]  ;;  %1123 = vst [vmem:[%s4626_s29 + $0x588] sm:$0xff] %v1122_v49 }
  0x6b   : > { %1125 = vst [vmem:[%s4626_s29 + $0x590] sm:$0xff] %v1124_v50  ;;  %1127 = vst [vmem:[%s4626_s29 + $0x598] sm:$0xff] %v1126_v51  ;;  %v1128_v52 = vld [vmem:[%s4618_s28 + $0xb40] sm:$0xff]  ;;  %v1130_v53 = vld [vmem:[%s4618_s28 + $0xb50] sm:$0xff] }
  0x6c   : > { %v1132_v54 = vld [vmem:[%s4618_s28 + $0xb60] sm:$0xff]  ;;  %1129 = vst [vmem:[%s4626_s29 + $0x5a0] sm:$0xff] %v1128_v52  ;;  %1131 = vst [vmem:[%s4626_s29 + $0x5a8] sm:$0xff] %v1130_v53  ;;  %v1134_v55 = vld [vmem:[%s4618_s28 + $0xb70] sm:$0xff] }
  0x6d   : > { %1133 = vst [vmem:[%s4626_s29 + $0x5b0] sm:$0xff] %v1132_v54  ;;  %v1136_v56 = vld [vmem:[%s4618_s28 + $0xb80] sm:$0xff]  ;;  %v1138_v57 = vld [vmem:[%s4618_s28 + $0xb90] sm:$0xff]  ;;  %1135 = vst [vmem:[%s4626_s29 + $0x5b8] sm:$0xff] %v1134_v55 }
  0x6e   : > { %1137 = vst [vmem:[%s4626_s29 + $0x5c0] sm:$0xff] %v1136_v56  ;;  %1139 = vst [vmem:[%s4626_s29 + $0x5c8] sm:$0xff] %v1138_v57  ;;  %v1140_v58 = vld [vmem:[%s4618_s28 + $0xba0] sm:$0xff]  ;;  %v1142_v59 = vld [vmem:[%s4618_s28 + $0xbb0] sm:$0xff] }
  0x6f   : > { %v1144_v60 = vld [vmem:[%s4618_s28 + $0xbc0] sm:$0xff]  ;;  %1141 = vst [vmem:[%s4626_s29 + $0x5d0] sm:$0xff] %v1140_v58  ;;  %1143 = vst [vmem:[%s4626_s29 + $0x5d8] sm:$0xff] %v1142_v59  ;;  %v1146_v61 = vld [vmem:[%s4618_s28 + $0xbd0] sm:$0xff] }
  0x70   : > { %1145 = vst [vmem:[%s4626_s29 + $0x5e0] sm:$0xff] %v1144_v60  ;;  %v1148_v62 = vld [vmem:[%s4618_s28 + $0xbe0] sm:$0xff]  ;;  %v1150_v63 = vld [vmem:[%s4618_s28 + $0xbf0] sm:$0xff]  ;;  %1147 = vst [vmem:[%s4626_s29 + $0x5e8] sm:$0xff] %v1146_v61 }
  0x71   : > { %1149 = vst [vmem:[%s4626_s29 + $0x5f0] sm:$0xff] %v1148_v62  ;;  %1151 = vst [vmem:[%s4626_s29 + $0x5f8] sm:$0xff] %v1150_v63  ;;  %v1152_v0 = vld [vmem:[%s4618_s28 + $0xc00] sm:$0xff]  ;;  %v1154_v1 = vld [vmem:[%s4618_s28 + $0xc10] sm:$0xff] }
  0x72   : > { %v1156_v2 = vld [vmem:[%s4618_s28 + $0xc20] sm:$0xff]  ;;  %1153 = vst [vmem:[%s4626_s29 + $0x600] sm:$0xff] %v1152_v0  ;;  %1155 = vst [vmem:[%s4626_s29 + $0x608] sm:$0xff] %v1154_v1  ;;  %v1158_v3 = vld [vmem:[%s4618_s28 + $0xc30] sm:$0xff] }
  0x73   : > { %1157 = vst [vmem:[%s4626_s29 + $0x610] sm:$0xff] %v1156_v2  ;;  %v1160_v4 = vld [vmem:[%s4618_s28 + $0xc40] sm:$0xff]  ;;  %v1162_v5 = vld [vmem:[%s4618_s28 + $0xc50] sm:$0xff]  ;;  %1159 = vst [vmem:[%s4626_s29 + $0x618] sm:$0xff] %v1158_v3 }
  0x74   : > { %1161 = vst [vmem:[%s4626_s29 + $0x620] sm:$0xff] %v1160_v4  ;;  %1163 = vst [vmem:[%s4626_s29 + $0x628] sm:$0xff] %v1162_v5  ;;  %v1164_v6 = vld [vmem:[%s4618_s28 + $0xc60] sm:$0xff]  ;;  %v1166_v7 = vld [vmem:[%s4618_s28 + $0xc70] sm:$0xff] }
  0x75   : > { %v1168_v8 = vld [vmem:[%s4618_s28 + $0xc80] sm:$0xff]  ;;  %1165 = vst [vmem:[%s4626_s29 + $0x630] sm:$0xff] %v1164_v6  ;;  %1167 = vst [vmem:[%s4626_s29 + $0x638] sm:$0xff] %v1166_v7  ;;  %v1170_v9 = vld [vmem:[%s4618_s28 + $0xc90] sm:$0xff] }
  0x76   : > { %1169 = vst [vmem:[%s4626_s29 + $0x640] sm:$0xff] %v1168_v8  ;;  %v1172_v10 = vld [vmem:[%s4618_s28 + $0xca0] sm:$0xff]  ;;  %v1174_v11 = vld [vmem:[%s4618_s28 + $0xcb0] sm:$0xff]  ;;  %1171 = vst [vmem:[%s4626_s29 + $0x648] sm:$0xff] %v1170_v9 }
  0x77   : > { %1173 = vst [vmem:[%s4626_s29 + $0x650] sm:$0xff] %v1172_v10  ;;  %1175 = vst [vmem:[%s4626_s29 + $0x658] sm:$0xff] %v1174_v11  ;;  %v1176_v12 = vld [vmem:[%s4618_s28 + $0xcc0] sm:$0xff]  ;;  %v1178_v13 = vld [vmem:[%s4618_s28 + $0xcd0] sm:$0xff] }
  0x78   : > { %v1180_v14 = vld [vmem:[%s4618_s28 + $0xce0] sm:$0xff]  ;;  %1177 = vst [vmem:[%s4626_s29 + $0x660] sm:$0xff] %v1176_v12  ;;  %1179 = vst [vmem:[%s4626_s29 + $0x668] sm:$0xff] %v1178_v13  ;;  %v1182_v15 = vld [vmem:[%s4618_s28 + $0xcf0] sm:$0xff] }
  0x79   : > { %1181 = vst [vmem:[%s4626_s29 + $0x670] sm:$0xff] %v1180_v14  ;;  %v1184_v16 = vld [vmem:[%s4618_s28 + $0xd00] sm:$0xff]  ;;  %v1186_v17 = vld [vmem:[%s4618_s28 + $0xd10] sm:$0xff]  ;;  %1183 = vst [vmem:[%s4626_s29 + $0x678] sm:$0xff] %v1182_v15 }
  0x7a   : > { %1185 = vst [vmem:[%s4626_s29 + $0x680] sm:$0xff] %v1184_v16  ;;  %1187 = vst [vmem:[%s4626_s29 + $0x688] sm:$0xff] %v1186_v17  ;;  %v1188_v18 = vld [vmem:[%s4618_s28 + $0xd20] sm:$0xff]  ;;  %v1190_v19 = vld [vmem:[%s4618_s28 + $0xd30] sm:$0xff] }
  0x7b   : > { %v1192_v20 = vld [vmem:[%s4618_s28 + $0xd40] sm:$0xff]  ;;  %1189 = vst [vmem:[%s4626_s29 + $0x690] sm:$0xff] %v1188_v18  ;;  %1191 = vst [vmem:[%s4626_s29 + $0x698] sm:$0xff] %v1190_v19  ;;  %v1194_v21 = vld [vmem:[%s4618_s28 + $0xd50] sm:$0xff] }
  0x7c   : > { %1193 = vst [vmem:[%s4626_s29 + $0x6a0] sm:$0xff] %v1192_v20  ;;  %v1196_v22 = vld [vmem:[%s4618_s28 + $0xd60] sm:$0xff]  ;;  %v1198_v23 = vld [vmem:[%s4618_s28 + $0xd70] sm:$0xff]  ;;  %1195 = vst [vmem:[%s4626_s29 + $0x6a8] sm:$0xff] %v1194_v21 }
  0x7d   : > { %1197 = vst [vmem:[%s4626_s29 + $0x6b0] sm:$0xff] %v1196_v22  ;;  %1199 = vst [vmem:[%s4626_s29 + $0x6b8] sm:$0xff] %v1198_v23  ;;  %v1200_v24 = vld [vmem:[%s4618_s28 + $0xd80] sm:$0xff]  ;;  %v1202_v25 = vld [vmem:[%s4618_s28 + $0xd90] sm:$0xff] }
  0x7e   : > { %v1204_v26 = vld [vmem:[%s4618_s28 + $0xda0] sm:$0xff]  ;;  %1201 = vst [vmem:[%s4626_s29 + $0x6c0] sm:$0xff] %v1200_v24  ;;  %1203 = vst [vmem:[%s4626_s29 + $0x6c8] sm:$0xff] %v1202_v25  ;;  %v1206_v27 = vld [vmem:[%s4618_s28 + $0xdb0] sm:$0xff] }
  0x7f   : > { %1205 = vst [vmem:[%s4626_s29 + $0x6d0] sm:$0xff] %v1204_v26  ;;  %v1208_v28 = vld [vmem:[%s4618_s28 + $0xdc0] sm:$0xff]  ;;  %v1210_v29 = vld [vmem:[%s4618_s28 + $0xdd0] sm:$0xff]  ;;  %1207 = vst [vmem:[%s4626_s29 + $0x6d8] sm:$0xff] %v1206_v27 }
  0x80   : > { %1209 = vst [vmem:[%s4626_s29 + $0x6e0] sm:$0xff] %v1208_v28  ;;  %1211 = vst [vmem:[%s4626_s29 + $0x6e8] sm:$0xff] %v1210_v29  ;;  %v1212_v30 = vld [vmem:[%s4618_s28 + $0xde0] sm:$0xff]  ;;  %v1214_v31 = vld [vmem:[%s4618_s28 + $0xdf0] sm:$0xff] }
  0x81   : > { %v1216_v32 = vld [vmem:[%s4618_s28 + $0xe00] sm:$0xff]  ;;  %1213 = vst [vmem:[%s4626_s29 + $0x6f0] sm:$0xff] %v1212_v30  ;;  %1215 = vst [vmem:[%s4626_s29 + $0x6f8] sm:$0xff] %v1214_v31  ;;  %v1218_v33 = vld [vmem:[%s4618_s28 + $0xe10] sm:$0xff] }
  0x82   : > { %1217 = vst [vmem:[%s4626_s29 + $0x700] sm:$0xff] %v1216_v32  ;;  %v1220_v34 = vld [vmem:[%s4618_s28 + $0xe20] sm:$0xff]  ;;  %v1222_v35 = vld [vmem:[%s4618_s28 + $0xe30] sm:$0xff]  ;;  %1219 = vst [vmem:[%s4626_s29 + $0x708] sm:$0xff] %v1218_v33 }
  0x83   : > { %1221 = vst [vmem:[%s4626_s29 + $0x710] sm:$0xff] %v1220_v34  ;;  %1223 = vst [vmem:[%s4626_s29 + $0x718] sm:$0xff] %v1222_v35  ;;  %v1224_v36 = vld [vmem:[%s4618_s28 + $0xe40] sm:$0xff]  ;;  %v1226_v37 = vld [vmem:[%s4618_s28 + $0xe50] sm:$0xff] }
  0x84   : > { %v1228_v38 = vld [vmem:[%s4618_s28 + $0xe60] sm:$0xff]  ;;  %1225 = vst [vmem:[%s4626_s29 + $0x720] sm:$0xff] %v1224_v36  ;;  %1227 = vst [vmem:[%s4626_s29 + $0x728] sm:$0xff] %v1226_v37  ;;  %v1230_v39 = vld [vmem:[%s4618_s28 + $0xe70] sm:$0xff] }
  0x85   : > { %1229 = vst [vmem:[%s4626_s29 + $0x730] sm:$0xff] %v1228_v38  ;;  %v1232_v40 = vld [vmem:[%s4618_s28 + $0xe80] sm:$0xff]  ;;  %v1234_v41 = vld [vmem:[%s4618_s28 + $0xe90] sm:$0xff]  ;;  %1231 = vst [vmem:[%s4626_s29 + $0x738] sm:$0xff] %v1230_v39 }
  0x86   : > { %1233 = vst [vmem:[%s4626_s29 + $0x740] sm:$0xff] %v1232_v40  ;;  %1235 = vst [vmem:[%s4626_s29 + $0x748] sm:$0xff] %v1234_v41  ;;  %v1236_v42 = vld [vmem:[%s4618_s28 + $0xea0] sm:$0xff]  ;;  %v1238_v43 = vld [vmem:[%s4618_s28 + $0xeb0] sm:$0xff] }
  0x87   : > { %v1240_v44 = vld [vmem:[%s4618_s28 + $0xec0] sm:$0xff]  ;;  %1237 = vst [vmem:[%s4626_s29 + $0x750] sm:$0xff] %v1236_v42  ;;  %1239 = vst [vmem:[%s4626_s29 + $0x758] sm:$0xff] %v1238_v43  ;;  %v1242_v45 = vld [vmem:[%s4618_s28 + $0xed0] sm:$0xff] }
  0x88   : > { %1241 = vst [vmem:[%s4626_s29 + $0x760] sm:$0xff] %v1240_v44  ;;  %v1244_v46 = vld [vmem:[%s4618_s28 + $0xee0] sm:$0xff]  ;;  %v1246_v47 = vld [vmem:[%s4618_s28 + $0xef0] sm:$0xff]  ;;  %1243 = vst [vmem:[%s4626_s29 + $0x768] sm:$0xff] %v1242_v45 }
  0x89   : > { %1245 = vst [vmem:[%s4626_s29 + $0x770] sm:$0xff] %v1244_v46  ;;  %1247 = vst [vmem:[%s4626_s29 + $0x778] sm:$0xff] %v1246_v47  ;;  %v1248_v48 = vld [vmem:[%s4618_s28 + $0xf00] sm:$0xff]  ;;  %v1250_v49 = vld [vmem:[%s4618_s28 + $0xf10] sm:$0xff] }
  0x8a   : > { %v1252_v50 = vld [vmem:[%s4618_s28 + $0xf20] sm:$0xff]  ;;  %1249 = vst [vmem:[%s4626_s29 + $0x780] sm:$0xff] %v1248_v48  ;;  %1251 = vst [vmem:[%s4626_s29 + $0x788] sm:$0xff] %v1250_v49  ;;  %v1254_v51 = vld [vmem:[%s4618_s28 + $0xf30] sm:$0xff] }
  0x8b   : > { %1253 = vst [vmem:[%s4626_s29 + $0x790] sm:$0xff] %v1252_v50  ;;  %v1256_v52 = vld [vmem:[%s4618_s28 + $0xf40] sm:$0xff]  ;;  %v1258_v53 = vld [vmem:[%s4618_s28 + $0xf50] sm:$0xff]  ;;  %1255 = vst [vmem:[%s4626_s29 + $0x798] sm:$0xff] %v1254_v51 }
  0x8c   : > { %1257 = vst [vmem:[%s4626_s29 + $0x7a0] sm:$0xff] %v1256_v52  ;;  %1259 = vst [vmem:[%s4626_s29 + $0x7a8] sm:$0xff] %v1258_v53  ;;  %v1260_v54 = vld [vmem:[%s4618_s28 + $0xf60] sm:$0xff]  ;;  %v1262_v55 = vld [vmem:[%s4618_s28 + $0xf70] sm:$0xff] }
  0x8d   : > { %v1264_v56 = vld [vmem:[%s4618_s28 + $0xf80] sm:$0xff]  ;;  %1261 = vst [vmem:[%s4626_s29 + $0x7b0] sm:$0xff] %v1260_v54  ;;  %1263 = vst [vmem:[%s4626_s29 + $0x7b8] sm:$0xff] %v1262_v55  ;;  %v1266_v57 = vld [vmem:[%s4618_s28 + $0xf90] sm:$0xff] }
  0x8e   : > { %1265 = vst [vmem:[%s4626_s29 + $0x7c0] sm:$0xff] %v1264_v56  ;;  %v1268_v58 = vld [vmem:[%s4618_s28 + $0xfa0] sm:$0xff]  ;;  %v1270_v59 = vld [vmem:[%s4618_s28 + $0xfb0] sm:$0xff]  ;;  %1267 = vst [vmem:[%s4626_s29 + $0x7c8] sm:$0xff] %v1266_v57 }
  0x8f   : > { %1269 = vst [vmem:[%s4626_s29 + $0x7d0] sm:$0xff] %v1268_v58  ;;  %1271 = vst [vmem:[%s4626_s29 + $0x7d8] sm:$0xff] %v1270_v59  ;;  %v1272_v60 = vld [vmem:[%s4618_s28 + $0xfc0] sm:$0xff]  ;;  %v1274_v61 = vld [vmem:[%s4618_s28 + $0xfd0] sm:$0xff] }
  0x90   : > { %v1276_v62 = vld [vmem:[%s4618_s28 + $0xfe0] sm:$0xff]  ;;  %1273 = vst [vmem:[%s4626_s29 + $0x7e0] sm:$0xff] %v1272_v60  ;;  %1275 = vst [vmem:[%s4626_s29 + $0x7e8] sm:$0xff] %v1274_v61  ;;  %v1278_v63 = vld [vmem:[%s4618_s28 + $0xff0] sm:$0xff] }
  0x91   : > { %1277 = vst [vmem:[%s4626_s29 + $0x7f0] sm:$0xff] %v1276_v62  ;;  %v1280_v0 = vld [vmem:[%s4618_s28 + $0x1000] sm:$0xff]  ;;  %v1282_v1 = vld [vmem:[%s4618_s28 + $0x1010] sm:$0xff]  ;;  %1279 = vst [vmem:[%s4626_s29 + $0x7f8] sm:$0xff] %v1278_v63 }
  0x92   : > { %1281 = vst [vmem:[%s4626_s29 + $0x800] sm:$0xff] %v1280_v0  ;;  %1283 = vst [vmem:[%s4626_s29 + $0x808] sm:$0xff] %v1282_v1  ;;  %v1284_v2 = vld [vmem:[%s4618_s28 + $0x1020] sm:$0xff]  ;;  %v1286_v3 = vld [vmem:[%s4618_s28 + $0x1030] sm:$0xff] }
  0x93   : > { %v1288_v4 = vld [vmem:[%s4618_s28 + $0x1040] sm:$0xff]  ;;  %1285 = vst [vmem:[%s4626_s29 + $0x810] sm:$0xff] %v1284_v2  ;;  %1287 = vst [vmem:[%s4626_s29 + $0x818] sm:$0xff] %v1286_v3  ;;  %v1290_v5 = vld [vmem:[%s4618_s28 + $0x1050] sm:$0xff] }
  0x94   : > { %1289 = vst [vmem:[%s4626_s29 + $0x820] sm:$0xff] %v1288_v4  ;;  %v1292_v6 = vld [vmem:[%s4618_s28 + $0x1060] sm:$0xff]  ;;  %v1294_v7 = vld [vmem:[%s4618_s28 + $0x1070] sm:$0xff]  ;;  %1291 = vst [vmem:[%s4626_s29 + $0x828] sm:$0xff] %v1290_v5 }
  0x95   : > { %1293 = vst [vmem:[%s4626_s29 + $0x830] sm:$0xff] %v1292_v6  ;;  %1295 = vst [vmem:[%s4626_s29 + $0x838] sm:$0xff] %v1294_v7  ;;  %v1296_v8 = vld [vmem:[%s4618_s28 + $0x1080] sm:$0xff]  ;;  %v1298_v9 = vld [vmem:[%s4618_s28 + $0x1090] sm:$0xff] }
  0x96   : > { %v1300_v10 = vld [vmem:[%s4618_s28 + $0x10a0] sm:$0xff]  ;;  %1297 = vst [vmem:[%s4626_s29 + $0x840] sm:$0xff] %v1296_v8  ;;  %1299 = vst [vmem:[%s4626_s29 + $0x848] sm:$0xff] %v1298_v9  ;;  %v1302_v11 = vld [vmem:[%s4618_s28 + $0x10b0] sm:$0xff] }
  0x97   : > { %1301 = vst [vmem:[%s4626_s29 + $0x850] sm:$0xff] %v1300_v10  ;;  %v1304_v12 = vld [vmem:[%s4618_s28 + $0x10c0] sm:$0xff]  ;;  %v1306_v13 = vld [vmem:[%s4618_s28 + $0x10d0] sm:$0xff]  ;;  %1303 = vst [vmem:[%s4626_s29 + $0x858] sm:$0xff] %v1302_v11 }
  0x98   : > { %1305 = vst [vmem:[%s4626_s29 + $0x860] sm:$0xff] %v1304_v12  ;;  %1307 = vst [vmem:[%s4626_s29 + $0x868] sm:$0xff] %v1306_v13  ;;  %v1308_v14 = vld [vmem:[%s4618_s28 + $0x10e0] sm:$0xff]  ;;  %v1310_v15 = vld [vmem:[%s4618_s28 + $0x10f0] sm:$0xff] }
  0x99   : > { %v1312_v16 = vld [vmem:[%s4618_s28 + $0x1100] sm:$0xff]  ;;  %1309 = vst [vmem:[%s4626_s29 + $0x870] sm:$0xff] %v1308_v14  ;;  %1311 = vst [vmem:[%s4626_s29 + $0x878] sm:$0xff] %v1310_v15  ;;  %v1314_v17 = vld [vmem:[%s4618_s28 + $0x1110] sm:$0xff] }
  0x9a   : > { %1313 = vst [vmem:[%s4626_s29 + $0x880] sm:$0xff] %v1312_v16  ;;  %v1316_v18 = vld [vmem:[%s4618_s28 + $0x1120] sm:$0xff]  ;;  %v1318_v19 = vld [vmem:[%s4618_s28 + $0x1130] sm:$0xff]  ;;  %1315 = vst [vmem:[%s4626_s29 + $0x888] sm:$0xff] %v1314_v17 }
  0x9b   : > { %1317 = vst [vmem:[%s4626_s29 + $0x890] sm:$0xff] %v1316_v18  ;;  %1319 = vst [vmem:[%s4626_s29 + $0x898] sm:$0xff] %v1318_v19  ;;  %v1320_v20 = vld [vmem:[%s4618_s28 + $0x1140] sm:$0xff]  ;;  %v1322_v21 = vld [vmem:[%s4618_s28 + $0x1150] sm:$0xff] }
  0x9c   : > { %v1324_v22 = vld [vmem:[%s4618_s28 + $0x1160] sm:$0xff]  ;;  %1321 = vst [vmem:[%s4626_s29 + $0x8a0] sm:$0xff] %v1320_v20  ;;  %1323 = vst [vmem:[%s4626_s29 + $0x8a8] sm:$0xff] %v1322_v21  ;;  %v1326_v23 = vld [vmem:[%s4618_s28 + $0x1170] sm:$0xff] }
  0x9d   : > { %1325 = vst [vmem:[%s4626_s29 + $0x8b0] sm:$0xff] %v1324_v22  ;;  %v1328_v24 = vld [vmem:[%s4618_s28 + $0x1180] sm:$0xff]  ;;  %v1330_v25 = vld [vmem:[%s4618_s28 + $0x1190] sm:$0xff]  ;;  %1327 = vst [vmem:[%s4626_s29 + $0x8b8] sm:$0xff] %v1326_v23 }
  0x9e   : > { %1329 = vst [vmem:[%s4626_s29 + $0x8c0] sm:$0xff] %v1328_v24  ;;  %1331 = vst [vmem:[%s4626_s29 + $0x8c8] sm:$0xff] %v1330_v25  ;;  %v1332_v26 = vld [vmem:[%s4618_s28 + $0x11a0] sm:$0xff]  ;;  %v1334_v27 = vld [vmem:[%s4618_s28 + $0x11b0] sm:$0xff] }
  0x9f   : > { %v1336_v28 = vld [vmem:[%s4618_s28 + $0x11c0] sm:$0xff]  ;;  %1333 = vst [vmem:[%s4626_s29 + $0x8d0] sm:$0xff] %v1332_v26  ;;  %1335 = vst [vmem:[%s4626_s29 + $0x8d8] sm:$0xff] %v1334_v27  ;;  %v1338_v29 = vld [vmem:[%s4618_s28 + $0x11d0] sm:$0xff] }
  0xa0   : > { %1337 = vst [vmem:[%s4626_s29 + $0x8e0] sm:$0xff] %v1336_v28  ;;  %v1340_v30 = vld [vmem:[%s4618_s28 + $0x11e0] sm:$0xff]  ;;  %v1342_v31 = vld [vmem:[%s4618_s28 + $0x11f0] sm:$0xff]  ;;  %1339 = vst [vmem:[%s4626_s29 + $0x8e8] sm:$0xff] %v1338_v29 }
  0xa1   : > { %1341 = vst [vmem:[%s4626_s29 + $0x8f0] sm:$0xff] %v1340_v30  ;;  %1343 = vst [vmem:[%s4626_s29 + $0x8f8] sm:$0xff] %v1342_v31 }
  0xa2 PF: > { %p3713_p5 = scmp.ge.s32.totalorder %s4557_s17, 1  ;;  %p1364_p6 = scmp.lt.s32.totalorder %s4557_s17, 3 }
  0xa4   : > { %p1365_p7 = pnand %p3713_p5, %p1364_p6 }
  0xa5   : > { %s1371_s30 = sand.u32 (!%p1365_p7), 1, %s4549_s15   ;;  %v5204_v32 = vld [vmem:[%s5593_s0] sm:$0xff] (!%p1365_p7) }
  0xa6   : > { %1368 = sbr.rel (%p1365_p7) target bundleno = 714 (0x2ca), region = 70  ;;  %v5209_v33 = vld [vmem:[%s5593_s0 + $0x20] sm:$0xff] (!%p1365_p7)  ;;  %v3719_v34 = vcombine.high (!%p1365_p7), %v5204_v32, %v5204_v32 }
  0xa7   : > { %s4060_s9 = smul.u32 (!%p1365_p7), 2304, %s1371_s30  ;;  %v3727_v35 = vcombine.high (!%p1365_p7), %v5209_v33, %v5209_v33  ;;  %s3714_s30 = sshll.u32 (!%p1365_p7), %s3707_s18, 1 }
  0xa8   : > { %3253 = vmatprep.mubr.bf16.mxu1 (!%p1365_p7), %v3719_v34  ;;  %p1406_p8 = scmp.lt.s32.totalorder (!%p1365_p7), %s3714_s30, 3 }
  0xa9   : > { %3417 = vmatprep.mubr.bf16.mxu0 (!%p1365_p7), %v3727_v35  ;;  %s5215_s10 = scalar_lea.vmem (!%p1365_p7), [#allocation2], %s4060_s9 }
  0xaa   : > { %v4085_v36 = vld [vmem:[%s5215_s10 + $0x4] ss:$8 sps:$4 sm:$0xff] (!%p1365_p7)   ;;  %v4089_v38 = vld [vmem:[%s5215_s10] ss:$8 sps:$4 sm:$0xff] (!%p1365_p7)   ;;  %v4091_v40 = vld [vmem:[%s5215_s10 + $0x14] ss:$8 sps:$4 sm:$0xff] (!%p1365_p7)  }
  0xab   : > { %v4087_v37 = vld [vmem:[%s5215_s10 + $0x404] ss:$8 sps:$4 sm:$0xff] (!%p1365_p7)   ;;  %3221 = vmatprep.subr.bf16.mxu1 (!%p1365_p7), %v4085_v36  ;;  %v4090_v39 = vld [vmem:[%s5215_s10 + $0x400] ss:$8 sps:$4 sm:$0xff] (!%p1365_p7)   ;;  %v4093_v41 = vld [vmem:[%s5215_s10 + $0x414] ss:$8 sps:$4 sm:$0xff] (!%p1365_p7)  }
  0xac   : > { %3385 = vmatprep.subr.bf16.mxu0 (!%p1365_p7), %v4087_v37  ;;  %3222 = vmatpush1.bf16.msra.mxu1 (!%p1365_p7), %v4089_v38  ;;  %v4095_v42 = vld [vmem:[%s5215_s10 + $0x10] ss:$8 sps:$4 sm:$0xff] (!%p1365_p7)   ;;  %v4097_v44 = vld [vmem:[%s5215_s10 + $0x24] ss:$8 sps:$4 sm:$0xff] (!%p1365_p7)   ;;  %v4101_v46 = vld [vmem:[%s5215_s10 + $0x20] ss:$8 sps:$4 sm:$0xff] (!%p1365_p7)  }
  0xad   : > { %3386 = vmatpush1.bf16.msra.mxu0 %v4090_v39  ;;  %3223 = vmatprep.subr.bf16.mxu1 %v4091_v40  ;;  %v4096_v43 = vld [vmem:[%s5215_s10 + $0x410] ss:$8 sps:$4 sm:$0xff]   ;;  %v4099_v45 = vld [vmem:[%s5215_s10 + $0x424] ss:$8 sps:$4 sm:$0xff]   ;;  %v4102_v47 = vld [vmem:[%s5215_s10 + $0x420] ss:$8 sps:$4 sm:$0xff]   ;;  %v3718_v40 = vcombine.low %v5204_v32, %v5204_v32 }
  0xae   : > { %3387 = vmatprep.subr.bf16.mxu0 %v4093_v41  ;;  %v4103_v48 = vld [vmem:[%s5215_s10 + $0x34] ss:$8 sps:$4 sm:$0xff]   ;;  %v4107_v50 = vld [vmem:[%s5215_s10 + $0x30] ss:$8 sps:$4 sm:$0xff]   ;;  %v4109_v52 = vld [vmem:[%s5215_s10 + $0x44] ss:$8 sps:$4 sm:$0xff]  }
  0xaf   : > { %v4105_v49 = vld [vmem:[%s5215_s10 + $0x434] ss:$8 sps:$4 sm:$0xff]   ;;  %v4108_v51 = vld [vmem:[%s5215_s10 + $0x430] ss:$8 sps:$4 sm:$0xff]   ;;  %v4111_v53 = vld [vmem:[%s5215_s10 + $0x444] ss:$8 sps:$4 sm:$0xff]  }
  0xb0   : > { %3224 = vmatpush1.bf16.msra.mxu1 %v4095_v42  ;;  %v4113_v54 = vld [vmem:[%s5215_s10 + $0x40] ss:$8 sps:$4 sm:$0xff]   ;;  %v4115_v56 = vld [vmem:[%s5215_s10 + $0x54] ss:$8 sps:$4 sm:$0xff]   ;;  %v4119_v58 = vld [vmem:[%s5215_s10 + $0x50] ss:$8 sps:$4 sm:$0xff]   ;;  %v3726_v42 = vcombine.low %v5209_v33, %v5209_v33 }
  0xb1   : > { %3388 = vmatpush1.bf16.msra.mxu0 %v4096_v43  ;;  %3225 = vmatprep.subr.bf16.mxu1 %v4097_v44  ;;  %v4114_v55 = vld [vmem:[%s5215_s10 + $0x440] ss:$8 sps:$4 sm:$0xff]   ;;  %v4117_v57 = vld [vmem:[%s5215_s10 + $0x454] ss:$8 sps:$4 sm:$0xff]   ;;  %v4120_v59 = vld [vmem:[%s5215_s10 + $0x450] ss:$8 sps:$4 sm:$0xff]  }
  0xb2   : > { %3389 = vmatprep.subr.bf16.mxu0 %v4099_v45  ;;  %v4121_v60 = vld [vmem:[%s5215_s10 + $0x64] ss:$8 sps:$4 sm:$0xff]   ;;  %v4125_v62 = vld [vmem:[%s5215_s10 + $0x60] ss:$8 sps:$4 sm:$0xff]   ;;  %v4127_v0 = vld [vmem:[%s5215_s10 + $0x74] ss:$8 sps:$4 sm:$0xff]  }
  0xb3   : > { %v4123_v61 = vld [vmem:[%s5215_s10 + $0x464] ss:$8 sps:$4 sm:$0xff]   ;;  %v4126_v63 = vld [vmem:[%s5215_s10 + $0x460] ss:$8 sps:$4 sm:$0xff]   ;;  %v4129_v1 = vld [vmem:[%s5215_s10 + $0x474] ss:$8 sps:$4 sm:$0xff]  }
  0xb4   : > { %3226 = vmatpush1.bf16.msra.mxu1 %v4101_v46  ;;  %v4131_v2 = vld [vmem:[%s5215_s10 + $0x70] ss:$8 sps:$4 sm:$0xff]   ;;  %v4133_v4 = vld [vmem:[%s5215_s10 + $0x84] ss:$8 sps:$4 sm:$0xff]   ;;  %v4137_v6 = vld [vmem:[%s5215_s10 + $0x80] ss:$8 sps:$4 sm:$0xff]  }
  0xb5   : > { %3390 = vmatpush1.bf16.msra.mxu0 %v4102_v47  ;;  %3227 = vmatprep.subr.bf16.mxu1 %v4103_v48  ;;  %v4132_v3 = vld [vmem:[%s5215_s10 + $0x470] ss:$8 sps:$4 sm:$0xff]   ;;  %v4135_v5 = vld [vmem:[%s5215_s10 + $0x484] ss:$8 sps:$4 sm:$0xff]   ;;  %v4138_v7 = vld [vmem:[%s5215_s10 + $0x480] ss:$8 sps:$4 sm:$0xff]  }
  0xb6   : > { %3391 = vmatprep.subr.bf16.mxu0 %v4105_v49  ;;  %v4139_v8 = vld [vmem:[%s5215_s10 + $0x94] ss:$8 sps:$4 sm:$0xff]   ;;  %v4143_v10 = vld [vmem:[%s5215_s10 + $0x90] ss:$8 sps:$4 sm:$0xff]   ;;  %v4145_v12 = vld [vmem:[%s5215_s10 + $0xa4] ss:$8 sps:$4 sm:$0xff]  }
  0xb7   : > { %v4141_v9 = vld [vmem:[%s5215_s10 + $0x494] ss:$8 sps:$4 sm:$0xff]   ;;  %v4144_v11 = vld [vmem:[%s5215_s10 + $0x490] ss:$8 sps:$4 sm:$0xff]   ;;  %v4147_v13 = vld [vmem:[%s5215_s10 + $0x4a4] ss:$8 sps:$4 sm:$0xff]  }
  0xb8   : > { %3228 = vmatpush1.bf16.msra.mxu1 %v4107_v50  ;;  %v4149_v14 = vld [vmem:[%s5215_s10 + $0xa0] ss:$8 sps:$4 sm:$0xff]   ;;  %v4151_v16 = vld [vmem:[%s5215_s10 + $0xb4] ss:$8 sps:$4 sm:$0xff]   ;;  %v4155_v18 = vld [vmem:[%s5215_s10 + $0xb0] ss:$8 sps:$4 sm:$0xff]  }
  0xb9   : > { %3392 = vmatpush1.bf16.msra.mxu0 %v4108_v51  ;;  %3229 = vmatprep.subr.bf16.mxu1 %v4109_v52  ;;  %v4150_v15 = vld [vmem:[%s5215_s10 + $0x4a0] ss:$8 sps:$4 sm:$0xff]   ;;  %v4153_v17 = vld [vmem:[%s5215_s10 + $0x4b4] ss:$8 sps:$4 sm:$0xff]   ;;  %v4156_v19 = vld [vmem:[%s5215_s10 + $0x4b0] ss:$8 sps:$4 sm:$0xff]  }
  0xba   : > { %3393 = vmatprep.subr.bf16.mxu0 %v4111_v53  ;;  %v4157_v20 = vld [vmem:[%s5215_s10 + $0xc4] ss:$8 sps:$4 sm:$0xff]   ;;  %v4161_v22 = vld [vmem:[%s5215_s10 + $0xc0] ss:$8 sps:$4 sm:$0xff]   ;;  %v4163_v24 = vld [vmem:[%s5215_s10 + $0xd4] ss:$8 sps:$4 sm:$0xff]  }
  0xbb   : > { %v4159_v21 = vld [vmem:[%s5215_s10 + $0x4c4] ss:$8 sps:$4 sm:$0xff]   ;;  %v4162_v23 = vld [vmem:[%s5215_s10 + $0x4c0] ss:$8 sps:$4 sm:$0xff]   ;;  %v4165_v25 = vld [vmem:[%s5215_s10 + $0x4d4] ss:$8 sps:$4 sm:$0xff]  }
  0xbc   : > { %3230 = vmatpush1.bf16.msra.mxu1 %v4113_v54  ;;  %v4167_v26 = vld [vmem:[%s5215_s10 + $0xd0] ss:$8 sps:$4 sm:$0xff]   ;;  %v4169_v28 = vld [vmem:[%s5215_s10 + $0xe4] ss:$8 sps:$4 sm:$0xff]   ;;  %v4173_v30 = vld [vmem:[%s5215_s10 + $0xe0] ss:$8 sps:$4 sm:$0xff]  }
  0xbd   : > { %3394 = vmatpush1.bf16.msra.mxu0 %v4114_v55  ;;  %3231 = vmatprep.subr.bf16.mxu1 %v4115_v56  ;;  %v4168_v27 = vld [vmem:[%s5215_s10 + $0x4d0] ss:$8 sps:$4 sm:$0xff]   ;;  %v4171_v29 = vld [vmem:[%s5215_s10 + $0x4e4] ss:$8 sps:$4 sm:$0xff]   ;;  %v4174_v31 = vld [vmem:[%s5215_s10 + $0x4e0] ss:$8 sps:$4 sm:$0xff]  }
  0xbe   : > { %3395 = vmatprep.subr.bf16.mxu0 %v4117_v57  ;;  %v4175_v34 = vld [vmem:[%s5215_s10 + $0xf4] ss:$8 sps:$4 sm:$0xff]   ;;  %v4179_v36 = vld [vmem:[%s5215_s10 + $0xf0] ss:$8 sps:$4 sm:$0xff]   ;;  %v4185_v38 = vld [vmem:[%s5215_s10 + $0x104] ss:$8 sps:$4 sm:$0xff]  }
  0xbf   : > { %v4177_v35 = vld [vmem:[%s5215_s10 + $0x4f4] ss:$8 sps:$4 sm:$0xff]   ;;  %v4180_v37 = vld [vmem:[%s5215_s10 + $0x4f0] ss:$8 sps:$4 sm:$0xff]   ;;  %v4190_v39 = vld [vmem:[%s5215_s10 + $0x504] ss:$8 sps:$4 sm:$0xff]  }
  0xc0   : > { %3232 = vmatpush1.bf16.msra.mxu1 %v4119_v58  ;;  %v4183_v41 = vld [vmem:[%s5215_s10 + $0x100] ss:$8 sps:$4 sm:$0xff]   ;;  %v4193_v44 = vld [vmem:[%s5215_s10 + $0x114] ss:$8 sps:$4 sm:$0xff]   ;;  %v4191_v32 = vld [vmem:[%s5215_s10 + $0x110] ss:$8 sps:$4 sm:$0xff]  }
  0xc1   : > { %3396 = vmatpush1.bf16.msra.mxu0 %v4120_v59  ;;  %3233 = vmatprep.subr.bf16.mxu1 %v4121_v60  ;;  %v4188_v43 = vld [vmem:[%s5215_s10 + $0x500] ss:$8 sps:$4 sm:$0xff]   ;;  %v4196_v45 = vld [vmem:[%s5215_s10 + $0x514] ss:$8 sps:$4 sm:$0xff]   ;;  %v4194_v46 = vld [vmem:[%s5215_s10 + $0x510] ss:$8 sps:$4 sm:$0xff]  }
  0xc2   : > { %3397 = vmatprep.subr.bf16.mxu0 %v4123_v61  ;;  %v4199_v33 = vld [vmem:[%s5215_s10 + $0x124] ss:$8 sps:$4 sm:$0xff]   ;;  %v4197_v48 = vld [vmem:[%s5215_s10 + $0x120] ss:$8 sps:$4 sm:$0xff]   ;;  %v4205_v50 = vld [vmem:[%s5215_s10 + $0x134] ss:$8 sps:$4 sm:$0xff]  }
  0xc3   : > { %v4202_v47 = vld [vmem:[%s5215_s10 + $0x524] ss:$8 sps:$4 sm:$0xff]   ;;  %v4200_v49 = vld [vmem:[%s5215_s10 + $0x520] ss:$8 sps:$4 sm:$0xff]   ;;  %v4208_v51 = vld [vmem:[%s5215_s10 + $0x534] ss:$8 sps:$4 sm:$0xff]  }
  0xc4   : > { %3234 = vmatpush1.bf16.msra.mxu1 %v4125_v62  ;;  %v4203_v52 = vld [vmem:[%s5215_s10 + $0x130] ss:$8 sps:$4 sm:$0xff]   ;;  %v4211_v54 = vld [vmem:[%s5215_s10 + $0x144] ss:$8 sps:$4 sm:$0xff]   ;;  %v4209_v56 = vld [vmem:[%s5215_s10 + $0x140] ss:$8 sps:$4 sm:$0xff]  }
  0xc5   : > { %3398 = vmatpush1.bf16.msra.mxu0 %v4126_v63  ;;  %3235 = vmatprep.subr.bf16.mxu1 %v4127_v0  ;;  %v4206_v53 = vld [vmem:[%s5215_s10 + $0x530] ss:$8 sps:$4 sm:$0xff]   ;;  %v4214_v55 = vld [vmem:[%s5215_s10 + $0x544] ss:$8 sps:$4 sm:$0xff]   ;;  %v4212_v57 = vld [vmem:[%s5215_s10 + $0x540] ss:$8 sps:$4 sm:$0xff]  }
  0xc6   : > { %3399 = vmatprep.subr.bf16.mxu0 %v4129_v1  ;;  %v4217_v58 = vld [vmem:[%s5215_s10 + $0x154] ss:$8 sps:$4 sm:$0xff]   ;;  %v4215_v60 = vld [vmem:[%s5215_s10 + $0x150] ss:$8 sps:$4 sm:$0xff]   ;;  %v4223_v62 = vld [vmem:[%s5215_s10 + $0x164] ss:$8 sps:$4 sm:$0xff]  }
  0xc7   : > { %v4220_v59 = vld [vmem:[%s5215_s10 + $0x554] ss:$8 sps:$4 sm:$0xff]   ;;  %v4218_v61 = vld [vmem:[%s5215_s10 + $0x550] ss:$8 sps:$4 sm:$0xff]   ;;  %v4226_v63 = vld [vmem:[%s5215_s10 + $0x564] ss:$8 sps:$4 sm:$0xff]  }
  0xc8   : > { %3236 = vmatpush1.bf16.msra.mxu1 %v4131_v2  ;;  %v5314_v0 = vld [vmem:[%s5593_s0 + $0x8] sm:$0xff]  ;;  %s5602_s30 = smov (!%p1406_p8, %s3714_s30), 3 }
  0xc9   : > { %3400 = vmatpush1.bf16.msra.mxu0 %v4132_v3  ;;  %3237 = vmatprep.subr.bf16.mxu1 %v4133_v4  ;;  %v3721_v1 = vcombine.high %v5314_v0, %v5314_v0  ;;  %v5321_v2 = vld [vmem:[%s5593_s0 + $0x28] sm:$0xff]  ;;  %s1408_s7 = scalar_lea.vmem %s5595_s2, %s5602_s30  ;;  %s3717_s17 = sshll.u32 %s5602_s30, 2 }
  0xca   : > { %3401 = vmatprep.subr.bf16.mxu0 %v4135_v5  ;;  %v4221_v3 = vld [vmem:[%s5215_s10 + $0x160] ss:$8 sps:$4 sm:$0xff]   ;;  %v3729_v5 = vcombine.high %v5321_v2, %v5321_v2  ;;  %s1419_s12 = scalar_lea.vmem %s5597_s4, %s3717_s17 }
  0xcb   : > { %v4224_v4 = vld [vmem:[%s5215_s10 + $0x560] ss:$8 sps:$4 sm:$0xff]  }
  0xcc   : > { %3238 = vmatpush1.bf16.msra.mxu1 %v4137_v6  ;;  %v4229_v6 = vld [vmem:[%s5215_s10 + $0x174] ss:$8 sps:$4 sm:$0xff]  }
  0xcd   : > { %3402 = vmatpush1.bf16.msra.mxu0 %v4138_v7  ;;  %3239 = vmatprep.subr.bf16.mxu1 %v4139_v8  ;;  %v4232_v7 = vld [vmem:[%s5215_s10 + $0x574] ss:$8 sps:$4 sm:$0xff]   ;;  %v4227_v8 = vld [vmem:[%s5215_s10 + $0x170] ss:$8 sps:$4 sm:$0xff]  }
  0xce   : > { %3403 = vmatprep.subr.bf16.mxu0 %v4141_v9  ;;  %v4230_v9 = vld [vmem:[%s5215_s10 + $0x570] ss:$8 sps:$4 sm:$0xff]  }
  0xd0   : > { %3240 = vmatpush1.bf16.msra.mxu1 %v4143_v10  ;;  %v4235_v10 = vld [vmem:[%s5215_s10 + $0x184] ss:$8 sps:$4 sm:$0xff]  }
  0xd1   : > { %3404 = vmatpush1.bf16.msra.mxu0 %v4144_v11  ;;  %3241 = vmatprep.subr.bf16.mxu1 %v4145_v12  ;;  %v4238_v11 = vld [vmem:[%s5215_s10 + $0x584] ss:$8 sps:$4 sm:$0xff]   ;;  %v4233_v12 = vld [vmem:[%s5215_s10 + $0x180] ss:$8 sps:$4 sm:$0xff]  }
  0xd2   : > { %3405 = vmatprep.subr.bf16.mxu0 %v4147_v13  ;;  %v4236_v13 = vld [vmem:[%s5215_s10 + $0x580] ss:$8 sps:$4 sm:$0xff]  }
  0xd4   : > { %3242 = vmatpush1.bf16.msra.mxu1 %v4149_v14  ;;  %v4241_v14 = vld [vmem:[%s5215_s10 + $0x194] ss:$8 sps:$4 sm:$0xff]  }
  0xd5   : > { %3406 = vmatpush1.bf16.msra.mxu0 %v4150_v15  ;;  %3243 = vmatprep.subr.bf16.mxu1 %v4151_v16  ;;  %v4244_v15 = vld [vmem:[%s5215_s10 + $0x594] ss:$8 sps:$4 sm:$0xff]   ;;  %v4239_v16 = vld [vmem:[%s5215_s10 + $0x190] ss:$8 sps:$4 sm:$0xff]  }
  0xd6   : > { %3407 = vmatprep.subr.bf16.mxu0 %v4153_v17  ;;  %v4242_v17 = vld [vmem:[%s5215_s10 + $0x590] ss:$8 sps:$4 sm:$0xff]  }
  0xd8   : > { %3244 = vmatpush1.bf16.msra.mxu1 %v4155_v18  ;;  %v4247_v18 = vld [vmem:[%s5215_s10 + $0x1a4] ss:$8 sps:$4 sm:$0xff]  }
  0xd9   : > { %3408 = vmatpush1.bf16.msra.mxu0 %v4156_v19  ;;  %3245 = vmatprep.subr.bf16.mxu1 %v4157_v20  ;;  %v4250_v19 = vld [vmem:[%s5215_s10 + $0x5a4] ss:$8 sps:$4 sm:$0xff]   ;;  %v4245_v20 = vld [vmem:[%s5215_s10 + $0x1a0] ss:$8 sps:$4 sm:$0xff]  }
  0xda   : > { %3409 = vmatprep.subr.bf16.mxu0 %v4159_v21  ;;  %v4248_v21 = vld [vmem:[%s5215_s10 + $0x5a0] ss:$8 sps:$4 sm:$0xff]  }
  0xdc   : > { %3246 = vmatpush1.bf16.msra.mxu1 %v4161_v22  ;;  %v4253_v22 = vld [vmem:[%s5215_s10 + $0x1b4] ss:$8 sps:$4 sm:$0xff]  }
  0xdd   : > { %3410 = vmatpush1.bf16.msra.mxu0 %v4162_v23  ;;  %3247 = vmatprep.subr.bf16.mxu1 %v4163_v24  ;;  %v4256_v23 = vld [vmem:[%s5215_s10 + $0x5b4] ss:$8 sps:$4 sm:$0xff]   ;;  %v4251_v24 = vld [vmem:[%s5215_s10 + $0x1b0] ss:$8 sps:$4 sm:$0xff]  }
  0xde   : > { %3411 = vmatprep.subr.bf16.mxu0 %v4165_v25  ;;  %v4254_v25 = vld [vmem:[%s5215_s10 + $0x5b0] ss:$8 sps:$4 sm:$0xff]  }
  0xe0   : > { %3248 = vmatpush1.bf16.msra.mxu1 %v4167_v26  ;;  %v4259_v26 = vld [vmem:[%s5215_s10 + $0x1c4] ss:$8 sps:$4 sm:$0xff]  }
  0xe1   : > { %3412 = vmatpush1.bf16.msra.mxu0 %v4168_v27  ;;  %3249 = vmatprep.subr.bf16.mxu1 %v4169_v28  ;;  %v4262_v27 = vld [vmem:[%s5215_s10 + $0x5c4] ss:$8 sps:$4 sm:$0xff]   ;;  %v4257_v28 = vld [vmem:[%s5215_s10 + $0x1c0] ss:$8 sps:$4 sm:$0xff]  }
  0xe2   : > { %3413 = vmatprep.subr.bf16.mxu0 %v4171_v29  ;;  %v4260_v29 = vld [vmem:[%s5215_s10 + $0x5c0] ss:$8 sps:$4 sm:$0xff]  }
  0xe4   : > { %3250 = vmatpush1.bf16.msra.mxu1 %v4173_v30  ;;  %v4265_v30 = vld [vmem:[%s5215_s10 + $0x1d4] ss:$8 sps:$4 sm:$0xff]  }
  0xe5   : > { %3414 = vmatpush1.bf16.msra.mxu0 %v4174_v31  ;;  %3251 = vmatprep.subr.bf16.mxu1 %v4175_v34  ;;  %v4268_v31 = vld [vmem:[%s5215_s10 + $0x5d4] ss:$8 sps:$4 sm:$0xff]   ;;  %v4263_v34 = vld [vmem:[%s5215_s10 + $0x1d0] ss:$8 sps:$4 sm:$0xff]  }
  0xe6   : > { %3415 = vmatprep.subr.bf16.mxu0 %v4177_v35  ;;  %v4266_v35 = vld [vmem:[%s5215_s10 + $0x5d0] ss:$8 sps:$4 sm:$0xff]  }
  0xe8   : > { %3252 = vmatpush1.bf16.msra.mxu1 %v4179_v36  ;;  %v4271_v36 = vld [vmem:[%s5215_s10 + $0x1e4] ss:$8 sps:$4 sm:$0xff]  }
  0xe9   : > { %3416 = vmatpush1.bf16.msra.mxu0 %v4180_v37  ;;  %3262 = vmatprep.subr.bf16.mxu1 %v4185_v38  ;;  %v4274_v37 = vld [vmem:[%s5215_s10 + $0x5e4] ss:$8 sps:$4 sm:$0xff]   ;;  %v4269_v38 = vld [vmem:[%s5215_s10 + $0x1e0] ss:$8 sps:$4 sm:$0xff]  }
  0xea   : > { %3426 = vmatprep.subr.bf16.mxu0 %v4190_v39  ;;  %v4272_v39 = vld [vmem:[%s5215_s10 + $0x5e0] ss:$8 sps:$4 sm:$0xff]  }
  0xeb   : > { %3254 = vmatmul.mubr.bf16.vlgmr.msra.gmra.mrb[0].mxu1 %v3718_v40  ;;  %v4277_v40 = vld [vmem:[%s5215_s10 + $0x1f4] ss:$8 sps:$4 sm:$0xff]  }
  0xec   : > { %3418 = vmatmul.mubr.bf16.vlgmr.msra.gmra.mrb[0].mxu0 %v3726_v42  ;;  %3263 = vmatpush1.bf16.msra.mxu1 %v4183_v41  ;;  %v4280_v41 = vld [vmem:[%s5215_s10 + $0x5f4] ss:$8 sps:$4 sm:$0xff]   ;;  %v4275_v42 = vld [vmem:[%s5215_s10 + $0x1f0] ss:$8 sps:$4 sm:$0xff]  }
  0xed   : > { %3427 = vmatpush1.bf16.msra.mxu0 %v4188_v43  ;;  %3264 = vmatprep.subr.bf16.mxu1 %v4193_v44  ;;  %v4278_v43 = vld [vmem:[%s5215_s10 + $0x5f0] ss:$8 sps:$4 sm:$0xff]   ;;  %v4285_v44 = vld [vmem:[%s5215_s10 + $0x204] ss:$8 sps:$4 sm:$0xff]  }
  0xee   : > { %3428 = vmatprep.subr.bf16.mxu0 %v4196_v45  ;;  %3294 = vmatprep.mubr.bf16.mxu1 %v3721_v1  ;;  %v4290_v45 = vld [vmem:[%s5215_s10 + $0x604] ss:$8 sps:$4 sm:$0xff]  }
  0xef   : > { %3458 = vmatprep.mubr.bf16.mxu0 %v3729_v5  ;;  %v4314_v1 = vld [vmem:[%s5215_s10 + $0x644] ss:$8 sps:$4 sm:$0xff]   ;;  %v4320_v5 = vld [vmem:[%s5215_s10 + $0x654] ss:$8 sps:$4 sm:$0xff]  }
  0xf0   : > { %3265 = vmatpush1.bf16.msra.mxu1 %v4191_v32  ;;  %v3720_v32 = vcombine.low %v5314_v0, %v5314_v0  ;;  %v4311_v0 = vld [vmem:[%s5215_s10 + $0x244] ss:$8 sps:$4 sm:$0xff]  }
  0xf1   : > { %3429 = vmatpush1.bf16.msra.mxu0 %v4194_v46  ;;  %3266 = vmatprep.subr.bf16.mxu1 %v4199_v33  ;;  %v4283_v46 = vld [vmem:[%s5215_s10 + $0x200] ss:$8 sps:$4 sm:$0xff]   ;;  %v3728_v33 = vcombine.low %v5321_v2, %v5321_v2 }
  0xf2   : > { %3430 = vmatprep.subr.bf16.mxu0 %v4202_v47  ;;  %v4288_v47 = vld [vmem:[%s5215_s10 + $0x600] ss:$8 sps:$4 sm:$0xff]  }
  0xf3   : > { %v4309_v2 = vld [vmem:[%s5215_s10 + $0x240] ss:$8 sps:$4 sm:$0xff]  }
  0xf4   : > { %3267 = vmatpush1.bf16.msra.mxu1 %v4197_v48  ;;  %v4293_v48 = vld [vmem:[%s5215_s10 + $0x214] ss:$8 sps:$4 sm:$0xff]  }
  0xf5   : > { %3431 = vmatpush1.bf16.msra.mxu0 %v4200_v49  ;;  %3268 = vmatprep.subr.bf16.mxu1 %v4205_v50  ;;  %v5375_v49 = vld [vmem:[%s5593_s0 + $0x10] sm:$0xff] }
  0xf6   : > { %3432 = vmatprep.subr.bf16.mxu0 %v4208_v51  ;;  %v4296_v50 = vld [vmem:[%s5215_s10 + $0x614] ss:$8 sps:$4 sm:$0xff]   ;;  %v3723_v51 = vcombine.high %v5375_v49, %v5375_v49 }
  0xf8   : > { %3269 = vmatpush1.bf16.msra.mxu1 %v4203_v52  ;;  %v5383_v52 = vld [vmem:[%s5593_s0 + $0x30] sm:$0xff] }
  0xf9   : > { %3433 = vmatpush1.bf16.msra.mxu0 %v4206_v53  ;;  %3270 = vmatprep.subr.bf16.mxu1 %v4211_v54  ;;  %v4291_v53 = vld [vmem:[%s5215_s10 + $0x210] ss:$8 sps:$4 sm:$0xff]  }
  0xfa   : > { %3434 = vmatprep.subr.bf16.mxu0 %v4214_v55  ;;  %v4294_v54 = vld [vmem:[%s5215_s10 + $0x610] ss:$8 sps:$4 sm:$0xff]   ;;  %v3731_v55 = vcombine.high %v5383_v52, %v5383_v52 }
  0xfc   : > { %3271 = vmatpush1.bf16.msra.mxu1 %v4209_v56  ;;  %v4299_v56 = vld [vmem:[%s5215_s10 + $0x224] ss:$8 sps:$4 sm:$0xff]  }
  0xfd   : > { %3435 = vmatpush1.bf16.msra.mxu0 %v4212_v57  ;;  %3272 = vmatprep.subr.bf16.mxu1 %v4217_v58  ;;  %v4302_v57 = vld [vmem:[%s5215_s10 + $0x624] ss:$8 sps:$4 sm:$0xff]   ;;  %v4297_v58 = vld [vmem:[%s5215_s10 + $0x220] ss:$8 sps:$4 sm:$0xff]  }
  0xfe   : > { %3436 = vmatprep.subr.bf16.mxu0 %v4220_v59  ;;  %v4300_v59 = vld [vmem:[%s5215_s10 + $0x620] ss:$8 sps:$4 sm:$0xff]  }
 0x100   : > { %3273 = vmatpush1.bf16.msra.mxu1 %v4215_v60  ;;  %v4305_v60 = vld [vmem:[%s5215_s10 + $0x234] ss:$8 sps:$4 sm:$0xff]  }
 0x101   : > { %3437 = vmatpush1.bf16.msra.mxu0 %v4218_v61  ;;  %3274 = vmatprep.subr.bf16.mxu1 %v4223_v62  ;;  %v4308_v61 = vld [vmem:[%s5215_s10 + $0x634] ss:$8 sps:$4 sm:$0xff]   ;;  %v4303_v62 = vld [vmem:[%s5215_s10 + $0x230] ss:$8 sps:$4 sm:$0xff]  }
 0x102   : > { %3438 = vmatprep.subr.bf16.mxu0 %v4226_v63  ;;  %v4306_v63 = vld [vmem:[%s5215_s10 + $0x630] ss:$8 sps:$4 sm:$0xff]  }
 0x104   : > { %3275 = vmatpush1.bf16.msra.mxu1 %v4221_v3  ;;  %v4312_v3 = vld [vmem:[%s5215_s10 + $0x640] ss:$8 sps:$4 sm:$0xff]  }
 0x105   : > { %3439 = vmatpush1.bf16.msra.mxu0 %v4224_v4  ;;  %3276 = vmatprep.subr.bf16.mxu1 %v4229_v6  ;;  %v4317_v4 = vld [vmem:[%s5215_s10 + $0x254] ss:$8 sps:$4 sm:$0xff]   ;;  %v4315_v6 = vld [vmem:[%s5215_s10 + $0x250] ss:$8 sps:$4 sm:$0xff]  }
 0x106   : > { %3440 = vmatprep.subr.bf16.mxu0 %v4232_v7  ;;  %v4318_v7 = vld [vmem:[%s5215_s10 + $0x650] ss:$8 sps:$4 sm:$0xff]  }
 0x108   : > { %3277 = vmatpush1.bf16.msra.mxu1 %v4227_v8  ;;  %v4323_v8 = vld [vmem:[%s5215_s10 + $0x264] ss:$8 sps:$4 sm:$0xff]  }
 0x109   : > { %3441 = vmatpush1.bf16.msra.mxu0 %v4230_v9  ;;  %3278 = vmatprep.subr.bf16.mxu1 %v4235_v10  ;;  %v4326_v9 = vld [vmem:[%s5215_s10 + $0x664] ss:$8 sps:$4 sm:$0xff]   ;;  %v4321_v10 = vld [vmem:[%s5215_s10 + $0x260] ss:$8 sps:$4 sm:$0xff]  }
 0x10a   : > { %3442 = vmatprep.subr.bf16.mxu0 %v4238_v11  ;;  %v4324_v11 = vld [vmem:[%s5215_s10 + $0x660] ss:$8 sps:$4 sm:$0xff]  }
 0x10c   : > { %3279 = vmatpush1.bf16.msra.mxu1 %v4233_v12  ;;  %v4329_v12 = vld [vmem:[%s5215_s10 + $0x274] ss:$8 sps:$4 sm:$0xff]  }
 0x10d   : > { %3443 = vmatpush1.bf16.msra.mxu0 %v4236_v13  ;;  %3280 = vmatprep.subr.bf16.mxu1 %v4241_v14  ;;  %v4332_v13 = vld [vmem:[%s5215_s10 + $0x674] ss:$8 sps:$4 sm:$0xff]   ;;  %v4327_v14 = vld [vmem:[%s5215_s10 + $0x270] ss:$8 sps:$4 sm:$0xff]  }
 0x10e   : > { %3444 = vmatprep.subr.bf16.mxu0 %v4244_v15  ;;  %v4330_v15 = vld [vmem:[%s5215_s10 + $0x670] ss:$8 sps:$4 sm:$0xff]  }
 0x110   : > { %3281 = vmatpush1.bf16.msra.mxu1 %v4239_v16  ;;  %v4335_v16 = vld [vmem:[%s5215_s10 + $0x284] ss:$8 sps:$4 sm:$0xff]  }
 0x111   : > { %3445 = vmatpush1.bf16.msra.mxu0 %v4242_v17  ;;  %3282 = vmatprep.subr.bf16.mxu1 %v4247_v18  ;;  %v4338_v17 = vld [vmem:[%s5215_s10 + $0x684] ss:$8 sps:$4 sm:$0xff]   ;;  %v4333_v18 = vld [vmem:[%s5215_s10 + $0x280] ss:$8 sps:$4 sm:$0xff]  }
 0x112   : > { %3446 = vmatprep.subr.bf16.mxu0 %v4250_v19  ;;  %v4336_v19 = vld [vmem:[%s5215_s10 + $0x680] ss:$8 sps:$4 sm:$0xff]  }
 0x114   : > { %3283 = vmatpush1.bf16.msra.mxu1 %v4245_v20  ;;  %v4341_v20 = vld [vmem:[%s5215_s10 + $0x294] ss:$8 sps:$4 sm:$0xff]  }
 0x115   : > { %3447 = vmatpush1.bf16.msra.mxu0 %v4248_v21  ;;  %3284 = vmatprep.subr.bf16.mxu1 %v4253_v22  ;;  %v4344_v21 = vld [vmem:[%s5215_s10 + $0x694] ss:$8 sps:$4 sm:$0xff]   ;;  %v4339_v22 = vld [vmem:[%s5215_s10 + $0x290] ss:$8 sps:$4 sm:$0xff]  }
 0x116   : > { %3448 = vmatprep.subr.bf16.mxu0 %v4256_v23  ;;  %v4342_v23 = vld [vmem:[%s5215_s10 + $0x690] ss:$8 sps:$4 sm:$0xff]  }
 0x118   : > { %3285 = vmatpush1.bf16.msra.mxu1 %v4251_v24  ;;  %v4347_v24 = vld [vmem:[%s5215_s10 + $0x2a4] ss:$8 sps:$4 sm:$0xff]  }
 0x119   : > { %3449 = vmatpush1.bf16.msra.mxu0 %v4254_v25  ;;  %3286 = vmatprep.subr.bf16.mxu1 %v4259_v26  ;;  %v4350_v25 = vld [vmem:[%s5215_s10 + $0x6a4] ss:$8 sps:$4 sm:$0xff]   ;;  %v4345_v26 = vld [vmem:[%s5215_s10 + $0x2a0] ss:$8 sps:$4 sm:$0xff]  }
 0x11a   : > { %3450 = vmatprep.subr.bf16.mxu0 %v4262_v27  ;;  %v4348_v27 = vld [vmem:[%s5215_s10 + $0x6a0] ss:$8 sps:$4 sm:$0xff]  }
 0x11c   : > { %3287 = vmatpush1.bf16.msra.mxu1 %v4257_v28  ;;  %v4353_v28 = vld [vmem:[%s5215_s10 + $0x2b4] ss:$8 sps:$4 sm:$0xff]  }
 0x11d   : > { %3451 = vmatpush1.bf16.msra.mxu0 %v4260_v29  ;;  %3288 = vmatprep.subr.bf16.mxu1 %v4265_v30  ;;  %v4356_v29 = vld [vmem:[%s5215_s10 + $0x6b4] ss:$8 sps:$4 sm:$0xff]   ;;  %v4351_v30 = vld [vmem:[%s5215_s10 + $0x2b0] ss:$8 sps:$4 sm:$0xff]  }
 0x11e   : > { %3452 = vmatprep.subr.bf16.mxu0 %v4268_v31  ;;  %v4354_v31 = vld [vmem:[%s5215_s10 + $0x6b0] ss:$8 sps:$4 sm:$0xff]  }
 0x120   : > { %3289 = vmatpush1.bf16.msra.mxu1 %v4263_v34  ;;  %v4359_v34 = vld [vmem:[%s5215_s10 + $0x2c4] ss:$8 sps:$4 sm:$0xff]  }
 0x121   : > { %3453 = vmatpush1.bf16.msra.mxu0 %v4266_v35  ;;  %3290 = vmatprep.subr.bf16.mxu1 %v4271_v36  ;;  %v4362_v35 = vld [vmem:[%s5215_s10 + $0x6c4] ss:$8 sps:$4 sm:$0xff]   ;;  %v4357_v36 = vld [vmem:[%s5215_s10 + $0x2c0] ss:$8 sps:$4 sm:$0xff]  }
 0x122   : > { %3454 = vmatprep.subr.bf16.mxu0 %v4274_v37  ;;  %v4360_v37 = vld [vmem:[%s5215_s10 + $0x6c0] ss:$8 sps:$4 sm:$0xff]  }
 0x124   : > { %3291 = vmatpush1.bf16.msra.mxu1 %v4269_v38  ;;  %v4365_v38 = vld [vmem:[%s5215_s10 + $0x2d4] ss:$8 sps:$4 sm:$0xff]  }
 0x125   : > { %3455 = vmatpush1.bf16.msra.mxu0 %v4272_v39  ;;  %3292 = vmatprep.subr.bf16.mxu1 %v4277_v40  ;;  %v4368_v39 = vld [vmem:[%s5215_s10 + $0x6d4] ss:$8 sps:$4 sm:$0xff]   ;;  %v4363_v40 = vld [vmem:[%s5215_s10 + $0x2d0] ss:$8 sps:$4 sm:$0xff]  }
 0x126   : > { %3456 = vmatprep.subr.bf16.mxu0 %v4280_v41  ;;  %v4366_v41 = vld [vmem:[%s5215_s10 + $0x6d0] ss:$8 sps:$4 sm:$0xff]  }
 0x128   : > { %3293 = vmatpush1.bf16.msra.mxu1 %v4275_v42  ;;  %v4371_v42 = vld [vmem:[%s5215_s10 + $0x2e4] ss:$8 sps:$4 sm:$0xff]  }
 0x129   : > { %3457 = vmatpush1.bf16.msra.mxu0 %v4278_v43  ;;  %3303 = vmatprep.subr.bf16.mxu1 %v4285_v44  ;;  %v4374_v43 = vld [vmem:[%s5215_s10 + $0x6e4] ss:$8 sps:$4 sm:$0xff]   ;;  %v4369_v44 = vld [vmem:[%s5215_s10 + $0x2e0] ss:$8 sps:$4 sm:$0xff]  }
 0x12a   : > { %3467 = vmatprep.subr.bf16.mxu0 %v4290_v45  ;;  %v4372_v45 = vld [vmem:[%s5215_s10 + $0x6e0] ss:$8 sps:$4 sm:$0xff]  }
 0x12b   : > { %3295 = vmatmul.mubr.bf16.vlgmr.msra.gmra.mrb[0].mxu1 %v3720_v32  ;;  %v4377_v32 = vld [vmem:[%s5215_s10 + $0x2f4] ss:$8 sps:$4 sm:$0xff]  }
 0x12c   : > { %3459 = vmatmul.mubr.bf16.vlgmr.msra.gmra.mrb[0].mxu0 %v3728_v33  ;;  %3304 = vmatpush1.bf16.msra.mxu1 %v4283_v46  ;;  %v4380_v46 = vld [vmem:[%s5215_s10 + $0x6f4] ss:$8 sps:$4 sm:$0xff]   ;;  %v4375_v33 = vld [vmem:[%s5215_s10 + $0x2f0] ss:$8 sps:$4 sm:$0xff]  }
 0x12d   : > { %3468 = vmatpush1.bf16.msra.mxu0 %v4288_v47  ;;  %3305 = vmatprep.subr.bf16.mxu1 %v4293_v48  ;;  %v4378_v47 = vld [vmem:[%s5215_s10 + $0x6f0] ss:$8 sps:$4 sm:$0xff]   ;;  %v4385_v48 = vld [vmem:[%s5215_s10 + $0x304] ss:$8 sps:$4 sm:$0xff]  }
 0x12e   : > { %3469 = vmatprep.subr.bf16.mxu0 %v4296_v50  ;;  %3335 = vmatprep.mubr.bf16.mxu1 %v3723_v51  ;;  %v4390_v50 = vld [vmem:[%s5215_s10 + $0x704] ss:$8 sps:$4 sm:$0xff]   ;;  %v5450_v51 = vld [vmem:[%s5593_s0 + $0x18] sm:$0xff] }
 0x12f   : > { %3499 = vmatprep.mubr.bf16.mxu0 %v3731_v55  ;;  %v5459_v55 = vld [vmem:[%s5593_s0 + $0x38] sm:$0xff] }
 0x130   : > { %3306 = vmatpush1.bf16.msra.mxu1 %v4291_v53  ;;  %v3722_v53 = vcombine.low %v5375_v49, %v5375_v49  ;;  %v4396_v49 = vld [vmem:[%s5215_s10 + $0x714] ss:$8 sps:$4 sm:$0xff]  }
 0x131   : > { %3470 = vmatpush1.bf16.msra.mxu0 %v4294_v54  ;;  %3307 = vmatprep.subr.bf16.mxu1 %v4299_v56  ;;  %v3730_v54 = vcombine.low %v5383_v52, %v5383_v52  ;;  %v4383_v56 = vld [vmem:[%s5215_s10 + $0x300] ss:$8 sps:$4 sm:$0xff]   ;;  %v3725_v52 = vcombine.high %v5450_v51, %v5450_v51 }
 0x132   : > { %3471 = vmatprep.subr.bf16.mxu0 %v4302_v57  ;;  %v4388_v57 = vld [vmem:[%s5215_s10 + $0x700] ss:$8 sps:$4 sm:$0xff]  }
 0x134   : > { %3308 = vmatpush1.bf16.msra.mxu1 %v4297_v58  ;;  %v4393_v58 = vld [vmem:[%s5215_s10 + $0x314] ss:$8 sps:$4 sm:$0xff]  }
 0x135   : > { %3472 = vmatpush1.bf16.msra.mxu0 %v4300_v59  ;;  %3309 = vmatprep.subr.bf16.mxu1 %v4305_v60  ;;  %v3733_v59 = vcombine.high %v5459_v55, %v5459_v55  ;;  %v4391_v60 = vld [vmem:[%s5215_s10 + $0x310] ss:$8 sps:$4 sm:$0xff]  }
 0x136   : > { %3473 = vmatprep.subr.bf16.mxu0 %v4308_v61  ;;  %v4394_v61 = vld [vmem:[%s5215_s10 + $0x710] ss:$8 sps:$4 sm:$0xff]  }
 0x138   : > { %3310 = vmatpush1.bf16.msra.mxu1 %v4303_v62  ;;  %v4399_v62 = vld [vmem:[%s5215_s10 + $0x324] ss:$8 sps:$4 sm:$0xff]  }
 0x139   : > { %3474 = vmatpush1.bf16.msra.mxu0 %v4306_v63  ;;  %3311 = vmatprep.subr.bf16.mxu1 %v4311_v0  ;;  %v4402_v63 = vld [vmem:[%s5215_s10 + $0x724] ss:$8 sps:$4 sm:$0xff]   ;;  %v4397_v0 = vld [vmem:[%s5215_s10 + $0x320] ss:$8 sps:$4 sm:$0xff]  }
 0x13a   : > { %3475 = vmatprep.subr.bf16.mxu0 %v4314_v1  ;;  %v4400_v1 = vld [vmem:[%s5215_s10 + $0x720] ss:$8 sps:$4 sm:$0xff]  }
 0x13c   : > { %3312 = vmatpush1.bf16.msra.mxu1 %v4309_v2  ;;  %v4405_v2 = vld [vmem:[%s5215_s10 + $0x334] ss:$8 sps:$4 sm:$0xff]  }
 0x13d   : > { %3476 = vmatpush1.bf16.msra.mxu0 %v4312_v3  ;;  %3313 = vmatprep.subr.bf16.mxu1 %v4317_v4  ;;  %v4408_v3 = vld [vmem:[%s5215_s10 + $0x734] ss:$8 sps:$4 sm:$0xff]   ;;  %v4403_v4 = vld [vmem:[%s5215_s10 + $0x330] ss:$8 sps:$4 sm:$0xff]  }
 0x13e   : > { %3477 = vmatprep.subr.bf16.mxu0 %v4320_v5  ;;  %v4406_v5 = vld [vmem:[%s5215_s10 + $0x730] ss:$8 sps:$4 sm:$0xff]  }
 0x140   : > { %3314 = vmatpush1.bf16.msra.mxu1 %v4315_v6  ;;  %v4411_v6 = vld [vmem:[%s5215_s10 + $0x344] ss:$8 sps:$4 sm:$0xff]  }
 0x141   : > { %3478 = vmatpush1.bf16.msra.mxu0 %v4318_v7  ;;  %3315 = vmatprep.subr.bf16.mxu1 %v4323_v8  ;;  %v4414_v7 = vld [vmem:[%s5215_s10 + $0x744] ss:$8 sps:$4 sm:$0xff]   ;;  %v4409_v8 = vld [vmem:[%s5215_s10 + $0x340] ss:$8 sps:$4 sm:$0xff]  }
 0x142   : > { %3479 = vmatprep.subr.bf16.mxu0 %v4326_v9  ;;  %v4412_v9 = vld [vmem:[%s5215_s10 + $0x740] ss:$8 sps:$4 sm:$0xff]  }
 0x144   : > { %3316 = vmatpush1.bf16.msra.mxu1 %v4321_v10  ;;  %v4417_v10 = vld [vmem:[%s5215_s10 + $0x354] ss:$8 sps:$4 sm:$0xff]  }
 0x145   : > { %3480 = vmatpush1.bf16.msra.mxu0 %v4324_v11  ;;  %3317 = vmatprep.subr.bf16.mxu1 %v4329_v12  ;;  %v4420_v11 = vld [vmem:[%s5215_s10 + $0x754] ss:$8 sps:$4 sm:$0xff]   ;;  %v4415_v12 = vld [vmem:[%s5215_s10 + $0x350] ss:$8 sps:$4 sm:$0xff]  }
 0x146   : > { %3481 = vmatprep.subr.bf16.mxu0 %v4332_v13  ;;  %v4418_v13 = vld [vmem:[%s5215_s10 + $0x750] ss:$8 sps:$4 sm:$0xff]  }
 0x148   : > { %3318 = vmatpush1.bf16.msra.mxu1 %v4327_v14  ;;  %v4423_v14 = vld [vmem:[%s5215_s10 + $0x364] ss:$8 sps:$4 sm:$0xff]  }
 0x149   : > { %3482 = vmatpush1.bf16.msra.mxu0 %v4330_v15  ;;  %3319 = vmatprep.subr.bf16.mxu1 %v4335_v16  ;;  %v4426_v15 = vld [vmem:[%s5215_s10 + $0x764] ss:$8 sps:$4 sm:$0xff]   ;;  %v4421_v16 = vld [vmem:[%s5215_s10 + $0x360] ss:$8 sps:$4 sm:$0xff]  }
 0x14a   : > { %3483 = vmatprep.subr.bf16.mxu0 %v4338_v17  ;;  %v4424_v17 = vld [vmem:[%s5215_s10 + $0x760] ss:$8 sps:$4 sm:$0xff]  }
 0x14c   : > { %3320 = vmatpush1.bf16.msra.mxu1 %v4333_v18  ;;  %v4429_v18 = vld [vmem:[%s5215_s10 + $0x374] ss:$8 sps:$4 sm:$0xff]  }
 0x14d   : > { %3484 = vmatpush1.bf16.msra.mxu0 %v4336_v19  ;;  %3321 = vmatprep.subr.bf16.mxu1 %v4341_v20  ;;  %v4432_v19 = vld [vmem:[%s5215_s10 + $0x774] ss:$8 sps:$4 sm:$0xff]   ;;  %v4427_v20 = vld [vmem:[%s5215_s10 + $0x370] ss:$8 sps:$4 sm:$0xff]  }
 0x14e   : > { %3485 = vmatprep.subr.bf16.mxu0 %v4344_v21  ;;  %v4430_v21 = vld [vmem:[%s5215_s10 + $0x770] ss:$8 sps:$4 sm:$0xff]  }
 0x150   : > { %3322 = vmatpush1.bf16.msra.mxu1 %v4339_v22  ;;  %v4435_v22 = vld [vmem:[%s5215_s10 + $0x384] ss:$8 sps:$4 sm:$0xff]  }
 0x151   : > { %3486 = vmatpush1.bf16.msra.mxu0 %v4342_v23  ;;  %3323 = vmatprep.subr.bf16.mxu1 %v4347_v24  ;;  %v4438_v23 = vld [vmem:[%s5215_s10 + $0x784] ss:$8 sps:$4 sm:$0xff]   ;;  %v4433_v24 = vld [vmem:[%s5215_s10 + $0x380] ss:$8 sps:$4 sm:$0xff]  }
 0x152   : > { %3487 = vmatprep.subr.bf16.mxu0 %v4350_v25  ;;  %v4436_v25 = vld [vmem:[%s5215_s10 + $0x780] ss:$8 sps:$4 sm:$0xff]  }
 0x154   : > { %3324 = vmatpush1.bf16.msra.mxu1 %v4345_v26  ;;  %v4441_v26 = vld [vmem:[%s5215_s10 + $0x394] ss:$8 sps:$4 sm:$0xff]  }
 0x155   : > { %3488 = vmatpush1.bf16.msra.mxu0 %v4348_v27  ;;  %3325 = vmatprep.subr.bf16.mxu1 %v4353_v28  ;;  %v4444_v27 = vld [vmem:[%s5215_s10 + $0x794] ss:$8 sps:$4 sm:$0xff]   ;;  %v4439_v28 = vld [vmem:[%s5215_s10 + $0x390] ss:$8 sps:$4 sm:$0xff]  }
 0x156   : > { %3489 = vmatprep.subr.bf16.mxu0 %v4356_v29  ;;  %v4442_v29 = vld [vmem:[%s5215_s10 + $0x790] ss:$8 sps:$4 sm:$0xff]  }
 0x158   : > { %3326 = vmatpush1.bf16.msra.mxu1 %v4351_v30  ;;  %v4447_v30 = vld [vmem:[%s5215_s10 + $0x3a4] ss:$8 sps:$4 sm:$0xff]  }
 0x159   : > { %3490 = vmatpush1.bf16.msra.mxu0 %v4354_v31  ;;  %3327 = vmatprep.subr.bf16.mxu1 %v4359_v34  ;;  %v4450_v31 = vld [vmem:[%s5215_s10 + $0x7a4] ss:$8 sps:$4 sm:$0xff]   ;;  %v4445_v34 = vld [vmem:[%s5215_s10 + $0x3a0] ss:$8 sps:$4 sm:$0xff]  }
 0x15a   : > { %3491 = vmatprep.subr.bf16.mxu0 %v4362_v35  ;;  %v4448_v35 = vld [vmem:[%s5215_s10 + $0x7a0] ss:$8 sps:$4 sm:$0xff]  }
 0x15c   : > { %3328 = vmatpush1.bf16.msra.mxu1 %v4357_v36  ;;  %v4453_v36 = vld [vmem:[%s5215_s10 + $0x3b4] ss:$8 sps:$4 sm:$0xff]  }
 0x15d   : > { %3492 = vmatpush1.bf16.msra.mxu0 %v4360_v37  ;;  %3329 = vmatprep.subr.bf16.mxu1 %v4365_v38  ;;  %v4456_v37 = vld [vmem:[%s5215_s10 + $0x7b4] ss:$8 sps:$4 sm:$0xff]   ;;  %v4451_v38 = vld [vmem:[%s5215_s10 + $0x3b0] ss:$8 sps:$4 sm:$0xff]  }
 0x15e   : > { %3493 = vmatprep.subr.bf16.mxu0 %v4368_v39  ;;  %v4454_v39 = vld [vmem:[%s5215_s10 + $0x7b0] ss:$8 sps:$4 sm:$0xff]  }
 0x160   : > { %3330 = vmatpush1.bf16.msra.mxu1 %v4363_v40  ;;  %v4459_v40 = vld [vmem:[%s5215_s10 + $0x3c4] ss:$8 sps:$4 sm:$0xff]  }
 0x161   : > { %3494 = vmatpush1.bf16.msra.mxu0 %v4366_v41  ;;  %3331 = vmatprep.subr.bf16.mxu1 %v4371_v42  ;;  %v4462_v41 = vld [vmem:[%s5215_s10 + $0x7c4] ss:$8 sps:$4 sm:$0xff]   ;;  %v4457_v42 = vld [vmem:[%s5215_s10 + $0x3c0] ss:$8 sps:$4 sm:$0xff]  }
 0x162   : > { %3495 = vmatprep.subr.bf16.mxu0 %v4374_v43  ;;  %v4460_v43 = vld [vmem:[%s5215_s10 + $0x7c0] ss:$8 sps:$4 sm:$0xff]  }
 0x164   : > { %3332 = vmatpush1.bf16.msra.mxu1 %v4369_v44  ;;  %v4465_v44 = vld [vmem:[%s5215_s10 + $0x3d4] ss:$8 sps:$4 sm:$0xff]  }
 0x165   : > { %3496 = vmatpush1.bf16.msra.mxu0 %v4372_v45  ;;  %3333 = vmatprep.subr.bf16.mxu1 %v4377_v32  ;;  %v4468_v45 = vld [vmem:[%s5215_s10 + $0x7d4] ss:$8 sps:$4 sm:$0xff]   ;;  %v4463_v32 = vld [vmem:[%s5215_s10 + $0x3d0] ss:$8 sps:$4 sm:$0xff]  }
 0x166   : > { %3497 = vmatprep.subr.bf16.mxu0 %v4380_v46  ;;  %v4466_v46 = vld [vmem:[%s5215_s10 + $0x7d0] ss:$8 sps:$4 sm:$0xff]  }
 0x168   : > { %3334 = vmatpush1.bf16.msra.mxu1 %v4375_v33  ;;  %v4471_v33 = vld [vmem:[%s5215_s10 + $0x3e4] ss:$8 sps:$4 sm:$0xff]  }
 0x169   : > { %3498 = vmatpush1.bf16.msra.mxu0 %v4378_v47  ;;  %3344 = vmatprep.subr.bf16.mxu1 %v4385_v48  ;;  %v4474_v47 = vld [vmem:[%s5215_s10 + $0x7e4] ss:$8 sps:$4 sm:$0xff]   ;;  %v4469_v48 = vld [vmem:[%s5215_s10 + $0x3e0] ss:$8 sps:$4 sm:$0xff]  }
 0x16a   : > { %3508 = vmatprep.subr.bf16.mxu0 %v4390_v50  ;;  %v4472_v50 = vld [vmem:[%s5215_s10 + $0x7e0] ss:$8 sps:$4 sm:$0xff]  }
 0x16b   : > { %3336 = vmatmul.mubr.bf16.vlgmr.msra.gmra.mrb[0].mxu1 %v3722_v53  ;;  %v4477_v53 = vld [vmem:[%s5215_s10 + $0x3f4] ss:$8 sps:$4 sm:$0xff]  }
 0x16c   : > { %3500 = vmatmul.mubr.bf16.vlgmr.msra.gmra.mrb[0].mxu0 %v3730_v54  ;;  %3345 = vmatpush1.bf16.msra.mxu1 %v4383_v56  ;;  %v4480_v54 = vld [vmem:[%s5215_s10 + $0x7f4] ss:$8 sps:$4 sm:$0xff]   ;;  %v4475_v56 = vld [vmem:[%s5215_s10 + $0x3f0] ss:$8 sps:$4 sm:$0xff]  }
 0x16d   : > { %3509 = vmatpush1.bf16.msra.mxu0 %v4388_v57  ;;  %3346 = vmatprep.subr.bf16.mxu1 %v4393_v58  ;;  %v4478_v57 = vld [vmem:[%s5215_s10 + $0x7f0] ss:$8 sps:$4 sm:$0xff]   ;;  %v4487_v58 = vld [vmem:[%s5215_s10 + $0x804] ss:$8 sps:$4 sm:$0xff]  }
 0x16e   : > { %3510 = vmatprep.subr.bf16.mxu0 %v4396_v49  ;;  %3376 = vmatprep.mubr.bf16.mxu1 %v3725_v52  ;;  %v5531_v49 = vld [vmem:[%s5593_s0 + $0x40] sm:$0xff]  ;;  %v3724_v52 = vcombine.low %v5450_v51, %v5450_v51  ;;  %v4488_v51 = vld [vmem:[%s5215_s10 + $0x810] ss:$8 sps:$4 sm:$0xff]  }
 0x16f   : > { %3540 = vmatprep.mubr.bf16.mxu0 %v3733_v59  ;;  %v3732_v59 = vcombine.low %v5459_v55, %v5459_v55  ;;  %v4493_v55 = vld [vmem:[%s5215_s10 + $0x824] ss:$8 sps:$4 sm:$0xff]  }
 0x170   : > { %3347 = vmatpush1.bf16.msra.mxu1 %v4391_v60  ;;  %v4485_v60 = vld [vmem:[%s5215_s10 + $0x800] ss:$8 sps:$4 sm:$0xff]  }
 0x171   : > { %3511 = vmatpush1.bf16.msra.mxu0 %v4394_v61  ;;  %3348 = vmatprep.subr.bf16.mxu1 %v4399_v62  ;;  %v3735_v61 = vcombine.high %v5531_v49, %v5531_v49  ;;  %v4490_v62 = vld [vmem:[%s5215_s10 + $0x814] ss:$8 sps:$4 sm:$0xff]  }
 0x172   : > { %3512 = vmatprep.subr.bf16.mxu0 %v4402_v63  ;;  %v4491_v63 = vld [vmem:[%s5215_s10 + $0x820] ss:$8 sps:$4 sm:$0xff]  }
 0x174   : > { %3349 = vmatpush1.bf16.msra.mxu1 %v4397_v0  ;;  %v4496_v0 = vld [vmem:[%s5215_s10 + $0x834] ss:$8 sps:$4 sm:$0xff]  }
 0x175   : > { %3513 = vmatpush1.bf16.msra.mxu0 %v4400_v1  ;;  %3350 = vmatprep.subr.bf16.mxu1 %v4405_v2  ;;  %v4494_v1 = vld [vmem:[%s5215_s10 + $0x830] ss:$8 sps:$4 sm:$0xff]   ;;  %v4499_v2 = vld [vmem:[%s5215_s10 + $0x844] ss:$8 sps:$4 sm:$0xff]  }
 0x176   : > { %3514 = vmatprep.subr.bf16.mxu0 %v4408_v3  ;;  %v4497_v3 = vld [vmem:[%s5215_s10 + $0x840] ss:$8 sps:$4 sm:$0xff]  }
 0x178   : > { %3351 = vmatpush1.bf16.msra.mxu1 %v4403_v4  ;;  %v4502_v4 = vld [vmem:[%s5215_s10 + $0x854] ss:$8 sps:$4 sm:$0xff]  }
 0x179   : > { %3515 = vmatpush1.bf16.msra.mxu0 %v4406_v5  ;;  %3352 = vmatprep.subr.bf16.mxu1 %v4411_v6  ;;  %v4500_v5 = vld [vmem:[%s5215_s10 + $0x850] ss:$8 sps:$4 sm:$0xff]   ;;  %v4505_v6 = vld [vmem:[%s5215_s10 + $0x864] ss:$8 sps:$4 sm:$0xff]  }
 0x17a   : > { %3516 = vmatprep.subr.bf16.mxu0 %v4414_v7  ;;  %v4503_v7 = vld [vmem:[%s5215_s10 + $0x860] ss:$8 sps:$4 sm:$0xff]  }
 0x17c   : > { %3353 = vmatpush1.bf16.msra.mxu1 %v4409_v8  ;;  %v4508_v8 = vld [vmem:[%s5215_s10 + $0x874] ss:$8 sps:$4 sm:$0xff]  }
 0x17d   : > { %3517 = vmatpush1.bf16.msra.mxu0 %v4412_v9  ;;  %3354 = vmatprep.subr.bf16.mxu1 %v4417_v10  ;;  %v4506_v9 = vld [vmem:[%s5215_s10 + $0x870] ss:$8 sps:$4 sm:$0xff]   ;;  %v4511_v10 = vld [vmem:[%s5215_s10 + $0x884] ss:$8 sps:$4 sm:$0xff]  }
 0x17e   : > { %3518 = vmatprep.subr.bf16.mxu0 %v4420_v11  ;;  %v4509_v11 = vld [vmem:[%s5215_s10 + $0x880] ss:$8 sps:$4 sm:$0xff]  }
 0x180   : > { %3355 = vmatpush1.bf16.msra.mxu1 %v4415_v12  ;;  %v4514_v12 = vld [vmem:[%s5215_s10 + $0x894] ss:$8 sps:$4 sm:$0xff]  }
 0x181   : > { %3519 = vmatpush1.bf16.msra.mxu0 %v4418_v13  ;;  %3356 = vmatprep.subr.bf16.mxu1 %v4423_v14  ;;  %v4512_v13 = vld [vmem:[%s5215_s10 + $0x890] ss:$8 sps:$4 sm:$0xff]   ;;  %v4517_v14 = vld [vmem:[%s5215_s10 + $0x8a4] ss:$8 sps:$4 sm:$0xff]  }
 0x182   : > { %3520 = vmatprep.subr.bf16.mxu0 %v4426_v15  ;;  %v4515_v15 = vld [vmem:[%s5215_s10 + $0x8a0] ss:$8 sps:$4 sm:$0xff]  }
 0x184   : > { %3357 = vmatpush1.bf16.msra.mxu1 %v4421_v16  ;;  %v4520_v16 = vld [vmem:[%s5215_s10 + $0x8b4] ss:$8 sps:$4 sm:$0xff]  }
 0x185   : > { %3521 = vmatpush1.bf16.msra.mxu0 %v4424_v17  ;;  %3358 = vmatprep.subr.bf16.mxu1 %v4429_v18  ;;  %v4518_v17 = vld [vmem:[%s5215_s10 + $0x8b0] ss:$8 sps:$4 sm:$0xff]   ;;  %v4523_v18 = vld [vmem:[%s5215_s10 + $0x8c4] ss:$8 sps:$4 sm:$0xff]  }
 0x186   : > { %3522 = vmatprep.subr.bf16.mxu0 %v4432_v19  ;;  %v4521_v19 = vld [vmem:[%s5215_s10 + $0x8c0] ss:$8 sps:$4 sm:$0xff]  }
 0x188   : > { %3359 = vmatpush1.bf16.msra.mxu1 %v4427_v20  ;;  %v4526_v20 = vld [vmem:[%s5215_s10 + $0x8d4] ss:$8 sps:$4 sm:$0xff]  }
 0x189   : > { %3523 = vmatpush1.bf16.msra.mxu0 %v4430_v21  ;;  %3360 = vmatprep.subr.bf16.mxu1 %v4435_v22  ;;  %v4524_v21 = vld [vmem:[%s5215_s10 + $0x8d0] ss:$8 sps:$4 sm:$0xff]   ;;  %v4529_v22 = vld [vmem:[%s5215_s10 + $0x8e4] ss:$8 sps:$4 sm:$0xff]  }
 0x18a   : > { %3524 = vmatprep.subr.bf16.mxu0 %v4438_v23  ;;  %v4527_v23 = vld [vmem:[%s5215_s10 + $0x8e0] ss:$8 sps:$4 sm:$0xff]  }
 0x18c   : > { %3361 = vmatpush1.bf16.msra.mxu1 %v4433_v24  ;;  %v4532_v24 = vld [vmem:[%s5215_s10 + $0x8f4] ss:$8 sps:$4 sm:$0xff]  }
 0x18d   : > { %3525 = vmatpush1.bf16.msra.mxu0 %v4436_v25  ;;  %3362 = vmatprep.subr.bf16.mxu1 %v4441_v26  ;;  %v4530_v25 = vld [vmem:[%s5215_s10 + $0x8f0] ss:$8 sps:$4 sm:$0xff]   ;;  %v3734_v26 = vcombine.low %v5531_v49, %v5531_v49  ;;  %s1413_s10 = scalar_lea.vmem %s5596_s3, %s5602_s30 }
 0x18e   : > { %3526 = vmatprep.subr.bf16.mxu0 %v4444_v27 }
 0x190   : > { %3363 = vmatpush1.bf16.msra.mxu1 %v4439_v28 }
 0x191   : > { %3527 = vmatpush1.bf16.msra.mxu0 %v4442_v29  ;;  %3364 = vmatprep.subr.bf16.mxu1 %v4447_v30 }
 0x192   : > { %3528 = vmatprep.subr.bf16.mxu0 %v4450_v31  ;;  %v3592_v31 = vlaneseq }
 0x194   : > { %3365 = vmatpush1.bf16.msra.mxu1 %v4445_v34  ;;  %v3593_v34 = vshrl.u32 %v3592_v31, 7 }
 0x195   : > { %3529 = vmatpush1.bf16.msra.mxu0 %v4448_v35  ;;  %3366 = vmatprep.subr.bf16.mxu1 %v4453_v36  ;;  %v3590_v36 = vld [vmem:[%s1408_s7] sm:$0x3] }
 0x196   : > { %3530 = vmatprep.subr.bf16.mxu0 %v4456_v37  ;;  %v3594_v35 = vsub.s32 0, %v3593_v34  ;;  %v3598_v37 = vsub.s32 1, %v3593_v34 }
 0x198   : > { %3367 = vmatpush1.bf16.msra.mxu1 %v4451_v38  ;;  %v3604_v38 = vld [vmem:[%s1413_s10] sm:$0x3] }
 0x199   : > { %3531 = vmatpush1.bf16.msra.mxu0 %v4454_v39  ;;  %3368 = vmatprep.subr.bf16.mxu1 %v4459_v40  ;;  %v3595_v39 = vrot.slane %v3590_v36, %v3594_v35 }
 0x19a   : > { %3532 = vmatprep.subr.bf16.mxu0 %v4462_v41  ;;  %v3599_v41 = vrot.slane %v3590_v36, %v3598_v37 }
 0x19c   : > { %3369 = vmatpush1.bf16.msra.mxu1 %v4457_v42 }
 0x19d   : > { %3533 = vmatpush1.bf16.msra.mxu0 %v4460_v43  ;;  %3370 = vmatprep.subr.bf16.mxu1 %v4465_v44  ;;  %v3609_v43 = vrot.slane %v3604_v38, %v3594_v35 }
 0x19e   : > { %3534 = vmatprep.subr.bf16.mxu0 %v4468_v45 }
 0x1a0   : > { %3371 = vmatpush1.bf16.msra.mxu1 %v4463_v32  ;;  %v3613_v32 = vrot.slane %v3604_v38, %v3598_v37 }
 0x1a1   : > { %3535 = vmatpush1.bf16.msra.mxu0 %v4466_v46  ;;  %3372 = vmatprep.subr.bf16.mxu1 %v4471_v33 }
 0x1a2   : > { %3536 = vmatprep.subr.bf16.mxu0 %v4474_v47 }
 0x1a4   : > { %3373 = vmatpush1.bf16.msra.mxu1 %v4469_v48 }
 0x1a5   : > { %3537 = vmatpush1.bf16.msra.mxu0 %v4472_v50  ;;  %3374 = vmatprep.subr.bf16.mxu1 %v4477_v53 }
 0x1a6   : > { %3538 = vmatprep.subr.bf16.mxu0 %v4480_v54 }
 0x1a8   : > { %3375 = vmatpush1.bf16.msra.mxu1 %v4475_v56 }
 0x1a9   : > { %3539 = vmatpush1.bf16.msra.mxu0 %v4478_v57 }
 0x1aa   : > { %3549 = vmatprep.subr.bf16.mxu0 %v4487_v58 }
 0x1ab   : > { %3377 = vmatmul.mubr.bf16.vlgmr.msra.gmra.mrb[0].mxu1 %v3724_v52 }
 0x1ac   : > { %3541 = vmatmul.mubr.bf16.vlgmr.msra.gmra.mrb[0].mxu0 %v3732_v59 }
 0x1ad   : > { %3550 = vmatpush1.bf16.msra.mxu0 %v4485_v60  ;;  %3581 = vmatprep.mubr.bf16.mxu0 %v3735_v61 }
 0x1ae   : > { %3551 = vmatprep.subr.bf16.mxu0 %v4490_v62 }
 0x1b1   : > { %3552 = vmatpush1.bf16.msra.mxu0 %v4488_v51 }
 0x1b2   : > { %3553 = vmatprep.subr.bf16.mxu0 %v4493_v55 }
 0x1b5   : > { %3554 = vmatpush1.bf16.msra.mxu0 %v4491_v63 }
 0x1b6   : > { %3555 = vmatprep.subr.bf16.mxu0 %v4496_v0 }
 0x1b9   : > { %3556 = vmatpush1.bf16.msra.mxu0 %v4494_v1 }
 0x1ba   : > { %3557 = vmatprep.subr.bf16.mxu0 %v4499_v2 }
 0x1bd   : > { %3558 = vmatpush1.bf16.msra.mxu0 %v4497_v3 }
 0x1be   : > { %3559 = vmatprep.subr.bf16.mxu0 %v4502_v4 }
 0x1c1   : > { %3560 = vmatpush1.bf16.msra.mxu0 %v4500_v5 }
 0x1c2   : > { %3561 = vmatprep.subr.bf16.mxu0 %v4505_v6 }
 0x1c5   : > { %3562 = vmatpush1.bf16.msra.mxu0 %v4503_v7 }
 0x1c6   : > { %3563 = vmatprep.subr.bf16.mxu0 %v4508_v8 }
 0x1c9   : > { %3564 = vmatpush1.bf16.msra.mxu0 %v4506_v9 }
 0x1ca   : > { %3565 = vmatprep.subr.bf16.mxu0 %v4511_v10 }
 0x1cd   : > { %3566 = vmatpush1.bf16.msra.mxu0 %v4509_v11 }
 0x1ce   : > { %3567 = vmatprep.subr.bf16.mxu0 %v4514_v12 }
 0x1d1   : > { %3568 = vmatpush1.bf16.msra.mxu0 %v4512_v13 }
 0x1d2   : > { %3569 = vmatprep.subr.bf16.mxu0 %v4517_v14 }
 0x1d5   : > { %3570 = vmatpush1.bf16.msra.mxu0 %v4515_v15 }
 0x1d6   : > { %3571 = vmatprep.subr.bf16.mxu0 %v4520_v16 }
 0x1d9   : > { %3572 = vmatpush1.bf16.msra.mxu0 %v4518_v17 }
 0x1da   : > { %3573 = vmatprep.subr.bf16.mxu0 %v4523_v18 }
 0x1dd   : > { %3574 = vmatpush1.bf16.msra.mxu0 %v4521_v19 }
 0x1de   : > { %3575 = vmatprep.subr.bf16.mxu0 %v4526_v20 }
 0x1e1   : > { %3576 = vmatpush1.bf16.msra.mxu0 %v4524_v21 }
 0x1e2   : > { %3577 = vmatprep.subr.bf16.mxu0 %v4529_v22 }
 0x1e5   : > { %3578 = vmatpush1.bf16.msra.mxu0 %v4527_v23 }
 0x1e6   : > { %3579 = vmatprep.subr.bf16.mxu0 %v4532_v24 }
 0x1e9   : > { %3580 = vmatpush1.bf16.msra.mxu0 %v4530_v25 }
 0x1ec   : > { %3582 = vmatmul.mubr.bf16.vlgmr.msra.gmra.mrb[0].mxu0 %v3734_v26 }
 0x27e   : > { %v3378_v27 = vpop.f32.mrb[0].mxu1 }
 0x27f   : > { %v3380_v28 = vpop.f32.mrb[1].mxu1 }
 0x280   : > { %v3382_v29 = vpop.f32.mrb[2].mxu1 }
 0x281   : > { %v3383_v30 = vpop.f32.mrb[3].mxu1 }
 0x2bf   : > { %v3583_v40 = vpop.f32.mrb[0].mxu0 }
 0x2c0   : > { %v4029_v42 = vadd.f32 %v3583_v40, %v3378_v27  ;;  %v3585_v44 = vpop.f32.mrb[1].mxu0 }
 0x2c1   : > { %v4030_v45 = vadd.f32 %v3585_v44, %v3380_v28  ;;  %v3587_v46 = vpop.f32.mrb[2].mxu0 }
 0x2c2   : > { %v3602_v33 = vmul.f32 %v4029_v42, %v3595_v39  ;;  %v3588_v47 = vpop.f32.mrb[3].mxu0 }
 0x2c3   : > { %v3603_v48 = vmul.f32 %v4030_v45, %v3599_v41 }
 0x2c4   : > { %v3616_v50 = vadd.f32 %v3609_v43, %v3602_v33 }
 0x2c5   : > { %v3617_v53 = vadd.f32 %v3613_v32, %v3603_v48 }
 0x2c7   : > { %v4028_v54 = vpack.c.bf16 %v3617_v53, %v3616_v50 }
 0x2c9   : > { %3626 = vst [vmem:[%s1419_s12] sm:$0xff] %v4028_v54 }
 0x2ca PF: > { %p11_p9 = scmp.ge.s32.totalorder %s4601_s19, 4   ;;  %s5598_s15 = smov %s4553_s16 }
 0x2cb   : > { %s5599_s16 = smov %s4610_s22  ;;  %s5600_s17 = smov %s4601_s19 }
 0x2cc   :  { %13 = sbr.rel (!%p11_p9) target bundleno = 2 (0x2), region = 115 }

// kernel: _lambda_.13
= control target key start
LH: loop header
LB: loop body
LE: loop exit
PB: predicated region body
PF: predicated region fallthrough
CT: control target
= control target key end

     0   :  { %v3068_v38 = vmov 1966171168   ;;  %v171_v40 = vlaneseq  ;;  %s4143_s0 = inlined_call_operand.vmem [shape: bf16[2,512], index: 0, kind: input, shape index: {}]   ;;  %s4144_s1 = inlined_call_operand.vmem [shape: bf16[512,512], index: 1, kind: input, shape index: {}]   ;;  %s4145_s2 = inlined_call_operand.vmem [shape: f32[1,512], index: 2, kind: input, shape index: {}]   ;;  %s4146_s3 = inlined_call_operand.vmem [shape: f32[1,512], index: 3, kind: input, shape index: {}]   ;;  %s4147_s4 = inlined_call_operand.vmem [shape: bf16[512,512], index: 4, kind: input, shape index: {}]   ;;  %s4148_s5 = inlined_call_operand.vmem [shape: f32[1,512], index: 5, kind: input, shape index: {}]   ;;  %s4149_s6 = inlined_call_operand.vmem [shape: f32[1,512], index: 6, kind: input, shape index: {}]   ;;  %s4150_s7 = inlined_call_operand.vmem [shape: f32[512,128], index: 7, kind: input, shape index: {}]   ;;  %s4151_s8 = inlined_call_operand.hbm [shape: f32[2,128], index: 8, kind: output, shape index: {}]  }
   0x1   :  { %v2660_v0 = vld [vmem:[%s4144_s1 + $0x4] ss:$16 sps:$4 sm:$0xff]   ;;  %v2662_v1 = vld [vmem:[%s4144_s1 + $0xc] ss:$16 sps:$4 sm:$0xff]   ;;  %v2664_v2 = vld [vmem:[%s4144_s1] ss:$16 sps:$4 sm:$0xff]   ;;  %v169_v39 = vunpack.c.l.s4 %v3068_v38 }
   0x2   :  { %828 = vmatprep.subr.bf16.mxu0 %v2660_v0  ;;  %v2665_v3 = vld [vmem:[%s4144_s1 + $0x8] ss:$16 sps:$4 sm:$0xff]   ;;  %910 = vmatprep.subr.bf16.mxu1 %v2662_v1  ;;  %v2666_v4 = vld [vmem:[%s4144_s1 + $0x24] ss:$16 sps:$4 sm:$0xff]   ;;  %v2668_v5 = vld [vmem:[%s4144_s1 + $0x2c] ss:$16 sps:$4 sm:$0xff]  }
   0x3   :  { %829 = vmatpush1.bf16.msra.mxu0 %v2664_v2  ;;  %911 = vmatpush1.bf16.msra.mxu1 %v2665_v3  ;;  %v2670_v6 = vld [vmem:[%s4144_s1 + $0x20] ss:$16 sps:$4 sm:$0xff]   ;;  %v2671_v7 = vld [vmem:[%s4144_s1 + $0x28] ss:$16 sps:$4 sm:$0xff]   ;;  %v2672_v8 = vld [vmem:[%s4144_s1 + $0x44] ss:$16 sps:$4 sm:$0xff]   ;;  %v170_v45 = vunpack.c.0.s8 %v169_v39 }
   0x4   :  { %830 = vmatprep.subr.bf16.mxu0 %v2666_v4  ;;  %912 = vmatprep.subr.bf16.mxu1 %v2668_v5  ;;  %v2674_v9 = vld [vmem:[%s4144_s1 + $0x4c] ss:$16 sps:$4 sm:$0xff]   ;;  %v2676_v10 = vld [vmem:[%s4144_s1 + $0x40] ss:$16 sps:$4 sm:$0xff]   ;;  %v2677_v11 = vld [vmem:[%s4144_s1 + $0x48] ss:$16 sps:$4 sm:$0xff]  }
   0x5   :  { %v2678_v12 = vld [vmem:[%s4144_s1 + $0x64] ss:$16 sps:$4 sm:$0xff]   ;;  %v2680_v13 = vld [vmem:[%s4144_s1 + $0x6c] ss:$16 sps:$4 sm:$0xff]   ;;  %v2682_v14 = vld [vmem:[%s4144_s1 + $0x60] ss:$16 sps:$4 sm:$0xff]  }
   0x6   :  { %v2683_v15 = vld [vmem:[%s4144_s1 + $0x68] ss:$16 sps:$4 sm:$0xff]   ;;  %v2684_v16 = vld [vmem:[%s4144_s1 + $0x84] ss:$16 sps:$4 sm:$0xff]   ;;  %v2686_v17 = vld [vmem:[%s4144_s1 + $0x8c] ss:$16 sps:$4 sm:$0xff]  }
   0x7   :  { %831 = vmatpush1.bf16.msra.mxu0 %v2670_v6  ;;  %913 = vmatpush1.bf16.msra.mxu1 %v2671_v7  ;;  %v2688_v18 = vld [vmem:[%s4144_s1 + $0x80] ss:$16 sps:$4 sm:$0xff]   ;;  %v2689_v19 = vld [vmem:[%s4144_s1 + $0x88] ss:$16 sps:$4 sm:$0xff]   ;;  %v2690_v20 = vld [vmem:[%s4144_s1 + $0xa4] ss:$16 sps:$4 sm:$0xff]  }
   0x8   :  { %832 = vmatprep.subr.bf16.mxu0 %v2672_v8  ;;  %914 = vmatprep.subr.bf16.mxu1 %v2674_v9  ;;  %v2692_v21 = vld [vmem:[%s4144_s1 + $0xac] ss:$16 sps:$4 sm:$0xff]   ;;  %v2694_v22 = vld [vmem:[%s4144_s1 + $0xa0] ss:$16 sps:$4 sm:$0xff]   ;;  %v2695_v23 = vld [vmem:[%s4144_s1 + $0xa8] ss:$16 sps:$4 sm:$0xff]  }
   0x9   :  { %v2696_v24 = vld [vmem:[%s4144_s1 + $0xc4] ss:$16 sps:$4 sm:$0xff]   ;;  %v2698_v25 = vld [vmem:[%s4144_s1 + $0xcc] ss:$16 sps:$4 sm:$0xff]   ;;  %v2700_v26 = vld [vmem:[%s4144_s1 + $0xc0] ss:$16 sps:$4 sm:$0xff]  }
   0xa   :  { %v2701_v27 = vld [vmem:[%s4144_s1 + $0xc8] ss:$16 sps:$4 sm:$0xff]   ;;  %v2702_v28 = vld [vmem:[%s4144_s1 + $0xe4] ss:$16 sps:$4 sm:$0xff]   ;;  %v2704_v29 = vld [vmem:[%s4144_s1 + $0xec] ss:$16 sps:$4 sm:$0xff]  }
   0xb   :  { %833 = vmatpush1.bf16.msra.mxu0 %v2676_v10  ;;  %915 = vmatpush1.bf16.msra.mxu1 %v2677_v11  ;;  %v2706_v30 = vld [vmem:[%s4144_s1 + $0xe0] ss:$16 sps:$4 sm:$0xff]   ;;  %v2707_v31 = vld [vmem:[%s4144_s1 + $0xe8] ss:$16 sps:$4 sm:$0xff]   ;;  %v2708_v32 = vld [vmem:[%s4144_s1 + $0x104] ss:$16 sps:$4 sm:$0xff]  }
   0xc   :  { %834 = vmatprep.subr.bf16.mxu0 %v2678_v12  ;;  %916 = vmatprep.subr.bf16.mxu1 %v2680_v13  ;;  %v2710_v33 = vld [vmem:[%s4144_s1 + $0x10c] ss:$16 sps:$4 sm:$0xff]   ;;  %v2712_v34 = vld [vmem:[%s4144_s1 + $0x100] ss:$16 sps:$4 sm:$0xff]   ;;  %v2713_v35 = vld [vmem:[%s4144_s1 + $0x108] ss:$16 sps:$4 sm:$0xff]  }
   0xd   :  { %v2714_v36 = vld [vmem:[%s4144_s1 + $0x124] ss:$16 sps:$4 sm:$0xff]   ;;  %v2716_v37 = vld [vmem:[%s4144_s1 + $0x12c] ss:$16 sps:$4 sm:$0xff]   ;;  %v2718_v41 = vld [vmem:[%s4144_s1 + $0x120] ss:$16 sps:$4 sm:$0xff]  }
   0xe   :  { %v2719_v42 = vld [vmem:[%s4144_s1 + $0x128] ss:$16 sps:$4 sm:$0xff]   ;;  %v2720_v43 = vld [vmem:[%s4144_s1 + $0x144] ss:$16 sps:$4 sm:$0xff]   ;;  %v2722_v44 = vld [vmem:[%s4144_s1 + $0x14c] ss:$16 sps:$4 sm:$0xff]  }
   0xf   :  { %835 = vmatpush1.bf16.msra.mxu0 %v2682_v14  ;;  %917 = vmatpush1.bf16.msra.mxu1 %v2683_v15  ;;  %v3241_v46 = vshrl.u32 %v171_v40, 7  ;;  %v2724_v47 = vld [vmem:[%s4144_s1 + $0x140] ss:$16 sps:$4 sm:$0xff]   ;;  %v2725_v48 = vld [vmem:[%s4144_s1 + $0x148] ss:$16 sps:$4 sm:$0xff]  }
  0x10   :  { %836 = vmatprep.subr.bf16.mxu0 %v2684_v16  ;;  %918 = vmatprep.subr.bf16.mxu1 %v2686_v17  ;;  %v2726_v49 = vld [vmem:[%s4144_s1 + $0x164] ss:$16 sps:$4 sm:$0xff]   ;;  %v2728_v50 = vld [vmem:[%s4144_s1 + $0x16c] ss:$16 sps:$4 sm:$0xff]   ;;  %v2730_v53 = vld [vmem:[%s4144_s1 + $0x160] ss:$16 sps:$4 sm:$0xff]  }
  0x11   :  { %v173_v51 = vsub.s32 %v170_v45, %v3241_v46  ;;  %v2251_v52 = vld.sshfl [vmem:[%s4143_s0] sm:$0x33 pattern:$0x75316420]  ;;  %v2731_v54 = vld [vmem:[%s4144_s1 + $0x168] ss:$16 sps:$4 sm:$0xff]  }
  0x12   :  { %v167_v55 = vcombine.high %v2251_v52, %v2251_v52  ;;  %v2732_v56 = vld [vmem:[%s4144_s1 + $0x184] ss:$16 sps:$4 sm:$0xff]   ;;  %v2734_v57 = vld [vmem:[%s4144_s1 + $0x18c] ss:$16 sps:$4 sm:$0xff]   ;;  %v2736_v59 = vld [vmem:[%s4144_s1 + $0x180] ss:$16 sps:$4 sm:$0xff]  }
  0x13   :  { %837 = vmatpush1.bf16.msra.mxu0 %v2688_v18  ;;  %919 = vmatpush1.bf16.msra.mxu1 %v2689_v19  ;;  %v2737_v60 = vld [vmem:[%s4144_s1 + $0x188] ss:$16 sps:$4 sm:$0xff]   ;;  %v2738_v61 = vld [vmem:[%s4144_s1 + $0x1a4] ss:$16 sps:$4 sm:$0xff]   ;;  %v2740_v62 = vld [vmem:[%s4144_s1 + $0x1ac] ss:$16 sps:$4 sm:$0xff]   ;;  %v3322_v12 = vrot.slane %v2251_v52, %v173_v51 }
  0x14   :  { %838 = vmatprep.subr.bf16.mxu0 %v2690_v20  ;;  %920 = vmatprep.subr.bf16.mxu1 %v2692_v21  ;;  %v181_v58 = vrot.slane %v167_v55, %v173_v51  ;;  %v2742_v63 = vld [vmem:[%s4144_s1 + $0x1a0] ss:$16 sps:$4 sm:$0xff]   ;;  %v2743_v0 = vld [vmem:[%s4144_s1 + $0x1a8] ss:$16 sps:$4 sm:$0xff]   ;;  %v2744_v1 = vld [vmem:[%s4144_s1 + $0x1c4] ss:$16 sps:$4 sm:$0xff]  }
  0x15   :  { %v2746_v2 = vld [vmem:[%s4144_s1 + $0x1cc] ss:$16 sps:$4 sm:$0xff]   ;;  %v2748_v3 = vld [vmem:[%s4144_s1 + $0x1c0] ss:$16 sps:$4 sm:$0xff]   ;;  %v2749_v4 = vld [vmem:[%s4144_s1 + $0x1c8] ss:$16 sps:$4 sm:$0xff]  }
  0x16   :  { %860 = vmatprep.mubr.bf16.mxu0 %v181_v58  ;;  %942 = vmatprep.mubr.bf16.mxu1 %v181_v58  ;;  %v2750_v5 = vld [vmem:[%s4144_s1 + $0x1e4] ss:$16 sps:$4 sm:$0xff]   ;;  %v2752_v6 = vld [vmem:[%s4144_s1 + $0x1ec] ss:$16 sps:$4 sm:$0xff]   ;;  %v2754_v7 = vld [vmem:[%s4144_s1 + $0x1e0] ss:$16 sps:$4 sm:$0xff]   ;;  %v183_v16 = vcombine.high %v181_v58, %v181_v58 }
  0x17   :  { %839 = vmatpush1.bf16.msra.mxu0 %v2694_v22  ;;  %921 = vmatpush1.bf16.msra.mxu1 %v2695_v23  ;;  %v2755_v8 = vld [vmem:[%s4144_s1 + $0x1e8] ss:$16 sps:$4 sm:$0xff]   ;;  %v2758_v9 = vld [vmem:[%s4144_s1 + $0x204] ss:$16 sps:$4 sm:$0xff]   ;;  %v2761_v10 = vld [vmem:[%s4144_s1 + $0x20c] ss:$16 sps:$4 sm:$0xff]  }
  0x18   :  { %840 = vmatprep.subr.bf16.mxu0 %v2696_v24  ;;  %922 = vmatprep.subr.bf16.mxu1 %v2698_v25  ;;  %v2756_v11 = vld [vmem:[%s4144_s1 + $0x200] ss:$16 sps:$4 sm:$0xff]   ;;  %v2759_v13 = vld [vmem:[%s4144_s1 + $0x208] ss:$16 sps:$4 sm:$0xff]   ;;  %v2764_v14 = vld [vmem:[%s4144_s1 + $0x224] ss:$16 sps:$4 sm:$0xff]  }
  0x19   :  { %v2767_v15 = vld [vmem:[%s4144_s1 + $0x22c] ss:$16 sps:$4 sm:$0xff]   ;;  %v2762_v17 = vld [vmem:[%s4144_s1 + $0x220] ss:$16 sps:$4 sm:$0xff]   ;;  %v2765_v18 = vld [vmem:[%s4144_s1 + $0x228] ss:$16 sps:$4 sm:$0xff]  }
  0x1a   :  { %v2770_v19 = vld [vmem:[%s4144_s1 + $0x244] ss:$16 sps:$4 sm:$0xff]   ;;  %v2773_v20 = vld [vmem:[%s4144_s1 + $0x24c] ss:$16 sps:$4 sm:$0xff]   ;;  %v2768_v21 = vld [vmem:[%s4144_s1 + $0x240] ss:$16 sps:$4 sm:$0xff]  }
  0x1b   :  { %841 = vmatpush1.bf16.msra.mxu0 %v2700_v26  ;;  %923 = vmatpush1.bf16.msra.mxu1 %v2701_v27  ;;  %v2771_v22 = vld [vmem:[%s4144_s1 + $0x248] ss:$16 sps:$4 sm:$0xff]   ;;  %v2776_v23 = vld [vmem:[%s4144_s1 + $0x264] ss:$16 sps:$4 sm:$0xff]   ;;  %v2779_v24 = vld [vmem:[%s4144_s1 + $0x26c] ss:$16 sps:$4 sm:$0xff]  }
  0x1c   :  { %842 = vmatprep.subr.bf16.mxu0 %v2702_v28  ;;  %924 = vmatprep.subr.bf16.mxu1 %v2704_v29  ;;  %v2774_v25 = vld [vmem:[%s4144_s1 + $0x260] ss:$16 sps:$4 sm:$0xff]   ;;  %v2777_v26 = vld [vmem:[%s4144_s1 + $0x268] ss:$16 sps:$4 sm:$0xff]   ;;  %v2782_v27 = vld [vmem:[%s4144_s1 + $0x284] ss:$16 sps:$4 sm:$0xff]  }
  0x1d   :  { %v2785_v28 = vld [vmem:[%s4144_s1 + $0x28c] ss:$16 sps:$4 sm:$0xff]   ;;  %v2780_v29 = vld [vmem:[%s4144_s1 + $0x280] ss:$16 sps:$4 sm:$0xff]   ;;  %v2795_v38 = vld [vmem:[%s4144_s1 + $0x2c8] ss:$16 sps:$4 sm:$0xff]  }
  0x1e   :  { %v2800_v39 = vld [vmem:[%s4144_s1 + $0x2e4] ss:$16 sps:$4 sm:$0xff]   ;;  %v2803_v40 = vld [vmem:[%s4144_s1 + $0x2ec] ss:$16 sps:$4 sm:$0xff]   ;;  %v2804_v45 = vld [vmem:[%s4144_s1 + $0x300] ss:$16 sps:$4 sm:$0xff]  }
  0x1f   :  { %843 = vmatpush1.bf16.msra.mxu0 %v2706_v30  ;;  %925 = vmatpush1.bf16.msra.mxu1 %v2707_v31  ;;  %v2783_v30 = vld [vmem:[%s4144_s1 + $0x288] ss:$16 sps:$4 sm:$0xff]   ;;  %v2788_v31 = vld [vmem:[%s4144_s1 + $0x2a4] ss:$16 sps:$4 sm:$0xff]   ;;  %v2822_v58 = vld [vmem:[%s4144_s1 + $0x360] ss:$16 sps:$4 sm:$0xff]  }
  0x20   :  { %844 = vmatprep.subr.bf16.mxu0 %v2708_v32  ;;  %926 = vmatprep.subr.bf16.mxu1 %v2710_v33  ;;  %v2791_v32 = vld [vmem:[%s4144_s1 + $0x2ac] ss:$16 sps:$4 sm:$0xff]   ;;  %v2786_v33 = vld [vmem:[%s4144_s1 + $0x2a0] ss:$16 sps:$4 sm:$0xff]   ;;  %v2813_v51 = vld [vmem:[%s4144_s1 + $0x328] ss:$16 sps:$4 sm:$0xff]  }
  0x21   :  { %v2818_v52 = vld [vmem:[%s4144_s1 + $0x344] ss:$16 sps:$4 sm:$0xff]   ;;  %v2819_v55 = vld [vmem:[%s4144_s1 + $0x348] ss:$16 sps:$4 sm:$0xff]  }
  0x23   :  { %845 = vmatpush1.bf16.msra.mxu0 %v2712_v34  ;;  %927 = vmatpush1.bf16.msra.mxu1 %v2713_v35  ;;  %v2789_v34 = vld [vmem:[%s4144_s1 + $0x2a8] ss:$16 sps:$4 sm:$0xff]   ;;  %v2794_v35 = vld [vmem:[%s4144_s1 + $0x2c4] ss:$16 sps:$4 sm:$0xff]  }
  0x24   :  { %846 = vmatprep.subr.bf16.mxu0 %v2714_v36  ;;  %928 = vmatprep.subr.bf16.mxu1 %v2716_v37  ;;  %v2797_v36 = vld [vmem:[%s4144_s1 + $0x2cc] ss:$16 sps:$4 sm:$0xff]   ;;  %v2792_v37 = vld [vmem:[%s4144_s1 + $0x2c0] ss:$16 sps:$4 sm:$0xff]  }
  0x27   :  { %847 = vmatpush1.bf16.msra.mxu0 %v2718_v41  ;;  %929 = vmatpush1.bf16.msra.mxu1 %v2719_v42  ;;  %v2798_v41 = vld [vmem:[%s4144_s1 + $0x2e0] ss:$16 sps:$4 sm:$0xff]   ;;  %v2801_v42 = vld [vmem:[%s4144_s1 + $0x2e8] ss:$16 sps:$4 sm:$0xff]  }
  0x28   :  { %848 = vmatprep.subr.bf16.mxu0 %v2720_v43  ;;  %930 = vmatprep.subr.bf16.mxu1 %v2722_v44  ;;  %v2806_v43 = vld [vmem:[%s4144_s1 + $0x304] ss:$16 sps:$4 sm:$0xff]   ;;  %v2809_v44 = vld [vmem:[%s4144_s1 + $0x30c] ss:$16 sps:$4 sm:$0xff]  }
  0x2b   :  { %849 = vmatpush1.bf16.msra.mxu0 %v2724_v47  ;;  %931 = vmatpush1.bf16.msra.mxu1 %v2725_v48  ;;  %v2807_v47 = vld [vmem:[%s4144_s1 + $0x308] ss:$16 sps:$4 sm:$0xff]   ;;  %v2812_v48 = vld [vmem:[%s4144_s1 + $0x324] ss:$16 sps:$4 sm:$0xff]  }
  0x2c   :  { %850 = vmatprep.subr.bf16.mxu0 %v2726_v49  ;;  %932 = vmatprep.subr.bf16.mxu1 %v2728_v50  ;;  %v2815_v49 = vld [vmem:[%s4144_s1 + $0x32c] ss:$16 sps:$4 sm:$0xff]   ;;  %v2810_v50 = vld [vmem:[%s4144_s1 + $0x320] ss:$16 sps:$4 sm:$0xff]  }
  0x2f   :  { %851 = vmatpush1.bf16.msra.mxu0 %v2730_v53  ;;  %933 = vmatpush1.bf16.msra.mxu1 %v2731_v54  ;;  %v2821_v53 = vld [vmem:[%s4144_s1 + $0x34c] ss:$16 sps:$4 sm:$0xff]   ;;  %v2816_v54 = vld [vmem:[%s4144_s1 + $0x340] ss:$16 sps:$4 sm:$0xff]  }
  0x30   :  { %852 = vmatprep.subr.bf16.mxu0 %v2732_v56  ;;  %934 = vmatprep.subr.bf16.mxu1 %v2734_v57  ;;  %v2824_v56 = vld [vmem:[%s4144_s1 + $0x364] ss:$16 sps:$4 sm:$0xff]   ;;  %v2827_v57 = vld [vmem:[%s4144_s1 + $0x36c] ss:$16 sps:$4 sm:$0xff]  }
  0x33   :  { %853 = vmatpush1.bf16.msra.mxu0 %v2736_v59  ;;  %935 = vmatpush1.bf16.msra.mxu1 %v2737_v60  ;;  %v2825_v59 = vld [vmem:[%s4144_s1 + $0x368] ss:$16 sps:$4 sm:$0xff]   ;;  %v2830_v60 = vld [vmem:[%s4144_s1 + $0x384] ss:$16 sps:$4 sm:$0xff]  }
  0x34   :  { %854 = vmatprep.subr.bf16.mxu0 %v2738_v61  ;;  %936 = vmatprep.subr.bf16.mxu1 %v2740_v62  ;;  %v2833_v61 = vld [vmem:[%s4144_s1 + $0x38c] ss:$16 sps:$4 sm:$0xff]   ;;  %v2828_v62 = vld [vmem:[%s4144_s1 + $0x380] ss:$16 sps:$4 sm:$0xff]  }
  0x37   :  { %855 = vmatpush1.bf16.msra.mxu0 %v2742_v63  ;;  %937 = vmatpush1.bf16.msra.mxu1 %v2743_v0  ;;  %v2831_v63 = vld [vmem:[%s4144_s1 + $0x388] ss:$16 sps:$4 sm:$0xff]   ;;  %v2836_v0 = vld [vmem:[%s4144_s1 + $0x3a4] ss:$16 sps:$4 sm:$0xff]  }
  0x38   :  { %856 = vmatprep.subr.bf16.mxu0 %v2744_v1  ;;  %938 = vmatprep.subr.bf16.mxu1 %v2746_v2  ;;  %v2839_v1 = vld [vmem:[%s4144_s1 + $0x3ac] ss:$16 sps:$4 sm:$0xff]   ;;  %v2834_v2 = vld [vmem:[%s4144_s1 + $0x3a0] ss:$16 sps:$4 sm:$0xff]  }
  0x3b   :  { %857 = vmatpush1.bf16.msra.mxu0 %v2748_v3  ;;  %939 = vmatpush1.bf16.msra.mxu1 %v2749_v4  ;;  %v2837_v3 = vld [vmem:[%s4144_s1 + $0x3a8] ss:$16 sps:$4 sm:$0xff]   ;;  %v2842_v4 = vld [vmem:[%s4144_s1 + $0x3c4] ss:$16 sps:$4 sm:$0xff]  }
  0x3c   :  { %858 = vmatprep.subr.bf16.mxu0 %v2750_v5  ;;  %940 = vmatprep.subr.bf16.mxu1 %v2752_v6  ;;  %v2845_v5 = vld [vmem:[%s4144_s1 + $0x3cc] ss:$16 sps:$4 sm:$0xff]   ;;  %v2840_v6 = vld [vmem:[%s4144_s1 + $0x3c0] ss:$16 sps:$4 sm:$0xff]  }
  0x3f   :  { %859 = vmatpush1.bf16.msra.mxu0 %v2754_v7  ;;  %941 = vmatpush1.bf16.msra.mxu1 %v2755_v8  ;;  %v2843_v7 = vld [vmem:[%s4144_s1 + $0x3c8] ss:$16 sps:$4 sm:$0xff]   ;;  %v2848_v8 = vld [vmem:[%s4144_s1 + $0x3e4] ss:$16 sps:$4 sm:$0xff]  }
  0x40   :  { %869 = vmatprep.subr.bf16.mxu0 %v2758_v9  ;;  %951 = vmatprep.subr.bf16.mxu1 %v2761_v10  ;;  %v2851_v9 = vld [vmem:[%s4144_s1 + $0x3ec] ss:$16 sps:$4 sm:$0xff]   ;;  %v2846_v10 = vld [vmem:[%s4144_s1 + $0x3e0] ss:$16 sps:$4 sm:$0xff]  }
  0x42   :  { %861 = vmatmul.mubr.bf16.vlgmr.msra.gmra.mrb[0].mxu0 %v3322_v12  ;;  %943 = vmatmul.mubr.bf16.vlgmr.msra.gmra.mrb[0].mxu1 %v3322_v12 }
  0x43   :  { %870 = vmatpush1.bf16.msra.mxu0 %v2756_v11  ;;  %952 = vmatpush1.bf16.msra.mxu1 %v2759_v13  ;;  %v2849_v11 = vld [vmem:[%s4144_s1 + $0x3e8] ss:$16 sps:$4 sm:$0xff]   ;;  %v2854_v13 = vld [vmem:[%s4147_s4 + $0x4] ss:$16 sps:$4 sm:$0xff]  }
  0x44   :  { %871 = vmatprep.subr.bf16.mxu0 %v2764_v14  ;;  %953 = vmatprep.subr.bf16.mxu1 %v2767_v15  ;;  %v2857_v14 = vld [vmem:[%s4147_s4 + $0xc] ss:$16 sps:$4 sm:$0xff]   ;;  %v2852_v15 = vld [vmem:[%s4147_s4] ss:$16 sps:$4 sm:$0xff]  }
  0x45   :  { %901 = vmatprep.mubr.bf16.mxu0 %v183_v16  ;;  %983 = vmatprep.mubr.bf16.mxu1 %v183_v16  ;;  %v2855_v16 = vld [vmem:[%s4147_s4 + $0x8] ss:$16 sps:$4 sm:$0xff]  }
  0x47   :  { %872 = vmatpush1.bf16.msra.mxu0 %v2762_v17  ;;  %954 = vmatpush1.bf16.msra.mxu1 %v2765_v18  ;;  %v182_v17 = vcombine.high %v3322_v12, %v3322_v12  ;;  %v2860_v18 = vld [vmem:[%s4147_s4 + $0x24] ss:$16 sps:$4 sm:$0xff]   ;;  %v2861_v12 = vld [vmem:[%s4147_s4 + $0x28] ss:$16 sps:$4 sm:$0xff]  }
  0x48   :  { %873 = vmatprep.subr.bf16.mxu0 %v2770_v19  ;;  %955 = vmatprep.subr.bf16.mxu1 %v2773_v20  ;;  %v2863_v19 = vld [vmem:[%s4147_s4 + $0x2c] ss:$16 sps:$4 sm:$0xff]   ;;  %v2858_v20 = vld [vmem:[%s4147_s4 + $0x20] ss:$16 sps:$4 sm:$0xff]  }
  0x4b   :  { %874 = vmatpush1.bf16.msra.mxu0 %v2768_v21  ;;  %956 = vmatpush1.bf16.msra.mxu1 %v2771_v22  ;;  %v2866_v21 = vld [vmem:[%s4147_s4 + $0x44] ss:$16 sps:$4 sm:$0xff]   ;;  %v2869_v22 = vld [vmem:[%s4147_s4 + $0x4c] ss:$16 sps:$4 sm:$0xff]  }
  0x4c   :  { %875 = vmatprep.subr.bf16.mxu0 %v2776_v23  ;;  %957 = vmatprep.subr.bf16.mxu1 %v2779_v24  ;;  %v2864_v23 = vld [vmem:[%s4147_s4 + $0x40] ss:$16 sps:$4 sm:$0xff]   ;;  %v2867_v24 = vld [vmem:[%s4147_s4 + $0x48] ss:$16 sps:$4 sm:$0xff]  }
  0x4f   :  { %876 = vmatpush1.bf16.msra.mxu0 %v2774_v25  ;;  %958 = vmatpush1.bf16.msra.mxu1 %v2777_v26  ;;  %v2872_v25 = vld [vmem:[%s4147_s4 + $0x64] ss:$16 sps:$4 sm:$0xff]   ;;  %v2875_v26 = vld [vmem:[%s4147_s4 + $0x6c] ss:$16 sps:$4 sm:$0xff]  }
  0x50   :  { %877 = vmatprep.subr.bf16.mxu0 %v2782_v27  ;;  %959 = vmatprep.subr.bf16.mxu1 %v2785_v28  ;;  %v2870_v27 = vld [vmem:[%s4147_s4 + $0x60] ss:$16 sps:$4 sm:$0xff]   ;;  %v2873_v28 = vld [vmem:[%s4147_s4 + $0x68] ss:$16 sps:$4 sm:$0xff]  }
  0x53   :  { %878 = vmatpush1.bf16.msra.mxu0 %v2780_v29  ;;  %960 = vmatpush1.bf16.msra.mxu1 %v2783_v30  ;;  %v2878_v29 = vld [vmem:[%s4147_s4 + $0x84] ss:$16 sps:$4 sm:$0xff]   ;;  %v2881_v30 = vld [vmem:[%s4147_s4 + $0x8c] ss:$16 sps:$4 sm:$0xff]  }
  0x54   :  { %879 = vmatprep.subr.bf16.mxu0 %v2788_v31  ;;  %961 = vmatprep.subr.bf16.mxu1 %v2791_v32  ;;  %v2876_v31 = vld [vmem:[%s4147_s4 + $0x80] ss:$16 sps:$4 sm:$0xff]   ;;  %v2879_v32 = vld [vmem:[%s4147_s4 + $0x88] ss:$16 sps:$4 sm:$0xff]  }
  0x57   :  { %880 = vmatpush1.bf16.msra.mxu0 %v2786_v33  ;;  %962 = vmatpush1.bf16.msra.mxu1 %v2789_v34  ;;  %v2884_v33 = vld [vmem:[%s4147_s4 + $0xa4] ss:$16 sps:$4 sm:$0xff]   ;;  %v2887_v34 = vld [vmem:[%s4147_s4 + $0xac] ss:$16 sps:$4 sm:$0xff]  }
  0x58   :  { %881 = vmatprep.subr.bf16.mxu0 %v2794_v35  ;;  %963 = vmatprep.subr.bf16.mxu1 %v2797_v36 }
  0x5b   :  { %882 = vmatpush1.bf16.msra.mxu0 %v2792_v37  ;;  %964 = vmatpush1.bf16.msra.mxu1 %v2795_v38 }
  0x5c   :  { %883 = vmatprep.subr.bf16.mxu0 %v2800_v39  ;;  %965 = vmatprep.subr.bf16.mxu1 %v2803_v40 }
  0x5f   :  { %884 = vmatpush1.bf16.msra.mxu0 %v2798_v41  ;;  %966 = vmatpush1.bf16.msra.mxu1 %v2801_v42 }
  0x60   :  { %885 = vmatprep.subr.bf16.mxu0 %v2806_v43  ;;  %967 = vmatprep.subr.bf16.mxu1 %v2809_v44 }
  0x63   :  { %886 = vmatpush1.bf16.msra.mxu0 %v2804_v45  ;;  %968 = vmatpush1.bf16.msra.mxu1 %v2807_v47 }
  0x64   :  { %887 = vmatprep.subr.bf16.mxu0 %v2812_v48  ;;  %969 = vmatprep.subr.bf16.mxu1 %v2815_v49 }
  0x67   :  { %888 = vmatpush1.bf16.msra.mxu0 %v2810_v50  ;;  %970 = vmatpush1.bf16.msra.mxu1 %v2813_v51 }
  0x68   :  { %889 = vmatprep.subr.bf16.mxu0 %v2818_v52  ;;  %971 = vmatprep.subr.bf16.mxu1 %v2821_v53 }
  0x6b   :  { %890 = vmatpush1.bf16.msra.mxu0 %v2816_v54  ;;  %972 = vmatpush1.bf16.msra.mxu1 %v2819_v55 }
  0x6c   :  { %891 = vmatprep.subr.bf16.mxu0 %v2824_v56  ;;  %973 = vmatprep.subr.bf16.mxu1 %v2827_v57 }
  0x6f   :  { %892 = vmatpush1.bf16.msra.mxu0 %v2822_v58  ;;  %974 = vmatpush1.bf16.msra.mxu1 %v2825_v59 }
  0x70   :  { %893 = vmatprep.subr.bf16.mxu0 %v2830_v60  ;;  %975 = vmatprep.subr.bf16.mxu1 %v2833_v61 }
  0x73   :  { %894 = vmatpush1.bf16.msra.mxu0 %v2828_v62  ;;  %976 = vmatpush1.bf16.msra.mxu1 %v2831_v63 }
  0x74   :  { %895 = vmatprep.subr.bf16.mxu0 %v2836_v0  ;;  %977 = vmatprep.subr.bf16.mxu1 %v2839_v1 }
  0x77   :  { %896 = vmatpush1.bf16.msra.mxu0 %v2834_v2  ;;  %978 = vmatpush1.bf16.msra.mxu1 %v2837_v3 }
  0x78   :  { %897 = vmatprep.subr.bf16.mxu0 %v2842_v4  ;;  %979 = vmatprep.subr.bf16.mxu1 %v2845_v5 }
  0x7b   :  { %898 = vmatpush1.bf16.msra.mxu0 %v2840_v6  ;;  %980 = vmatpush1.bf16.msra.mxu1 %v2843_v7 }
  0x7c   :  { %899 = vmatprep.subr.bf16.mxu0 %v2848_v8  ;;  %981 = vmatprep.subr.bf16.mxu1 %v2851_v9 }
  0x7f   :  { %900 = vmatpush1.bf16.msra.mxu0 %v2846_v10  ;;  %982 = vmatpush1.bf16.msra.mxu1 %v2849_v11 }
  0x80   :  { %1816 = vmatprep.subr.bf16.mxu0 %v2854_v13  ;;  %1898 = vmatprep.subr.bf16.mxu1 %v2857_v14 }
  0x82   :  { %902 = vmatmul.mubr.bf16.vlgmr.msra.gmra.mrb[0].mxu0 %v182_v17  ;;  %984 = vmatmul.mubr.bf16.vlgmr.msra.gmra.mrb[0].mxu1 %v182_v17 }
  0x83   :  { %1817 = vmatpush1.bf16.msra.mxu0 %v2852_v15  ;;  %1899 = vmatpush1.bf16.msra.mxu1 %v2855_v16 }
  0x84   :  { %1818 = vmatprep.subr.bf16.mxu0 %v2860_v18  ;;  %1900 = vmatprep.subr.bf16.mxu1 %v2863_v19 }
  0x87   :  { %1819 = vmatpush1.bf16.msra.mxu0 %v2858_v20  ;;  %1901 = vmatpush1.bf16.msra.mxu1 %v2861_v12 }
  0x88   :  { %1820 = vmatprep.subr.bf16.mxu0 %v2866_v21  ;;  %1902 = vmatprep.subr.bf16.mxu1 %v2869_v22 }
  0x8b   :  { %1821 = vmatpush1.bf16.msra.mxu0 %v2864_v23  ;;  %1903 = vmatpush1.bf16.msra.mxu1 %v2867_v24 }
  0x8c   :  { %1822 = vmatprep.subr.bf16.mxu0 %v2872_v25  ;;  %1904 = vmatprep.subr.bf16.mxu1 %v2875_v26 }
  0x8f   :  { %1823 = vmatpush1.bf16.msra.mxu0 %v2870_v27  ;;  %1905 = vmatpush1.bf16.msra.mxu1 %v2873_v28 }
  0x90   :  { %1824 = vmatprep.subr.bf16.mxu0 %v2878_v29  ;;  %1906 = vmatprep.subr.bf16.mxu1 %v2881_v30 }
  0x91   :  { %13 = vsyncpa [#allocation3], 0  ;;  %v2882_v35 = vld [vmem:[%s4147_s4 + $0xa0] ss:$16 sps:$4 sm:$0xff]   ;;  %v2885_v36 = vld [vmem:[%s4147_s4 + $0xa8] ss:$16 sps:$4 sm:$0xff]  }
  0x92   :  { %v2890_v37 = vld [vmem:[%s4147_s4 + $0xc4] ss:$16 sps:$4 sm:$0xff]   ;;  %v2893_v38 = vld [vmem:[%s4147_s4 + $0xcc] ss:$16 sps:$4 sm:$0xff]   ;;  %v2888_v39 = vld [vmem:[%s4147_s4 + $0xc0] ss:$16 sps:$4 sm:$0xff]  }
  0x93   :  { %1825 = vmatpush1.bf16.msra.mxu0 %v2876_v31  ;;  %1907 = vmatpush1.bf16.msra.mxu1 %v2879_v32  ;;  %v2891_v40 = vld [vmem:[%s4147_s4 + $0xc8] ss:$16 sps:$4 sm:$0xff]   ;;  %v2896_v41 = vld [vmem:[%s4147_s4 + $0xe4] ss:$16 sps:$4 sm:$0xff]   ;;  %v2899_v42 = vld [vmem:[%s4147_s4 + $0xec] ss:$16 sps:$4 sm:$0xff]  }
  0x94   :  { %1826 = vmatprep.subr.bf16.mxu0 %v2884_v33  ;;  %1908 = vmatprep.subr.bf16.mxu1 %v2887_v34  ;;  %v2894_v43 = vld [vmem:[%s4147_s4 + $0xe0] ss:$16 sps:$4 sm:$0xff]   ;;  %v2897_v44 = vld [vmem:[%s4147_s4 + $0xe8] ss:$16 sps:$4 sm:$0xff]   ;;  %v2902_v45 = vld [vmem:[%s4147_s4 + $0x104] ss:$16 sps:$4 sm:$0xff]  }
  0x95   :  { %v2905_v47 = vld [vmem:[%s4147_s4 + $0x10c] ss:$16 sps:$4 sm:$0xff]   ;;  %v2900_v48 = vld [vmem:[%s4147_s4 + $0x100] ss:$16 sps:$4 sm:$0xff]   ;;  %v2903_v49 = vld [vmem:[%s4147_s4 + $0x108] ss:$16 sps:$4 sm:$0xff]  }
  0x96   :  { %v2908_v50 = vld [vmem:[%s4147_s4 + $0x124] ss:$16 sps:$4 sm:$0xff]   ;;  %v2911_v51 = vld [vmem:[%s4147_s4 + $0x12c] ss:$16 sps:$4 sm:$0xff]   ;;  %v2906_v52 = vld [vmem:[%s4147_s4 + $0x120] ss:$16 sps:$4 sm:$0xff]  }
  0x97   :  { %1827 = vmatpush1.bf16.msra.mxu0 %v2882_v35  ;;  %1909 = vmatpush1.bf16.msra.mxu1 %v2885_v36  ;;  %v2909_v53 = vld [vmem:[%s4147_s4 + $0x128] ss:$16 sps:$4 sm:$0xff]   ;;  %v2914_v54 = vld [vmem:[%s4147_s4 + $0x144] ss:$16 sps:$4 sm:$0xff]   ;;  %v2917_v55 = vld [vmem:[%s4147_s4 + $0x14c] ss:$16 sps:$4 sm:$0xff]  }
  0x98   :  { %1828 = vmatprep.subr.bf16.mxu0 %v2890_v37  ;;  %1910 = vmatprep.subr.bf16.mxu1 %v2893_v38  ;;  %v2912_v56 = vld [vmem:[%s4147_s4 + $0x140] ss:$16 sps:$4 sm:$0xff]   ;;  %v2915_v57 = vld [vmem:[%s4147_s4 + $0x148] ss:$16 sps:$4 sm:$0xff]   ;;  %v2920_v58 = vld [vmem:[%s4147_s4 + $0x164] ss:$16 sps:$4 sm:$0xff]  }
  0x99   :  { %v2923_v59 = vld [vmem:[%s4147_s4 + $0x16c] ss:$16 sps:$4 sm:$0xff]   ;;  %v2918_v60 = vld [vmem:[%s4147_s4 + $0x160] ss:$16 sps:$4 sm:$0xff]   ;;  %v2921_v61 = vld [vmem:[%s4147_s4 + $0x168] ss:$16 sps:$4 sm:$0xff]  }
  0x9a   :  { %v2926_v62 = vld [vmem:[%s4147_s4 + $0x184] ss:$16 sps:$4 sm:$0xff]   ;;  %v2929_v63 = vld [vmem:[%s4147_s4 + $0x18c] ss:$16 sps:$4 sm:$0xff]   ;;  %v2924_v0 = vld [vmem:[%s4147_s4 + $0x180] ss:$16 sps:$4 sm:$0xff]  }
  0x9b   :  { %1829 = vmatpush1.bf16.msra.mxu0 %v2888_v39  ;;  %1911 = vmatpush1.bf16.msra.mxu1 %v2891_v40  ;;  %v2927_v1 = vld [vmem:[%s4147_s4 + $0x188] ss:$16 sps:$4 sm:$0xff]   ;;  %v2932_v2 = vld [vmem:[%s4147_s4 + $0x1a4] ss:$16 sps:$4 sm:$0xff]   ;;  %v2935_v3 = vld [vmem:[%s4147_s4 + $0x1ac] ss:$16 sps:$4 sm:$0xff]  }
  0x9c   :  { %1830 = vmatprep.subr.bf16.mxu0 %v2896_v41  ;;  %1912 = vmatprep.subr.bf16.mxu1 %v2899_v42  ;;  %v2930_v4 = vld [vmem:[%s4147_s4 + $0x1a0] ss:$16 sps:$4 sm:$0xff]   ;;  %v2933_v5 = vld [vmem:[%s4147_s4 + $0x1a8] ss:$16 sps:$4 sm:$0xff]   ;;  %v2938_v6 = vld [vmem:[%s4147_s4 + $0x1c4] ss:$16 sps:$4 sm:$0xff]  }
  0x9d   :  { %v2941_v7 = vld [vmem:[%s4147_s4 + $0x1cc] ss:$16 sps:$4 sm:$0xff]   ;;  %v2936_v8 = vld [vmem:[%s4147_s4 + $0x1c0] ss:$16 sps:$4 sm:$0xff]   ;;  %v2939_v9 = vld [vmem:[%s4147_s4 + $0x1c8] ss:$16 sps:$4 sm:$0xff]  }
  0x9e   :  { %v2944_v10 = vld [vmem:[%s4147_s4 + $0x1e4] ss:$16 sps:$4 sm:$0xff]   ;;  %v2947_v11 = vld [vmem:[%s4147_s4 + $0x1ec] ss:$16 sps:$4 sm:$0xff]   ;;  %v2942_v13 = vld [vmem:[%s4147_s4 + $0x1e0] ss:$16 sps:$4 sm:$0xff]  }
  0x9f   :  { %1831 = vmatpush1.bf16.msra.mxu0 %v2894_v43  ;;  %1913 = vmatpush1.bf16.msra.mxu1 %v2897_v44  ;;  %v2945_v14 = vld [vmem:[%s4147_s4 + $0x1e8] ss:$16 sps:$4 sm:$0xff]   ;;  %v2950_v15 = vld [vmem:[%s4147_s4 + $0x204] ss:$16 sps:$4 sm:$0xff]   ;;  %v2953_v16 = vld [vmem:[%s4147_s4 + $0x20c] ss:$16 sps:$4 sm:$0xff]  }
  0xa0   :  { %1832 = vmatprep.subr.bf16.mxu0 %v2902_v45  ;;  %1914 = vmatprep.subr.bf16.mxu1 %v2905_v47  ;;  %v3710_v17 = vsub.s32 0, %v3241_v46  ;;  %v3713_v18 = vsub.s32 2, %v3241_v46  ;;  %v992_v19 = vld [vmem:[%s4145_s2] sm:$0xf]  ;;  %v3719_v20 = vsub.s32 1, %v3241_v46  ;;  %v3722_v12 = vsub.s32 3, %v3241_v46 }
  0xa1   :  { %v1018_v21 = vld [vmem:[%s4146_s3] sm:$0xf] }
  0xa2   :  { %v997_v22 = vrot.slane %v992_v19, %v3710_v17  ;;  %v1005_v23 = vrot.slane %v992_v19, %v3713_v18  ;;  %v1001_v24 = vrot.slane %v992_v19, %v3719_v20  ;;  %v1009_v25 = vrot.slane %v992_v19, %v3722_v12  ;;  %v2948_v47 = vld [vmem:[%s4147_s4 + $0x200] ss:$16 sps:$4 sm:$0xff]   ;;  %v3001_v19 = vld [vmem:[%s4147_s4 + $0x30c] ss:$16 sps:$4 sm:$0xff]  }
  0xa3   :  { %1833 = vmatpush1.bf16.msra.mxu0 %v2900_v48  ;;  %1915 = vmatpush1.bf16.msra.mxu1 %v2903_v49  ;;  %v1023_v26 = vrot.slane %v1018_v21, %v3710_v17  ;;  %v1031_v27 = vrot.slane %v1018_v21, %v3713_v18  ;;  %v1027_v46 = vrot.slane %v1018_v21, %v3719_v20  ;;  %v2951_v48 = vld [vmem:[%s4147_s4 + $0x208] ss:$16 sps:$4 sm:$0xff]  }
  0xa4   :  { %1834 = vmatprep.subr.bf16.mxu0 %v2908_v50  ;;  %1916 = vmatprep.subr.bf16.mxu1 %v2911_v51  ;;  %v1035_v34 = vrot.slane %v1018_v21, %v3722_v12  ;;  %v2956_v50 = vld [vmem:[%s4147_s4 + $0x224] ss:$16 sps:$4 sm:$0xff]   ;;  %v2959_v51 = vld [vmem:[%s4147_s4 + $0x22c] ss:$16 sps:$4 sm:$0xff]   ;;  %v2996_v21 = vld [vmem:[%s4147_s4 + $0x300] ss:$16 sps:$4 sm:$0xff]  }
  0xa7   :  { %1835 = vmatpush1.bf16.msra.mxu0 %v2906_v52  ;;  %1917 = vmatpush1.bf16.msra.mxu1 %v2909_v53  ;;  %v2954_v53 = vld [vmem:[%s4147_s4 + $0x220] ss:$16 sps:$4 sm:$0xff]  }
  0xa8   :  { %1836 = vmatprep.subr.bf16.mxu0 %v2914_v54  ;;  %1918 = vmatprep.subr.bf16.mxu1 %v2917_v55  ;;  %v2957_v54 = vld [vmem:[%s4147_s4 + $0x228] ss:$16 sps:$4 sm:$0xff]   ;;  %v2962_v55 = vld [vmem:[%s4147_s4 + $0x244] ss:$16 sps:$4 sm:$0xff]  }
  0xab   :  { %1837 = vmatpush1.bf16.msra.mxu0 %v2912_v56  ;;  %1919 = vmatpush1.bf16.msra.mxu1 %v2915_v57  ;;  %v2965_v56 = vld [vmem:[%s4147_s4 + $0x24c] ss:$16 sps:$4 sm:$0xff]   ;;  %v2960_v57 = vld [vmem:[%s4147_s4 + $0x240] ss:$16 sps:$4 sm:$0xff]  }
  0xac   :  { %1838 = vmatprep.subr.bf16.mxu0 %v2920_v58  ;;  %1920 = vmatprep.subr.bf16.mxu1 %v2923_v59  ;;  %v2963_v58 = vld [vmem:[%s4147_s4 + $0x248] ss:$16 sps:$4 sm:$0xff]   ;;  %v2968_v59 = vld [vmem:[%s4147_s4 + $0x264] ss:$16 sps:$4 sm:$0xff]  }
  0xaf   :  { %1839 = vmatpush1.bf16.msra.mxu0 %v2918_v60  ;;  %1921 = vmatpush1.bf16.msra.mxu1 %v2921_v61  ;;  %v2971_v60 = vld [vmem:[%s4147_s4 + $0x26c] ss:$16 sps:$4 sm:$0xff]   ;;  %v2966_v61 = vld [vmem:[%s4147_s4 + $0x260] ss:$16 sps:$4 sm:$0xff]  }
  0xb0   :  { %1840 = vmatprep.subr.bf16.mxu0 %v2926_v62  ;;  %1922 = vmatprep.subr.bf16.mxu1 %v2929_v63  ;;  %v2969_v62 = vld [vmem:[%s4147_s4 + $0x268] ss:$16 sps:$4 sm:$0xff]   ;;  %v2974_v63 = vld [vmem:[%s4147_s4 + $0x284] ss:$16 sps:$4 sm:$0xff]  }
  0xb3   :  { %1841 = vmatpush1.bf16.msra.mxu0 %v2924_v0  ;;  %1923 = vmatpush1.bf16.msra.mxu1 %v2927_v1  ;;  %v2977_v0 = vld [vmem:[%s4147_s4 + $0x28c] ss:$16 sps:$4 sm:$0xff]   ;;  %v2972_v1 = vld [vmem:[%s4147_s4 + $0x280] ss:$16 sps:$4 sm:$0xff]  }
  0xb4   :  { %1842 = vmatprep.subr.bf16.mxu0 %v2932_v2  ;;  %1924 = vmatprep.subr.bf16.mxu1 %v2935_v3  ;;  %v2975_v2 = vld [vmem:[%s4147_s4 + $0x288] ss:$16 sps:$4 sm:$0xff]   ;;  %v2980_v3 = vld [vmem:[%s4147_s4 + $0x2a4] ss:$16 sps:$4 sm:$0xff]  }
  0xb7   :  { %1843 = vmatpush1.bf16.msra.mxu0 %v2930_v4  ;;  %1925 = vmatpush1.bf16.msra.mxu1 %v2933_v5  ;;  %v2983_v4 = vld [vmem:[%s4147_s4 + $0x2ac] ss:$16 sps:$4 sm:$0xff]   ;;  %v2978_v5 = vld [vmem:[%s4147_s4 + $0x2a0] ss:$16 sps:$4 sm:$0xff]  }
  0xb8   :  { %1844 = vmatprep.subr.bf16.mxu0 %v2938_v6  ;;  %1926 = vmatprep.subr.bf16.mxu1 %v2941_v7  ;;  %v2981_v6 = vld [vmem:[%s4147_s4 + $0x2a8] ss:$16 sps:$4 sm:$0xff]   ;;  %v2986_v7 = vld [vmem:[%s4147_s4 + $0x2c4] ss:$16 sps:$4 sm:$0xff]  }
  0xbb   :  { %1845 = vmatpush1.bf16.msra.mxu0 %v2936_v8  ;;  %1927 = vmatpush1.bf16.msra.mxu1 %v2939_v9  ;;  %v2989_v8 = vld [vmem:[%s4147_s4 + $0x2cc] ss:$16 sps:$4 sm:$0xff]   ;;  %v2984_v9 = vld [vmem:[%s4147_s4 + $0x2c0] ss:$16 sps:$4 sm:$0xff]  }
  0xbc   :  { %1846 = vmatprep.subr.bf16.mxu0 %v2944_v10  ;;  %1928 = vmatprep.subr.bf16.mxu1 %v2947_v11  ;;  %v2987_v10 = vld [vmem:[%s4147_s4 + $0x2c8] ss:$16 sps:$4 sm:$0xff]   ;;  %v2992_v11 = vld [vmem:[%s4147_s4 + $0x2e4] ss:$16 sps:$4 sm:$0xff]  }
  0xbf   :  { %1847 = vmatpush1.bf16.msra.mxu0 %v2942_v13  ;;  %1929 = vmatpush1.bf16.msra.mxu1 %v2945_v14  ;;  %v2995_v13 = vld [vmem:[%s4147_s4 + $0x2ec] ss:$16 sps:$4 sm:$0xff]   ;;  %v2990_v14 = vld [vmem:[%s4147_s4 + $0x2e0] ss:$16 sps:$4 sm:$0xff]  }
  0xc0   :  { %1857 = vmatprep.subr.bf16.mxu0 %v2950_v15  ;;  %1939 = vmatprep.subr.bf16.mxu1 %v2953_v16  ;;  %v2993_v15 = vld [vmem:[%s4147_s4 + $0x2e8] ss:$16 sps:$4 sm:$0xff]   ;;  %v2998_v16 = vld [vmem:[%s4147_s4 + $0x304] ss:$16 sps:$4 sm:$0xff]  }
 0x155   :  { %v903_v28 = vpop.f32.mrb[0].mxu0  ;;  %v985_v29 = vpop.f32.mrb[0].mxu1 }
 0x156   :  { %v1014_v30 = vmul.f32 %v997_v22, %v903_v28  ;;  %v1016_v31 = vmul.f32 %v1005_v23, %v985_v29  ;;  %v905_v32 = vpop.f32.mrb[1].mxu0  ;;  %v987_v33 = vpop.f32.mrb[1].mxu1  ;;  %v2999_v22 = vld [vmem:[%s4147_s4 + $0x308] ss:$16 sps:$4 sm:$0xff]   ;;  %v3004_v23 = vld [vmem:[%s4147_s4 + $0x324] ss:$16 sps:$4 sm:$0xff]  }
 0x157   :  { %v1015_v35 = vmul.f32 %v1001_v24, %v905_v32  ;;  %v1017_v36 = vmul.f32 %v1009_v25, %v987_v33  ;;  %v907_v37 = vpop.f32.mrb[2].mxu0  ;;  %v989_v38 = vpop.f32.mrb[2].mxu1  ;;  %v3007_v24 = vld [vmem:[%s4147_s4 + $0x32c] ss:$16 sps:$4 sm:$0xff]   ;;  %v3002_v25 = vld [vmem:[%s4147_s4 + $0x320] ss:$16 sps:$4 sm:$0xff]  }
 0x158   :  { %v1040_v39 = vadd.f32 %v1023_v26, %v1014_v30  ;;  %v3735_v40 = vadd.f32 %v1031_v27, %v1016_v31  ;;  %v908_v41 = vpop.f32.mrb[3].mxu0  ;;  %v990_v42 = vpop.f32.mrb[3].mxu1  ;;  %v3005_v26 = vld [vmem:[%s4147_s4 + $0x328] ss:$16 sps:$4 sm:$0xff]   ;;  %v3010_v27 = vld [vmem:[%s4147_s4 + $0x344] ss:$16 sps:$4 sm:$0xff]  }
 0x159   :  { %v1041_v43 = vadd.f32 %v1027_v46, %v1015_v35  ;;  %v1043_v44 = vadd.f32 %v1035_v34, %v1017_v36  ;;  %v3013_v28 = vld [vmem:[%s4147_s4 + $0x34c] ss:$16 sps:$4 sm:$0xff]   ;;  %v3008_v29 = vld [vmem:[%s4147_s4 + $0x340] ss:$16 sps:$4 sm:$0xff]   ;;  %v3011_v46 = vld [vmem:[%s4147_s4 + $0x348] ss:$16 sps:$4 sm:$0xff]  }
 0x15a   :  { %v1044_v49 = vpack.c.bf16 %v1040_v39, %v1040_v39  ;;  %v3016_v30 = vld [vmem:[%s4147_s4 + $0x364] ss:$16 sps:$4 sm:$0xff]   ;;  %v3019_v31 = vld [vmem:[%s4147_s4 + $0x36c] ss:$16 sps:$4 sm:$0xff]   ;;  %v3014_v32 = vld [vmem:[%s4147_s4 + $0x360] ss:$16 sps:$4 sm:$0xff]  }
 0x15b   :  { %v1045_v45 = vpack.c.bf16 %v1041_v43, %v1041_v43  ;;  %v1047_v52 = vpack.c.bf16 %v1043_v44, %v1043_v44  ;;  %v3017_v33 = vld [vmem:[%s4147_s4 + $0x368] ss:$16 sps:$4 sm:$0xff]   ;;  %v3022_v34 = vld [vmem:[%s4147_s4 + $0x384] ss:$16 sps:$4 sm:$0xff]   ;;  %v3025_v35 = vld [vmem:[%s4147_s4 + $0x38c] ss:$16 sps:$4 sm:$0xff]  }
 0x15c   :  { %v3020_v36 = vld [vmem:[%s4147_s4 + $0x380] ss:$16 sps:$4 sm:$0xff]   ;;  %v3023_v37 = vld [vmem:[%s4147_s4 + $0x388] ss:$16 sps:$4 sm:$0xff]   ;;  %v3028_v38 = vld [vmem:[%s4147_s4 + $0x3a4] ss:$16 sps:$4 sm:$0xff]  }
 0x15d   :  { %1848 = vmatprep.mubr.bf16.mxu0 %v1045_v45  ;;  %1930 = vmatprep.mubr.bf16.mxu1 %v1045_v45  ;;  %v3031_v39 = vld [vmem:[%s4147_s4 + $0x3ac] ss:$16 sps:$4 sm:$0xff]   ;;  %v3026_v41 = vld [vmem:[%s4147_s4 + $0x3a0] ss:$16 sps:$4 sm:$0xff]   ;;  %v3029_v42 = vld [vmem:[%s4147_s4 + $0x3a8] ss:$16 sps:$4 sm:$0xff]  }
 0x15e   :  { %1849 = vmatmul.mubr.bf16.vlgmr.msra.gmra.mrb[4].mxu0 %v1044_v49  ;;  %1931 = vmatmul.mubr.bf16.vlgmr.msra.gmra.mrb[4].mxu1 %v1044_v49  ;;  %v3034_v43 = vld [vmem:[%s4147_s4 + $0x3c4] ss:$16 sps:$4 sm:$0xff]   ;;  %v3037_v44 = vld [vmem:[%s4147_s4 + $0x3cc] ss:$16 sps:$4 sm:$0xff]   ;;  %v3032_v45 = vld [vmem:[%s4147_s4 + $0x3c0] ss:$16 sps:$4 sm:$0xff]  }
 0x15f   :  { %1858 = vmatpush1.bf16.msra.mxu0 %v2948_v47  ;;  %1940 = vmatpush1.bf16.msra.mxu1 %v2951_v48  ;;  %v3035_v47 = vld [vmem:[%s4147_s4 + $0x3c8] ss:$16 sps:$4 sm:$0xff]   ;;  %v3040_v48 = vld [vmem:[%s4147_s4 + $0x3e4] ss:$16 sps:$4 sm:$0xff]   ;;  %v3043_v49 = vld [vmem:[%s4147_s4 + $0x3ec] ss:$16 sps:$4 sm:$0xff]  }
 0x160   :  { %1889 = vmatprep.mubr.bf16.mxu0 %v1047_v52  ;;  %1971 = vmatprep.mubr.bf16.mxu1 %v1047_v52  ;;  %v2080_v52 = vld [vmem:[%s4150_s7 + $0x180] sm:$0xff] }
 0x161   :  { %1859 = vmatprep.subr.bf16.mxu0 %v2956_v50  ;;  %1941 = vmatprep.subr.bf16.mxu1 %v2959_v51  ;;  %v2048_v50 = vld [vmem:[%s4150_s7 + $0x80] sm:$0xff]  ;;  %v2049_v51 = vld [vmem:[%s4150_s7 + $0x88] sm:$0xff] }
 0x163   :  { %1860 = vmatpush1.bf16.msra.mxu0 %v2954_v53  ;;  %1942 = vmatpush1.bf16.msra.mxu1 %v2957_v54  ;;  %v2081_v53 = vld [vmem:[%s4150_s7 + $0x188] sm:$0xff]  ;;  %v3038_v54 = vld [vmem:[%s4147_s4 + $0x3e0] ss:$16 sps:$4 sm:$0xff]  }
 0x164   :  { %1861 = vmatprep.subr.bf16.mxu0 %v2962_v55  ;;  %1943 = vmatprep.subr.bf16.mxu1 %v2965_v56  ;;  %v3041_v55 = vld [vmem:[%s4147_s4 + $0x3e8] ss:$16 sps:$4 sm:$0xff]   ;;  %v2032_v56 = vld [vmem:[%s4150_s7] sm:$0xff] }
 0x167   :  { %1862 = vmatpush1.bf16.msra.mxu0 %v2960_v57  ;;  %1944 = vmatpush1.bf16.msra.mxu1 %v2963_v58  ;;  %v2033_v57 = vld [vmem:[%s4150_s7 + $0x8] sm:$0xff]  ;;  %v2578_v58 = vpack.c.bf16 %v2049_v51, %v2048_v50  ;;  %v2058_v51 = vld [vmem:[%s4150_s7 + $0xd0] sm:$0xff] }
 0x168   :  { %1863 = vmatprep.subr.bf16.mxu0 %v2968_v59  ;;  %1945 = vmatprep.subr.bf16.mxu1 %v2971_v60  ;;  %v2610_v59 = vpack.c.bf16 %v2081_v53, %v2080_v52  ;;  %v2064_v60 = vld [vmem:[%s4150_s7 + $0x100] sm:$0xff]  ;;  %v2073_v50 = vld [vmem:[%s4150_s7 + $0x148] sm:$0xff]  ;;  %v2059_v52 = vld [vmem:[%s4150_s7 + $0xd8] sm:$0xff] }
 0x169   :  { %v2090_v53 = vld [vmem:[%s4150_s7 + $0x1d0] sm:$0xff] }
 0x16b   :  { %1864 = vmatpush1.bf16.msra.mxu0 %v2966_v61  ;;  %1946 = vmatpush1.bf16.msra.mxu1 %v2969_v62  ;;  %v2065_v61 = vld [vmem:[%s4150_s7 + $0x108] sm:$0xff]  ;;  %v2050_v62 = vld [vmem:[%s4150_s7 + $0x90] sm:$0xff] }
 0x16c   :  { %1865 = vmatprep.subr.bf16.mxu0 %v2974_v63  ;;  %1947 = vmatprep.subr.bf16.mxu1 %v2977_v0  ;;  %v2051_v63 = vld [vmem:[%s4150_s7 + $0x98] sm:$0xff]  ;;  %v2082_v0 = vld [vmem:[%s4150_s7 + $0x190] sm:$0xff] }
 0x16f   :  { %1866 = vmatpush1.bf16.msra.mxu0 %v2972_v1  ;;  %1948 = vmatpush1.bf16.msra.mxu1 %v2975_v2  ;;  %v2083_v1 = vld [vmem:[%s4150_s7 + $0x198] sm:$0xff]  ;;  %v2580_v2 = vpack.c.bf16 %v2033_v57, %v2032_v56  ;;  %v2042_v57 = vld [vmem:[%s4150_s7 + $0x50] sm:$0xff] }
 0x170   :  { %1867 = vmatprep.subr.bf16.mxu0 %v2980_v3  ;;  %1949 = vmatprep.subr.bf16.mxu1 %v2983_v4  ;;  %v2612_v3 = vpack.c.bf16 %v2065_v61, %v2064_v60  ;;  %v2034_v4 = vld [vmem:[%s4150_s7 + $0x10] sm:$0xff] }
 0x171   :  { %v2074_v61 = vld [vmem:[%s4150_s7 + $0x150] sm:$0xff] }
 0x173   :  { %1868 = vmatpush1.bf16.msra.mxu0 %v2978_v5  ;;  %1950 = vmatpush1.bf16.msra.mxu1 %v2981_v6  ;;  %v2035_v5 = vld [vmem:[%s4150_s7 + $0x18] sm:$0xff]  ;;  %v1046_v6 = vpack.c.bf16 %v3735_v40, %v3735_v40  ;;  %v2053_v40 = vld [vmem:[%s4150_s7 + $0xa8] sm:$0xff] }
 0x174   :  { %1869 = vmatprep.subr.bf16.mxu0 %v2986_v7  ;;  %1951 = vmatprep.subr.bf16.mxu1 %v2989_v8  ;;  %v2582_v7 = vpack.c.bf16 %v2051_v63, %v2050_v62  ;;  %v2614_v8 = vpack.c.bf16 %v2083_v1, %v2082_v0  ;;  %v2075_v62 = vld [vmem:[%s4150_s7 + $0x158] sm:$0xff]  ;;  %v2060_v63 = vld [vmem:[%s4150_s7 + $0xe0] sm:$0xff]  ;;  %v2061_v0 = vld [vmem:[%s4150_s7 + $0xe8] sm:$0xff] }
 0x175   :  { %v2092_v1 = vld [vmem:[%s4150_s7 + $0x1e0] sm:$0xff] }
 0x177   :  { %1870 = vmatpush1.bf16.msra.mxu0 %v2984_v9  ;;  %1952 = vmatpush1.bf16.msra.mxu1 %v2987_v10  ;;  %v2066_v9 = vld [vmem:[%s4150_s7 + $0x110] sm:$0xff]  ;;  %v2067_v10 = vld [vmem:[%s4150_s7 + $0x118] sm:$0xff] }
 0x178   :  { %1871 = vmatprep.subr.bf16.mxu0 %v2992_v11  ;;  %1953 = vmatprep.subr.bf16.mxu1 %v2995_v13  ;;  %v2052_v11 = vld [vmem:[%s4150_s7 + $0xa0] sm:$0xff] }
 0x179   :  { %v2084_v13 = vld [vmem:[%s4150_s7 + $0x1a0] sm:$0xff] }
 0x17b   :  { %1872 = vmatpush1.bf16.msra.mxu0 %v2990_v14  ;;  %1954 = vmatpush1.bf16.msra.mxu1 %v2993_v15  ;;  %v2085_v14 = vld [vmem:[%s4150_s7 + $0x1a8] sm:$0xff]  ;;  %v2584_v15 = vpack.c.bf16 %v2035_v5, %v2034_v4  ;;  %v2632_v4 = vpack.c.bf16 %v2075_v62, %v2074_v61  ;;  %v2602_v5 = vpack.c.bf16 %v2061_v0, %v2060_v63 }
 0x17c   :  { %1873 = vmatprep.subr.bf16.mxu0 %v2998_v16  ;;  %1955 = vmatprep.subr.bf16.mxu1 %v3001_v19  ;;  %v2616_v16 = vpack.c.bf16 %v2067_v10, %v2066_v9  ;;  %v2036_v19 = vld [vmem:[%s4150_s7 + $0x20] sm:$0xff] }
 0x17d   :  { %v2076_v9 = vld [vmem:[%s4150_s7 + $0x160] sm:$0xff] }
 0x17f   :  { %1874 = vmatpush1.bf16.msra.mxu0 %v2996_v21  ;;  %1956 = vmatpush1.bf16.msra.mxu1 %v2999_v22  ;;  %v2037_v21 = vld [vmem:[%s4150_s7 + $0x28] sm:$0xff]  ;;  %v2586_v22 = vpack.c.bf16 %v2053_v40, %v2052_v11 }
 0x180   :  { %1875 = vmatprep.subr.bf16.mxu0 %v3004_v23  ;;  %1957 = vmatprep.subr.bf16.mxu1 %v3007_v24  ;;  %v2618_v23 = vpack.c.bf16 %v2085_v14, %v2084_v13  ;;  %v2068_v24 = vld [vmem:[%s4150_s7 + $0x120] sm:$0xff]  ;;  %v2077_v11 = vld [vmem:[%s4150_s7 + $0x168] sm:$0xff]  ;;  %v2062_v13 = vld [vmem:[%s4150_s7 + $0xf0] sm:$0xff] }
 0x181   :  { %v2636_v40 = vpack.c.bf16 %v2077_v11, %v2076_v9  ;;  %v2063_v14 = vld [vmem:[%s4150_s7 + $0xf8] sm:$0xff] }
 0x183   :  { %1876 = vmatpush1.bf16.msra.mxu0 %v3002_v25  ;;  %1958 = vmatpush1.bf16.msra.mxu1 %v3005_v26  ;;  %v2069_v25 = vld [vmem:[%s4150_s7 + $0x128] sm:$0xff]  ;;  %v2054_v26 = vld [vmem:[%s4150_s7 + $0xb0] sm:$0xff] }
 0x184   :  { %1877 = vmatprep.subr.bf16.mxu0 %v3010_v27  ;;  %1959 = vmatprep.subr.bf16.mxu1 %v3013_v28  ;;  %v2055_v27 = vld [vmem:[%s4150_s7 + $0xb8] sm:$0xff]  ;;  %v2086_v28 = vld [vmem:[%s4150_s7 + $0x1b0] sm:$0xff] }
 0x187   :  { %1878 = vmatpush1.bf16.msra.mxu0 %v3008_v29  ;;  %1960 = vmatpush1.bf16.msra.mxu1 %v3011_v46  ;;  %v2087_v29 = vld [vmem:[%s4150_s7 + $0x1b8] sm:$0xff]  ;;  %v2588_v46 = vpack.c.bf16 %v2037_v21, %v2036_v19  ;;  %v2046_v21 = vld [vmem:[%s4150_s7 + $0x70] sm:$0xff] }
 0x188   :  { %1879 = vmatprep.subr.bf16.mxu0 %v3016_v30  ;;  %1961 = vmatprep.subr.bf16.mxu1 %v3019_v31  ;;  %v2620_v30 = vpack.c.bf16 %v2069_v25, %v2068_v24  ;;  %v2038_v31 = vld [vmem:[%s4150_s7 + $0x30] sm:$0xff]  ;;  %v2095_v19 = vld [vmem:[%s4150_s7 + $0x1f8] sm:$0xff] }
 0x189   :  { %v2078_v24 = vld [vmem:[%s4150_s7 + $0x170] sm:$0xff]  ;;  %v2079_v25 = vld [vmem:[%s4150_s7 + $0x178] sm:$0xff] }
 0x18b   :  { %1880 = vmatpush1.bf16.msra.mxu0 %v3014_v32  ;;  %1962 = vmatpush1.bf16.msra.mxu1 %v3017_v33  ;;  %v2039_v32 = vld [vmem:[%s4150_s7 + $0x38] sm:$0xff]  ;;  %v2590_v33 = vpack.c.bf16 %v2055_v27, %v2054_v26  ;;  %v2640_v27 = vpack.c.bf16 %v2079_v25, %v2078_v24 }
 0x18c   :  { %1881 = vmatprep.subr.bf16.mxu0 %v3022_v34  ;;  %1963 = vmatprep.subr.bf16.mxu1 %v3025_v35  ;;  %v2622_v34 = vpack.c.bf16 %v2087_v29, %v2086_v28  ;;  %v2070_v35 = vld [vmem:[%s4150_s7 + $0x130] sm:$0xff]  ;;  %v1980_v28 = vld [vmem:[%s4148_s5] sm:$0xf]  ;;  %s3069_s5 = smov [#allocation2]  }
 0x18d   :  { %v1985_v29 = vrot.slane %v1980_v28, %v3710_v17 }
 0x18f   :  { %1882 = vmatpush1.bf16.msra.mxu0 %v3020_v36  ;;  %1964 = vmatpush1.bf16.msra.mxu1 %v3023_v37  ;;  %v2071_v36 = vld [vmem:[%s4150_s7 + $0x138] sm:$0xff]  ;;  %v2056_v37 = vld [vmem:[%s4150_s7 + $0xc0] sm:$0xff] }
 0x190   :  { %1883 = vmatprep.subr.bf16.mxu0 %v3028_v38  ;;  %1965 = vmatprep.subr.bf16.mxu1 %v3031_v39  ;;  %v2057_v38 = vld [vmem:[%s4150_s7 + $0xc8] sm:$0xff]  ;;  %v2088_v39 = vld [vmem:[%s4150_s7 + $0x1c0] sm:$0xff] }
 0x193   :  { %1884 = vmatpush1.bf16.msra.mxu0 %v3026_v41  ;;  %1966 = vmatpush1.bf16.msra.mxu1 %v3029_v42  ;;  %v2089_v41 = vld [vmem:[%s4150_s7 + $0x1c8] sm:$0xff]  ;;  %v2592_v42 = vpack.c.bf16 %v2039_v32, %v2038_v31  ;;  %v1989_v31 = vrot.slane %v1980_v28, %v3719_v20  ;;  %v1997_v32 = vrot.slane %v1980_v28, %v3722_v12 }
 0x194   :  { %1885 = vmatprep.subr.bf16.mxu0 %v3034_v43  ;;  %1967 = vmatprep.subr.bf16.mxu1 %v3037_v44  ;;  %v2624_v43 = vpack.c.bf16 %v2071_v36, %v2070_v35  ;;  %v2040_v44 = vld [vmem:[%s4150_s7 + $0x40] sm:$0xff] }
 0x197   :  { %1886 = vmatpush1.bf16.msra.mxu0 %v3032_v45  ;;  %1968 = vmatpush1.bf16.msra.mxu1 %v3035_v47  ;;  %v2041_v45 = vld [vmem:[%s4150_s7 + $0x48] sm:$0xff]  ;;  %v2594_v47 = vpack.c.bf16 %v2057_v38, %v2056_v37 }
 0x198   :  { %1887 = vmatprep.subr.bf16.mxu0 %v3040_v48  ;;  %1969 = vmatprep.subr.bf16.mxu1 %v3043_v49  ;;  %v2626_v48 = vpack.c.bf16 %v2089_v41, %v2088_v39  ;;  %v2072_v49 = vld [vmem:[%s4150_s7 + $0x140] sm:$0xff] }
 0x199   :  { %v2628_v56 = vpack.c.bf16 %v2073_v50, %v2072_v49 }
 0x19b   :  { %1888 = vmatpush1.bf16.msra.mxu0 %v3038_v54  ;;  %1970 = vmatpush1.bf16.msra.mxu1 %v3041_v55  ;;  %v2091_v54 = vld [vmem:[%s4150_s7 + $0x1d8] sm:$0xff]  ;;  %v2596_v55 = vpack.c.bf16 %v2041_v45, %v2040_v44 }
 0x19c   :  { %2579 = vmatprep.subr.bf16.mxu0 %v2578_v58  ;;  %2611 = vmatprep.subr.bf16.mxu1 %v2610_v59  ;;  %v2043_v58 = vld [vmem:[%s4150_s7 + $0x58] sm:$0xff]  ;;  %v2598_v59 = vpack.c.bf16 %v2059_v52, %v2058_v51  ;;  %v2630_v60 = vpack.c.bf16 %v2091_v54, %v2090_v53 }
 0x19e   :  { %1890 = vmatmul.mubr.bf16.vlgmr.msra.gmra.mrb[4].mxu0 %v1046_v6  ;;  %1972 = vmatmul.mubr.bf16.vlgmr.msra.gmra.mrb[4].mxu1 %v1046_v6 }
 0x19f   :  { %2581 = vmatpush3.bf16.msra.mxu0 %v2580_v2  ;;  %2613 = vmatpush3.bf16.msra.mxu1 %v2612_v3  ;;  %v2093_v2 = vld [vmem:[%s4150_s7 + $0x1e8] sm:$0xff]  ;;  %v2600_v3 = vpack.c.bf16 %v2043_v58, %v2042_v57 }
 0x1a0   :  { %2583 = vmatprep.subr.bf16.mxu0 %v2582_v7  ;;  %2615 = vmatprep.subr.bf16.mxu1 %v2614_v8  ;;  %v2634_v6 = vpack.c.bf16 %v2093_v2, %v2092_v1  ;;  %v2044_v7 = vld [vmem:[%s4150_s7 + $0x60] sm:$0xff]  ;;  %v2045_v8 = vld [vmem:[%s4150_s7 + $0x68] sm:$0xff] }
 0x1a1   :  { %v2604_v10 = vpack.c.bf16 %v2045_v8, %v2044_v7 }
 0x1a3   :  { %2585 = vmatpush3.bf16.msra.mxu0 %v2584_v15  ;;  %2617 = vmatpush3.bf16.msra.mxu1 %v2616_v16  ;;  %v2606_v15 = vpack.c.bf16 %v2063_v14, %v2062_v13  ;;  %v2094_v16 = vld [vmem:[%s4150_s7 + $0x1f0] sm:$0xff] }
 0x1a4   :  { %2587 = vmatprep.subr.bf16.mxu0 %v2586_v22  ;;  %2619 = vmatprep.subr.bf16.mxu1 %v2618_v23  ;;  %v2638_v22 = vpack.c.bf16 %v2095_v19, %v2094_v16  ;;  %v2047_v23 = vld [vmem:[%s4150_s7 + $0x78] sm:$0xff] }
 0x1a5   :  { %v2608_v26 = vpack.c.bf16 %v2047_v23, %v2046_v21 }
 0x1a7   :  { %2589 = vmatpush3.bf16.msra.mxu0 %v2588_v46  ;;  %2621 = vmatpush3.bf16.msra.mxu1 %v2620_v30  ;;  %v2006_v46 = vld [vmem:[%s4149_s6] sm:$0xf]  ;;  %v1993_v30 = vrot.slane %v1980_v28, %v3713_v18  ;;  %s2243_s6 = sshll.u32 %s3069_s5, 4  ;;  %s2244_s6 = int_to_ptr.vmem [resolvable:$true] %s2243_s6 }
 0x1a8   :  { %2591 = vmatprep.subr.bf16.mxu0 %v2590_v33  ;;  %2623 = vmatprep.subr.bf16.mxu1 %v2622_v34  ;;  %v2015_v35 = vrot.slane %v2006_v46, %v3719_v20  ;;  %v2023_v36 = vrot.slane %v2006_v46, %v3722_v12  ;;  %v2011_v38 = vrot.slane %v2006_v46, %v3710_v17  ;;  %s3044_s7 = scalar_lea.vmem %s2244_s6, 32  ;;  %p3049_p1 = scmp.lt.s32.totalorder %s2244_s6, %s2244_s6 }
 0x1a9   :  { %v2019_v41 = vrot.slane %v2006_v46, %v3713_v18  ;;  %p3045_p0 = scmp.ne.s32.totalorder %s2244_s6, %s3044_s7  ;;  %p3050_p2 = scmp.lt.s32.totalorder %s3044_s7, %s3044_s7 }
 0x1ab   :  { %2593 = vmatpush3.bf16.msra.mxu0 %v2592_v42  ;;  %2625 = vmatpush3.bf16.msra.mxu1 %v2624_v43  ;;  %p3051_p3 = por %p3050_p2, %p3049_p1 }
 0x1ac   :  { %2595 = vmatprep.subr.bf16.mxu0 %v2594_v47  ;;  %2627 = vmatprep.subr.bf16.mxu1 %v2626_v48 }
 0x1ad   :  { %p3052_p4 = pnand %p3051_p3, %p3045_p0 }
 0x1af   :  { %2597 = vmatpush3.bf16.msra.mxu0 %v2596_v55  ;;  %2629 = vmatpush3.bf16.msra.mxu1 %v2628_v56 }
 0x1b0   :  { %2599 = vmatprep.subr.bf16.mxu0 %v2598_v59  ;;  %2631 = vmatprep.subr.bf16.mxu1 %v2630_v60 }
 0x1b3   :  { %2601 = vmatpush3.bf16.msra.mxu0 %v2600_v3  ;;  %2633 = vmatpush3.bf16.msra.mxu1 %v2632_v4 }
 0x1b4   :  { %2603 = vmatprep.subr.bf16.mxu0 %v2602_v5  ;;  %2635 = vmatprep.subr.bf16.mxu1 %v2634_v6 }
 0x1b7   :  { %2605 = vmatpush3.bf16.msra.mxu0 %v2604_v10  ;;  %2637 = vmatpush3.bf16.msra.mxu1 %v2636_v40 }
 0x1b8   :  { %2607 = vmatprep.subr.bf16.mxu0 %v2606_v15  ;;  %2639 = vmatprep.subr.bf16.mxu1 %v2638_v22 }
 0x1bb   :  { %2609 = vmatpush3.bf16.msra.mxu0 %v2608_v26  ;;  %2641 = vmatpush3.bf16.msra.mxu1 %v2640_v27 }
 0x271   :  { %v1891_v33 = vpop.f32.mrb[4].mxu0  ;;  %v1973_v34 = vpop.f32.mrb[4].mxu1 }
 0x272   :  { %v2002_v37 = vmul.f32 %v1985_v29, %v1891_v33  ;;  %v2004_v39 = vmul.f32 %v1993_v30, %v1973_v34  ;;  %v1893_v42 = vpop.f32.mrb[5].mxu0  ;;  %v1975_v43 = vpop.f32.mrb[5].mxu1 }
 0x273   :  { %v2003_v44 = vmul.f32 %v1989_v31, %v1893_v42  ;;  %v2005_v45 = vmul.f32 %v1997_v32, %v1975_v43  ;;  %v1895_v47 = vpop.f32.mrb[6].mxu0  ;;  %v1977_v48 = vpop.f32.mrb[6].mxu1 }
 0x274   :  { %v1896_v49 = vpop.f32.mrb[7].mxu0  ;;  %v1978_v50 = vpop.f32.mrb[7].mxu1  ;;  %v2028_v53 = vadd.f32 %v2011_v38, %v2002_v37  ;;  %v2030_v20 = vadd.f32 %v2019_v41, %v2004_v39 }
 0x275   :  { %v2029_v51 = vadd.f32 %v2015_v35, %v2003_v44  ;;  %v2031_v52 = vadd.f32 %v2023_v36, %v2005_v45 }
 0x277   :  { %2160 = vmatprep.mubr.f32.mxu0 %v2029_v51  ;;  %2230 = vmatprep.mubr.f32.mxu1 %v2031_v52 }
 0x278   :  { %2161 = vmatmul.mubr.f32.vlgmr.msra.gmra.mrb[8].mxu0 %v2028_v53  ;;  %2231 = vmatmul.mubr.f32.vlgmr.msra.gmra.mrb[8].mxu1 %v2030_v20 }
 0x34b   :  { %v2540_v17 = vpop.f32.mrb[8].mxu0  ;;  %v2575_v12 = vpop.f32.mrb[8].mxu1 }
 0x34c   :  { %v2541_v54 = vpop.f32.mrb[9].mxu0  ;;  %v2576_v18 = vpop.f32.mrb[9].mxu1 }
 0x34d   :  { %v2542_v55 = vadd.f32 %v2541_v54, %v2540_v17  ;;  %v2577_v56 = vadd.f32 %v2576_v18, %v2575_v12 }
 0x34f   :  { %v2233_v57 = vadd.f32 %v2577_v56, %v2542_v55 }
 0x351   :  { %2236 = vst [vmem:[#allocation2] sm:$0x3] %v2233_v57 }
 0x352   :  { %3055 = shalt.err (!%p3052_p4)
}
 0x353   :  { %s3056_s21 = scalar_lea.hbm %s4151_s8, 32 }
 0x354   :  { %p3057_p5 = scmp.ne.s32.totalorder %s4151_s8, %s3056_s21  ;;  %p3060_p6 = scmp.lt.u32.totalorder %s3056_s21, %s4151_s8 }
 0x356   :  { %p3062_p7 = pnand %p3060_p6, %p3057_p5 }
 0x358   :  { %3065 = shalt.err (!%p3062_p7)
}
 0x359   :  { %2246 = dma.vmem_to_hbm [thread:$0]  %s2244_s6, 32, %s4151_s8, [#allocation3]  }
 0x35a   :  { %3066 = dma.done.wait [#allocation3], 32  }
 0x35b   :  { %3067 = vsyncadd [#allocation3], 4294967264 }
 0x35c   :  { %2250 = vsyncpa [#allocation3], 1 }

// kernel: _lambda_.12
= control target key start
LH: loop header
LB: loop body
LE: loop exit
PB: predicated region body
PF: predicated region fallthrough
CT: control target
= control target key end

     0   :  { %s11109_s15 = smov 0   ;;  %s11111_s16 = smov 0   ;;  %s13105_s0 = inlined_call_operand.vmem [shape: bf16[2,4608], index: 0, kind: input, shape index: {}]   ;;  %s13106_s1 = inlined_call_operand.vmem [shape: bf16[4608,512], index: 1, kind: input, shape index: {}]   ;;  %s13107_s2 = inlined_call_operand.vmem [shape: f32[1,512], index: 2, kind: input, shape index: {}]   ;;  %s13108_s3 = inlined_call_operand.vmem [shape: f32[1,512], index: 3, kind: input, shape index: {}]   ;;  %s13109_s4 = inlined_call_operand.vmem [shape: bf16[2,512], index: 4, kind: output, shape index: {}]  }
   0x1   :  { %s11113_s17 = smov 0  }
   0x2 LB: > { %s9506_s18 = sadd.s32 4294967295, %s11081_s17   ;;  %s11126_s19 = sadd.s32 1, %s11081_s17   ;;  %s11081_s17 = sphi %s11113_s17, %s13112_s17   ;;  %s11077_s16 = sphi %s11111_s16, %s13111_s16   ;;  %s11073_s15 = sphi %s11109_s15, %s13110_s15  }
   0x3   : > { %s39_s20 = ssub.s32 %s11081_s17, %s11126_s19  ;;  %s42_s21 = sadd.s32 1, %s11077_s16 }
   0x4   : > { %p40_p0 = scmp.eq.s32.totalorder %s39_s20, 0  ;;  %p49_p1 = scmp.ne.s32.totalorder %s11077_s16, %s11073_s15 }
   0x5   : > { %p50_p2 = scmp.eq.s32.totalorder %s11081_s17, 0  ;;  %p9509_p4 = scmp.ge.s32.totalorder %s11081_s17, 2 }
   0x6   : > { %s11135_s22 = scalar_select %p40_p0, %s11077_s16, %s42_s21  }
   0x7   : > { %p51_p3 = por %p50_p2, %p49_p1  ;;  %156 = sbr.rel (%p9509_p4) target bundleno = 306 (0x132), region = 20 }
   0xe   : > { %159 = sbr.rel (!%p51_p3) target bundleno = 306 (0x132), region = 24  ;;  %s161_s23 = sand.u32 (%p51_p3), 1, %s11077_s16  }
   0xf   : > { %s10097_s24 = sshll.u32 (%p51_p3), %s11081_s17, 3  ;;  %s10164_s25 = smul.u32 (%p51_p3), 4608, %s161_s23 }
  0x10   : > { %s11143_s28 = scalar_lea.vmem (%p51_p3), %s13106_s1, %s10097_s24 }
  0x11   : > { %v1347_v0 = vld [vmem:[%s11143_s28] sm:$0xff] (%p51_p3)  ;;  %v1349_v1 = vld [vmem:[%s11143_s28 + $0x10] sm:$0xff] (%p51_p3)  ;;  %s11151_s29 = scalar_lea.vmem (%p51_p3), [#allocation2], %s10164_s25 }
  0x12   : > { %v1351_v2 = vld [vmem:[%s11143_s28 + $0x20] sm:$0xff] (%p51_p3)  ;;  %v1353_v3 = vld [vmem:[%s11143_s28 + $0x30] sm:$0xff] (%p51_p3)  ;;  %1348 = vst [vmem:[%s11151_s29] sm:$0xff] (%p51_p3), %v1347_v0  ;;  %1350 = vst [vmem:[%s11151_s29 + $0x8] sm:$0xff] (%p51_p3), %v1349_v1 }
  0x13   : > { %v1355_v4 = vld [vmem:[%s11143_s28 + $0x40] sm:$0xff] (%p51_p3)  ;;  %v1357_v5 = vld [vmem:[%s11143_s28 + $0x50] sm:$0xff] (%p51_p3)  ;;  %1352 = vst [vmem:[%s11151_s29 + $0x10] sm:$0xff] (%p51_p3), %v1351_v2  ;;  %1354 = vst [vmem:[%s11151_s29 + $0x18] sm:$0xff] (%p51_p3), %v1353_v3 }
  0x14   : > { %1356 = vst [vmem:[%s11151_s29 + $0x20] sm:$0xff] (%p51_p3), %v1355_v4  ;;  %1358 = vst [vmem:[%s11151_s29 + $0x28] sm:$0xff] (%p51_p3), %v1357_v5  ;;  %v1359_v6 = vld [vmem:[%s11143_s28 + $0x60] sm:$0xff] (%p51_p3)  ;;  %v1361_v7 = vld [vmem:[%s11143_s28 + $0x70] sm:$0xff] (%p51_p3) }
  0x15   : > { %v1363_v8 = vld [vmem:[%s11143_s28 + $0x80] sm:$0xff]  ;;  %1360 = vst [vmem:[%s11151_s29 + $0x30] sm:$0xff] %v1359_v6  ;;  %1362 = vst [vmem:[%s11151_s29 + $0x38] sm:$0xff] %v1361_v7  ;;  %v1365_v9 = vld [vmem:[%s11143_s28 + $0x90] sm:$0xff] }
  0x16   : > { %1364 = vst [vmem:[%s11151_s29 + $0x40] sm:$0xff] %v1363_v8  ;;  %v1367_v10 = vld [vmem:[%s11143_s28 + $0xa0] sm:$0xff]  ;;  %v1369_v11 = vld [vmem:[%s11143_s28 + $0xb0] sm:$0xff]  ;;  %1366 = vst [vmem:[%s11151_s29 + $0x48] sm:$0xff] %v1365_v9 }
  0x17   : > { %1368 = vst [vmem:[%s11151_s29 + $0x50] sm:$0xff] %v1367_v10  ;;  %1370 = vst [vmem:[%s11151_s29 + $0x58] sm:$0xff] %v1369_v11  ;;  %v1371_v12 = vld [vmem:[%s11143_s28 + $0xc0] sm:$0xff]  ;;  %v1373_v13 = vld [vmem:[%s11143_s28 + $0xd0] sm:$0xff] }
  0x18   : > { %v1375_v14 = vld [vmem:[%s11143_s28 + $0xe0] sm:$0xff]  ;;  %1372 = vst [vmem:[%s11151_s29 + $0x60] sm:$0xff] %v1371_v12  ;;  %1374 = vst [vmem:[%s11151_s29 + $0x68] sm:$0xff] %v1373_v13  ;;  %v1377_v15 = vld [vmem:[%s11143_s28 + $0xf0] sm:$0xff] }
  0x19   : > { %1376 = vst [vmem:[%s11151_s29 + $0x70] sm:$0xff] %v1375_v14  ;;  %v1379_v16 = vld [vmem:[%s11143_s28 + $0x100] sm:$0xff]  ;;  %v1381_v17 = vld [vmem:[%s11143_s28 + $0x110] sm:$0xff]  ;;  %1378 = vst [vmem:[%s11151_s29 + $0x78] sm:$0xff] %v1377_v15 }
  0x1a   : > { %1380 = vst [vmem:[%s11151_s29 + $0x80] sm:$0xff] %v1379_v16  ;;  %1382 = vst [vmem:[%s11151_s29 + $0x88] sm:$0xff] %v1381_v17  ;;  %v1383_v18 = vld [vmem:[%s11143_s28 + $0x120] sm:$0xff]  ;;  %v1385_v19 = vld [vmem:[%s11143_s28 + $0x130] sm:$0xff] }
  0x1b   : > { %v1387_v20 = vld [vmem:[%s11143_s28 + $0x140] sm:$0xff]  ;;  %1384 = vst [vmem:[%s11151_s29 + $0x90] sm:$0xff] %v1383_v18  ;;  %1386 = vst [vmem:[%s11151_s29 + $0x98] sm:$0xff] %v1385_v19  ;;  %v1389_v21 = vld [vmem:[%s11143_s28 + $0x150] sm:$0xff] }
  0x1c   : > { %1388 = vst [vmem:[%s11151_s29 + $0xa0] sm:$0xff] %v1387_v20  ;;  %v1391_v22 = vld [vmem:[%s11143_s28 + $0x160] sm:$0xff]  ;;  %v1393_v23 = vld [vmem:[%s11143_s28 + $0x170] sm:$0xff]  ;;  %1390 = vst [vmem:[%s11151_s29 + $0xa8] sm:$0xff] %v1389_v21 }
  0x1d   : > { %1392 = vst [vmem:[%s11151_s29 + $0xb0] sm:$0xff] %v1391_v22  ;;  %1394 = vst [vmem:[%s11151_s29 + $0xb8] sm:$0xff] %v1393_v23  ;;  %v1395_v24 = vld [vmem:[%s11143_s28 + $0x180] sm:$0xff]  ;;  %v1397_v25 = vld [vmem:[%s11143_s28 + $0x190] sm:$0xff] }
  0x1e   : > { %v1399_v26 = vld [vmem:[%s11143_s28 + $0x1a0] sm:$0xff]  ;;  %1396 = vst [vmem:[%s11151_s29 + $0xc0] sm:$0xff] %v1395_v24  ;;  %1398 = vst [vmem:[%s11151_s29 + $0xc8] sm:$0xff] %v1397_v25  ;;  %v1401_v27 = vld [vmem:[%s11143_s28 + $0x1b0] sm:$0xff] }
  0x1f   : > { %1400 = vst [vmem:[%s11151_s29 + $0xd0] sm:$0xff] %v1399_v26  ;;  %v1403_v28 = vld [vmem:[%s11143_s28 + $0x1c0] sm:$0xff]  ;;  %v1405_v29 = vld [vmem:[%s11143_s28 + $0x1d0] sm:$0xff]  ;;  %1402 = vst [vmem:[%s11151_s29 + $0xd8] sm:$0xff] %v1401_v27 }
  0x20   : > { %1404 = vst [vmem:[%s11151_s29 + $0xe0] sm:$0xff] %v1403_v28  ;;  %1406 = vst [vmem:[%s11151_s29 + $0xe8] sm:$0xff] %v1405_v29  ;;  %v1407_v30 = vld [vmem:[%s11143_s28 + $0x1e0] sm:$0xff]  ;;  %v1409_v31 = vld [vmem:[%s11143_s28 + $0x1f0] sm:$0xff] }
  0x21   : > { %v1411_v32 = vld [vmem:[%s11143_s28 + $0x200] sm:$0xff]  ;;  %1408 = vst [vmem:[%s11151_s29 + $0xf0] sm:$0xff] %v1407_v30  ;;  %1410 = vst [vmem:[%s11151_s29 + $0xf8] sm:$0xff] %v1409_v31  ;;  %v1413_v33 = vld [vmem:[%s11143_s28 + $0x210] sm:$0xff] }
  0x22   : > { %1412 = vst [vmem:[%s11151_s29 + $0x100] sm:$0xff] %v1411_v32  ;;  %v1415_v34 = vld [vmem:[%s11143_s28 + $0x220] sm:$0xff]  ;;  %v1417_v35 = vld [vmem:[%s11143_s28 + $0x230] sm:$0xff]  ;;  %1414 = vst [vmem:[%s11151_s29 + $0x108] sm:$0xff] %v1413_v33 }
  0x23   : > { %1416 = vst [vmem:[%s11151_s29 + $0x110] sm:$0xff] %v1415_v34  ;;  %1418 = vst [vmem:[%s11151_s29 + $0x118] sm:$0xff] %v1417_v35  ;;  %v1419_v36 = vld [vmem:[%s11143_s28 + $0x240] sm:$0xff]  ;;  %v1421_v37 = vld [vmem:[%s11143_s28 + $0x250] sm:$0xff] }
  0x24   : > { %v1423_v38 = vld [vmem:[%s11143_s28 + $0x260] sm:$0xff]  ;;  %1420 = vst [vmem:[%s11151_s29 + $0x120] sm:$0xff] %v1419_v36  ;;  %1422 = vst [vmem:[%s11151_s29 + $0x128] sm:$0xff] %v1421_v37  ;;  %v1425_v39 = vld [vmem:[%s11143_s28 + $0x270] sm:$0xff] }
  0x25   : > { %1424 = vst [vmem:[%s11151_s29 + $0x130] sm:$0xff] %v1423_v38  ;;  %v1427_v40 = vld [vmem:[%s11143_s28 + $0x280] sm:$0xff]  ;;  %v1429_v41 = vld [vmem:[%s11143_s28 + $0x290] sm:$0xff]  ;;  %1426 = vst [vmem:[%s11151_s29 + $0x138] sm:$0xff] %v1425_v39 }
  0x26   : > { %1428 = vst [vmem:[%s11151_s29 + $0x140] sm:$0xff] %v1427_v40  ;;  %1430 = vst [vmem:[%s11151_s29 + $0x148] sm:$0xff] %v1429_v41  ;;  %v1431_v42 = vld [vmem:[%s11143_s28 + $0x2a0] sm:$0xff]  ;;  %v1433_v43 = vld [vmem:[%s11143_s28 + $0x2b0] sm:$0xff] }
  0x27   : > { %v1435_v44 = vld [vmem:[%s11143_s28 + $0x2c0] sm:$0xff]  ;;  %1432 = vst [vmem:[%s11151_s29 + $0x150] sm:$0xff] %v1431_v42  ;;  %1434 = vst [vmem:[%s11151_s29 + $0x158] sm:$0xff] %v1433_v43  ;;  %v1437_v45 = vld [vmem:[%s11143_s28 + $0x2d0] sm:$0xff] }
  0x28   : > { %1436 = vst [vmem:[%s11151_s29 + $0x160] sm:$0xff] %v1435_v44  ;;  %v1439_v46 = vld [vmem:[%s11143_s28 + $0x2e0] sm:$0xff]  ;;  %v1441_v47 = vld [vmem:[%s11143_s28 + $0x2f0] sm:$0xff]  ;;  %1438 = vst [vmem:[%s11151_s29 + $0x168] sm:$0xff] %v1437_v45 }
  0x29   : > { %1440 = vst [vmem:[%s11151_s29 + $0x170] sm:$0xff] %v1439_v46  ;;  %1442 = vst [vmem:[%s11151_s29 + $0x178] sm:$0xff] %v1441_v47  ;;  %v1443_v48 = vld [vmem:[%s11143_s28 + $0x300] sm:$0xff]  ;;  %v1445_v49 = vld [vmem:[%s11143_s28 + $0x310] sm:$0xff] }
  0x2a   : > { %v1447_v50 = vld [vmem:[%s11143_s28 + $0x320] sm:$0xff]  ;;  %1444 = vst [vmem:[%s11151_s29 + $0x180] sm:$0xff] %v1443_v48  ;;  %1446 = vst [vmem:[%s11151_s29 + $0x188] sm:$0xff] %v1445_v49  ;;  %v1449_v51 = vld [vmem:[%s11143_s28 + $0x330] sm:$0xff] }
  0x2b   : > { %1448 = vst [vmem:[%s11151_s29 + $0x190] sm:$0xff] %v1447_v50  ;;  %v1451_v52 = vld [vmem:[%s11143_s28 + $0x340] sm:$0xff]  ;;  %v1453_v53 = vld [vmem:[%s11143_s28 + $0x350] sm:$0xff]  ;;  %1450 = vst [vmem:[%s11151_s29 + $0x198] sm:$0xff] %v1449_v51 }
  0x2c   : > { %1452 = vst [vmem:[%s11151_s29 + $0x1a0] sm:$0xff] %v1451_v52  ;;  %1454 = vst [vmem:[%s11151_s29 + $0x1a8] sm:$0xff] %v1453_v53  ;;  %v1455_v54 = vld [vmem:[%s11143_s28 + $0x360] sm:$0xff]  ;;  %v1457_v55 = vld [vmem:[%s11143_s28 + $0x370] sm:$0xff] }
  0x2d   : > { %v1459_v56 = vld [vmem:[%s11143_s28 + $0x380] sm:$0xff]  ;;  %1456 = vst [vmem:[%s11151_s29 + $0x1b0] sm:$0xff] %v1455_v54  ;;  %1458 = vst [vmem:[%s11151_s29 + $0x1b8] sm:$0xff] %v1457_v55  ;;  %v1461_v57 = vld [vmem:[%s11143_s28 + $0x390] sm:$0xff] }
  0x2e   : > { %1460 = vst [vmem:[%s11151_s29 + $0x1c0] sm:$0xff] %v1459_v56  ;;  %v1463_v58 = vld [vmem:[%s11143_s28 + $0x3a0] sm:$0xff]  ;;  %v1465_v59 = vld [vmem:[%s11143_s28 + $0x3b0] sm:$0xff]  ;;  %1462 = vst [vmem:[%s11151_s29 + $0x1c8] sm:$0xff] %v1461_v57 }
  0x2f   : > { %1464 = vst [vmem:[%s11151_s29 + $0x1d0] sm:$0xff] %v1463_v58  ;;  %1466 = vst [vmem:[%s11151_s29 + $0x1d8] sm:$0xff] %v1465_v59  ;;  %v1467_v60 = vld [vmem:[%s11143_s28 + $0x3c0] sm:$0xff]  ;;  %v1469_v61 = vld [vmem:[%s11143_s28 + $0x3d0] sm:$0xff] }
  0x30   : > { %v1471_v62 = vld [vmem:[%s11143_s28 + $0x3e0] sm:$0xff]  ;;  %1468 = vst [vmem:[%s11151_s29 + $0x1e0] sm:$0xff] %v1467_v60  ;;  %1470 = vst [vmem:[%s11151_s29 + $0x1e8] sm:$0xff] %v1469_v61  ;;  %v1473_v63 = vld [vmem:[%s11143_s28 + $0x3f0] sm:$0xff] }
  0x31   : > { %1472 = vst [vmem:[%s11151_s29 + $0x1f0] sm:$0xff] %v1471_v62  ;;  %v1475_v0 = vld [vmem:[%s11143_s28 + $0x400] sm:$0xff]  ;;  %v1477_v1 = vld [vmem:[%s11143_s28 + $0x410] sm:$0xff]  ;;  %1474 = vst [vmem:[%s11151_s29 + $0x1f8] sm:$0xff] %v1473_v63 }
  0x32   : > { %1476 = vst [vmem:[%s11151_s29 + $0x200] sm:$0xff] %v1475_v0  ;;  %1478 = vst [vmem:[%s11151_s29 + $0x208] sm:$0xff] %v1477_v1  ;;  %v1479_v2 = vld [vmem:[%s11143_s28 + $0x420] sm:$0xff]  ;;  %v1481_v3 = vld [vmem:[%s11143_s28 + $0x430] sm:$0xff] }
  0x33   : > { %v1483_v4 = vld [vmem:[%s11143_s28 + $0x440] sm:$0xff]  ;;  %1480 = vst [vmem:[%s11151_s29 + $0x210] sm:$0xff] %v1479_v2  ;;  %1482 = vst [vmem:[%s11151_s29 + $0x218] sm:$0xff] %v1481_v3  ;;  %v1485_v5 = vld [vmem:[%s11143_s28 + $0x450] sm:$0xff] }
  0x34   : > { %1484 = vst [vmem:[%s11151_s29 + $0x220] sm:$0xff] %v1483_v4  ;;  %v1487_v6 = vld [vmem:[%s11143_s28 + $0x460] sm:$0xff]  ;;  %v1489_v7 = vld [vmem:[%s11143_s28 + $0x470] sm:$0xff]  ;;  %1486 = vst [vmem:[%s11151_s29 + $0x228] sm:$0xff] %v1485_v5 }
  0x35   : > { %1488 = vst [vmem:[%s11151_s29 + $0x230] sm:$0xff] %v1487_v6  ;;  %1490 = vst [vmem:[%s11151_s29 + $0x238] sm:$0xff] %v1489_v7  ;;  %v1491_v8 = vld [vmem:[%s11143_s28 + $0x480] sm:$0xff]  ;;  %v1493_v9 = vld [vmem:[%s11143_s28 + $0x490] sm:$0xff] }
  0x36   : > { %v1495_v10 = vld [vmem:[%s11143_s28 + $0x4a0] sm:$0xff]  ;;  %1492 = vst [vmem:[%s11151_s29 + $0x240] sm:$0xff] %v1491_v8  ;;  %1494 = vst [vmem:[%s11151_s29 + $0x248] sm:$0xff] %v1493_v9  ;;  %v1497_v11 = vld [vmem:[%s11143_s28 + $0x4b0] sm:$0xff] }
  0x37   : > { %1496 = vst [vmem:[%s11151_s29 + $0x250] sm:$0xff] %v1495_v10  ;;  %v1499_v12 = vld [vmem:[%s11143_s28 + $0x4c0] sm:$0xff]  ;;  %v1501_v13 = vld [vmem:[%s11143_s28 + $0x4d0] sm:$0xff]  ;;  %1498 = vst [vmem:[%s11151_s29 + $0x258] sm:$0xff] %v1497_v11 }
  0x38   : > { %1500 = vst [vmem:[%s11151_s29 + $0x260] sm:$0xff] %v1499_v12  ;;  %1502 = vst [vmem:[%s11151_s29 + $0x268] sm:$0xff] %v1501_v13  ;;  %v1503_v14 = vld [vmem:[%s11143_s28 + $0x4e0] sm:$0xff]  ;;  %v1505_v15 = vld [vmem:[%s11143_s28 + $0x4f0] sm:$0xff] }
  0x39   : > { %v1507_v16 = vld [vmem:[%s11143_s28 + $0x500] sm:$0xff]  ;;  %1504 = vst [vmem:[%s11151_s29 + $0x270] sm:$0xff] %v1503_v14  ;;  %1506 = vst [vmem:[%s11151_s29 + $0x278] sm:$0xff] %v1505_v15  ;;  %v1509_v17 = vld [vmem:[%s11143_s28 + $0x510] sm:$0xff] }
  0x3a   : > { %1508 = vst [vmem:[%s11151_s29 + $0x280] sm:$0xff] %v1507_v16  ;;  %v1511_v18 = vld [vmem:[%s11143_s28 + $0x520] sm:$0xff]  ;;  %v1513_v19 = vld [vmem:[%s11143_s28 + $0x530] sm:$0xff]  ;;  %1510 = vst [vmem:[%s11151_s29 + $0x288] sm:$0xff] %v1509_v17 }
  0x3b   : > { %1512 = vst [vmem:[%s11151_s29 + $0x290] sm:$0xff] %v1511_v18  ;;  %1514 = vst [vmem:[%s11151_s29 + $0x298] sm:$0xff] %v1513_v19  ;;  %v1515_v20 = vld [vmem:[%s11143_s28 + $0x540] sm:$0xff]  ;;  %v1517_v21 = vld [vmem:[%s11143_s28 + $0x550] sm:$0xff] }
  0x3c   : > { %v1519_v22 = vld [vmem:[%s11143_s28 + $0x560] sm:$0xff]  ;;  %1516 = vst [vmem:[%s11151_s29 + $0x2a0] sm:$0xff] %v1515_v20  ;;  %1518 = vst [vmem:[%s11151_s29 + $0x2a8] sm:$0xff] %v1517_v21  ;;  %v1521_v23 = vld [vmem:[%s11143_s28 + $0x570] sm:$0xff] }
  0x3d   : > { %1520 = vst [vmem:[%s11151_s29 + $0x2b0] sm:$0xff] %v1519_v22  ;;  %v1523_v24 = vld [vmem:[%s11143_s28 + $0x580] sm:$0xff]  ;;  %v1525_v25 = vld [vmem:[%s11143_s28 + $0x590] sm:$0xff]  ;;  %1522 = vst [vmem:[%s11151_s29 + $0x2b8] sm:$0xff] %v1521_v23 }
  0x3e   : > { %1524 = vst [vmem:[%s11151_s29 + $0x2c0] sm:$0xff] %v1523_v24  ;;  %1526 = vst [vmem:[%s11151_s29 + $0x2c8] sm:$0xff] %v1525_v25  ;;  %v1527_v26 = vld [vmem:[%s11143_s28 + $0x5a0] sm:$0xff]  ;;  %v1529_v27 = vld [vmem:[%s11143_s28 + $0x5b0] sm:$0xff] }
  0x3f   : > { %v1531_v28 = vld [vmem:[%s11143_s28 + $0x5c0] sm:$0xff]  ;;  %1528 = vst [vmem:[%s11151_s29 + $0x2d0] sm:$0xff] %v1527_v26  ;;  %1530 = vst [vmem:[%s11151_s29 + $0x2d8] sm:$0xff] %v1529_v27  ;;  %v1533_v29 = vld [vmem:[%s11143_s28 + $0x5d0] sm:$0xff] }
  0x40   : > { %1532 = vst [vmem:[%s11151_s29 + $0x2e0] sm:$0xff] %v1531_v28  ;;  %v1535_v30 = vld [vmem:[%s11143_s28 + $0x5e0] sm:$0xff]  ;;  %v1537_v31 = vld [vmem:[%s11143_s28 + $0x5f0] sm:$0xff]  ;;  %1534 = vst [vmem:[%s11151_s29 + $0x2e8] sm:$0xff] %v1533_v29 }
  0x41   : > { %1536 = vst [vmem:[%s11151_s29 + $0x2f0] sm:$0xff] %v1535_v30  ;;  %1538 = vst [vmem:[%s11151_s29 + $0x2f8] sm:$0xff] %v1537_v31  ;;  %v1539_v32 = vld [vmem:[%s11143_s28 + $0x600] sm:$0xff]  ;;  %v1541_v33 = vld [vmem:[%s11143_s28 + $0x610] sm:$0xff] }
  0x42   : > { %v1543_v34 = vld [vmem:[%s11143_s28 + $0x620] sm:$0xff]  ;;  %1540 = vst [vmem:[%s11151_s29 + $0x300] sm:$0xff] %v1539_v32  ;;  %1542 = vst [vmem:[%s11151_s29 + $0x308] sm:$0xff] %v1541_v33  ;;  %v1545_v35 = vld [vmem:[%s11143_s28 + $0x630] sm:$0xff] }
  0x43   : > { %1544 = vst [vmem:[%s11151_s29 + $0x310] sm:$0xff] %v1543_v34  ;;  %v1547_v36 = vld [vmem:[%s11143_s28 + $0x640] sm:$0xff]  ;;  %v1549_v37 = vld [vmem:[%s11143_s28 + $0x650] sm:$0xff]  ;;  %1546 = vst [vmem:[%s11151_s29 + $0x318] sm:$0xff] %v1545_v35 }
  0x44   : > { %1548 = vst [vmem:[%s11151_s29 + $0x320] sm:$0xff] %v1547_v36  ;;  %1550 = vst [vmem:[%s11151_s29 + $0x328] sm:$0xff] %v1549_v37  ;;  %v1551_v38 = vld [vmem:[%s11143_s28 + $0x660] sm:$0xff]  ;;  %v1553_v39 = vld [vmem:[%s11143_s28 + $0x670] sm:$0xff] }
  0x45   : > { %v1555_v40 = vld [vmem:[%s11143_s28 + $0x680] sm:$0xff]  ;;  %1552 = vst [vmem:[%s11151_s29 + $0x330] sm:$0xff] %v1551_v38  ;;  %1554 = vst [vmem:[%s11151_s29 + $0x338] sm:$0xff] %v1553_v39  ;;  %v1557_v41 = vld [vmem:[%s11143_s28 + $0x690] sm:$0xff] }
  0x46   : > { %1556 = vst [vmem:[%s11151_s29 + $0x340] sm:$0xff] %v1555_v40  ;;  %v1559_v42 = vld [vmem:[%s11143_s28 + $0x6a0] sm:$0xff]  ;;  %v1561_v43 = vld [vmem:[%s11143_s28 + $0x6b0] sm:$0xff]  ;;  %1558 = vst [vmem:[%s11151_s29 + $0x348] sm:$0xff] %v1557_v41 }
  0x47   : > { %1560 = vst [vmem:[%s11151_s29 + $0x350] sm:$0xff] %v1559_v42  ;;  %1562 = vst [vmem:[%s11151_s29 + $0x358] sm:$0xff] %v1561_v43  ;;  %v1563_v44 = vld [vmem:[%s11143_s28 + $0x6c0] sm:$0xff]  ;;  %v1565_v45 = vld [vmem:[%s11143_s28 + $0x6d0] sm:$0xff] }
  0x48   : > { %v1567_v46 = vld [vmem:[%s11143_s28 + $0x6e0] sm:$0xff]  ;;  %1564 = vst [vmem:[%s11151_s29 + $0x360] sm:$0xff] %v1563_v44  ;;  %1566 = vst [vmem:[%s11151_s29 + $0x368] sm:$0xff] %v1565_v45  ;;  %v1569_v47 = vld [vmem:[%s11143_s28 + $0x6f0] sm:$0xff] }
  0x49   : > { %1568 = vst [vmem:[%s11151_s29 + $0x370] sm:$0xff] %v1567_v46  ;;  %v1571_v48 = vld [vmem:[%s11143_s28 + $0x700] sm:$0xff]  ;;  %v1573_v49 = vld [vmem:[%s11143_s28 + $0x710] sm:$0xff]  ;;  %1570 = vst [vmem:[%s11151_s29 + $0x378] sm:$0xff] %v1569_v47 }
  0x4a   : > { %1572 = vst [vmem:[%s11151_s29 + $0x380] sm:$0xff] %v1571_v48  ;;  %1574 = vst [vmem:[%s11151_s29 + $0x388] sm:$0xff] %v1573_v49  ;;  %v1575_v50 = vld [vmem:[%s11143_s28 + $0x720] sm:$0xff]  ;;  %v1577_v51 = vld [vmem:[%s11143_s28 + $0x730] sm:$0xff] }
  0x4b   : > { %v1579_v52 = vld [vmem:[%s11143_s28 + $0x740] sm:$0xff]  ;;  %1576 = vst [vmem:[%s11151_s29 + $0x390] sm:$0xff] %v1575_v50  ;;  %1578 = vst [vmem:[%s11151_s29 + $0x398] sm:$0xff] %v1577_v51  ;;  %v1581_v53 = vld [vmem:[%s11143_s28 + $0x750] sm:$0xff] }
  0x4c   : > { %1580 = vst [vmem:[%s11151_s29 + $0x3a0] sm:$0xff] %v1579_v52  ;;  %v1583_v54 = vld [vmem:[%s11143_s28 + $0x760] sm:$0xff]  ;;  %v1585_v55 = vld [vmem:[%s11143_s28 + $0x770] sm:$0xff]  ;;  %1582 = vst [vmem:[%s11151_s29 + $0x3a8] sm:$0xff] %v1581_v53 }
  0x4d   : > { %1584 = vst [vmem:[%s11151_s29 + $0x3b0] sm:$0xff] %v1583_v54  ;;  %1586 = vst [vmem:[%s11151_s29 + $0x3b8] sm:$0xff] %v1585_v55  ;;  %v1587_v56 = vld [vmem:[%s11143_s28 + $0x780] sm:$0xff]  ;;  %v1589_v57 = vld [vmem:[%s11143_s28 + $0x790] sm:$0xff] }
  0x4e   : > { %v1591_v58 = vld [vmem:[%s11143_s28 + $0x7a0] sm:$0xff]  ;;  %1588 = vst [vmem:[%s11151_s29 + $0x3c0] sm:$0xff] %v1587_v56  ;;  %1590 = vst [vmem:[%s11151_s29 + $0x3c8] sm:$0xff] %v1589_v57  ;;  %v1593_v59 = vld [vmem:[%s11143_s28 + $0x7b0] sm:$0xff] }
  0x4f   : > { %1592 = vst [vmem:[%s11151_s29 + $0x3d0] sm:$0xff] %v1591_v58  ;;  %v1595_v60 = vld [vmem:[%s11143_s28 + $0x7c0] sm:$0xff]  ;;  %v1597_v61 = vld [vmem:[%s11143_s28 + $0x7d0] sm:$0xff]  ;;  %1594 = vst [vmem:[%s11151_s29 + $0x3d8] sm:$0xff] %v1593_v59 }
  0x50   : > { %1596 = vst [vmem:[%s11151_s29 + $0x3e0] sm:$0xff] %v1595_v60  ;;  %1598 = vst [vmem:[%s11151_s29 + $0x3e8] sm:$0xff] %v1597_v61  ;;  %v1599_v62 = vld [vmem:[%s11143_s28 + $0x7e0] sm:$0xff]  ;;  %v1601_v63 = vld [vmem:[%s11143_s28 + $0x7f0] sm:$0xff] }
  0x51   : > { %v1603_v0 = vld [vmem:[%s11143_s28 + $0x800] sm:$0xff]  ;;  %1600 = vst [vmem:[%s11151_s29 + $0x3f0] sm:$0xff] %v1599_v62  ;;  %1602 = vst [vmem:[%s11151_s29 + $0x3f8] sm:$0xff] %v1601_v63  ;;  %v1605_v1 = vld [vmem:[%s11143_s28 + $0x810] sm:$0xff] }
  0x52   : > { %1604 = vst [vmem:[%s11151_s29 + $0x400] sm:$0xff] %v1603_v0  ;;  %v1607_v2 = vld [vmem:[%s11143_s28 + $0x820] sm:$0xff]  ;;  %v1609_v3 = vld [vmem:[%s11143_s28 + $0x830] sm:$0xff]  ;;  %1606 = vst [vmem:[%s11151_s29 + $0x408] sm:$0xff] %v1605_v1 }
  0x53   : > { %1608 = vst [vmem:[%s11151_s29 + $0x410] sm:$0xff] %v1607_v2  ;;  %1610 = vst [vmem:[%s11151_s29 + $0x418] sm:$0xff] %v1609_v3  ;;  %v1611_v4 = vld [vmem:[%s11143_s28 + $0x840] sm:$0xff]  ;;  %v1613_v5 = vld [vmem:[%s11143_s28 + $0x850] sm:$0xff] }
  0x54   : > { %v1615_v6 = vld [vmem:[%s11143_s28 + $0x860] sm:$0xff]  ;;  %1612 = vst [vmem:[%s11151_s29 + $0x420] sm:$0xff] %v1611_v4  ;;  %1614 = vst [vmem:[%s11151_s29 + $0x428] sm:$0xff] %v1613_v5  ;;  %v1617_v7 = vld [vmem:[%s11143_s28 + $0x870] sm:$0xff] }
  0x55   : > { %1616 = vst [vmem:[%s11151_s29 + $0x430] sm:$0xff] %v1615_v6  ;;  %v1619_v8 = vld [vmem:[%s11143_s28 + $0x880] sm:$0xff]  ;;  %v1621_v9 = vld [vmem:[%s11143_s28 + $0x890] sm:$0xff]  ;;  %1618 = vst [vmem:[%s11151_s29 + $0x438] sm:$0xff] %v1617_v7 }
  0x56   : > { %1620 = vst [vmem:[%s11151_s29 + $0x440] sm:$0xff] %v1619_v8  ;;  %1622 = vst [vmem:[%s11151_s29 + $0x448] sm:$0xff] %v1621_v9  ;;  %v1623_v10 = vld [vmem:[%s11143_s28 + $0x8a0] sm:$0xff]  ;;  %v1625_v11 = vld [vmem:[%s11143_s28 + $0x8b0] sm:$0xff] }
  0x57   : > { %v1627_v12 = vld [vmem:[%s11143_s28 + $0x8c0] sm:$0xff]  ;;  %1624 = vst [vmem:[%s11151_s29 + $0x450] sm:$0xff] %v1623_v10  ;;  %1626 = vst [vmem:[%s11151_s29 + $0x458] sm:$0xff] %v1625_v11  ;;  %v1629_v13 = vld [vmem:[%s11143_s28 + $0x8d0] sm:$0xff] }
  0x58   : > { %1628 = vst [vmem:[%s11151_s29 + $0x460] sm:$0xff] %v1627_v12  ;;  %v1631_v14 = vld [vmem:[%s11143_s28 + $0x8e0] sm:$0xff]  ;;  %v1633_v15 = vld [vmem:[%s11143_s28 + $0x8f0] sm:$0xff]  ;;  %1630 = vst [vmem:[%s11151_s29 + $0x468] sm:$0xff] %v1629_v13 }
  0x59   : > { %1632 = vst [vmem:[%s11151_s29 + $0x470] sm:$0xff] %v1631_v14  ;;  %1634 = vst [vmem:[%s11151_s29 + $0x478] sm:$0xff] %v1633_v15  ;;  %v1635_v16 = vld [vmem:[%s11143_s28 + $0x900] sm:$0xff]  ;;  %v1637_v17 = vld [vmem:[%s11143_s28 + $0x910] sm:$0xff] }
  0x5a   : > { %v1639_v18 = vld [vmem:[%s11143_s28 + $0x920] sm:$0xff]  ;;  %1636 = vst [vmem:[%s11151_s29 + $0x480] sm:$0xff] %v1635_v16  ;;  %1638 = vst [vmem:[%s11151_s29 + $0x488] sm:$0xff] %v1637_v17  ;;  %v1641_v19 = vld [vmem:[%s11143_s28 + $0x930] sm:$0xff] }
  0x5b   : > { %1640 = vst [vmem:[%s11151_s29 + $0x490] sm:$0xff] %v1639_v18  ;;  %v1643_v20 = vld [vmem:[%s11143_s28 + $0x940] sm:$0xff]  ;;  %v1645_v21 = vld [vmem:[%s11143_s28 + $0x950] sm:$0xff]  ;;  %1642 = vst [vmem:[%s11151_s29 + $0x498] sm:$0xff] %v1641_v19 }
  0x5c   : > { %1644 = vst [vmem:[%s11151_s29 + $0x4a0] sm:$0xff] %v1643_v20  ;;  %1646 = vst [vmem:[%s11151_s29 + $0x4a8] sm:$0xff] %v1645_v21  ;;  %v1647_v22 = vld [vmem:[%s11143_s28 + $0x960] sm:$0xff]  ;;  %v1649_v23 = vld [vmem:[%s11143_s28 + $0x970] sm:$0xff] }
  0x5d   : > { %v1651_v24 = vld [vmem:[%s11143_s28 + $0x980] sm:$0xff]  ;;  %1648 = vst [vmem:[%s11151_s29 + $0x4b0] sm:$0xff] %v1647_v22  ;;  %1650 = vst [vmem:[%s11151_s29 + $0x4b8] sm:$0xff] %v1649_v23  ;;  %v1653_v25 = vld [vmem:[%s11143_s28 + $0x990] sm:$0xff] }
  0x5e   : > { %1652 = vst [vmem:[%s11151_s29 + $0x4c0] sm:$0xff] %v1651_v24  ;;  %v1655_v26 = vld [vmem:[%s11143_s28 + $0x9a0] sm:$0xff]  ;;  %v1657_v27 = vld [vmem:[%s11143_s28 + $0x9b0] sm:$0xff]  ;;  %1654 = vst [vmem:[%s11151_s29 + $0x4c8] sm:$0xff] %v1653_v25 }
  0x5f   : > { %1656 = vst [vmem:[%s11151_s29 + $0x4d0] sm:$0xff] %v1655_v26  ;;  %1658 = vst [vmem:[%s11151_s29 + $0x4d8] sm:$0xff] %v1657_v27  ;;  %v1659_v28 = vld [vmem:[%s11143_s28 + $0x9c0] sm:$0xff]  ;;  %v1661_v29 = vld [vmem:[%s11143_s28 + $0x9d0] sm:$0xff] }
  0x60   : > { %v1663_v30 = vld [vmem:[%s11143_s28 + $0x9e0] sm:$0xff]  ;;  %1660 = vst [vmem:[%s11151_s29 + $0x4e0] sm:$0xff] %v1659_v28  ;;  %1662 = vst [vmem:[%s11151_s29 + $0x4e8] sm:$0xff] %v1661_v29  ;;  %v1665_v31 = vld [vmem:[%s11143_s28 + $0x9f0] sm:$0xff] }
  0x61   : > { %1664 = vst [vmem:[%s11151_s29 + $0x4f0] sm:$0xff] %v1663_v30  ;;  %v1667_v32 = vld [vmem:[%s11143_s28 + $0xa00] sm:$0xff]  ;;  %v1669_v33 = vld [vmem:[%s11143_s28 + $0xa10] sm:$0xff]  ;;  %1666 = vst [vmem:[%s11151_s29 + $0x4f8] sm:$0xff] %v1665_v31 }
  0x62   : > { %1668 = vst [vmem:[%s11151_s29 + $0x500] sm:$0xff] %v1667_v32  ;;  %1670 = vst [vmem:[%s11151_s29 + $0x508] sm:$0xff] %v1669_v33  ;;  %v1671_v34 = vld [vmem:[%s11143_s28 + $0xa20] sm:$0xff]  ;;  %v1673_v35 = vld [vmem:[%s11143_s28 + $0xa30] sm:$0xff] }
  0x63   : > { %v1675_v36 = vld [vmem:[%s11143_s28 + $0xa40] sm:$0xff]  ;;  %1672 = vst [vmem:[%s11151_s29 + $0x510] sm:$0xff] %v1671_v34  ;;  %1674 = vst [vmem:[%s11151_s29 + $0x518] sm:$0xff] %v1673_v35  ;;  %v1677_v37 = vld [vmem:[%s11143_s28 + $0xa50] sm:$0xff] }
  0x64   : > { %1676 = vst [vmem:[%s11151_s29 + $0x520] sm:$0xff] %v1675_v36  ;;  %v1679_v38 = vld [vmem:[%s11143_s28 + $0xa60] sm:$0xff]  ;;  %v1681_v39 = vld [vmem:[%s11143_s28 + $0xa70] sm:$0xff]  ;;  %1678 = vst [vmem:[%s11151_s29 + $0x528] sm:$0xff] %v1677_v37 }
  0x65   : > { %1680 = vst [vmem:[%s11151_s29 + $0x530] sm:$0xff] %v1679_v38  ;;  %1682 = vst [vmem:[%s11151_s29 + $0x538] sm:$0xff] %v1681_v39  ;;  %v1683_v40 = vld [vmem:[%s11143_s28 + $0xa80] sm:$0xff]  ;;  %v1685_v41 = vld [vmem:[%s11143_s28 + $0xa90] sm:$0xff] }
  0x66   : > { %v1687_v42 = vld [vmem:[%s11143_s28 + $0xaa0] sm:$0xff]  ;;  %1684 = vst [vmem:[%s11151_s29 + $0x540] sm:$0xff] %v1683_v40  ;;  %1686 = vst [vmem:[%s11151_s29 + $0x548] sm:$0xff] %v1685_v41  ;;  %v1689_v43 = vld [vmem:[%s11143_s28 + $0xab0] sm:$0xff] }
  0x67   : > { %1688 = vst [vmem:[%s11151_s29 + $0x550] sm:$0xff] %v1687_v42  ;;  %v1691_v44 = vld [vmem:[%s11143_s28 + $0xac0] sm:$0xff]  ;;  %v1693_v45 = vld [vmem:[%s11143_s28 + $0xad0] sm:$0xff]  ;;  %1690 = vst [vmem:[%s11151_s29 + $0x558] sm:$0xff] %v1689_v43 }
  0x68   : > { %1692 = vst [vmem:[%s11151_s29 + $0x560] sm:$0xff] %v1691_v44  ;;  %1694 = vst [vmem:[%s11151_s29 + $0x568] sm:$0xff] %v1693_v45  ;;  %v1695_v46 = vld [vmem:[%s11143_s28 + $0xae0] sm:$0xff]  ;;  %v1697_v47 = vld [vmem:[%s11143_s28 + $0xaf0] sm:$0xff] }
  0x69   : > { %v1699_v48 = vld [vmem:[%s11143_s28 + $0xb00] sm:$0xff]  ;;  %1696 = vst [vmem:[%s11151_s29 + $0x570] sm:$0xff] %v1695_v46  ;;  %1698 = vst [vmem:[%s11151_s29 + $0x578] sm:$0xff] %v1697_v47  ;;  %v1701_v49 = vld [vmem:[%s11143_s28 + $0xb10] sm:$0xff] }
  0x6a   : > { %1700 = vst [vmem:[%s11151_s29 + $0x580] sm:$0xff] %v1699_v48  ;;  %v1703_v50 = vld [vmem:[%s11143_s28 + $0xb20] sm:$0xff]  ;;  %v1705_v51 = vld [vmem:[%s11143_s28 + $0xb30] sm:$0xff]  ;;  %1702 = vst [vmem:[%s11151_s29 + $0x588] sm:$0xff] %v1701_v49 }
  0x6b   : > { %1704 = vst [vmem:[%s11151_s29 + $0x590] sm:$0xff] %v1703_v50  ;;  %1706 = vst [vmem:[%s11151_s29 + $0x598] sm:$0xff] %v1705_v51  ;;  %v1707_v52 = vld [vmem:[%s11143_s28 + $0xb40] sm:$0xff]  ;;  %v1709_v53 = vld [vmem:[%s11143_s28 + $0xb50] sm:$0xff] }
  0x6c   : > { %v1711_v54 = vld [vmem:[%s11143_s28 + $0xb60] sm:$0xff]  ;;  %1708 = vst [vmem:[%s11151_s29 + $0x5a0] sm:$0xff] %v1707_v52  ;;  %1710 = vst [vmem:[%s11151_s29 + $0x5a8] sm:$0xff] %v1709_v53  ;;  %v1713_v55 = vld [vmem:[%s11143_s28 + $0xb70] sm:$0xff] }
  0x6d   : > { %1712 = vst [vmem:[%s11151_s29 + $0x5b0] sm:$0xff] %v1711_v54  ;;  %v1715_v56 = vld [vmem:[%s11143_s28 + $0xb80] sm:$0xff]  ;;  %v1717_v57 = vld [vmem:[%s11143_s28 + $0xb90] sm:$0xff]  ;;  %1714 = vst [vmem:[%s11151_s29 + $0x5b8] sm:$0xff] %v1713_v55 }
  0x6e   : > { %1716 = vst [vmem:[%s11151_s29 + $0x5c0] sm:$0xff] %v1715_v56  ;;  %1718 = vst [vmem:[%s11151_s29 + $0x5c8] sm:$0xff] %v1717_v57  ;;  %v1719_v58 = vld [vmem:[%s11143_s28 + $0xba0] sm:$0xff]  ;;  %v1721_v59 = vld [vmem:[%s11143_s28 + $0xbb0] sm:$0xff] }
  0x6f   : > { %v1723_v60 = vld [vmem:[%s11143_s28 + $0xbc0] sm:$0xff]  ;;  %1720 = vst [vmem:[%s11151_s29 + $0x5d0] sm:$0xff] %v1719_v58  ;;  %1722 = vst [vmem:[%s11151_s29 + $0x5d8] sm:$0xff] %v1721_v59  ;;  %v1725_v61 = vld [vmem:[%s11143_s28 + $0xbd0] sm:$0xff] }
  0x70   : > { %1724 = vst [vmem:[%s11151_s29 + $0x5e0] sm:$0xff] %v1723_v60  ;;  %v1727_v62 = vld [vmem:[%s11143_s28 + $0xbe0] sm:$0xff]  ;;  %v1729_v63 = vld [vmem:[%s11143_s28 + $0xbf0] sm:$0xff]  ;;  %1726 = vst [vmem:[%s11151_s29 + $0x5e8] sm:$0xff] %v1725_v61 }
  0x71   : > { %1728 = vst [vmem:[%s11151_s29 + $0x5f0] sm:$0xff] %v1727_v62  ;;  %1730 = vst [vmem:[%s11151_s29 + $0x5f8] sm:$0xff] %v1729_v63  ;;  %v1731_v0 = vld [vmem:[%s11143_s28 + $0xc00] sm:$0xff]  ;;  %v1733_v1 = vld [vmem:[%s11143_s28 + $0xc10] sm:$0xff] }
  0x72   : > { %v1735_v2 = vld [vmem:[%s11143_s28 + $0xc20] sm:$0xff]  ;;  %1732 = vst [vmem:[%s11151_s29 + $0x600] sm:$0xff] %v1731_v0  ;;  %1734 = vst [vmem:[%s11151_s29 + $0x608] sm:$0xff] %v1733_v1  ;;  %v1737_v3 = vld [vmem:[%s11143_s28 + $0xc30] sm:$0xff] }
  0x73   : > { %1736 = vst [vmem:[%s11151_s29 + $0x610] sm:$0xff] %v1735_v2  ;;  %v1739_v4 = vld [vmem:[%s11143_s28 + $0xc40] sm:$0xff]  ;;  %v1741_v5 = vld [vmem:[%s11143_s28 + $0xc50] sm:$0xff]  ;;  %1738 = vst [vmem:[%s11151_s29 + $0x618] sm:$0xff] %v1737_v3 }
  0x74   : > { %1740 = vst [vmem:[%s11151_s29 + $0x620] sm:$0xff] %v1739_v4  ;;  %1742 = vst [vmem:[%s11151_s29 + $0x628] sm:$0xff] %v1741_v5  ;;  %v1743_v6 = vld [vmem:[%s11143_s28 + $0xc60] sm:$0xff]  ;;  %v1745_v7 = vld [vmem:[%s11143_s28 + $0xc70] sm:$0xff] }
  0x75   : > { %v1747_v8 = vld [vmem:[%s11143_s28 + $0xc80] sm:$0xff]  ;;  %1744 = vst [vmem:[%s11151_s29 + $0x630] sm:$0xff] %v1743_v6  ;;  %1746 = vst [vmem:[%s11151_s29 + $0x638] sm:$0xff] %v1745_v7  ;;  %v1749_v9 = vld [vmem:[%s11143_s28 + $0xc90] sm:$0xff] }
  0x76   : > { %1748 = vst [vmem:[%s11151_s29 + $0x640] sm:$0xff] %v1747_v8  ;;  %v1751_v10 = vld [vmem:[%s11143_s28 + $0xca0] sm:$0xff]  ;;  %v1753_v11 = vld [vmem:[%s11143_s28 + $0xcb0] sm:$0xff]  ;;  %1750 = vst [vmem:[%s11151_s29 + $0x648] sm:$0xff] %v1749_v9 }
  0x77   : > { %1752 = vst [vmem:[%s11151_s29 + $0x650] sm:$0xff] %v1751_v10  ;;  %1754 = vst [vmem:[%s11151_s29 + $0x658] sm:$0xff] %v1753_v11  ;;  %v1755_v12 = vld [vmem:[%s11143_s28 + $0xcc0] sm:$0xff]  ;;  %v1757_v13 = vld [vmem:[%s11143_s28 + $0xcd0] sm:$0xff] }
  0x78   : > { %v1759_v14 = vld [vmem:[%s11143_s28 + $0xce0] sm:$0xff]  ;;  %1756 = vst [vmem:[%s11151_s29 + $0x660] sm:$0xff] %v1755_v12  ;;  %1758 = vst [vmem:[%s11151_s29 + $0x668] sm:$0xff] %v1757_v13  ;;  %v1761_v15 = vld [vmem:[%s11143_s28 + $0xcf0] sm:$0xff] }
  0x79   : > { %1760 = vst [vmem:[%s11151_s29 + $0x670] sm:$0xff] %v1759_v14  ;;  %v1763_v16 = vld [vmem:[%s11143_s28 + $0xd00] sm:$0xff]  ;;  %v1765_v17 = vld [vmem:[%s11143_s28 + $0xd10] sm:$0xff]  ;;  %1762 = vst [vmem:[%s11151_s29 + $0x678] sm:$0xff] %v1761_v15 }
  0x7a   : > { %1764 = vst [vmem:[%s11151_s29 + $0x680] sm:$0xff] %v1763_v16  ;;  %1766 = vst [vmem:[%s11151_s29 + $0x688] sm:$0xff] %v1765_v17  ;;  %v1767_v18 = vld [vmem:[%s11143_s28 + $0xd20] sm:$0xff]  ;;  %v1769_v19 = vld [vmem:[%s11143_s28 + $0xd30] sm:$0xff] }
  0x7b   : > { %v1771_v20 = vld [vmem:[%s11143_s28 + $0xd40] sm:$0xff]  ;;  %1768 = vst [vmem:[%s11151_s29 + $0x690] sm:$0xff] %v1767_v18  ;;  %1770 = vst [vmem:[%s11151_s29 + $0x698] sm:$0xff] %v1769_v19  ;;  %v1773_v21 = vld [vmem:[%s11143_s28 + $0xd50] sm:$0xff] }
  0x7c   : > { %1772 = vst [vmem:[%s11151_s29 + $0x6a0] sm:$0xff] %v1771_v20  ;;  %v1775_v22 = vld [vmem:[%s11143_s28 + $0xd60] sm:$0xff]  ;;  %v1777_v23 = vld [vmem:[%s11143_s28 + $0xd70] sm:$0xff]  ;;  %1774 = vst [vmem:[%s11151_s29 + $0x6a8] sm:$0xff] %v1773_v21 }
  0x7d   : > { %1776 = vst [vmem:[%s11151_s29 + $0x6b0] sm:$0xff] %v1775_v22  ;;  %1778 = vst [vmem:[%s11151_s29 + $0x6b8] sm:$0xff] %v1777_v23  ;;  %v1779_v24 = vld [vmem:[%s11143_s28 + $0xd80] sm:$0xff]  ;;  %v1781_v25 = vld [vmem:[%s11143_s28 + $0xd90] sm:$0xff] }
  0x7e   : > { %v1783_v26 = vld [vmem:[%s11143_s28 + $0xda0] sm:$0xff]  ;;  %1780 = vst [vmem:[%s11151_s29 + $0x6c0] sm:$0xff] %v1779_v24  ;;  %1782 = vst [vmem:[%s11151_s29 + $0x6c8] sm:$0xff] %v1781_v25  ;;  %v1785_v27 = vld [vmem:[%s11143_s28 + $0xdb0] sm:$0xff] }
  0x7f   : > { %1784 = vst [vmem:[%s11151_s29 + $0x6d0] sm:$0xff] %v1783_v26  ;;  %v1787_v28 = vld [vmem:[%s11143_s28 + $0xdc0] sm:$0xff]  ;;  %v1789_v29 = vld [vmem:[%s11143_s28 + $0xdd0] sm:$0xff]  ;;  %1786 = vst [vmem:[%s11151_s29 + $0x6d8] sm:$0xff] %v1785_v27 }
  0x80   : > { %1788 = vst [vmem:[%s11151_s29 + $0x6e0] sm:$0xff] %v1787_v28  ;;  %1790 = vst [vmem:[%s11151_s29 + $0x6e8] sm:$0xff] %v1789_v29  ;;  %v1791_v30 = vld [vmem:[%s11143_s28 + $0xde0] sm:$0xff]  ;;  %v1793_v31 = vld [vmem:[%s11143_s28 + $0xdf0] sm:$0xff] }
  0x81   : > { %v1795_v32 = vld [vmem:[%s11143_s28 + $0xe00] sm:$0xff]  ;;  %1792 = vst [vmem:[%s11151_s29 + $0x6f0] sm:$0xff] %v1791_v30  ;;  %1794 = vst [vmem:[%s11151_s29 + $0x6f8] sm:$0xff] %v1793_v31  ;;  %v1797_v33 = vld [vmem:[%s11143_s28 + $0xe10] sm:$0xff] }
  0x82   : > { %1796 = vst [vmem:[%s11151_s29 + $0x700] sm:$0xff] %v1795_v32  ;;  %v1799_v34 = vld [vmem:[%s11143_s28 + $0xe20] sm:$0xff]  ;;  %v1801_v35 = vld [vmem:[%s11143_s28 + $0xe30] sm:$0xff]  ;;  %1798 = vst [vmem:[%s11151_s29 + $0x708] sm:$0xff] %v1797_v33 }
  0x83   : > { %1800 = vst [vmem:[%s11151_s29 + $0x710] sm:$0xff] %v1799_v34  ;;  %1802 = vst [vmem:[%s11151_s29 + $0x718] sm:$0xff] %v1801_v35  ;;  %v1803_v36 = vld [vmem:[%s11143_s28 + $0xe40] sm:$0xff]  ;;  %v1805_v37 = vld [vmem:[%s11143_s28 + $0xe50] sm:$0xff] }
  0x84   : > { %v1807_v38 = vld [vmem:[%s11143_s28 + $0xe60] sm:$0xff]  ;;  %1804 = vst [vmem:[%s11151_s29 + $0x720] sm:$0xff] %v1803_v36  ;;  %1806 = vst [vmem:[%s11151_s29 + $0x728] sm:$0xff] %v1805_v37  ;;  %v1809_v39 = vld [vmem:[%s11143_s28 + $0xe70] sm:$0xff] }
  0x85   : > { %1808 = vst [vmem:[%s11151_s29 + $0x730] sm:$0xff] %v1807_v38  ;;  %v1811_v40 = vld [vmem:[%s11143_s28 + $0xe80] sm:$0xff]  ;;  %v1813_v41 = vld [vmem:[%s11143_s28 + $0xe90] sm:$0xff]  ;;  %1810 = vst [vmem:[%s11151_s29 + $0x738] sm:$0xff] %v1809_v39 }
  0x86   : > { %1812 = vst [vmem:[%s11151_s29 + $0x740] sm:$0xff] %v1811_v40  ;;  %1814 = vst [vmem:[%s11151_s29 + $0x748] sm:$0xff] %v1813_v41  ;;  %v1815_v42 = vld [vmem:[%s11143_s28 + $0xea0] sm:$0xff]  ;;  %v1817_v43 = vld [vmem:[%s11143_s28 + $0xeb0] sm:$0xff] }
  0x87   : > { %v1819_v44 = vld [vmem:[%s11143_s28 + $0xec0] sm:$0xff]  ;;  %1816 = vst [vmem:[%s11151_s29 + $0x750] sm:$0xff] %v1815_v42  ;;  %1818 = vst [vmem:[%s11151_s29 + $0x758] sm:$0xff] %v1817_v43  ;;  %v1821_v45 = vld [vmem:[%s11143_s28 + $0xed0] sm:$0xff] }
  0x88   : > { %1820 = vst [vmem:[%s11151_s29 + $0x760] sm:$0xff] %v1819_v44  ;;  %v1823_v46 = vld [vmem:[%s11143_s28 + $0xee0] sm:$0xff]  ;;  %v1825_v47 = vld [vmem:[%s11143_s28 + $0xef0] sm:$0xff]  ;;  %1822 = vst [vmem:[%s11151_s29 + $0x768] sm:$0xff] %v1821_v45 }
  0x89   : > { %1824 = vst [vmem:[%s11151_s29 + $0x770] sm:$0xff] %v1823_v46  ;;  %1826 = vst [vmem:[%s11151_s29 + $0x778] sm:$0xff] %v1825_v47  ;;  %v1827_v48 = vld [vmem:[%s11143_s28 + $0xf00] sm:$0xff]  ;;  %v1829_v49 = vld [vmem:[%s11143_s28 + $0xf10] sm:$0xff] }
  0x8a   : > { %v1831_v50 = vld [vmem:[%s11143_s28 + $0xf20] sm:$0xff]  ;;  %1828 = vst [vmem:[%s11151_s29 + $0x780] sm:$0xff] %v1827_v48  ;;  %1830 = vst [vmem:[%s11151_s29 + $0x788] sm:$0xff] %v1829_v49  ;;  %v1833_v51 = vld [vmem:[%s11143_s28 + $0xf30] sm:$0xff] }
  0x8b   : > { %1832 = vst [vmem:[%s11151_s29 + $0x790] sm:$0xff] %v1831_v50  ;;  %v1835_v52 = vld [vmem:[%s11143_s28 + $0xf40] sm:$0xff]  ;;  %v1837_v53 = vld [vmem:[%s11143_s28 + $0xf50] sm:$0xff]  ;;  %1834 = vst [vmem:[%s11151_s29 + $0x798] sm:$0xff] %v1833_v51 }
  0x8c   : > { %1836 = vst [vmem:[%s11151_s29 + $0x7a0] sm:$0xff] %v1835_v52  ;;  %1838 = vst [vmem:[%s11151_s29 + $0x7a8] sm:$0xff] %v1837_v53  ;;  %v1839_v54 = vld [vmem:[%s11143_s28 + $0xf60] sm:$0xff]  ;;  %v1841_v55 = vld [vmem:[%s11143_s28 + $0xf70] sm:$0xff] }
  0x8d   : > { %v1843_v56 = vld [vmem:[%s11143_s28 + $0xf80] sm:$0xff]  ;;  %1840 = vst [vmem:[%s11151_s29 + $0x7b0] sm:$0xff] %v1839_v54  ;;  %1842 = vst [vmem:[%s11151_s29 + $0x7b8] sm:$0xff] %v1841_v55  ;;  %v1845_v57 = vld [vmem:[%s11143_s28 + $0xf90] sm:$0xff] }
  0x8e   : > { %1844 = vst [vmem:[%s11151_s29 + $0x7c0] sm:$0xff] %v1843_v56  ;;  %v1847_v58 = vld [vmem:[%s11143_s28 + $0xfa0] sm:$0xff]  ;;  %v1849_v59 = vld [vmem:[%s11143_s28 + $0xfb0] sm:$0xff]  ;;  %1846 = vst [vmem:[%s11151_s29 + $0x7c8] sm:$0xff] %v1845_v57 }
  0x8f   : > { %1848 = vst [vmem:[%s11151_s29 + $0x7d0] sm:$0xff] %v1847_v58  ;;  %1850 = vst [vmem:[%s11151_s29 + $0x7d8] sm:$0xff] %v1849_v59  ;;  %v1851_v60 = vld [vmem:[%s11143_s28 + $0xfc0] sm:$0xff]  ;;  %v1853_v61 = vld [vmem:[%s11143_s28 + $0xfd0] sm:$0xff] }
  0x90   : > { %v1855_v62 = vld [vmem:[%s11143_s28 + $0xfe0] sm:$0xff]  ;;  %1852 = vst [vmem:[%s11151_s29 + $0x7e0] sm:$0xff] %v1851_v60  ;;  %1854 = vst [vmem:[%s11151_s29 + $0x7e8] sm:$0xff] %v1853_v61  ;;  %v1857_v63 = vld [vmem:[%s11143_s28 + $0xff0] sm:$0xff] }
  0x91   : > { %1856 = vst [vmem:[%s11151_s29 + $0x7f0] sm:$0xff] %v1855_v62  ;;  %v1859_v0 = vld [vmem:[%s11143_s28 + $0x1000] sm:$0xff]  ;;  %v1861_v1 = vld [vmem:[%s11143_s28 + $0x1010] sm:$0xff]  ;;  %1858 = vst [vmem:[%s11151_s29 + $0x7f8] sm:$0xff] %v1857_v63 }
  0x92   : > { %1860 = vst [vmem:[%s11151_s29 + $0x800] sm:$0xff] %v1859_v0  ;;  %1862 = vst [vmem:[%s11151_s29 + $0x808] sm:$0xff] %v1861_v1  ;;  %v1863_v2 = vld [vmem:[%s11143_s28 + $0x1020] sm:$0xff]  ;;  %v1865_v3 = vld [vmem:[%s11143_s28 + $0x1030] sm:$0xff] }
  0x93   : > { %v1867_v4 = vld [vmem:[%s11143_s28 + $0x1040] sm:$0xff]  ;;  %1864 = vst [vmem:[%s11151_s29 + $0x810] sm:$0xff] %v1863_v2  ;;  %1866 = vst [vmem:[%s11151_s29 + $0x818] sm:$0xff] %v1865_v3  ;;  %v1869_v5 = vld [vmem:[%s11143_s28 + $0x1050] sm:$0xff] }
  0x94   : > { %1868 = vst [vmem:[%s11151_s29 + $0x820] sm:$0xff] %v1867_v4  ;;  %v1871_v6 = vld [vmem:[%s11143_s28 + $0x1060] sm:$0xff]  ;;  %v1873_v7 = vld [vmem:[%s11143_s28 + $0x1070] sm:$0xff]  ;;  %1870 = vst [vmem:[%s11151_s29 + $0x828] sm:$0xff] %v1869_v5 }
  0x95   : > { %1872 = vst [vmem:[%s11151_s29 + $0x830] sm:$0xff] %v1871_v6  ;;  %1874 = vst [vmem:[%s11151_s29 + $0x838] sm:$0xff] %v1873_v7  ;;  %v1875_v8 = vld [vmem:[%s11143_s28 + $0x1080] sm:$0xff]  ;;  %v1877_v9 = vld [vmem:[%s11143_s28 + $0x1090] sm:$0xff] }
  0x96   : > { %v1879_v10 = vld [vmem:[%s11143_s28 + $0x10a0] sm:$0xff]  ;;  %1876 = vst [vmem:[%s11151_s29 + $0x840] sm:$0xff] %v1875_v8  ;;  %1878 = vst [vmem:[%s11151_s29 + $0x848] sm:$0xff] %v1877_v9  ;;  %v1881_v11 = vld [vmem:[%s11143_s28 + $0x10b0] sm:$0xff] }
  0x97   : > { %1880 = vst [vmem:[%s11151_s29 + $0x850] sm:$0xff] %v1879_v10  ;;  %v1883_v12 = vld [vmem:[%s11143_s28 + $0x10c0] sm:$0xff]  ;;  %v1885_v13 = vld [vmem:[%s11143_s28 + $0x10d0] sm:$0xff]  ;;  %1882 = vst [vmem:[%s11151_s29 + $0x858] sm:$0xff] %v1881_v11 }
  0x98   : > { %1884 = vst [vmem:[%s11151_s29 + $0x860] sm:$0xff] %v1883_v12  ;;  %1886 = vst [vmem:[%s11151_s29 + $0x868] sm:$0xff] %v1885_v13  ;;  %v1887_v14 = vld [vmem:[%s11143_s28 + $0x10e0] sm:$0xff]  ;;  %v1889_v15 = vld [vmem:[%s11143_s28 + $0x10f0] sm:$0xff] }
  0x99   : > { %v1891_v16 = vld [vmem:[%s11143_s28 + $0x1100] sm:$0xff]  ;;  %1888 = vst [vmem:[%s11151_s29 + $0x870] sm:$0xff] %v1887_v14  ;;  %1890 = vst [vmem:[%s11151_s29 + $0x878] sm:$0xff] %v1889_v15  ;;  %v1893_v17 = vld [vmem:[%s11143_s28 + $0x1110] sm:$0xff] }
  0x9a   : > { %1892 = vst [vmem:[%s11151_s29 + $0x880] sm:$0xff] %v1891_v16  ;;  %v1895_v18 = vld [vmem:[%s11143_s28 + $0x1120] sm:$0xff]  ;;  %v1897_v19 = vld [vmem:[%s11143_s28 + $0x1130] sm:$0xff]  ;;  %1894 = vst [vmem:[%s11151_s29 + $0x888] sm:$0xff] %v1893_v17 }
  0x9b   : > { %1896 = vst [vmem:[%s11151_s29 + $0x890] sm:$0xff] %v1895_v18  ;;  %1898 = vst [vmem:[%s11151_s29 + $0x898] sm:$0xff] %v1897_v19  ;;  %v1899_v20 = vld [vmem:[%s11143_s28 + $0x1140] sm:$0xff]  ;;  %v1901_v21 = vld [vmem:[%s11143_s28 + $0x1150] sm:$0xff] }
  0x9c   : > { %v1903_v22 = vld [vmem:[%s11143_s28 + $0x1160] sm:$0xff]  ;;  %1900 = vst [vmem:[%s11151_s29 + $0x8a0] sm:$0xff] %v1899_v20  ;;  %1902 = vst [vmem:[%s11151_s29 + $0x8a8] sm:$0xff] %v1901_v21  ;;  %v1905_v23 = vld [vmem:[%s11143_s28 + $0x1170] sm:$0xff] }
  0x9d   : > { %1904 = vst [vmem:[%s11151_s29 + $0x8b0] sm:$0xff] %v1903_v22  ;;  %v1907_v24 = vld [vmem:[%s11143_s28 + $0x1180] sm:$0xff]  ;;  %v1909_v25 = vld [vmem:[%s11143_s28 + $0x1190] sm:$0xff]  ;;  %1906 = vst [vmem:[%s11151_s29 + $0x8b8] sm:$0xff] %v1905_v23 }
  0x9e   : > { %1908 = vst [vmem:[%s11151_s29 + $0x8c0] sm:$0xff] %v1907_v24  ;;  %1910 = vst [vmem:[%s11151_s29 + $0x8c8] sm:$0xff] %v1909_v25  ;;  %v1911_v26 = vld [vmem:[%s11143_s28 + $0x11a0] sm:$0xff]  ;;  %v1913_v27 = vld [vmem:[%s11143_s28 + $0x11b0] sm:$0xff] }
  0x9f   : > { %v1915_v28 = vld [vmem:[%s11143_s28 + $0x11c0] sm:$0xff]  ;;  %1912 = vst [vmem:[%s11151_s29 + $0x8d0] sm:$0xff] %v1911_v26  ;;  %1914 = vst [vmem:[%s11151_s29 + $0x8d8] sm:$0xff] %v1913_v27  ;;  %v1917_v29 = vld [vmem:[%s11143_s28 + $0x11d0] sm:$0xff] }
  0xa0   : > { %1916 = vst [vmem:[%s11151_s29 + $0x8e0] sm:$0xff] %v1915_v28  ;;  %v1919_v30 = vld [vmem:[%s11143_s28 + $0x11e0] sm:$0xff]  ;;  %v1921_v31 = vld [vmem:[%s11143_s28 + $0x11f0] sm:$0xff]  ;;  %1918 = vst [vmem:[%s11151_s29 + $0x8e8] sm:$0xff] %v1917_v29 }
  0xa1   : > { %1920 = vst [vmem:[%s11151_s29 + $0x8f0] sm:$0xff] %v1919_v30  ;;  %1922 = vst [vmem:[%s11151_s29 + $0x8f8] sm:$0xff] %v1921_v31  ;;  %v1923_v32 = vld [vmem:[%s11143_s28 + $0x1200] sm:$0xff]  ;;  %v1925_v33 = vld [vmem:[%s11143_s28 + $0x1210] sm:$0xff] }
  0xa2   : > { %v1927_v34 = vld [vmem:[%s11143_s28 + $0x1220] sm:$0xff]  ;;  %1924 = vst [vmem:[%s11151_s29 + $0x900] sm:$0xff] %v1923_v32  ;;  %1926 = vst [vmem:[%s11151_s29 + $0x908] sm:$0xff] %v1925_v33  ;;  %v1929_v35 = vld [vmem:[%s11143_s28 + $0x1230] sm:$0xff] }
  0xa3   : > { %1928 = vst [vmem:[%s11151_s29 + $0x910] sm:$0xff] %v1927_v34  ;;  %v1931_v36 = vld [vmem:[%s11143_s28 + $0x1240] sm:$0xff]  ;;  %v1933_v37 = vld [vmem:[%s11143_s28 + $0x1250] sm:$0xff]  ;;  %1930 = vst [vmem:[%s11151_s29 + $0x918] sm:$0xff] %v1929_v35 }
  0xa4   : > { %1932 = vst [vmem:[%s11151_s29 + $0x920] sm:$0xff] %v1931_v36  ;;  %1934 = vst [vmem:[%s11151_s29 + $0x928] sm:$0xff] %v1933_v37  ;;  %v1935_v38 = vld [vmem:[%s11143_s28 + $0x1260] sm:$0xff]  ;;  %v1937_v39 = vld [vmem:[%s11143_s28 + $0x1270] sm:$0xff] }
  0xa5   : > { %v1939_v40 = vld [vmem:[%s11143_s28 + $0x1280] sm:$0xff]  ;;  %1936 = vst [vmem:[%s11151_s29 + $0x930] sm:$0xff] %v1935_v38  ;;  %1938 = vst [vmem:[%s11151_s29 + $0x938] sm:$0xff] %v1937_v39  ;;  %v1941_v41 = vld [vmem:[%s11143_s28 + $0x1290] sm:$0xff] }
  0xa6   : > { %1940 = vst [vmem:[%s11151_s29 + $0x940] sm:$0xff] %v1939_v40  ;;  %v1943_v42 = vld [vmem:[%s11143_s28 + $0x12a0] sm:$0xff]  ;;  %v1945_v43 = vld [vmem:[%s11143_s28 + $0x12b0] sm:$0xff]  ;;  %1942 = vst [vmem:[%s11151_s29 + $0x948] sm:$0xff] %v1941_v41 }
  0xa7   : > { %1944 = vst [vmem:[%s11151_s29 + $0x950] sm:$0xff] %v1943_v42  ;;  %1946 = vst [vmem:[%s11151_s29 + $0x958] sm:$0xff] %v1945_v43  ;;  %v1947_v44 = vld [vmem:[%s11143_s28 + $0x12c0] sm:$0xff]  ;;  %v1949_v45 = vld [vmem:[%s11143_s28 + $0x12d0] sm:$0xff] }
  0xa8   : > { %v1951_v46 = vld [vmem:[%s11143_s28 + $0x12e0] sm:$0xff]  ;;  %1948 = vst [vmem:[%s11151_s29 + $0x960] sm:$0xff] %v1947_v44  ;;  %1950 = vst [vmem:[%s11151_s29 + $0x968] sm:$0xff] %v1949_v45  ;;  %v1953_v47 = vld [vmem:[%s11143_s28 + $0x12f0] sm:$0xff] }
  0xa9   : > { %1952 = vst [vmem:[%s11151_s29 + $0x970] sm:$0xff] %v1951_v46  ;;  %v1955_v48 = vld [vmem:[%s11143_s28 + $0x1300] sm:$0xff]  ;;  %v1957_v49 = vld [vmem:[%s11143_s28 + $0x1310] sm:$0xff]  ;;  %1954 = vst [vmem:[%s11151_s29 + $0x978] sm:$0xff] %v1953_v47 }
  0xaa   : > { %1956 = vst [vmem:[%s11151_s29 + $0x980] sm:$0xff] %v1955_v48  ;;  %1958 = vst [vmem:[%s11151_s29 + $0x988] sm:$0xff] %v1957_v49  ;;  %v1959_v50 = vld [vmem:[%s11143_s28 + $0x1320] sm:$0xff]  ;;  %v1961_v51 = vld [vmem:[%s11143_s28 + $0x1330] sm:$0xff] }
  0xab   : > { %v1963_v52 = vld [vmem:[%s11143_s28 + $0x1340] sm:$0xff]  ;;  %1960 = vst [vmem:[%s11151_s29 + $0x990] sm:$0xff] %v1959_v50  ;;  %1962 = vst [vmem:[%s11151_s29 + $0x998] sm:$0xff] %v1961_v51  ;;  %v1965_v53 = vld [vmem:[%s11143_s28 + $0x1350] sm:$0xff] }
  0xac   : > { %1964 = vst [vmem:[%s11151_s29 + $0x9a0] sm:$0xff] %v1963_v52  ;;  %v1967_v54 = vld [vmem:[%s11143_s28 + $0x1360] sm:$0xff]  ;;  %v1969_v55 = vld [vmem:[%s11143_s28 + $0x1370] sm:$0xff]  ;;  %1966 = vst [vmem:[%s11151_s29 + $0x9a8] sm:$0xff] %v1965_v53 }
  0xad   : > { %1968 = vst [vmem:[%s11151_s29 + $0x9b0] sm:$0xff] %v1967_v54  ;;  %1970 = vst [vmem:[%s11151_s29 + $0x9b8] sm:$0xff] %v1969_v55  ;;  %v1971_v56 = vld [vmem:[%s11143_s28 + $0x1380] sm:$0xff]  ;;  %v1973_v57 = vld [vmem:[%s11143_s28 + $0x1390] sm:$0xff] }
  0xae   : > { %v1975_v58 = vld [vmem:[%s11143_s28 + $0x13a0] sm:$0xff]  ;;  %1972 = vst [vmem:[%s11151_s29 + $0x9c0] sm:$0xff] %v1971_v56  ;;  %1974 = vst [vmem:[%s11151_s29 + $0x9c8] sm:$0xff] %v1973_v57  ;;  %v1977_v59 = vld [vmem:[%s11143_s28 + $0x13b0] sm:$0xff] }
  0xaf   : > { %1976 = vst [vmem:[%s11151_s29 + $0x9d0] sm:$0xff] %v1975_v58  ;;  %v1979_v60 = vld [vmem:[%s11143_s28 + $0x13c0] sm:$0xff]  ;;  %v1981_v61 = vld [vmem:[%s11143_s28 + $0x13d0] sm:$0xff]  ;;  %1978 = vst [vmem:[%s11151_s29 + $0x9d8] sm:$0xff] %v1977_v59 }
  0xb0   : > { %1980 = vst [vmem:[%s11151_s29 + $0x9e0] sm:$0xff] %v1979_v60  ;;  %1982 = vst [vmem:[%s11151_s29 + $0x9e8] sm:$0xff] %v1981_v61  ;;  %v1983_v62 = vld [vmem:[%s11143_s28 + $0x13e0] sm:$0xff]  ;;  %v1985_v63 = vld [vmem:[%s11143_s28 + $0x13f0] sm:$0xff] }
  0xb1   : > { %v1987_v0 = vld [vmem:[%s11143_s28 + $0x1400] sm:$0xff]  ;;  %1984 = vst [vmem:[%s11151_s29 + $0x9f0] sm:$0xff] %v1983_v62  ;;  %1986 = vst [vmem:[%s11151_s29 + $0x9f8] sm:$0xff] %v1985_v63  ;;  %v1989_v1 = vld [vmem:[%s11143_s28 + $0x1410] sm:$0xff] }
  0xb2   : > { %1988 = vst [vmem:[%s11151_s29 + $0xa00] sm:$0xff] %v1987_v0  ;;  %v1991_v2 = vld [vmem:[%s11143_s28 + $0x1420] sm:$0xff]  ;;  %v1993_v3 = vld [vmem:[%s11143_s28 + $0x1430] sm:$0xff]  ;;  %1990 = vst [vmem:[%s11151_s29 + $0xa08] sm:$0xff] %v1989_v1 }
  0xb3   : > { %1992 = vst [vmem:[%s11151_s29 + $0xa10] sm:$0xff] %v1991_v2  ;;  %1994 = vst [vmem:[%s11151_s29 + $0xa18] sm:$0xff] %v1993_v3  ;;  %v1995_v4 = vld [vmem:[%s11143_s28 + $0x1440] sm:$0xff]  ;;  %v1997_v5 = vld [vmem:[%s11143_s28 + $0x1450] sm:$0xff] }
  0xb4   : > { %v1999_v6 = vld [vmem:[%s11143_s28 + $0x1460] sm:$0xff]  ;;  %1996 = vst [vmem:[%s11151_s29 + $0xa20] sm:$0xff] %v1995_v4  ;;  %1998 = vst [vmem:[%s11151_s29 + $0xa28] sm:$0xff] %v1997_v5  ;;  %v2001_v7 = vld [vmem:[%s11143_s28 + $0x1470] sm:$0xff] }
  0xb5   : > { %2000 = vst [vmem:[%s11151_s29 + $0xa30] sm:$0xff] %v1999_v6  ;;  %v2003_v8 = vld [vmem:[%s11143_s28 + $0x1480] sm:$0xff]  ;;  %v2005_v9 = vld [vmem:[%s11143_s28 + $0x1490] sm:$0xff]  ;;  %2002 = vst [vmem:[%s11151_s29 + $0xa38] sm:$0xff] %v2001_v7 }
  0xb6   : > { %2004 = vst [vmem:[%s11151_s29 + $0xa40] sm:$0xff] %v2003_v8  ;;  %2006 = vst [vmem:[%s11151_s29 + $0xa48] sm:$0xff] %v2005_v9  ;;  %v2007_v10 = vld [vmem:[%s11143_s28 + $0x14a0] sm:$0xff]  ;;  %v2009_v11 = vld [vmem:[%s11143_s28 + $0x14b0] sm:$0xff] }
  0xb7   : > { %v2011_v12 = vld [vmem:[%s11143_s28 + $0x14c0] sm:$0xff]  ;;  %2008 = vst [vmem:[%s11151_s29 + $0xa50] sm:$0xff] %v2007_v10  ;;  %2010 = vst [vmem:[%s11151_s29 + $0xa58] sm:$0xff] %v2009_v11  ;;  %v2013_v13 = vld [vmem:[%s11143_s28 + $0x14d0] sm:$0xff] }
  0xb8   : > { %2012 = vst [vmem:[%s11151_s29 + $0xa60] sm:$0xff] %v2011_v12  ;;  %v2015_v14 = vld [vmem:[%s11143_s28 + $0x14e0] sm:$0xff]  ;;  %v2017_v15 = vld [vmem:[%s11143_s28 + $0x14f0] sm:$0xff]  ;;  %2014 = vst [vmem:[%s11151_s29 + $0xa68] sm:$0xff] %v2013_v13 }
  0xb9   : > { %2016 = vst [vmem:[%s11151_s29 + $0xa70] sm:$0xff] %v2015_v14  ;;  %2018 = vst [vmem:[%s11151_s29 + $0xa78] sm:$0xff] %v2017_v15  ;;  %v2019_v16 = vld [vmem:[%s11143_s28 + $0x1500] sm:$0xff]  ;;  %v2021_v17 = vld [vmem:[%s11143_s28 + $0x1510] sm:$0xff] }
  0xba   : > { %v2023_v18 = vld [vmem:[%s11143_s28 + $0x1520] sm:$0xff]  ;;  %2020 = vst [vmem:[%s11151_s29 + $0xa80] sm:$0xff] %v2019_v16  ;;  %2022 = vst [vmem:[%s11151_s29 + $0xa88] sm:$0xff] %v2021_v17  ;;  %v2025_v19 = vld [vmem:[%s11143_s28 + $0x1530] sm:$0xff] }
  0xbb   : > { %2024 = vst [vmem:[%s11151_s29 + $0xa90] sm:$0xff] %v2023_v18  ;;  %v2027_v20 = vld [vmem:[%s11143_s28 + $0x1540] sm:$0xff]  ;;  %v2029_v21 = vld [vmem:[%s11143_s28 + $0x1550] sm:$0xff]  ;;  %2026 = vst [vmem:[%s11151_s29 + $0xa98] sm:$0xff] %v2025_v19 }
  0xbc   : > { %2028 = vst [vmem:[%s11151_s29 + $0xaa0] sm:$0xff] %v2027_v20  ;;  %2030 = vst [vmem:[%s11151_s29 + $0xaa8] sm:$0xff] %v2029_v21  ;;  %v2031_v22 = vld [vmem:[%s11143_s28 + $0x1560] sm:$0xff]  ;;  %v2033_v23 = vld [vmem:[%s11143_s28 + $0x1570] sm:$0xff] }
  0xbd   : > { %v2035_v24 = vld [vmem:[%s11143_s28 + $0x1580] sm:$0xff]  ;;  %2032 = vst [vmem:[%s11151_s29 + $0xab0] sm:$0xff] %v2031_v22  ;;  %2034 = vst [vmem:[%s11151_s29 + $0xab8] sm:$0xff] %v2033_v23  ;;  %v2037_v25 = vld [vmem:[%s11143_s28 + $0x1590] sm:$0xff] }
  0xbe   : > { %2036 = vst [vmem:[%s11151_s29 + $0xac0] sm:$0xff] %v2035_v24  ;;  %v2039_v26 = vld [vmem:[%s11143_s28 + $0x15a0] sm:$0xff]  ;;  %v2041_v27 = vld [vmem:[%s11143_s28 + $0x15b0] sm:$0xff]  ;;  %2038 = vst [vmem:[%s11151_s29 + $0xac8] sm:$0xff] %v2037_v25 }
  0xbf   : > { %2040 = vst [vmem:[%s11151_s29 + $0xad0] sm:$0xff] %v2039_v26  ;;  %2042 = vst [vmem:[%s11151_s29 + $0xad8] sm:$0xff] %v2041_v27  ;;  %v2043_v28 = vld [vmem:[%s11143_s28 + $0x15c0] sm:$0xff]  ;;  %v2045_v29 = vld [vmem:[%s11143_s28 + $0x15d0] sm:$0xff] }
  0xc0   : > { %v2047_v30 = vld [vmem:[%s11143_s28 + $0x15e0] sm:$0xff]  ;;  %2044 = vst [vmem:[%s11151_s29 + $0xae0] sm:$0xff] %v2043_v28  ;;  %2046 = vst [vmem:[%s11151_s29 + $0xae8] sm:$0xff] %v2045_v29  ;;  %v2049_v31 = vld [vmem:[%s11143_s28 + $0x15f0] sm:$0xff] }
  0xc1   : > { %2048 = vst [vmem:[%s11151_s29 + $0xaf0] sm:$0xff] %v2047_v30  ;;  %v2051_v32 = vld [vmem:[%s11143_s28 + $0x1600] sm:$0xff]  ;;  %v2053_v33 = vld [vmem:[%s11143_s28 + $0x1610] sm:$0xff]  ;;  %2050 = vst [vmem:[%s11151_s29 + $0xaf8] sm:$0xff] %v2049_v31 }
  0xc2   : > { %2052 = vst [vmem:[%s11151_s29 + $0xb00] sm:$0xff] %v2051_v32  ;;  %2054 = vst [vmem:[%s11151_s29 + $0xb08] sm:$0xff] %v2053_v33  ;;  %v2055_v34 = vld [vmem:[%s11143_s28 + $0x1620] sm:$0xff]  ;;  %v2057_v35 = vld [vmem:[%s11143_s28 + $0x1630] sm:$0xff] }
  0xc3   : > { %v2059_v36 = vld [vmem:[%s11143_s28 + $0x1640] sm:$0xff]  ;;  %2056 = vst [vmem:[%s11151_s29 + $0xb10] sm:$0xff] %v2055_v34  ;;  %2058 = vst [vmem:[%s11151_s29 + $0xb18] sm:$0xff] %v2057_v35  ;;  %v2061_v37 = vld [vmem:[%s11143_s28 + $0x1650] sm:$0xff] }
  0xc4   : > { %2060 = vst [vmem:[%s11151_s29 + $0xb20] sm:$0xff] %v2059_v36  ;;  %v2063_v38 = vld [vmem:[%s11143_s28 + $0x1660] sm:$0xff]  ;;  %v2065_v39 = vld [vmem:[%s11143_s28 + $0x1670] sm:$0xff]  ;;  %2062 = vst [vmem:[%s11151_s29 + $0xb28] sm:$0xff] %v2061_v37 }
  0xc5   : > { %2064 = vst [vmem:[%s11151_s29 + $0xb30] sm:$0xff] %v2063_v38  ;;  %2066 = vst [vmem:[%s11151_s29 + $0xb38] sm:$0xff] %v2065_v39  ;;  %v2067_v40 = vld [vmem:[%s11143_s28 + $0x1680] sm:$0xff]  ;;  %v2069_v41 = vld [vmem:[%s11143_s28 + $0x1690] sm:$0xff] }
  0xc6   : > { %v2071_v42 = vld [vmem:[%s11143_s28 + $0x16a0] sm:$0xff]  ;;  %2068 = vst [vmem:[%s11151_s29 + $0xb40] sm:$0xff] %v2067_v40  ;;  %2070 = vst [vmem:[%s11151_s29 + $0xb48] sm:$0xff] %v2069_v41  ;;  %v2073_v43 = vld [vmem:[%s11143_s28 + $0x16b0] sm:$0xff] }
  0xc7   : > { %2072 = vst [vmem:[%s11151_s29 + $0xb50] sm:$0xff] %v2071_v42  ;;  %v2075_v44 = vld [vmem:[%s11143_s28 + $0x16c0] sm:$0xff]  ;;  %v2077_v45 = vld [vmem:[%s11143_s28 + $0x16d0] sm:$0xff]  ;;  %2074 = vst [vmem:[%s11151_s29 + $0xb58] sm:$0xff] %v2073_v43 }
  0xc8   : > { %2076 = vst [vmem:[%s11151_s29 + $0xb60] sm:$0xff] %v2075_v44  ;;  %2078 = vst [vmem:[%s11151_s29 + $0xb68] sm:$0xff] %v2077_v45  ;;  %v2079_v46 = vld [vmem:[%s11143_s28 + $0x16e0] sm:$0xff]  ;;  %v2081_v47 = vld [vmem:[%s11143_s28 + $0x16f0] sm:$0xff] }
  0xc9   : > { %v2083_v48 = vld [vmem:[%s11143_s28 + $0x1700] sm:$0xff]  ;;  %2080 = vst [vmem:[%s11151_s29 + $0xb70] sm:$0xff] %v2079_v46  ;;  %2082 = vst [vmem:[%s11151_s29 + $0xb78] sm:$0xff] %v2081_v47  ;;  %v2085_v49 = vld [vmem:[%s11143_s28 + $0x1710] sm:$0xff] }
  0xca   : > { %2084 = vst [vmem:[%s11151_s29 + $0xb80] sm:$0xff] %v2083_v48  ;;  %v2087_v50 = vld [vmem:[%s11143_s28 + $0x1720] sm:$0xff]  ;;  %v2089_v51 = vld [vmem:[%s11143_s28 + $0x1730] sm:$0xff]  ;;  %2086 = vst [vmem:[%s11151_s29 + $0xb88] sm:$0xff] %v2085_v49 }
  0xcb   : > { %2088 = vst [vmem:[%s11151_s29 + $0xb90] sm:$0xff] %v2087_v50  ;;  %2090 = vst [vmem:[%s11151_s29 + $0xb98] sm:$0xff] %v2089_v51  ;;  %v2091_v52 = vld [vmem:[%s11143_s28 + $0x1740] sm:$0xff]  ;;  %v2093_v53 = vld [vmem:[%s11143_s28 + $0x1750] sm:$0xff] }
  0xcc   : > { %v2095_v54 = vld [vmem:[%s11143_s28 + $0x1760] sm:$0xff]  ;;  %2092 = vst [vmem:[%s11151_s29 + $0xba0] sm:$0xff] %v2091_v52  ;;  %2094 = vst [vmem:[%s11151_s29 + $0xba8] sm:$0xff] %v2093_v53  ;;  %v2097_v55 = vld [vmem:[%s11143_s28 + $0x1770] sm:$0xff] }
  0xcd   : > { %2096 = vst [vmem:[%s11151_s29 + $0xbb0] sm:$0xff] %v2095_v54  ;;  %v2099_v56 = vld [vmem:[%s11143_s28 + $0x1780] sm:$0xff]  ;;  %v2101_v57 = vld [vmem:[%s11143_s28 + $0x1790] sm:$0xff]  ;;  %2098 = vst [vmem:[%s11151_s29 + $0xbb8] sm:$0xff] %v2097_v55 }
  0xce   : > { %2100 = vst [vmem:[%s11151_s29 + $0xbc0] sm:$0xff] %v2099_v56  ;;  %2102 = vst [vmem:[%s11151_s29 + $0xbc8] sm:$0xff] %v2101_v57  ;;  %v2103_v58 = vld [vmem:[%s11143_s28 + $0x17a0] sm:$0xff]  ;;  %v2105_v59 = vld [vmem:[%s11143_s28 + $0x17b0] sm:$0xff] }
  0xcf   : > { %v2107_v60 = vld [vmem:[%s11143_s28 + $0x17c0] sm:$0xff]  ;;  %2104 = vst [vmem:[%s11151_s29 + $0xbd0] sm:$0xff] %v2103_v58  ;;  %2106 = vst [vmem:[%s11151_s29 + $0xbd8] sm:$0xff] %v2105_v59  ;;  %v2109_v61 = vld [vmem:[%s11143_s28 + $0x17d0] sm:$0xff] }
  0xd0   : > { %2108 = vst [vmem:[%s11151_s29 + $0xbe0] sm:$0xff] %v2107_v60  ;;  %v2111_v62 = vld [vmem:[%s11143_s28 + $0x17e0] sm:$0xff]  ;;  %v2113_v63 = vld [vmem:[%s11143_s28 + $0x17f0] sm:$0xff]  ;;  %2110 = vst [vmem:[%s11151_s29 + $0xbe8] sm:$0xff] %v2109_v61 }
  0xd1   : > { %2112 = vst [vmem:[%s11151_s29 + $0xbf0] sm:$0xff] %v2111_v62  ;;  %2114 = vst [vmem:[%s11151_s29 + $0xbf8] sm:$0xff] %v2113_v63  ;;  %v2115_v0 = vld [vmem:[%s11143_s28 + $0x1800] sm:$0xff]  ;;  %v2117_v1 = vld [vmem:[%s11143_s28 + $0x1810] sm:$0xff] }
  0xd2   : > { %v2119_v2 = vld [vmem:[%s11143_s28 + $0x1820] sm:$0xff]  ;;  %2116 = vst [vmem:[%s11151_s29 + $0xc00] sm:$0xff] %v2115_v0  ;;  %2118 = vst [vmem:[%s11151_s29 + $0xc08] sm:$0xff] %v2117_v1  ;;  %v2121_v3 = vld [vmem:[%s11143_s28 + $0x1830] sm:$0xff] }
  0xd3   : > { %2120 = vst [vmem:[%s11151_s29 + $0xc10] sm:$0xff] %v2119_v2  ;;  %v2123_v4 = vld [vmem:[%s11143_s28 + $0x1840] sm:$0xff]  ;;  %v2125_v5 = vld [vmem:[%s11143_s28 + $0x1850] sm:$0xff]  ;;  %2122 = vst [vmem:[%s11151_s29 + $0xc18] sm:$0xff] %v2121_v3 }
  0xd4   : > { %2124 = vst [vmem:[%s11151_s29 + $0xc20] sm:$0xff] %v2123_v4  ;;  %2126 = vst [vmem:[%s11151_s29 + $0xc28] sm:$0xff] %v2125_v5  ;;  %v2127_v6 = vld [vmem:[%s11143_s28 + $0x1860] sm:$0xff]  ;;  %v2129_v7 = vld [vmem:[%s11143_s28 + $0x1870] sm:$0xff] }
  0xd5   : > { %v2131_v8 = vld [vmem:[%s11143_s28 + $0x1880] sm:$0xff]  ;;  %2128 = vst [vmem:[%s11151_s29 + $0xc30] sm:$0xff] %v2127_v6  ;;  %2130 = vst [vmem:[%s11151_s29 + $0xc38] sm:$0xff] %v2129_v7  ;;  %v2133_v9 = vld [vmem:[%s11143_s28 + $0x1890] sm:$0xff] }
  0xd6   : > { %2132 = vst [vmem:[%s11151_s29 + $0xc40] sm:$0xff] %v2131_v8  ;;  %v2135_v10 = vld [vmem:[%s11143_s28 + $0x18a0] sm:$0xff]  ;;  %v2137_v11 = vld [vmem:[%s11143_s28 + $0x18b0] sm:$0xff]  ;;  %2134 = vst [vmem:[%s11151_s29 + $0xc48] sm:$0xff] %v2133_v9 }
  0xd7   : > { %2136 = vst [vmem:[%s11151_s29 + $0xc50] sm:$0xff] %v2135_v10  ;;  %2138 = vst [vmem:[%s11151_s29 + $0xc58] sm:$0xff] %v2137_v11  ;;  %v2139_v12 = vld [vmem:[%s11143_s28 + $0x18c0] sm:$0xff]  ;;  %v2141_v13 = vld [vmem:[%s11143_s28 + $0x18d0] sm:$0xff] }
  0xd8   : > { %v2143_v14 = vld [vmem:[%s11143_s28 + $0x18e0] sm:$0xff]  ;;  %2140 = vst [vmem:[%s11151_s29 + $0xc60] sm:$0xff] %v2139_v12  ;;  %2142 = vst [vmem:[%s11151_s29 + $0xc68] sm:$0xff] %v2141_v13  ;;  %v2145_v15 = vld [vmem:[%s11143_s28 + $0x18f0] sm:$0xff] }
  0xd9   : > { %2144 = vst [vmem:[%s11151_s29 + $0xc70] sm:$0xff] %v2143_v14  ;;  %v2147_v16 = vld [vmem:[%s11143_s28 + $0x1900] sm:$0xff]  ;;  %v2149_v17 = vld [vmem:[%s11143_s28 + $0x1910] sm:$0xff]  ;;  %2146 = vst [vmem:[%s11151_s29 + $0xc78] sm:$0xff] %v2145_v15 }
  0xda   : > { %2148 = vst [vmem:[%s11151_s29 + $0xc80] sm:$0xff] %v2147_v16  ;;  %2150 = vst [vmem:[%s11151_s29 + $0xc88] sm:$0xff] %v2149_v17  ;;  %v2151_v18 = vld [vmem:[%s11143_s28 + $0x1920] sm:$0xff]  ;;  %v2153_v19 = vld [vmem:[%s11143_s28 + $0x1930] sm:$0xff] }
  0xdb   : > { %v2155_v20 = vld [vmem:[%s11143_s28 + $0x1940] sm:$0xff]  ;;  %2152 = vst [vmem:[%s11151_s29 + $0xc90] sm:$0xff] %v2151_v18  ;;  %2154 = vst [vmem:[%s11151_s29 + $0xc98] sm:$0xff] %v2153_v19  ;;  %v2157_v21 = vld [vmem:[%s11143_s28 + $0x1950] sm:$0xff] }
  0xdc   : > { %2156 = vst [vmem:[%s11151_s29 + $0xca0] sm:$0xff] %v2155_v20  ;;  %v2159_v22 = vld [vmem:[%s11143_s28 + $0x1960] sm:$0xff]  ;;  %v2161_v23 = vld [vmem:[%s11143_s28 + $0x1970] sm:$0xff]  ;;  %2158 = vst [vmem:[%s11151_s29 + $0xca8] sm:$0xff] %v2157_v21 }
  0xdd   : > { %2160 = vst [vmem:[%s11151_s29 + $0xcb0] sm:$0xff] %v2159_v22  ;;  %2162 = vst [vmem:[%s11151_s29 + $0xcb8] sm:$0xff] %v2161_v23  ;;  %v2163_v24 = vld [vmem:[%s11143_s28 + $0x1980] sm:$0xff]  ;;  %v2165_v25 = vld [vmem:[%s11143_s28 + $0x1990] sm:$0xff] }
  0xde   : > { %v2167_v26 = vld [vmem:[%s11143_s28 + $0x19a0] sm:$0xff]  ;;  %2164 = vst [vmem:[%s11151_s29 + $0xcc0] sm:$0xff] %v2163_v24  ;;  %2166 = vst [vmem:[%s11151_s29 + $0xcc8] sm:$0xff] %v2165_v25  ;;  %v2169_v27 = vld [vmem:[%s11143_s28 + $0x19b0] sm:$0xff] }
  0xdf   : > { %2168 = vst [vmem:[%s11151_s29 + $0xcd0] sm:$0xff] %v2167_v26  ;;  %v2171_v28 = vld [vmem:[%s11143_s28 + $0x19c0] sm:$0xff]  ;;  %v2173_v29 = vld [vmem:[%s11143_s28 + $0x19d0] sm:$0xff]  ;;  %2170 = vst [vmem:[%s11151_s29 + $0xcd8] sm:$0xff] %v2169_v27 }
  0xe0   : > { %2172 = vst [vmem:[%s11151_s29 + $0xce0] sm:$0xff] %v2171_v28  ;;  %2174 = vst [vmem:[%s11151_s29 + $0xce8] sm:$0xff] %v2173_v29  ;;  %v2175_v30 = vld [vmem:[%s11143_s28 + $0x19e0] sm:$0xff]  ;;  %v2177_v31 = vld [vmem:[%s11143_s28 + $0x19f0] sm:$0xff] }
  0xe1   : > { %v2179_v32 = vld [vmem:[%s11143_s28 + $0x1a00] sm:$0xff]  ;;  %2176 = vst [vmem:[%s11151_s29 + $0xcf0] sm:$0xff] %v2175_v30  ;;  %2178 = vst [vmem:[%s11151_s29 + $0xcf8] sm:$0xff] %v2177_v31  ;;  %v2181_v33 = vld [vmem:[%s11143_s28 + $0x1a10] sm:$0xff] }
  0xe2   : > { %2180 = vst [vmem:[%s11151_s29 + $0xd00] sm:$0xff] %v2179_v32  ;;  %v2183_v34 = vld [vmem:[%s11143_s28 + $0x1a20] sm:$0xff]  ;;  %v2185_v35 = vld [vmem:[%s11143_s28 + $0x1a30] sm:$0xff]  ;;  %2182 = vst [vmem:[%s11151_s29 + $0xd08] sm:$0xff] %v2181_v33 }
  0xe3   : > { %2184 = vst [vmem:[%s11151_s29 + $0xd10] sm:$0xff] %v2183_v34  ;;  %2186 = vst [vmem:[%s11151_s29 + $0xd18] sm:$0xff] %v2185_v35  ;;  %v2187_v36 = vld [vmem:[%s11143_s28 + $0x1a40] sm:$0xff]  ;;  %v2189_v37 = vld [vmem:[%s11143_s28 + $0x1a50] sm:$0xff] }
  0xe4   : > { %v2191_v38 = vld [vmem:[%s11143_s28 + $0x1a60] sm:$0xff]  ;;  %2188 = vst [vmem:[%s11151_s29 + $0xd20] sm:$0xff] %v2187_v36  ;;  %2190 = vst [vmem:[%s11151_s29 + $0xd28] sm:$0xff] %v2189_v37  ;;  %v2193_v39 = vld [vmem:[%s11143_s28 + $0x1a70] sm:$0xff] }
  0xe5   : > { %2192 = vst [vmem:[%s11151_s29 + $0xd30] sm:$0xff] %v2191_v38  ;;  %v2195_v40 = vld [vmem:[%s11143_s28 + $0x1a80] sm:$0xff]  ;;  %v2197_v41 = vld [vmem:[%s11143_s28 + $0x1a90] sm:$0xff]  ;;  %2194 = vst [vmem:[%s11151_s29 + $0xd38] sm:$0xff] %v2193_v39 }
  0xe6   : > { %2196 = vst [vmem:[%s11151_s29 + $0xd40] sm:$0xff] %v2195_v40  ;;  %2198 = vst [vmem:[%s11151_s29 + $0xd48] sm:$0xff] %v2197_v41  ;;  %v2199_v42 = vld [vmem:[%s11143_s28 + $0x1aa0] sm:$0xff]  ;;  %v2201_v43 = vld [vmem:[%s11143_s28 + $0x1ab0] sm:$0xff] }
  0xe7   : > { %v2203_v44 = vld [vmem:[%s11143_s28 + $0x1ac0] sm:$0xff]  ;;  %2200 = vst [vmem:[%s11151_s29 + $0xd50] sm:$0xff] %v2199_v42  ;;  %2202 = vst [vmem:[%s11151_s29 + $0xd58] sm:$0xff] %v2201_v43  ;;  %v2205_v45 = vld [vmem:[%s11143_s28 + $0x1ad0] sm:$0xff] }
  0xe8   : > { %2204 = vst [vmem:[%s11151_s29 + $0xd60] sm:$0xff] %v2203_v44  ;;  %v2207_v46 = vld [vmem:[%s11143_s28 + $0x1ae0] sm:$0xff]  ;;  %v2209_v47 = vld [vmem:[%s11143_s28 + $0x1af0] sm:$0xff]  ;;  %2206 = vst [vmem:[%s11151_s29 + $0xd68] sm:$0xff] %v2205_v45 }
  0xe9   : > { %2208 = vst [vmem:[%s11151_s29 + $0xd70] sm:$0xff] %v2207_v46  ;;  %2210 = vst [vmem:[%s11151_s29 + $0xd78] sm:$0xff] %v2209_v47  ;;  %v2211_v48 = vld [vmem:[%s11143_s28 + $0x1b00] sm:$0xff]  ;;  %v2213_v49 = vld [vmem:[%s11143_s28 + $0x1b10] sm:$0xff] }
  0xea   : > { %v2215_v50 = vld [vmem:[%s11143_s28 + $0x1b20] sm:$0xff]  ;;  %2212 = vst [vmem:[%s11151_s29 + $0xd80] sm:$0xff] %v2211_v48  ;;  %2214 = vst [vmem:[%s11151_s29 + $0xd88] sm:$0xff] %v2213_v49  ;;  %v2217_v51 = vld [vmem:[%s11143_s28 + $0x1b30] sm:$0xff] }
  0xeb   : > { %2216 = vst [vmem:[%s11151_s29 + $0xd90] sm:$0xff] %v2215_v50  ;;  %v2219_v52 = vld [vmem:[%s11143_s28 + $0x1b40] sm:$0xff]  ;;  %v2221_v53 = vld [vmem:[%s11143_s28 + $0x1b50] sm:$0xff]  ;;  %2218 = vst [vmem:[%s11151_s29 + $0xd98] sm:$0xff] %v2217_v51 }
  0xec   : > { %2220 = vst [vmem:[%s11151_s29 + $0xda0] sm:$0xff] %v2219_v52  ;;  %2222 = vst [vmem:[%s11151_s29 + $0xda8] sm:$0xff] %v2221_v53  ;;  %v2223_v54 = vld [vmem:[%s11143_s28 + $0x1b60] sm:$0xff]  ;;  %v2225_v55 = vld [vmem:[%s11143_s28 + $0x1b70] sm:$0xff] }
  0xed   : > { %v2227_v56 = vld [vmem:[%s11143_s28 + $0x1b80] sm:$0xff]  ;;  %2224 = vst [vmem:[%s11151_s29 + $0xdb0] sm:$0xff] %v2223_v54  ;;  %2226 = vst [vmem:[%s11151_s29 + $0xdb8] sm:$0xff] %v2225_v55  ;;  %v2229_v57 = vld [vmem:[%s11143_s28 + $0x1b90] sm:$0xff] }
  0xee   : > { %2228 = vst [vmem:[%s11151_s29 + $0xdc0] sm:$0xff] %v2227_v56  ;;  %v2231_v58 = vld [vmem:[%s11143_s28 + $0x1ba0] sm:$0xff]  ;;  %v2233_v59 = vld [vmem:[%s11143_s28 + $0x1bb0] sm:$0xff]  ;;  %2230 = vst [vmem:[%s11151_s29 + $0xdc8] sm:$0xff] %v2229_v57 }
  0xef   : > { %2232 = vst [vmem:[%s11151_s29 + $0xdd0] sm:$0xff] %v2231_v58  ;;  %2234 = vst [vmem:[%s11151_s29 + $0xdd8] sm:$0xff] %v2233_v59  ;;  %v2235_v60 = vld [vmem:[%s11143_s28 + $0x1bc0] sm:$0xff]  ;;  %v2237_v61 = vld [vmem:[%s11143_s28 + $0x1bd0] sm:$0xff] }
  0xf0   : > { %v2239_v62 = vld [vmem:[%s11143_s28 + $0x1be0] sm:$0xff]  ;;  %2236 = vst [vmem:[%s11151_s29 + $0xde0] sm:$0xff] %v2235_v60  ;;  %2238 = vst [vmem:[%s11151_s29 + $0xde8] sm:$0xff] %v2237_v61  ;;  %v2241_v63 = vld [vmem:[%s11143_s28 + $0x1bf0] sm:$0xff] }
  0xf1   : > { %2240 = vst [vmem:[%s11151_s29 + $0xdf0] sm:$0xff] %v2239_v62  ;;  %v2243_v0 = vld [vmem:[%s11143_s28 + $0x1c00] sm:$0xff]  ;;  %v2245_v1 = vld [vmem:[%s11143_s28 + $0x1c10] sm:$0xff]  ;;  %2242 = vst [vmem:[%s11151_s29 + $0xdf8] sm:$0xff] %v2241_v63 }
  0xf2   : > { %2244 = vst [vmem:[%s11151_s29 + $0xe00] sm:$0xff] %v2243_v0  ;;  %2246 = vst [vmem:[%s11151_s29 + $0xe08] sm:$0xff] %v2245_v1  ;;  %v2247_v2 = vld [vmem:[%s11143_s28 + $0x1c20] sm:$0xff]  ;;  %v2249_v3 = vld [vmem:[%s11143_s28 + $0x1c30] sm:$0xff] }
  0xf3   : > { %v2251_v4 = vld [vmem:[%s11143_s28 + $0x1c40] sm:$0xff]  ;;  %2248 = vst [vmem:[%s11151_s29 + $0xe10] sm:$0xff] %v2247_v2  ;;  %2250 = vst [vmem:[%s11151_s29 + $0xe18] sm:$0xff] %v2249_v3  ;;  %v2253_v5 = vld [vmem:[%s11143_s28 + $0x1c50] sm:$0xff] }
  0xf4   : > { %2252 = vst [vmem:[%s11151_s29 + $0xe20] sm:$0xff] %v2251_v4  ;;  %v2255_v6 = vld [vmem:[%s11143_s28 + $0x1c60] sm:$0xff]  ;;  %v2257_v7 = vld [vmem:[%s11143_s28 + $0x1c70] sm:$0xff]  ;;  %2254 = vst [vmem:[%s11151_s29 + $0xe28] sm:$0xff] %v2253_v5 }
  0xf5   : > { %2256 = vst [vmem:[%s11151_s29 + $0xe30] sm:$0xff] %v2255_v6  ;;  %2258 = vst [vmem:[%s11151_s29 + $0xe38] sm:$0xff] %v2257_v7  ;;  %v2259_v8 = vld [vmem:[%s11143_s28 + $0x1c80] sm:$0xff]  ;;  %v2261_v9 = vld [vmem:[%s11143_s28 + $0x1c90] sm:$0xff] }
  0xf6   : > { %v2263_v10 = vld [vmem:[%s11143_s28 + $0x1ca0] sm:$0xff]  ;;  %2260 = vst [vmem:[%s11151_s29 + $0xe40] sm:$0xff] %v2259_v8  ;;  %2262 = vst [vmem:[%s11151_s29 + $0xe48] sm:$0xff] %v2261_v9  ;;  %v2265_v11 = vld [vmem:[%s11143_s28 + $0x1cb0] sm:$0xff] }
  0xf7   : > { %2264 = vst [vmem:[%s11151_s29 + $0xe50] sm:$0xff] %v2263_v10  ;;  %v2267_v12 = vld [vmem:[%s11143_s28 + $0x1cc0] sm:$0xff]  ;;  %v2269_v13 = vld [vmem:[%s11143_s28 + $0x1cd0] sm:$0xff]  ;;  %2266 = vst [vmem:[%s11151_s29 + $0xe58] sm:$0xff] %v2265_v11 }
  0xf8   : > { %2268 = vst [vmem:[%s11151_s29 + $0xe60] sm:$0xff] %v2267_v12  ;;  %2270 = vst [vmem:[%s11151_s29 + $0xe68] sm:$0xff] %v2269_v13  ;;  %v2271_v14 = vld [vmem:[%s11143_s28 + $0x1ce0] sm:$0xff]  ;;  %v2273_v15 = vld [vmem:[%s11143_s28 + $0x1cf0] sm:$0xff] }
  0xf9   : > { %v2275_v16 = vld [vmem:[%s11143_s28 + $0x1d00] sm:$0xff]  ;;  %2272 = vst [vmem:[%s11151_s29 + $0xe70] sm:$0xff] %v2271_v14  ;;  %2274 = vst [vmem:[%s11151_s29 + $0xe78] sm:$0xff] %v2273_v15  ;;  %v2277_v17 = vld [vmem:[%s11143_s28 + $0x1d10] sm:$0xff] }
  0xfa   : > { %2276 = vst [vmem:[%s11151_s29 + $0xe80] sm:$0xff] %v2275_v16  ;;  %v2279_v18 = vld [vmem:[%s11143_s28 + $0x1d20] sm:$0xff]  ;;  %v2281_v19 = vld [vmem:[%s11143_s28 + $0x1d30] sm:$0xff]  ;;  %2278 = vst [vmem:[%s11151_s29 + $0xe88] sm:$0xff] %v2277_v17 }
  0xfb   : > { %2280 = vst [vmem:[%s11151_s29 + $0xe90] sm:$0xff] %v2279_v18  ;;  %2282 = vst [vmem:[%s11151_s29 + $0xe98] sm:$0xff] %v2281_v19  ;;  %v2283_v20 = vld [vmem:[%s11143_s28 + $0x1d40] sm:$0xff]  ;;  %v2285_v21 = vld [vmem:[%s11143_s28 + $0x1d50] sm:$0xff] }
  0xfc   : > { %v2287_v22 = vld [vmem:[%s11143_s28 + $0x1d60] sm:$0xff]  ;;  %2284 = vst [vmem:[%s11151_s29 + $0xea0] sm:$0xff] %v2283_v20  ;;  %2286 = vst [vmem:[%s11151_s29 + $0xea8] sm:$0xff] %v2285_v21  ;;  %v2289_v23 = vld [vmem:[%s11143_s28 + $0x1d70] sm:$0xff] }
  0xfd   : > { %2288 = vst [vmem:[%s11151_s29 + $0xeb0] sm:$0xff] %v2287_v22  ;;  %v2291_v24 = vld [vmem:[%s11143_s28 + $0x1d80] sm:$0xff]  ;;  %v2293_v25 = vld [vmem:[%s11143_s28 + $0x1d90] sm:$0xff]  ;;  %2290 = vst [vmem:[%s11151_s29 + $0xeb8] sm:$0xff] %v2289_v23 }
  0xfe   : > { %2292 = vst [vmem:[%s11151_s29 + $0xec0] sm:$0xff] %v2291_v24  ;;  %2294 = vst [vmem:[%s11151_s29 + $0xec8] sm:$0xff] %v2293_v25  ;;  %v2295_v26 = vld [vmem:[%s11143_s28 + $0x1da0] sm:$0xff]  ;;  %v2297_v27 = vld [vmem:[%s11143_s28 + $0x1db0] sm:$0xff] }
  0xff   : > { %v2299_v28 = vld [vmem:[%s11143_s28 + $0x1dc0] sm:$0xff]  ;;  %2296 = vst [vmem:[%s11151_s29 + $0xed0] sm:$0xff] %v2295_v26  ;;  %2298 = vst [vmem:[%s11151_s29 + $0xed8] sm:$0xff] %v2297_v27  ;;  %v2301_v29 = vld [vmem:[%s11143_s28 + $0x1dd0] sm:$0xff] }
 0x100   : > { %2300 = vst [vmem:[%s11151_s29 + $0xee0] sm:$0xff] %v2299_v28  ;;  %v2303_v30 = vld [vmem:[%s11143_s28 + $0x1de0] sm:$0xff]  ;;  %v2305_v31 = vld [vmem:[%s11143_s28 + $0x1df0] sm:$0xff]  ;;  %2302 = vst [vmem:[%s11151_s29 + $0xee8] sm:$0xff] %v2301_v29 }
 0x101   : > { %2304 = vst [vmem:[%s11151_s29 + $0xef0] sm:$0xff] %v2303_v30  ;;  %2306 = vst [vmem:[%s11151_s29 + $0xef8] sm:$0xff] %v2305_v31  ;;  %v2307_v32 = vld [vmem:[%s11143_s28 + $0x1e00] sm:$0xff]  ;;  %v2309_v33 = vld [vmem:[%s11143_s28 + $0x1e10] sm:$0xff] }
 0x102   : > { %v2311_v34 = vld [vmem:[%s11143_s28 + $0x1e20] sm:$0xff]  ;;  %2308 = vst [vmem:[%s11151_s29 + $0xf00] sm:$0xff] %v2307_v32  ;;  %2310 = vst [vmem:[%s11151_s29 + $0xf08] sm:$0xff] %v2309_v33  ;;  %v2313_v35 = vld [vmem:[%s11143_s28 + $0x1e30] sm:$0xff] }
 0x103   : > { %2312 = vst [vmem:[%s11151_s29 + $0xf10] sm:$0xff] %v2311_v34  ;;  %v2315_v36 = vld [vmem:[%s11143_s28 + $0x1e40] sm:$0xff]  ;;  %v2317_v37 = vld [vmem:[%s11143_s28 + $0x1e50] sm:$0xff]  ;;  %2314 = vst [vmem:[%s11151_s29 + $0xf18] sm:$0xff] %v2313_v35 }
 0x104   : > { %2316 = vst [vmem:[%s11151_s29 + $0xf20] sm:$0xff] %v2315_v36  ;;  %2318 = vst [vmem:[%s11151_s29 + $0xf28] sm:$0xff] %v2317_v37  ;;  %v2319_v38 = vld [vmem:[%s11143_s28 + $0x1e60] sm:$0xff]  ;;  %v2321_v39 = vld [vmem:[%s11143_s28 + $0x1e70] sm:$0xff] }
 0x105   : > { %v2323_v40 = vld [vmem:[%s11143_s28 + $0x1e80] sm:$0xff]  ;;  %2320 = vst [vmem:[%s11151_s29 + $0xf30] sm:$0xff] %v2319_v38  ;;  %2322 = vst [vmem:[%s11151_s29 + $0xf38] sm:$0xff] %v2321_v39  ;;  %v2325_v41 = vld [vmem:[%s11143_s28 + $0x1e90] sm:$0xff] }
 0x106   : > { %2324 = vst [vmem:[%s11151_s29 + $0xf40] sm:$0xff] %v2323_v40  ;;  %v2327_v42 = vld [vmem:[%s11143_s28 + $0x1ea0] sm:$0xff]  ;;  %v2329_v43 = vld [vmem:[%s11143_s28 + $0x1eb0] sm:$0xff]  ;;  %2326 = vst [vmem:[%s11151_s29 + $0xf48] sm:$0xff] %v2325_v41 }
 0x107   : > { %2328 = vst [vmem:[%s11151_s29 + $0xf50] sm:$0xff] %v2327_v42  ;;  %2330 = vst [vmem:[%s11151_s29 + $0xf58] sm:$0xff] %v2329_v43  ;;  %v2331_v44 = vld [vmem:[%s11143_s28 + $0x1ec0] sm:$0xff]  ;;  %v2333_v45 = vld [vmem:[%s11143_s28 + $0x1ed0] sm:$0xff] }
 0x108   : > { %v2335_v46 = vld [vmem:[%s11143_s28 + $0x1ee0] sm:$0xff]  ;;  %2332 = vst [vmem:[%s11151_s29 + $0xf60] sm:$0xff] %v2331_v44  ;;  %2334 = vst [vmem:[%s11151_s29 + $0xf68] sm:$0xff] %v2333_v45  ;;  %v2337_v47 = vld [vmem:[%s11143_s28 + $0x1ef0] sm:$0xff] }
 0x109   : > { %2336 = vst [vmem:[%s11151_s29 + $0xf70] sm:$0xff] %v2335_v46  ;;  %v2339_v48 = vld [vmem:[%s11143_s28 + $0x1f00] sm:$0xff]  ;;  %v2341_v49 = vld [vmem:[%s11143_s28 + $0x1f10] sm:$0xff]  ;;  %2338 = vst [vmem:[%s11151_s29 + $0xf78] sm:$0xff] %v2337_v47 }
 0x10a   : > { %2340 = vst [vmem:[%s11151_s29 + $0xf80] sm:$0xff] %v2339_v48  ;;  %2342 = vst [vmem:[%s11151_s29 + $0xf88] sm:$0xff] %v2341_v49  ;;  %v2343_v50 = vld [vmem:[%s11143_s28 + $0x1f20] sm:$0xff]  ;;  %v2345_v51 = vld [vmem:[%s11143_s28 + $0x1f30] sm:$0xff] }
 0x10b   : > { %v2347_v52 = vld [vmem:[%s11143_s28 + $0x1f40] sm:$0xff]  ;;  %2344 = vst [vmem:[%s11151_s29 + $0xf90] sm:$0xff] %v2343_v50  ;;  %2346 = vst [vmem:[%s11151_s29 + $0xf98] sm:$0xff] %v2345_v51  ;;  %v2349_v53 = vld [vmem:[%s11143_s28 + $0x1f50] sm:$0xff] }
 0x10c   : > { %2348 = vst [vmem:[%s11151_s29 + $0xfa0] sm:$0xff] %v2347_v52  ;;  %v2351_v54 = vld [vmem:[%s11143_s28 + $0x1f60] sm:$0xff]  ;;  %v2353_v55 = vld [vmem:[%s11143_s28 + $0x1f70] sm:$0xff]  ;;  %2350 = vst [vmem:[%s11151_s29 + $0xfa8] sm:$0xff] %v2349_v53 }
 0x10d   : > { %2352 = vst [vmem:[%s11151_s29 + $0xfb0] sm:$0xff] %v2351_v54  ;;  %2354 = vst [vmem:[%s11151_s29 + $0xfb8] sm:$0xff] %v2353_v55  ;;  %v2355_v56 = vld [vmem:[%s11143_s28 + $0x1f80] sm:$0xff]  ;;  %v2357_v57 = vld [vmem:[%s11143_s28 + $0x1f90] sm:$0xff] }
 0x10e   : > { %v2359_v58 = vld [vmem:[%s11143_s28 + $0x1fa0] sm:$0xff]  ;;  %2356 = vst [vmem:[%s11151_s29 + $0xfc0] sm:$0xff] %v2355_v56  ;;  %2358 = vst [vmem:[%s11151_s29 + $0xfc8] sm:$0xff] %v2357_v57  ;;  %v2361_v59 = vld [vmem:[%s11143_s28 + $0x1fb0] sm:$0xff] }
 0x10f   : > { %2360 = vst [vmem:[%s11151_s29 + $0xfd0] sm:$0xff] %v2359_v58  ;;  %v2363_v60 = vld [vmem:[%s11143_s28 + $0x1fc0] sm:$0xff]  ;;  %v2365_v61 = vld [vmem:[%s11143_s28 + $0x1fd0] sm:$0xff]  ;;  %2362 = vst [vmem:[%s11151_s29 + $0xfd8] sm:$0xff] %v2361_v59 }
 0x110   : > { %2364 = vst [vmem:[%s11151_s29 + $0xfe0] sm:$0xff] %v2363_v60  ;;  %2366 = vst [vmem:[%s11151_s29 + $0xfe8] sm:$0xff] %v2365_v61  ;;  %v2367_v62 = vld [vmem:[%s11143_s28 + $0x1fe0] sm:$0xff]  ;;  %v2369_v63 = vld [vmem:[%s11143_s28 + $0x1ff0] sm:$0xff] }
 0x111   : > { %v2371_v0 = vld [vmem:[%s11143_s28 + $0x2000] sm:$0xff]  ;;  %2368 = vst [vmem:[%s11151_s29 + $0xff0] sm:$0xff] %v2367_v62  ;;  %2370 = vst [vmem:[%s11151_s29 + $0xff8] sm:$0xff] %v2369_v63  ;;  %v2373_v1 = vld [vmem:[%s11143_s28 + $0x2010] sm:$0xff] }
 0x112   : > { %2372 = vst [vmem:[%s11151_s29 + $0x1000] sm:$0xff] %v2371_v0  ;;  %v2375_v2 = vld [vmem:[%s11143_s28 + $0x2020] sm:$0xff]  ;;  %v2377_v3 = vld [vmem:[%s11143_s28 + $0x2030] sm:$0xff]  ;;  %2374 = vst [vmem:[%s11151_s29 + $0x1008] sm:$0xff] %v2373_v1 }
 0x113   : > { %2376 = vst [vmem:[%s11151_s29 + $0x1010] sm:$0xff] %v2375_v2  ;;  %2378 = vst [vmem:[%s11151_s29 + $0x1018] sm:$0xff] %v2377_v3  ;;  %v2379_v4 = vld [vmem:[%s11143_s28 + $0x2040] sm:$0xff]  ;;  %v2381_v5 = vld [vmem:[%s11143_s28 + $0x2050] sm:$0xff] }
 0x114   : > { %v2383_v6 = vld [vmem:[%s11143_s28 + $0x2060] sm:$0xff]  ;;  %2380 = vst [vmem:[%s11151_s29 + $0x1020] sm:$0xff] %v2379_v4  ;;  %2382 = vst [vmem:[%s11151_s29 + $0x1028] sm:$0xff] %v2381_v5  ;;  %v2385_v7 = vld [vmem:[%s11143_s28 + $0x2070] sm:$0xff] }
 0x115   : > { %2384 = vst [vmem:[%s11151_s29 + $0x1030] sm:$0xff] %v2383_v6  ;;  %v2387_v8 = vld [vmem:[%s11143_s28 + $0x2080] sm:$0xff]  ;;  %v2389_v9 = vld [vmem:[%s11143_s28 + $0x2090] sm:$0xff]  ;;  %2386 = vst [vmem:[%s11151_s29 + $0x1038] sm:$0xff] %v2385_v7 }
 0x116   : > { %2388 = vst [vmem:[%s11151_s29 + $0x1040] sm:$0xff] %v2387_v8  ;;  %2390 = vst [vmem:[%s11151_s29 + $0x1048] sm:$0xff] %v2389_v9  ;;  %v2391_v10 = vld [vmem:[%s11143_s28 + $0x20a0] sm:$0xff]  ;;  %v2393_v11 = vld [vmem:[%s11143_s28 + $0x20b0] sm:$0xff] }
 0x117   : > { %v2395_v12 = vld [vmem:[%s11143_s28 + $0x20c0] sm:$0xff]  ;;  %2392 = vst [vmem:[%s11151_s29 + $0x1050] sm:$0xff] %v2391_v10  ;;  %2394 = vst [vmem:[%s11151_s29 + $0x1058] sm:$0xff] %v2393_v11  ;;  %v2397_v13 = vld [vmem:[%s11143_s28 + $0x20d0] sm:$0xff] }
 0x118   : > { %2396 = vst [vmem:[%s11151_s29 + $0x1060] sm:$0xff] %v2395_v12  ;;  %v2399_v14 = vld [vmem:[%s11143_s28 + $0x20e0] sm:$0xff]  ;;  %v2401_v15 = vld [vmem:[%s11143_s28 + $0x20f0] sm:$0xff]  ;;  %2398 = vst [vmem:[%s11151_s29 + $0x1068] sm:$0xff] %v2397_v13 }
 0x119   : > { %2400 = vst [vmem:[%s11151_s29 + $0x1070] sm:$0xff] %v2399_v14  ;;  %2402 = vst [vmem:[%s11151_s29 + $0x1078] sm:$0xff] %v2401_v15  ;;  %v2403_v16 = vld [vmem:[%s11143_s28 + $0x2100] sm:$0xff]  ;;  %v2405_v17 = vld [vmem:[%s11143_s28 + $0x2110] sm:$0xff] }
 0x11a   : > { %v2407_v18 = vld [vmem:[%s11143_s28 + $0x2120] sm:$0xff]  ;;  %2404 = vst [vmem:[%s11151_s29 + $0x1080] sm:$0xff] %v2403_v16  ;;  %2406 = vst [vmem:[%s11151_s29 + $0x1088] sm:$0xff] %v2405_v17  ;;  %v2409_v19 = vld [vmem:[%s11143_s28 + $0x2130] sm:$0xff] }
 0x11b   : > { %2408 = vst [vmem:[%s11151_s29 + $0x1090] sm:$0xff] %v2407_v18  ;;  %v2411_v20 = vld [vmem:[%s11143_s28 + $0x2140] sm:$0xff]  ;;  %v2413_v21 = vld [vmem:[%s11143_s28 + $0x2150] sm:$0xff]  ;;  %2410 = vst [vmem:[%s11151_s29 + $0x1098] sm:$0xff] %v2409_v19 }
 0x11c   : > { %2412 = vst [vmem:[%s11151_s29 + $0x10a0] sm:$0xff] %v2411_v20  ;;  %2414 = vst [vmem:[%s11151_s29 + $0x10a8] sm:$0xff] %v2413_v21  ;;  %v2415_v22 = vld [vmem:[%s11143_s28 + $0x2160] sm:$0xff]  ;;  %v2417_v23 = vld [vmem:[%s11143_s28 + $0x2170] sm:$0xff] }
 0x11d   : > { %v2419_v24 = vld [vmem:[%s11143_s28 + $0x2180] sm:$0xff]  ;;  %2416 = vst [vmem:[%s11151_s29 + $0x10b0] sm:$0xff] %v2415_v22  ;;  %2418 = vst [vmem:[%s11151_s29 + $0x10b8] sm:$0xff] %v2417_v23  ;;  %v2421_v25 = vld [vmem:[%s11143_s28 + $0x2190] sm:$0xff] }
 0x11e   : > { %2420 = vst [vmem:[%s11151_s29 + $0x10c0] sm:$0xff] %v2419_v24  ;;  %v2423_v26 = vld [vmem:[%s11143_s28 + $0x21a0] sm:$0xff]  ;;  %v2425_v27 = vld [vmem:[%s11143_s28 + $0x21b0] sm:$0xff]  ;;  %2422 = vst [vmem:[%s11151_s29 + $0x10c8] sm:$0xff] %v2421_v25 }
 0x11f   : > { %2424 = vst [vmem:[%s11151_s29 + $0x10d0] sm:$0xff] %v2423_v26  ;;  %2426 = vst [vmem:[%s11151_s29 + $0x10d8] sm:$0xff] %v2425_v27  ;;  %v2427_v28 = vld [vmem:[%s11143_s28 + $0x21c0] sm:$0xff]  ;;  %v2429_v29 = vld [vmem:[%s11143_s28 + $0x21d0] sm:$0xff] }
 0x120   : > { %v2431_v30 = vld [vmem:[%s11143_s28 + $0x21e0] sm:$0xff]  ;;  %2428 = vst [vmem:[%s11151_s29 + $0x10e0] sm:$0xff] %v2427_v28  ;;  %2430 = vst [vmem:[%s11151_s29 + $0x10e8] sm:$0xff] %v2429_v29  ;;  %v2433_v31 = vld [vmem:[%s11143_s28 + $0x21f0] sm:$0xff] }
 0x121   : > { %2432 = vst [vmem:[%s11151_s29 + $0x10f0] sm:$0xff] %v2431_v30  ;;  %v2435_v32 = vld [vmem:[%s11143_s28 + $0x2200] sm:$0xff]  ;;  %v2437_v33 = vld [vmem:[%s11143_s28 + $0x2210] sm:$0xff]  ;;  %2434 = vst [vmem:[%s11151_s29 + $0x10f8] sm:$0xff] %v2433_v31 }
 0x122   : > { %2436 = vst [vmem:[%s11151_s29 + $0x1100] sm:$0xff] %v2435_v32  ;;  %2438 = vst [vmem:[%s11151_s29 + $0x1108] sm:$0xff] %v2437_v33  ;;  %v2439_v34 = vld [vmem:[%s11143_s28 + $0x2220] sm:$0xff]  ;;  %v2441_v35 = vld [vmem:[%s11143_s28 + $0x2230] sm:$0xff] }
 0x123   : > { %v2443_v36 = vld [vmem:[%s11143_s28 + $0x2240] sm:$0xff]  ;;  %2440 = vst [vmem:[%s11151_s29 + $0x1110] sm:$0xff] %v2439_v34  ;;  %2442 = vst [vmem:[%s11151_s29 + $0x1118] sm:$0xff] %v2441_v35  ;;  %v2445_v37 = vld [vmem:[%s11143_s28 + $0x2250] sm:$0xff] }
 0x124   : > { %2444 = vst [vmem:[%s11151_s29 + $0x1120] sm:$0xff] %v2443_v36  ;;  %v2447_v38 = vld [vmem:[%s11143_s28 + $0x2260] sm:$0xff]  ;;  %v2449_v39 = vld [vmem:[%s11143_s28 + $0x2270] sm:$0xff]  ;;  %2446 = vst [vmem:[%s11151_s29 + $0x1128] sm:$0xff] %v2445_v37 }
 0x125   : > { %2448 = vst [vmem:[%s11151_s29 + $0x1130] sm:$0xff] %v2447_v38  ;;  %2450 = vst [vmem:[%s11151_s29 + $0x1138] sm:$0xff] %v2449_v39  ;;  %v2451_v40 = vld [vmem:[%s11143_s28 + $0x2280] sm:$0xff]  ;;  %v2453_v41 = vld [vmem:[%s11143_s28 + $0x2290] sm:$0xff] }
 0x126   : > { %v2455_v42 = vld [vmem:[%s11143_s28 + $0x22a0] sm:$0xff]  ;;  %2452 = vst [vmem:[%s11151_s29 + $0x1140] sm:$0xff] %v2451_v40  ;;  %2454 = vst [vmem:[%s11151_s29 + $0x1148] sm:$0xff] %v2453_v41  ;;  %v2457_v43 = vld [vmem:[%s11143_s28 + $0x22b0] sm:$0xff] }
 0x127   : > { %2456 = vst [vmem:[%s11151_s29 + $0x1150] sm:$0xff] %v2455_v42  ;;  %v2459_v44 = vld [vmem:[%s11143_s28 + $0x22c0] sm:$0xff]  ;;  %v2461_v45 = vld [vmem:[%s11143_s28 + $0x22d0] sm:$0xff]  ;;  %2458 = vst [vmem:[%s11151_s29 + $0x1158] sm:$0xff] %v2457_v43 }
 0x128   : > { %2460 = vst [vmem:[%s11151_s29 + $0x1160] sm:$0xff] %v2459_v44  ;;  %2462 = vst [vmem:[%s11151_s29 + $0x1168] sm:$0xff] %v2461_v45  ;;  %v2463_v46 = vld [vmem:[%s11143_s28 + $0x22e0] sm:$0xff]  ;;  %v2465_v47 = vld [vmem:[%s11143_s28 + $0x22f0] sm:$0xff] }
 0x129   : > { %v2467_v48 = vld [vmem:[%s11143_s28 + $0x2300] sm:$0xff]  ;;  %2464 = vst [vmem:[%s11151_s29 + $0x1170] sm:$0xff] %v2463_v46  ;;  %2466 = vst [vmem:[%s11151_s29 + $0x1178] sm:$0xff] %v2465_v47  ;;  %v2469_v49 = vld [vmem:[%s11143_s28 + $0x2310] sm:$0xff] }
 0x12a   : > { %2468 = vst [vmem:[%s11151_s29 + $0x1180] sm:$0xff] %v2467_v48  ;;  %v2471_v50 = vld [vmem:[%s11143_s28 + $0x2320] sm:$0xff]  ;;  %v2473_v51 = vld [vmem:[%s11143_s28 + $0x2330] sm:$0xff]  ;;  %2470 = vst [vmem:[%s11151_s29 + $0x1188] sm:$0xff] %v2469_v49 }
 0x12b   : > { %2472 = vst [vmem:[%s11151_s29 + $0x1190] sm:$0xff] %v2471_v50  ;;  %2474 = vst [vmem:[%s11151_s29 + $0x1198] sm:$0xff] %v2473_v51  ;;  %v2475_v52 = vld [vmem:[%s11143_s28 + $0x2340] sm:$0xff]  ;;  %v2477_v53 = vld [vmem:[%s11143_s28 + $0x2350] sm:$0xff] }
 0x12c   : > { %v2479_v54 = vld [vmem:[%s11143_s28 + $0x2360] sm:$0xff]  ;;  %2476 = vst [vmem:[%s11151_s29 + $0x11a0] sm:$0xff] %v2475_v52  ;;  %2478 = vst [vmem:[%s11151_s29 + $0x11a8] sm:$0xff] %v2477_v53  ;;  %v2481_v55 = vld [vmem:[%s11143_s28 + $0x2370] sm:$0xff] }
 0x12d   : > { %2480 = vst [vmem:[%s11151_s29 + $0x11b0] sm:$0xff] %v2479_v54  ;;  %v2483_v56 = vld [vmem:[%s11143_s28 + $0x2380] sm:$0xff]  ;;  %v2485_v57 = vld [vmem:[%s11143_s28 + $0x2390] sm:$0xff]  ;;  %2482 = vst [vmem:[%s11151_s29 + $0x11b8] sm:$0xff] %v2481_v55 }
 0x12e   : > { %2484 = vst [vmem:[%s11151_s29 + $0x11c0] sm:$0xff] %v2483_v56  ;;  %2486 = vst [vmem:[%s11151_s29 + $0x11c8] sm:$0xff] %v2485_v57  ;;  %v2487_v58 = vld [vmem:[%s11143_s28 + $0x23a0] sm:$0xff]  ;;  %v2489_v59 = vld [vmem:[%s11143_s28 + $0x23b0] sm:$0xff] }
 0x12f   : > { %v2491_v60 = vld [vmem:[%s11143_s28 + $0x23c0] sm:$0xff]  ;;  %2488 = vst [vmem:[%s11151_s29 + $0x11d0] sm:$0xff] %v2487_v58  ;;  %2490 = vst [vmem:[%s11151_s29 + $0x11d8] sm:$0xff] %v2489_v59  ;;  %v2493_v61 = vld [vmem:[%s11143_s28 + $0x23d0] sm:$0xff] }
 0x130   : > { %2492 = vst [vmem:[%s11151_s29 + $0x11e0] sm:$0xff] %v2491_v60  ;;  %v2495_v62 = vld [vmem:[%s11143_s28 + $0x23e0] sm:$0xff]  ;;  %v2497_v63 = vld [vmem:[%s11143_s28 + $0x23f0] sm:$0xff]  ;;  %2494 = vst [vmem:[%s11151_s29 + $0x11e8] sm:$0xff] %v2493_v61 }
 0x131   : > { %2496 = vst [vmem:[%s11151_s29 + $0x11f0] sm:$0xff] %v2495_v62  ;;  %2498 = vst [vmem:[%s11151_s29 + $0x11f8] sm:$0xff] %v2497_v63 }
 0x132 PF: > { %p9512_p5 = scmp.ge.s32.totalorder %s11081_s17, 1  ;;  %p4859_p6 = scmp.lt.s32.totalorder %s11081_s17, 3 }
 0x134   : > { %p4860_p7 = pnand %p9512_p5, %p4859_p6 }
 0x135   : > { %s4866_s30 = sand.u32 (!%p4860_p7), 1, %s11073_s15   ;;  %v5504_v0 = vlaneseq (!%p4860_p7)  ;;  %v11083_v1 = vmov (!%p4860_p7), 1966171168   ;;  %v12307_v4 = vld [vmem:[%s13105_s0] sm:$0xff] (!%p4860_p7)  ;;  %v12312_v6 = vld [vmem:[%s13105_s0 + $0x10] sm:$0xff] (!%p4860_p7)  ;;  %s9513_s21 = sshll.u32 (!%p4860_p7), %s9506_s18, 1 }
 0x136   : > { %4863 = sbr.rel (%p4860_p7) target bundleno = 1116 (0x45c), region = 84  ;;  %v5502_v2 = vunpack.c.l.s4 (!%p4860_p7), %v11083_v1  ;;  %p4900_p8 = scmp.lt.s32.totalorder (!%p4860_p7), %s9513_s21, 3 }
 0x137   : > { %s10165_s5 = smul.u32 (!%p4860_p7), 4608, %s4866_s30  ;;  %v12302_v3 = vshrl.u32 (!%p4860_p7), %v5504_v0, 7 }
 0x138   : > { %v5503_v5 = vunpack.c.0.s8 (!%p4860_p7), %v5502_v2 }
 0x139   : > { %s12314_s10 = scalar_lea.vmem (!%p4860_p7), [#allocation2], %s10165_s5 }
 0x13a   : > { %v10191_v7 = vld [vmem:[%s12314_s10 + $0x4] ss:$8 sps:$4 sm:$0xff] (!%p4860_p7)   ;;  %v12319_v9 = vsub.s32 (!%p4860_p7), %v5503_v5, %v12302_v3  ;;  %v10195_v10 = vld [vmem:[%s12314_s10] ss:$8 sps:$4 sm:$0xff] (!%p4860_p7)   ;;  %v10197_v12 = vld [vmem:[%s12314_s10 + $0x14] ss:$8 sps:$4 sm:$0xff] (!%p4860_p7)  }
 0x13b   : > { %v10193_v8 = vld [vmem:[%s12314_s10 + $0x904] ss:$8 sps:$4 sm:$0xff] (!%p4860_p7)   ;;  %8636 = vmatprep.subr.bf16.mxu1 (!%p4860_p7), %v10191_v7  ;;  %v10196_v11 = vld [vmem:[%s12314_s10 + $0x900] ss:$8 sps:$4 sm:$0xff] (!%p4860_p7)   ;;  %v10199_v15 = vld [vmem:[%s12314_s10 + $0x914] ss:$8 sps:$4 sm:$0xff] (!%p4860_p7)  }
 0x13c   : > { %9005 = vmatprep.subr.bf16.mxu0 (!%p4860_p7), %v10193_v8  ;;  %v12326_v13 = vrot.slane (!%p4860_p7), %v12307_v4, %v12319_v9  ;;  %v12330_v14 = vrot.slane (!%p4860_p7), %v12312_v6, %v12319_v9  ;;  %8637 = vmatpush1.bf16.msra.mxu1 (!%p4860_p7), %v10195_v10  ;;  %v10201_v16 = vld [vmem:[%s12314_s10 + $0x10] ss:$8 sps:$4 sm:$0xff] (!%p4860_p7)   ;;  %v10203_v20 = vld [vmem:[%s12314_s10 + $0x24] ss:$8 sps:$4 sm:$0xff] (!%p4860_p7)   ;;  %v10207_v22 = vld [vmem:[%s12314_s10 + $0x20] ss:$8 sps:$4 sm:$0xff] (!%p4860_p7)  }
 0x13d   : > { %9006 = vmatpush1.bf16.msra.mxu0 %v10196_v11  ;;  %8638 = vmatprep.subr.bf16.mxu1 %v10197_v12  ;;  %v10202_v17 = vld [vmem:[%s12314_s10 + $0x910] ss:$8 sps:$4 sm:$0xff]   ;;  %v10205_v21 = vld [vmem:[%s12314_s10 + $0x924] ss:$8 sps:$4 sm:$0xff]   ;;  %v10208_v23 = vld [vmem:[%s12314_s10 + $0x920] ss:$8 sps:$4 sm:$0xff]  }
 0x13e   : > { %v5515_v18 = vcombine.high %v12326_v13, %v12326_v13  ;;  %v5613_v19 = vcombine.high %v12330_v14, %v12330_v14  ;;  %9007 = vmatprep.subr.bf16.mxu0 %v10199_v15  ;;  %v10209_v26 = vld [vmem:[%s12314_s10 + $0x34] ss:$8 sps:$4 sm:$0xff]   ;;  %v10213_v29 = vld [vmem:[%s12314_s10 + $0x30] ss:$8 sps:$4 sm:$0xff]   ;;  %v10215_v31 = vld [vmem:[%s12314_s10 + $0x44] ss:$8 sps:$4 sm:$0xff]   ;;  %v5598_v15 = vcombine.high %v12312_v6, %v12312_v6  ;;  %v12411_v6 = vrot.slane %v12330_v14, %v12319_v9 }
 0x13f   : > { %v10211_v27 = vld [vmem:[%s12314_s10 + $0x934] ss:$8 sps:$4 sm:$0xff]   ;;  %v10214_v30 = vld [vmem:[%s12314_s10 + $0x930] ss:$8 sps:$4 sm:$0xff]   ;;  %v10217_v32 = vld [vmem:[%s12314_s10 + $0x944] ss:$8 sps:$4 sm:$0xff]  }
 0x140   : > { %v12344_v24 = vrot.slane %v5515_v18, %v12319_v9  ;;  %v12347_v25 = vrot.slane %v5613_v19, %v12319_v9  ;;  %8639 = vmatpush1.bf16.msra.mxu1 %v10201_v16  ;;  %v10219_v33 = vld [vmem:[%s12314_s10 + $0x40] ss:$8 sps:$4 sm:$0xff]   ;;  %v10221_v35 = vld [vmem:[%s12314_s10 + $0x54] ss:$8 sps:$4 sm:$0xff]   ;;  %v10225_v37 = vld [vmem:[%s12314_s10 + $0x50] ss:$8 sps:$4 sm:$0xff]   ;;  %v5643_v14 = vcombine.high %v12411_v6, %v12411_v6 }
 0x141   : > { %9008 = vmatpush1.bf16.msra.mxu0 %v10202_v17  ;;  %8640 = vmatprep.subr.bf16.mxu1 %v10203_v20  ;;  %v10220_v34 = vld [vmem:[%s12314_s10 + $0x940] ss:$8 sps:$4 sm:$0xff]   ;;  %v10223_v36 = vld [vmem:[%s12314_s10 + $0x954] ss:$8 sps:$4 sm:$0xff]   ;;  %v10226_v38 = vld [vmem:[%s12314_s10 + $0x950] ss:$8 sps:$4 sm:$0xff]   ;;  %v12405_v20 = vrot.slane %v5598_v15, %v12319_v9 }
 0x142   : > { %9009 = vmatprep.subr.bf16.mxu0 %v10205_v21  ;;  %v5645_v28 = vcombine.high %v12347_v25, %v12347_v25  ;;  %8668 = vmatprep.mubr.bf16.mxu1 %v12344_v24  ;;  %v10227_v39 = vld [vmem:[%s12314_s10 + $0x64] ss:$8 sps:$4 sm:$0xff]   ;;  %v10231_v41 = vld [vmem:[%s12314_s10 + $0x60] ss:$8 sps:$4 sm:$0xff]   ;;  %v10233_v43 = vld [vmem:[%s12314_s10 + $0x74] ss:$8 sps:$4 sm:$0xff]  }
 0x143   : > { %v10229_v40 = vld [vmem:[%s12314_s10 + $0x964] ss:$8 sps:$4 sm:$0xff]   ;;  %v10232_v42 = vld [vmem:[%s12314_s10 + $0x960] ss:$8 sps:$4 sm:$0xff]   ;;  %v10235_v44 = vld [vmem:[%s12314_s10 + $0x974] ss:$8 sps:$4 sm:$0xff]  }
 0x144   : > { %9037 = vmatprep.mubr.bf16.mxu0 %v5645_v28  ;;  %8641 = vmatpush1.bf16.msra.mxu1 %v10207_v22  ;;  %v10237_v45 = vld [vmem:[%s12314_s10 + $0x70] ss:$8 sps:$4 sm:$0xff]   ;;  %v10239_v47 = vld [vmem:[%s12314_s10 + $0x84] ss:$8 sps:$4 sm:$0xff]   ;;  %v10243_v49 = vld [vmem:[%s12314_s10 + $0x80] ss:$8 sps:$4 sm:$0xff]  }
 0x145   : > { %9010 = vmatpush1.bf16.msra.mxu0 %v10208_v23  ;;  %8642 = vmatprep.subr.bf16.mxu1 %v10209_v26  ;;  %v10238_v46 = vld [vmem:[%s12314_s10 + $0x970] ss:$8 sps:$4 sm:$0xff]   ;;  %v10241_v48 = vld [vmem:[%s12314_s10 + $0x984] ss:$8 sps:$4 sm:$0xff]   ;;  %v10244_v50 = vld [vmem:[%s12314_s10 + $0x980] ss:$8 sps:$4 sm:$0xff]  }
 0x146   : > { %9011 = vmatprep.subr.bf16.mxu0 %v10211_v27  ;;  %v10245_v51 = vld [vmem:[%s12314_s10 + $0x94] ss:$8 sps:$4 sm:$0xff]   ;;  %v10249_v53 = vld [vmem:[%s12314_s10 + $0x90] ss:$8 sps:$4 sm:$0xff]   ;;  %v10251_v55 = vld [vmem:[%s12314_s10 + $0xa4] ss:$8 sps:$4 sm:$0xff]   ;;  %v5614_v27 = vcombine.high %v12405_v20, %v12405_v20 }
 0x147   : > { %v10247_v52 = vld [vmem:[%s12314_s10 + $0x994] ss:$8 sps:$4 sm:$0xff]   ;;  %v10250_v54 = vld [vmem:[%s12314_s10 + $0x990] ss:$8 sps:$4 sm:$0xff]   ;;  %v10253_v56 = vld [vmem:[%s12314_s10 + $0x9a4] ss:$8 sps:$4 sm:$0xff]  }
 0x148   : > { %8643 = vmatpush1.bf16.msra.mxu1 %v10213_v29  ;;  %v10255_v57 = vld [vmem:[%s12314_s10 + $0xa0] ss:$8 sps:$4 sm:$0xff]   ;;  %v10257_v59 = vld [vmem:[%s12314_s10 + $0xb4] ss:$8 sps:$4 sm:$0xff]   ;;  %v10261_v61 = vld [vmem:[%s12314_s10 + $0xb0] ss:$8 sps:$4 sm:$0xff]  }
 0x149   : > { %9012 = vmatpush1.bf16.msra.mxu0 %v10214_v30  ;;  %8644 = vmatprep.subr.bf16.mxu1 %v10215_v31  ;;  %v10256_v58 = vld [vmem:[%s12314_s10 + $0x9a0] ss:$8 sps:$4 sm:$0xff]   ;;  %v10259_v60 = vld [vmem:[%s12314_s10 + $0x9b4] ss:$8 sps:$4 sm:$0xff]   ;;  %v10262_v62 = vld [vmem:[%s12314_s10 + $0x9b0] ss:$8 sps:$4 sm:$0xff]   ;;  %v12421_v30 = vrot.slane %v12326_v13, %v12319_v9 }
 0x14a   : > { %9013 = vmatprep.subr.bf16.mxu0 %v10217_v32  ;;  %v10263_v63 = vld [vmem:[%s12314_s10 + $0xc4] ss:$8 sps:$4 sm:$0xff]   ;;  %v10267_v1 = vld [vmem:[%s12314_s10 + $0xc0] ss:$8 sps:$4 sm:$0xff]   ;;  %v10269_v5 = vld [vmem:[%s12314_s10 + $0xd4] ss:$8 sps:$4 sm:$0xff]  }
 0x14b   : > { %v10265_v0 = vld [vmem:[%s12314_s10 + $0x9c4] ss:$8 sps:$4 sm:$0xff]   ;;  %v10268_v2 = vld [vmem:[%s12314_s10 + $0x9c0] ss:$8 sps:$4 sm:$0xff]   ;;  %v10271_v7 = vld [vmem:[%s12314_s10 + $0x9d4] ss:$8 sps:$4 sm:$0xff]  }
 0x14c   : > { %8645 = vmatpush1.bf16.msra.mxu1 %v10219_v33  ;;  %v10273_v8 = vld [vmem:[%s12314_s10 + $0xd0] ss:$8 sps:$4 sm:$0xff]   ;;  %v10275_v11 = vld [vmem:[%s12314_s10 + $0xe4] ss:$8 sps:$4 sm:$0xff]   ;;  %v10279_v16 = vld [vmem:[%s12314_s10 + $0xe0] ss:$8 sps:$4 sm:$0xff]   ;;  %v5547_v33 = vcombine.high %v12344_v24, %v12344_v24 }
 0x14d   : > { %9014 = vmatpush1.bf16.msra.mxu0 %v10220_v34  ;;  %8646 = vmatprep.subr.bf16.mxu1 %v10221_v35  ;;  %v10274_v10 = vld [vmem:[%s12314_s10 + $0x9d0] ss:$8 sps:$4 sm:$0xff]   ;;  %v10277_v12 = vld [vmem:[%s12314_s10 + $0x9e4] ss:$8 sps:$4 sm:$0xff]   ;;  %v10280_v17 = vld [vmem:[%s12314_s10 + $0x9e0] ss:$8 sps:$4 sm:$0xff]   ;;  %v12430_v34 = vrot.slane %v5614_v27, %v12319_v9 }
 0x14e   : > { %9015 = vmatprep.subr.bf16.mxu0 %v10223_v36  ;;  %v10281_v18 = vld [vmem:[%s12314_s10 + $0xf4] ss:$8 sps:$4 sm:$0xff]   ;;  %v10285_v21 = vld [vmem:[%s12314_s10 + $0xf0] ss:$8 sps:$4 sm:$0xff]   ;;  %v10290_v23 = vld [vmem:[%s12314_s10 + $0x104] ss:$8 sps:$4 sm:$0xff]  }
 0x14f   : > { %v10283_v19 = vld [vmem:[%s12314_s10 + $0x9f4] ss:$8 sps:$4 sm:$0xff]   ;;  %v10286_v22 = vld [vmem:[%s12314_s10 + $0x9f0] ss:$8 sps:$4 sm:$0xff]   ;;  %v10294_v26 = vld [vmem:[%s12314_s10 + $0xa04] ss:$8 sps:$4 sm:$0xff]  }
 0x150   : > { %8647 = vmatpush1.bf16.msra.mxu1 %v10225_v37  ;;  %v10288_v28 = vld [vmem:[%s12314_s10 + $0x100] ss:$8 sps:$4 sm:$0xff]   ;;  %v10297_v31 = vld [vmem:[%s12314_s10 + $0x114] ss:$8 sps:$4 sm:$0xff]   ;;  %v10295_v13 = vld [vmem:[%s12314_s10 + $0x110] ss:$8 sps:$4 sm:$0xff]  }
 0x151   : > { %9016 = vmatpush1.bf16.msra.mxu0 %v10226_v38  ;;  %8648 = vmatprep.subr.bf16.mxu1 %v10227_v39  ;;  %v10292_v29 = vld [vmem:[%s12314_s10 + $0xa00] ss:$8 sps:$4 sm:$0xff]   ;;  %v10300_v32 = vld [vmem:[%s12314_s10 + $0xa14] ss:$8 sps:$4 sm:$0xff]   ;;  %v10298_v35 = vld [vmem:[%s12314_s10 + $0xa10] ss:$8 sps:$4 sm:$0xff]  }
 0x152   : > { %9017 = vmatprep.subr.bf16.mxu0 %v10229_v40  ;;  %v10303_v36 = vld [vmem:[%s12314_s10 + $0x124] ss:$8 sps:$4 sm:$0xff]   ;;  %v10301_v24 = vld [vmem:[%s12314_s10 + $0x120] ss:$8 sps:$4 sm:$0xff]   ;;  %v10309_v39 = vld [vmem:[%s12314_s10 + $0x134] ss:$8 sps:$4 sm:$0xff]  }
 0x153   : > { %v10306_v37 = vld [vmem:[%s12314_s10 + $0xa24] ss:$8 sps:$4 sm:$0xff]   ;;  %v10304_v38 = vld [vmem:[%s12314_s10 + $0xa20] ss:$8 sps:$4 sm:$0xff]   ;;  %v10312_v40 = vld [vmem:[%s12314_s10 + $0xa34] ss:$8 sps:$4 sm:$0xff]  }
 0x154   : > { %8649 = vmatpush1.bf16.msra.mxu1 %v10231_v41  ;;  %v10307_v41 = vld [vmem:[%s12314_s10 + $0x130] ss:$8 sps:$4 sm:$0xff]   ;;  %s13114_s21 = smov (!%p4900_p8, %s9513_s21), 3 }
 0x155   : > { %9018 = vmatpush1.bf16.msra.mxu0 %v10232_v42  ;;  %8650 = vmatprep.subr.bf16.mxu1 %v10233_v43  ;;  %v10310_v42 = vld [vmem:[%s12314_s10 + $0xa30] ss:$8 sps:$4 sm:$0xff]   ;;  %v10315_v43 = vld [vmem:[%s12314_s10 + $0x144] ss:$8 sps:$4 sm:$0xff]   ;;  %s4902_s25 = scalar_lea.vmem %s13107_s2, %s13114_s21  ;;  %s4907_s28 = scalar_lea.vmem %s13108_s3, %s13114_s21 }
 0x156   : > { %9019 = vmatprep.subr.bf16.mxu0 %v10235_v44  ;;  %v10318_v44 = vld [vmem:[%s12314_s10 + $0xa44] ss:$8 sps:$4 sm:$0xff]   ;;  %v10355_v15 = vld [vmem:[%s12314_s10 + $0x1b0] ss:$8 sps:$4 sm:$0xff]   ;;  %s4912_s29 = scalar_lea.vmem %s13109_s4, %s13114_s21 }
 0x157   : > { %v10370_v27 = vld [vmem:[%s12314_s10 + $0xad0] ss:$8 sps:$4 sm:$0xff]  }
 0x158   : > { %8651 = vmatpush1.bf16.msra.mxu1 %v10237_v45  ;;  %v10313_v45 = vld [vmem:[%s12314_s10 + $0x140] ss:$8 sps:$4 sm:$0xff]  }
 0x159   : > { %9020 = vmatpush1.bf16.msra.mxu0 %v10238_v46  ;;  %8652 = vmatprep.subr.bf16.mxu1 %v10239_v47  ;;  %v10316_v46 = vld [vmem:[%s12314_s10 + $0xa40] ss:$8 sps:$4 sm:$0xff]   ;;  %v10321_v47 = vld [vmem:[%s12314_s10 + $0x154] ss:$8 sps:$4 sm:$0xff]  }
 0x15a   : > { %9021 = vmatprep.subr.bf16.mxu0 %v10241_v48  ;;  %v10324_v48 = vld [vmem:[%s12314_s10 + $0xa54] ss:$8 sps:$4 sm:$0xff]  }
 0x15c   : > { %8653 = vmatpush1.bf16.msra.mxu1 %v10243_v49  ;;  %v10319_v49 = vld [vmem:[%s12314_s10 + $0x150] ss:$8 sps:$4 sm:$0xff]  }
 0x15d   : > { %9022 = vmatpush1.bf16.msra.mxu0 %v10244_v50  ;;  %8654 = vmatprep.subr.bf16.mxu1 %v10245_v51  ;;  %v10322_v50 = vld [vmem:[%s12314_s10 + $0xa50] ss:$8 sps:$4 sm:$0xff]   ;;  %v10327_v51 = vld [vmem:[%s12314_s10 + $0x164] ss:$8 sps:$4 sm:$0xff]  }
 0x15e   : > { %9023 = vmatprep.subr.bf16.mxu0 %v10247_v52  ;;  %v10330_v52 = vld [vmem:[%s12314_s10 + $0xa64] ss:$8 sps:$4 sm:$0xff]  }
 0x160   : > { %8655 = vmatpush1.bf16.msra.mxu1 %v10249_v53  ;;  %v10325_v53 = vld [vmem:[%s12314_s10 + $0x160] ss:$8 sps:$4 sm:$0xff]  }
 0x161   : > { %9024 = vmatpush1.bf16.msra.mxu0 %v10250_v54  ;;  %8656 = vmatprep.subr.bf16.mxu1 %v10251_v55  ;;  %v10328_v54 = vld [vmem:[%s12314_s10 + $0xa60] ss:$8 sps:$4 sm:$0xff]   ;;  %v10333_v55 = vld [vmem:[%s12314_s10 + $0x174] ss:$8 sps:$4 sm:$0xff]  }
 0x162   : > { %9025 = vmatprep.subr.bf16.mxu0 %v10253_v56  ;;  %v10336_v56 = vld [vmem:[%s12314_s10 + $0xa74] ss:$8 sps:$4 sm:$0xff]  }
 0x164   : > { %8657 = vmatpush1.bf16.msra.mxu1 %v10255_v57  ;;  %v10331_v57 = vld [vmem:[%s12314_s10 + $0x170] ss:$8 sps:$4 sm:$0xff]  }
 0x165   : > { %9026 = vmatpush1.bf16.msra.mxu0 %v10256_v58  ;;  %8658 = vmatprep.subr.bf16.mxu1 %v10257_v59  ;;  %v10334_v58 = vld [vmem:[%s12314_s10 + $0xa70] ss:$8 sps:$4 sm:$0xff]   ;;  %v10339_v59 = vld [vmem:[%s12314_s10 + $0x184] ss:$8 sps:$4 sm:$0xff]  }
 0x166   : > { %9027 = vmatprep.subr.bf16.mxu0 %v10259_v60  ;;  %v10342_v60 = vld [vmem:[%s12314_s10 + $0xa84] ss:$8 sps:$4 sm:$0xff]  }
 0x168   : > { %8659 = vmatpush1.bf16.msra.mxu1 %v10261_v61  ;;  %v10337_v61 = vld [vmem:[%s12314_s10 + $0x180] ss:$8 sps:$4 sm:$0xff]  }
 0x169   : > { %9028 = vmatpush1.bf16.msra.mxu0 %v10262_v62  ;;  %8660 = vmatprep.subr.bf16.mxu1 %v10263_v63  ;;  %v10340_v62 = vld [vmem:[%s12314_s10 + $0xa80] ss:$8 sps:$4 sm:$0xff]   ;;  %v10345_v63 = vld [vmem:[%s12314_s10 + $0x194] ss:$8 sps:$4 sm:$0xff]  }
 0x16a   : > { %9029 = vmatprep.subr.bf16.mxu0 %v10265_v0  ;;  %v10348_v0 = vld [vmem:[%s12314_s10 + $0xa94] ss:$8 sps:$4 sm:$0xff]  }
 0x16c   : > { %8661 = vmatpush1.bf16.msra.mxu1 %v10267_v1  ;;  %v10343_v1 = vld [vmem:[%s12314_s10 + $0x190] ss:$8 sps:$4 sm:$0xff]  }
 0x16d   : > { %9030 = vmatpush1.bf16.msra.mxu0 %v10268_v2  ;;  %8662 = vmatprep.subr.bf16.mxu1 %v10269_v5  ;;  %v10346_v2 = vld [vmem:[%s12314_s10 + $0xa90] ss:$8 sps:$4 sm:$0xff]   ;;  %v10351_v5 = vld [vmem:[%s12314_s10 + $0x1a4] ss:$8 sps:$4 sm:$0xff]  }
 0x16e   : > { %9031 = vmatprep.subr.bf16.mxu0 %v10271_v7  ;;  %v10354_v7 = vld [vmem:[%s12314_s10 + $0xaa4] ss:$8 sps:$4 sm:$0xff]  }
 0x170   : > { %8663 = vmatpush1.bf16.msra.mxu1 %v10273_v8  ;;  %v10349_v8 = vld [vmem:[%s12314_s10 + $0x1a0] ss:$8 sps:$4 sm:$0xff]  }
 0x171   : > { %9032 = vmatpush1.bf16.msra.mxu0 %v10274_v10  ;;  %8664 = vmatprep.subr.bf16.mxu1 %v10275_v11  ;;  %v10352_v10 = vld [vmem:[%s12314_s10 + $0xaa0] ss:$8 sps:$4 sm:$0xff]   ;;  %v10357_v11 = vld [vmem:[%s12314_s10 + $0x1b4] ss:$8 sps:$4 sm:$0xff]  }
 0x172   : > { %9033 = vmatprep.subr.bf16.mxu0 %v10277_v12  ;;  %v10360_v12 = vld [vmem:[%s12314_s10 + $0xab4] ss:$8 sps:$4 sm:$0xff]  }
 0x174   : > { %8665 = vmatpush1.bf16.msra.mxu1 %v10279_v16  ;;  %v10358_v16 = vld [vmem:[%s12314_s10 + $0xab0] ss:$8 sps:$4 sm:$0xff]  }
 0x175   : > { %9034 = vmatpush1.bf16.msra.mxu0 %v10280_v17  ;;  %8666 = vmatprep.subr.bf16.mxu1 %v10281_v18  ;;  %v10363_v17 = vld [vmem:[%s12314_s10 + $0x1c4] ss:$8 sps:$4 sm:$0xff]  }
 0x176   : > { %9035 = vmatprep.subr.bf16.mxu0 %v10283_v19  ;;  %v10366_v18 = vld [vmem:[%s12314_s10 + $0xac4] ss:$8 sps:$4 sm:$0xff]   ;;  %v10361_v19 = vld [vmem:[%s12314_s10 + $0x1c0] ss:$8 sps:$4 sm:$0xff]  }
 0x178   : > { %8667 = vmatpush1.bf16.msra.mxu1 %v10285_v21  ;;  %v10364_v21 = vld [vmem:[%s12314_s10 + $0xac0] ss:$8 sps:$4 sm:$0xff]  }
 0x179   : > { %9036 = vmatpush1.bf16.msra.mxu0 %v10286_v22  ;;  %8677 = vmatprep.subr.bf16.mxu1 %v10290_v23  ;;  %v10369_v22 = vld [vmem:[%s12314_s10 + $0x1d4] ss:$8 sps:$4 sm:$0xff]  }
 0x17a   : > { %9046 = vmatprep.subr.bf16.mxu0 %v10294_v26  ;;  %v10372_v23 = vld [vmem:[%s12314_s10 + $0xad4] ss:$8 sps:$4 sm:$0xff]   ;;  %v10367_v26 = vld [vmem:[%s12314_s10 + $0x1d0] ss:$8 sps:$4 sm:$0xff]  }
 0x17b   : > { %8669 = vmatmul.mubr.bf16.vlgmr.msra.gmra.mrb[0].mxu1 %v12421_v30 }
 0x17c   : > { %9038 = vmatmul.mubr.bf16.vlgmr.msra.gmra.mrb[0].mxu0 %v5643_v14  ;;  %8678 = vmatpush1.bf16.msra.mxu1 %v10288_v28  ;;  %v10375_v28 = vld [vmem:[%s12314_s10 + $0x1e4] ss:$8 sps:$4 sm:$0xff]   ;;  %v5500_v14 = vcombine.high %v12307_v4, %v12307_v4 }
 0x17d   : > { %9047 = vmatpush1.bf16.msra.mxu0 %v10292_v29  ;;  %8679 = vmatprep.subr.bf16.mxu1 %v10297_v31  ;;  %v10378_v29 = vld [vmem:[%s12314_s10 + $0xae4] ss:$8 sps:$4 sm:$0xff]   ;;  %v10373_v31 = vld [vmem:[%s12314_s10 + $0x1e0] ss:$8 sps:$4 sm:$0xff]  }
 0x17e   : > { %9048 = vmatprep.subr.bf16.mxu0 %v10300_v32  ;;  %8709 = vmatprep.mubr.bf16.mxu1 %v5547_v33  ;;  %v10376_v32 = vld [vmem:[%s12314_s10 + $0xae0] ss:$8 sps:$4 sm:$0xff]   ;;  %v10381_v33 = vld [vmem:[%s12314_s10 + $0x1f4] ss:$8 sps:$4 sm:$0xff]   ;;  %v10387_v4 = vld [vmem:[%s12314_s10 + $0x204] ss:$8 sps:$4 sm:$0xff]  }
 0x17f   : > { %9078 = vmatprep.mubr.bf16.mxu0 %v12430_v34 }
 0x180   : > { %8680 = vmatpush1.bf16.msra.mxu1 %v10295_v13  ;;  %v10384_v13 = vld [vmem:[%s12314_s10 + $0xaf4] ss:$8 sps:$4 sm:$0xff]  }
 0x181   : > { %9049 = vmatpush1.bf16.msra.mxu0 %v10298_v35  ;;  %8681 = vmatprep.subr.bf16.mxu1 %v10303_v36  ;;  %v12493_v35 = vrot.slane %v5500_v14, %v12319_v9  ;;  %v10379_v36 = vld [vmem:[%s12314_s10 + $0x1f0] ss:$8 sps:$4 sm:$0xff]  }
 0x182   : > { %9050 = vmatprep.subr.bf16.mxu0 %v10306_v37  ;;  %v10382_v37 = vld [vmem:[%s12314_s10 + $0xaf0] ss:$8 sps:$4 sm:$0xff]  }
 0x183   : > { %v10454_v14 = vld [vmem:[%s12314_s10 + $0xbb0] ss:$8 sps:$4 sm:$0xff]  }
 0x184   : > { %8682 = vmatpush1.bf16.msra.mxu1 %v10301_v24  ;;  %v10390_v24 = vld [vmem:[%s12314_s10 + $0xb04] ss:$8 sps:$4 sm:$0xff]  }
 0x185   : > { %9051 = vmatpush1.bf16.msra.mxu0 %v10304_v38  ;;  %8683 = vmatprep.subr.bf16.mxu1 %v10309_v39  ;;  %v5516_v38 = vcombine.high %v12493_v35, %v12493_v35  ;;  %v5545_v39 = vcombine.high %v12421_v30, %v12421_v30  ;;  %v5646_v30 = vcombine.high %v12430_v34, %v12430_v34  ;;  %v10397_v34 = vld [vmem:[%s12314_s10 + $0x220] ss:$8 sps:$4 sm:$0xff]  }
 0x186   : > { %9052 = vmatprep.subr.bf16.mxu0 %v10312_v40  ;;  %v10385_v40 = vld [vmem:[%s12314_s10 + $0x200] ss:$8 sps:$4 sm:$0xff]  }
 0x188   : > { %8684 = vmatpush1.bf16.msra.mxu1 %v10307_v41  ;;  %v10388_v41 = vld [vmem:[%s12314_s10 + $0xb00] ss:$8 sps:$4 sm:$0xff]  }
 0x189   : > { %9053 = vmatpush1.bf16.msra.mxu0 %v10310_v42  ;;  %8685 = vmatprep.subr.bf16.mxu1 %v10315_v43  ;;  %v12507_v42 = vrot.slane %v12405_v20, %v12319_v9  ;;  %v10393_v43 = vld [vmem:[%s12314_s10 + $0x214] ss:$8 sps:$4 sm:$0xff]   ;;  %v10391_v20 = vld [vmem:[%s12314_s10 + $0x210] ss:$8 sps:$4 sm:$0xff]  }
 0x18a   : > { %9054 = vmatprep.subr.bf16.mxu0 %v10318_v44  ;;  %v10396_v44 = vld [vmem:[%s12314_s10 + $0xb14] ss:$8 sps:$4 sm:$0xff]  }
 0x18c   : > { %8686 = vmatpush1.bf16.msra.mxu1 %v10313_v45  ;;  %v12512_v45 = vrot.slane %v5516_v38, %v12319_v9  ;;  %v10471_v38 = vld [vmem:[%s12314_s10 + $0x2e4] ss:$8 sps:$4 sm:$0xff]  }
 0x18d   : > { %9055 = vmatpush1.bf16.msra.mxu0 %v10316_v46  ;;  %8687 = vmatprep.subr.bf16.mxu1 %v10321_v47  ;;  %v10394_v46 = vld [vmem:[%s12314_s10 + $0xb10] ss:$8 sps:$4 sm:$0xff]   ;;  %v10399_v47 = vld [vmem:[%s12314_s10 + $0x224] ss:$8 sps:$4 sm:$0xff]  }
 0x18e   : > { %9056 = vmatprep.subr.bf16.mxu0 %v10324_v48  ;;  %v10402_v48 = vld [vmem:[%s12314_s10 + $0xb24] ss:$8 sps:$4 sm:$0xff]  }
 0x190   : > { %8688 = vmatpush1.bf16.msra.mxu1 %v10319_v49  ;;  %v10400_v49 = vld [vmem:[%s12314_s10 + $0xb20] ss:$8 sps:$4 sm:$0xff]  }
 0x191   : > { %9057 = vmatpush1.bf16.msra.mxu0 %v10322_v50  ;;  %8689 = vmatprep.subr.bf16.mxu1 %v10327_v51  ;;  %v10405_v50 = vld [vmem:[%s12314_s10 + $0x234] ss:$8 sps:$4 sm:$0xff]  }
 0x192   : > { %9058 = vmatprep.subr.bf16.mxu0 %v10330_v52  ;;  %v10408_v51 = vld [vmem:[%s12314_s10 + $0xb34] ss:$8 sps:$4 sm:$0xff]   ;;  %v10403_v52 = vld [vmem:[%s12314_s10 + $0x230] ss:$8 sps:$4 sm:$0xff]  }
 0x194   : > { %8690 = vmatpush1.bf16.msra.mxu1 %v10325_v53  ;;  %v10406_v53 = vld [vmem:[%s12314_s10 + $0xb30] ss:$8 sps:$4 sm:$0xff]  }
 0x195   : > { %9059 = vmatpush1.bf16.msra.mxu0 %v10328_v54  ;;  %8691 = vmatprep.subr.bf16.mxu1 %v10333_v55  ;;  %v10411_v54 = vld [vmem:[%s12314_s10 + $0x244] ss:$8 sps:$4 sm:$0xff]  }
 0x196   : > { %9060 = vmatprep.subr.bf16.mxu0 %v10336_v56  ;;  %v10414_v55 = vld [vmem:[%s12314_s10 + $0xb44] ss:$8 sps:$4 sm:$0xff]   ;;  %v10409_v56 = vld [vmem:[%s12314_s10 + $0x240] ss:$8 sps:$4 sm:$0xff]  }
 0x198   : > { %8692 = vmatpush1.bf16.msra.mxu1 %v10331_v57  ;;  %v10412_v57 = vld [vmem:[%s12314_s10 + $0xb40] ss:$8 sps:$4 sm:$0xff]  }
 0x199   : > { %9061 = vmatpush1.bf16.msra.mxu0 %v10334_v58  ;;  %8693 = vmatprep.subr.bf16.mxu1 %v10339_v59  ;;  %v10417_v58 = vld [vmem:[%s12314_s10 + $0x254] ss:$8 sps:$4 sm:$0xff]  }
 0x19a   : > { %9062 = vmatprep.subr.bf16.mxu0 %v10342_v60  ;;  %v10420_v59 = vld [vmem:[%s12314_s10 + $0xb54] ss:$8 sps:$4 sm:$0xff]   ;;  %v10415_v60 = vld [vmem:[%s12314_s10 + $0x250] ss:$8 sps:$4 sm:$0xff]  }
 0x19c   : > { %8694 = vmatpush1.bf16.msra.mxu1 %v10337_v61  ;;  %v10418_v61 = vld [vmem:[%s12314_s10 + $0xb50] ss:$8 sps:$4 sm:$0xff]  }
 0x19d   : > { %9063 = vmatpush1.bf16.msra.mxu0 %v10340_v62  ;;  %8695 = vmatprep.subr.bf16.mxu1 %v10345_v63  ;;  %v10423_v62 = vld [vmem:[%s12314_s10 + $0x264] ss:$8 sps:$4 sm:$0xff]  }
 0x19e   : > { %9064 = vmatprep.subr.bf16.mxu0 %v10348_v0  ;;  %v10426_v63 = vld [vmem:[%s12314_s10 + $0xb64] ss:$8 sps:$4 sm:$0xff]   ;;  %v10421_v0 = vld [vmem:[%s12314_s10 + $0x260] ss:$8 sps:$4 sm:$0xff]  }
 0x1a0   : > { %8696 = vmatpush1.bf16.msra.mxu1 %v10343_v1  ;;  %v10424_v1 = vld [vmem:[%s12314_s10 + $0xb60] ss:$8 sps:$4 sm:$0xff]  }
 0x1a1   : > { %9065 = vmatpush1.bf16.msra.mxu0 %v10346_v2  ;;  %8697 = vmatprep.subr.bf16.mxu1 %v10351_v5  ;;  %v10429_v2 = vld [vmem:[%s12314_s10 + $0x274] ss:$8 sps:$4 sm:$0xff]  }
 0x1a2   : > { %9066 = vmatprep.subr.bf16.mxu0 %v10354_v7  ;;  %v10432_v5 = vld [vmem:[%s12314_s10 + $0xb74] ss:$8 sps:$4 sm:$0xff]   ;;  %v10427_v7 = vld [vmem:[%s12314_s10 + $0x270] ss:$8 sps:$4 sm:$0xff]  }
 0x1a4   : > { %8698 = vmatpush1.bf16.msra.mxu1 %v10349_v8  ;;  %v10430_v8 = vld [vmem:[%s12314_s10 + $0xb70] ss:$8 sps:$4 sm:$0xff]  }
 0x1a5   : > { %9067 = vmatpush1.bf16.msra.mxu0 %v10352_v10  ;;  %8699 = vmatprep.subr.bf16.mxu1 %v10357_v11  ;;  %v10435_v10 = vld [vmem:[%s12314_s10 + $0x284] ss:$8 sps:$4 sm:$0xff]  }
 0x1a6   : > { %9068 = vmatprep.subr.bf16.mxu0 %v10360_v12  ;;  %v10438_v11 = vld [vmem:[%s12314_s10 + $0xb84] ss:$8 sps:$4 sm:$0xff]   ;;  %v10433_v12 = vld [vmem:[%s12314_s10 + $0x280] ss:$8 sps:$4 sm:$0xff]  }
 0x1a8   : > { %8700 = vmatpush1.bf16.msra.mxu1 %v10355_v15  ;;  %v10436_v15 = vld [vmem:[%s12314_s10 + $0xb80] ss:$8 sps:$4 sm:$0xff]  }
 0x1a9   : > { %9069 = vmatpush1.bf16.msra.mxu0 %v10358_v16  ;;  %8701 = vmatprep.subr.bf16.mxu1 %v10363_v17  ;;  %v10441_v16 = vld [vmem:[%s12314_s10 + $0x294] ss:$8 sps:$4 sm:$0xff]  }
 0x1aa   : > { %9070 = vmatprep.subr.bf16.mxu0 %v10366_v18  ;;  %v10444_v17 = vld [vmem:[%s12314_s10 + $0xb94] ss:$8 sps:$4 sm:$0xff]   ;;  %v10439_v18 = vld [vmem:[%s12314_s10 + $0x290] ss:$8 sps:$4 sm:$0xff]  }
 0x1ac   : > { %8702 = vmatpush1.bf16.msra.mxu1 %v10361_v19  ;;  %v10442_v19 = vld [vmem:[%s12314_s10 + $0xb90] ss:$8 sps:$4 sm:$0xff]  }
 0x1ad   : > { %9071 = vmatpush1.bf16.msra.mxu0 %v10364_v21  ;;  %8703 = vmatprep.subr.bf16.mxu1 %v10369_v22  ;;  %v10447_v21 = vld [vmem:[%s12314_s10 + $0x2a4] ss:$8 sps:$4 sm:$0xff]  }
 0x1ae   : > { %9072 = vmatprep.subr.bf16.mxu0 %v10372_v23  ;;  %v10450_v22 = vld [vmem:[%s12314_s10 + $0xba4] ss:$8 sps:$4 sm:$0xff]   ;;  %v10445_v23 = vld [vmem:[%s12314_s10 + $0x2a0] ss:$8 sps:$4 sm:$0xff]  }
 0x1b0   : > { %8704 = vmatpush1.bf16.msra.mxu1 %v10367_v26  ;;  %v10448_v26 = vld [vmem:[%s12314_s10 + $0xba0] ss:$8 sps:$4 sm:$0xff]  }
 0x1b1   : > { %9073 = vmatpush1.bf16.msra.mxu0 %v10370_v27  ;;  %8705 = vmatprep.subr.bf16.mxu1 %v10375_v28  ;;  %v10453_v27 = vld [vmem:[%s12314_s10 + $0x2b4] ss:$8 sps:$4 sm:$0xff]  }
 0x1b2   : > { %9074 = vmatprep.subr.bf16.mxu0 %v10378_v29  ;;  %v10456_v28 = vld [vmem:[%s12314_s10 + $0xbb4] ss:$8 sps:$4 sm:$0xff]   ;;  %v10451_v29 = vld [vmem:[%s12314_s10 + $0x2b0] ss:$8 sps:$4 sm:$0xff]  }
 0x1b4   : > { %8706 = vmatpush1.bf16.msra.mxu1 %v10373_v31  ;;  %v10459_v31 = vld [vmem:[%s12314_s10 + $0x2c4] ss:$8 sps:$4 sm:$0xff]  }
 0x1b5   : > { %9075 = vmatpush1.bf16.msra.mxu0 %v10376_v32  ;;  %8707 = vmatprep.subr.bf16.mxu1 %v10381_v33  ;;  %v10462_v32 = vld [vmem:[%s12314_s10 + $0xbc4] ss:$8 sps:$4 sm:$0xff]   ;;  %v10457_v33 = vld [vmem:[%s12314_s10 + $0x2c0] ss:$8 sps:$4 sm:$0xff]  }
 0x1b6   : > { %9076 = vmatprep.subr.bf16.mxu0 %v10384_v13  ;;  %v10460_v13 = vld [vmem:[%s12314_s10 + $0xbc0] ss:$8 sps:$4 sm:$0xff]  }
 0x1b8   : > { %8708 = vmatpush1.bf16.msra.mxu1 %v10379_v36  ;;  %v10465_v36 = vld [vmem:[%s12314_s10 + $0x2d4] ss:$8 sps:$4 sm:$0xff]  }
 0x1b9   : > { %9077 = vmatpush1.bf16.msra.mxu0 %v10382_v37  ;;  %8718 = vmatprep.subr.bf16.mxu1 %v10387_v4  ;;  %v10468_v37 = vld [vmem:[%s12314_s10 + $0xbd4] ss:$8 sps:$4 sm:$0xff]   ;;  %v10463_v4 = vld [vmem:[%s12314_s10 + $0x2d0] ss:$8 sps:$4 sm:$0xff]  }
 0x1ba   : > { %9087 = vmatprep.subr.bf16.mxu0 %v10390_v24  ;;  %v10466_v24 = vld [vmem:[%s12314_s10 + $0xbd0] ss:$8 sps:$4 sm:$0xff]  }
 0x1bb   : > { %8710 = vmatmul.mubr.bf16.vlgmr.msra.gmra.mrb[0].mxu1 %v5545_v39  ;;  %v10474_v39 = vld [vmem:[%s12314_s10 + $0xbe4] ss:$8 sps:$4 sm:$0xff]  }
 0x1bc   : > { %9079 = vmatmul.mubr.bf16.vlgmr.msra.gmra.mrb[0].mxu0 %v12507_v42  ;;  %8719 = vmatpush1.bf16.msra.mxu1 %v10385_v40  ;;  %v10469_v40 = vld [vmem:[%s12314_s10 + $0x2e0] ss:$8 sps:$4 sm:$0xff]  }
 0x1bd   : > { %9088 = vmatpush1.bf16.msra.mxu0 %v10388_v41  ;;  %8720 = vmatprep.subr.bf16.mxu1 %v10393_v43  ;;  %v12574_v41 = vld [vmem:[%s13105_s0 + $0x18] sm:$0xff]  ;;  %v10472_v43 = vld [vmem:[%s12314_s10 + $0xbe0] ss:$8 sps:$4 sm:$0xff]  }
 0x1be   : > { %9089 = vmatprep.subr.bf16.mxu0 %v10396_v44  ;;  %8750 = vmatprep.mubr.bf16.mxu1 %v12512_v45  ;;  %v10477_v44 = vld [vmem:[%s12314_s10 + $0x2f4] ss:$8 sps:$4 sm:$0xff]  }
 0x1bf   : > { %9119 = vmatprep.mubr.bf16.mxu0 %v5646_v30  ;;  %v10480_v30 = vld [vmem:[%s12314_s10 + $0xbf4] ss:$8 sps:$4 sm:$0xff]  }
 0x1c0   : > { %8721 = vmatpush1.bf16.msra.mxu1 %v10391_v20  ;;  %v12581_v20 = vrot.slane %v12574_v41, %v12319_v9 }
 0x1c1   : > { %9090 = vmatpush1.bf16.msra.mxu0 %v10394_v46  ;;  %8722 = vmatprep.subr.bf16.mxu1 %v10399_v47  ;;  %v10475_v46 = vld [vmem:[%s12314_s10 + $0x2f0] ss:$8 sps:$4 sm:$0xff]  }
 0x1c2   : > { %9091 = vmatprep.subr.bf16.mxu0 %v10402_v48  ;;  %v10478_v47 = vld [vmem:[%s12314_s10 + $0xbf0] ss:$8 sps:$4 sm:$0xff]   ;;  %v10483_v48 = vld [vmem:[%s12314_s10 + $0x304] ss:$8 sps:$4 sm:$0xff]  }
 0x1c4   : > { %8723 = vmatpush1.bf16.msra.mxu1 %v10397_v34  ;;  %v10486_v34 = vld [vmem:[%s12314_s10 + $0xc04] ss:$8 sps:$4 sm:$0xff]  }
 0x1c5   : > { %9092 = vmatpush1.bf16.msra.mxu0 %v10400_v49  ;;  %8724 = vmatprep.subr.bf16.mxu1 %v10405_v50  ;;  %v5662_v49 = vcombine.high %v12581_v20, %v12581_v20  ;;  %v10481_v50 = vld [vmem:[%s12314_s10 + $0x300] ss:$8 sps:$4 sm:$0xff]  }
 0x1c6   : > { %9093 = vmatprep.subr.bf16.mxu0 %v10408_v51  ;;  %v12592_v51 = vrot.slane %v12493_v35, %v12319_v9 }
 0x1c7   : > { %v12602_v35 = vrot.slane %v5662_v49, %v12319_v9  ;;  %v10562_v49 = vld [vmem:[%s12314_s10 + $0xcd0] ss:$8 sps:$4 sm:$0xff]  }
 0x1c8   : > { %8725 = vmatpush1.bf16.msra.mxu1 %v10403_v52  ;;  %v5644_v52 = vcombine.high %v12507_v42, %v12507_v42  ;;  %v10487_v42 = vld [vmem:[%s12314_s10 + $0x310] ss:$8 sps:$4 sm:$0xff]  }
 0x1c9   : > { %9094 = vmatpush1.bf16.msra.mxu0 %v10406_v53  ;;  %8726 = vmatprep.subr.bf16.mxu1 %v10411_v54  ;;  %v10484_v53 = vld [vmem:[%s12314_s10 + $0xc00] ss:$8 sps:$4 sm:$0xff]   ;;  %v10489_v54 = vld [vmem:[%s12314_s10 + $0x314] ss:$8 sps:$4 sm:$0xff]  }
 0x1ca   : > { %9095 = vmatprep.subr.bf16.mxu0 %v10414_v55  ;;  %v10492_v55 = vld [vmem:[%s12314_s10 + $0xc14] ss:$8 sps:$4 sm:$0xff]  }
 0x1cc   : > { %8727 = vmatpush1.bf16.msra.mxu1 %v10409_v56  ;;  %v5548_v56 = vcombine.high %v12512_v45, %v12512_v45  ;;  %v10493_v45 = vld [vmem:[%s12314_s10 + $0x320] ss:$8 sps:$4 sm:$0xff]  }
 0x1cd   : > { %9096 = vmatpush1.bf16.msra.mxu0 %v10412_v57  ;;  %8728 = vmatprep.subr.bf16.mxu1 %v10417_v58  ;;  %v10490_v57 = vld [vmem:[%s12314_s10 + $0xc10] ss:$8 sps:$4 sm:$0xff]   ;;  %v10495_v58 = vld [vmem:[%s12314_s10 + $0x324] ss:$8 sps:$4 sm:$0xff]  }
 0x1ce   : > { %9097 = vmatprep.subr.bf16.mxu0 %v10420_v59  ;;  %v10498_v59 = vld [vmem:[%s12314_s10 + $0xc24] ss:$8 sps:$4 sm:$0xff]  }
 0x1d0   : > { %8729 = vmatpush1.bf16.msra.mxu1 %v10415_v60  ;;  %v10496_v60 = vld [vmem:[%s12314_s10 + $0xc20] ss:$8 sps:$4 sm:$0xff]  }
 0x1d1   : > { %9098 = vmatpush1.bf16.msra.mxu0 %v10418_v61  ;;  %8730 = vmatprep.subr.bf16.mxu1 %v10423_v62  ;;  %v10501_v61 = vld [vmem:[%s12314_s10 + $0x334] ss:$8 sps:$4 sm:$0xff]  }
 0x1d2   : > { %9099 = vmatprep.subr.bf16.mxu0 %v10426_v63  ;;  %v10504_v62 = vld [vmem:[%s12314_s10 + $0xc34] ss:$8 sps:$4 sm:$0xff]   ;;  %v10499_v63 = vld [vmem:[%s12314_s10 + $0x330] ss:$8 sps:$4 sm:$0xff]  }
 0x1d4   : > { %8731 = vmatpush1.bf16.msra.mxu1 %v10421_v0  ;;  %v10502_v0 = vld [vmem:[%s12314_s10 + $0xc30] ss:$8 sps:$4 sm:$0xff]  }
 0x1d5   : > { %9100 = vmatpush1.bf16.msra.mxu0 %v10424_v1  ;;  %8732 = vmatprep.subr.bf16.mxu1 %v10429_v2  ;;  %v10507_v1 = vld [vmem:[%s12314_s10 + $0x344] ss:$8 sps:$4 sm:$0xff]  }
 0x1d6   : > { %9101 = vmatprep.subr.bf16.mxu0 %v10432_v5  ;;  %v10510_v2 = vld [vmem:[%s12314_s10 + $0xc44] ss:$8 sps:$4 sm:$0xff]   ;;  %v10505_v5 = vld [vmem:[%s12314_s10 + $0x340] ss:$8 sps:$4 sm:$0xff]  }
 0x1d8   : > { %8733 = vmatpush1.bf16.msra.mxu1 %v10427_v7  ;;  %v10508_v7 = vld [vmem:[%s12314_s10 + $0xc40] ss:$8 sps:$4 sm:$0xff]  }
 0x1d9   : > { %9102 = vmatpush1.bf16.msra.mxu0 %v10430_v8  ;;  %8734 = vmatprep.subr.bf16.mxu1 %v10435_v10  ;;  %v10513_v8 = vld [vmem:[%s12314_s10 + $0x354] ss:$8 sps:$4 sm:$0xff]  }
 0x1da   : > { %9103 = vmatprep.subr.bf16.mxu0 %v10438_v11  ;;  %v10516_v10 = vld [vmem:[%s12314_s10 + $0xc54] ss:$8 sps:$4 sm:$0xff]   ;;  %v10511_v11 = vld [vmem:[%s12314_s10 + $0x350] ss:$8 sps:$4 sm:$0xff]  }
 0x1dc   : > { %8735 = vmatpush1.bf16.msra.mxu1 %v10433_v12  ;;  %v10514_v12 = vld [vmem:[%s12314_s10 + $0xc50] ss:$8 sps:$4 sm:$0xff]  }
 0x1dd   : > { %9104 = vmatpush1.bf16.msra.mxu0 %v10436_v15  ;;  %8736 = vmatprep.subr.bf16.mxu1 %v10441_v16  ;;  %v10519_v15 = vld [vmem:[%s12314_s10 + $0x364] ss:$8 sps:$4 sm:$0xff]  }
 0x1de   : > { %9105 = vmatprep.subr.bf16.mxu0 %v10444_v17  ;;  %v10522_v16 = vld [vmem:[%s12314_s10 + $0xc64] ss:$8 sps:$4 sm:$0xff]   ;;  %v10517_v17 = vld [vmem:[%s12314_s10 + $0x360] ss:$8 sps:$4 sm:$0xff]  }
 0x1e0   : > { %8737 = vmatpush1.bf16.msra.mxu1 %v10439_v18  ;;  %v10520_v18 = vld [vmem:[%s12314_s10 + $0xc60] ss:$8 sps:$4 sm:$0xff]  }
 0x1e1   : > { %9106 = vmatpush1.bf16.msra.mxu0 %v10442_v19  ;;  %8738 = vmatprep.subr.bf16.mxu1 %v10447_v21  ;;  %v10525_v19 = vld [vmem:[%s12314_s10 + $0x374] ss:$8 sps:$4 sm:$0xff]  }
 0x1e2   : > { %9107 = vmatprep.subr.bf16.mxu0 %v10450_v22  ;;  %v10528_v21 = vld [vmem:[%s12314_s10 + $0xc74] ss:$8 sps:$4 sm:$0xff]   ;;  %v10523_v22 = vld [vmem:[%s12314_s10 + $0x370] ss:$8 sps:$4 sm:$0xff]  }
 0x1e4   : > { %8739 = vmatpush1.bf16.msra.mxu1 %v10445_v23  ;;  %v10526_v23 = vld [vmem:[%s12314_s10 + $0xc70] ss:$8 sps:$4 sm:$0xff]  }
 0x1e5   : > { %9108 = vmatpush1.bf16.msra.mxu0 %v10448_v26  ;;  %8740 = vmatprep.subr.bf16.mxu1 %v10453_v27  ;;  %v10531_v26 = vld [vmem:[%s12314_s10 + $0x384] ss:$8 sps:$4 sm:$0xff]  }
 0x1e6   : > { %9109 = vmatprep.subr.bf16.mxu0 %v10456_v28  ;;  %v10534_v27 = vld [vmem:[%s12314_s10 + $0xc84] ss:$8 sps:$4 sm:$0xff]   ;;  %v10529_v28 = vld [vmem:[%s12314_s10 + $0x380] ss:$8 sps:$4 sm:$0xff]  }
 0x1e8   : > { %8741 = vmatpush1.bf16.msra.mxu1 %v10451_v29  ;;  %v10532_v29 = vld [vmem:[%s12314_s10 + $0xc80] ss:$8 sps:$4 sm:$0xff]  }
 0x1e9   : > { %9110 = vmatpush1.bf16.msra.mxu0 %v10454_v14  ;;  %8742 = vmatprep.subr.bf16.mxu1 %v10459_v31  ;;  %v10537_v14 = vld [vmem:[%s12314_s10 + $0x394] ss:$8 sps:$4 sm:$0xff]  }
 0x1ea   : > { %9111 = vmatprep.subr.bf16.mxu0 %v10462_v32  ;;  %v10540_v31 = vld [vmem:[%s12314_s10 + $0xc94] ss:$8 sps:$4 sm:$0xff]   ;;  %v10535_v32 = vld [vmem:[%s12314_s10 + $0x390] ss:$8 sps:$4 sm:$0xff]  }
 0x1ec   : > { %8743 = vmatpush1.bf16.msra.mxu1 %v10457_v33  ;;  %v10538_v33 = vld [vmem:[%s12314_s10 + $0xc90] ss:$8 sps:$4 sm:$0xff]  }
 0x1ed   : > { %9112 = vmatpush1.bf16.msra.mxu0 %v10460_v13  ;;  %8744 = vmatprep.subr.bf16.mxu1 %v10465_v36  ;;  %v10543_v13 = vld [vmem:[%s12314_s10 + $0x3a4] ss:$8 sps:$4 sm:$0xff]  }
 0x1ee   : > { %9113 = vmatprep.subr.bf16.mxu0 %v10468_v37  ;;  %v10546_v36 = vld [vmem:[%s12314_s10 + $0xca4] ss:$8 sps:$4 sm:$0xff]   ;;  %v10541_v37 = vld [vmem:[%s12314_s10 + $0x3a0] ss:$8 sps:$4 sm:$0xff]  }
 0x1f0   : > { %8745 = vmatpush1.bf16.msra.mxu1 %v10463_v4  ;;  %v10544_v4 = vld [vmem:[%s12314_s10 + $0xca0] ss:$8 sps:$4 sm:$0xff]  }
 0x1f1   : > { %9114 = vmatpush1.bf16.msra.mxu0 %v10466_v24  ;;  %8746 = vmatprep.subr.bf16.mxu1 %v10471_v38  ;;  %v10549_v24 = vld [vmem:[%s12314_s10 + $0x3b4] ss:$8 sps:$4 sm:$0xff]  }
 0x1f2   : > { %9115 = vmatprep.subr.bf16.mxu0 %v10474_v39  ;;  %v10552_v38 = vld [vmem:[%s12314_s10 + $0xcb4] ss:$8 sps:$4 sm:$0xff]   ;;  %v10547_v39 = vld [vmem:[%s12314_s10 + $0x3b0] ss:$8 sps:$4 sm:$0xff]  }
 0x1f4   : > { %8747 = vmatpush1.bf16.msra.mxu1 %v10469_v40  ;;  %v10550_v40 = vld [vmem:[%s12314_s10 + $0xcb0] ss:$8 sps:$4 sm:$0xff]  }
 0x1f5   : > { %9116 = vmatpush1.bf16.msra.mxu0 %v10472_v43  ;;  %8748 = vmatprep.subr.bf16.mxu1 %v10477_v44  ;;  %v10555_v43 = vld [vmem:[%s12314_s10 + $0x3c4] ss:$8 sps:$4 sm:$0xff]  }
 0x1f6   : > { %9117 = vmatprep.subr.bf16.mxu0 %v10480_v30  ;;  %v10558_v44 = vld [vmem:[%s12314_s10 + $0xcc4] ss:$8 sps:$4 sm:$0xff]   ;;  %v10553_v30 = vld [vmem:[%s12314_s10 + $0x3c0] ss:$8 sps:$4 sm:$0xff]  }
 0x1f8   : > { %8749 = vmatpush1.bf16.msra.mxu1 %v10475_v46  ;;  %v10556_v46 = vld [vmem:[%s12314_s10 + $0xcc0] ss:$8 sps:$4 sm:$0xff]  }
 0x1f9   : > { %9118 = vmatpush1.bf16.msra.mxu0 %v10478_v47  ;;  %8759 = vmatprep.subr.bf16.mxu1 %v10483_v48  ;;  %v10561_v47 = vld [vmem:[%s12314_s10 + $0x3d4] ss:$8 sps:$4 sm:$0xff]  }
 0x1fa   : > { %9128 = vmatprep.subr.bf16.mxu0 %v10486_v34  ;;  %v10564_v48 = vld [vmem:[%s12314_s10 + $0xcd4] ss:$8 sps:$4 sm:$0xff]   ;;  %v10559_v34 = vld [vmem:[%s12314_s10 + $0x3d0] ss:$8 sps:$4 sm:$0xff]  }
 0x1fb   : > { %8751 = vmatmul.mubr.bf16.vlgmr.msra.gmra.mrb[0].mxu1 %v12592_v51 }
 0x1fc   : > { %9120 = vmatmul.mubr.bf16.vlgmr.msra.gmra.mrb[0].mxu0 %v5644_v52  ;;  %8760 = vmatpush1.bf16.msra.mxu1 %v10481_v50  ;;  %v10567_v50 = vld [vmem:[%s12314_s10 + $0x3e4] ss:$8 sps:$4 sm:$0xff]  }
 0x1fd   : > { %9129 = vmatpush1.bf16.msra.mxu0 %v10484_v53  ;;  %8761 = vmatprep.subr.bf16.mxu1 %v10489_v54  ;;  %v10570_v52 = vld [vmem:[%s12314_s10 + $0xce4] ss:$8 sps:$4 sm:$0xff]   ;;  %v10565_v54 = vld [vmem:[%s12314_s10 + $0x3e0] ss:$8 sps:$4 sm:$0xff]  }
 0x1fe   : > { %9130 = vmatprep.subr.bf16.mxu0 %v10492_v55  ;;  %8791 = vmatprep.mubr.bf16.mxu1 %v5548_v56  ;;  %v12661_v53 = vld [vmem:[%s13105_s0 + $0x8] sm:$0xff]  ;;  %v10573_v56 = vld [vmem:[%s12314_s10 + $0x3f4] ss:$8 sps:$4 sm:$0xff]  }
 0x1ff   : > { %9160 = vmatprep.mubr.bf16.mxu0 %v12602_v35  ;;  %v10568_v55 = vld [vmem:[%s12314_s10 + $0xce0] ss:$8 sps:$4 sm:$0xff]  }
 0x200   : > { %8762 = vmatpush1.bf16.msra.mxu1 %v10487_v42  ;;  %v10576_v42 = vld [vmem:[%s12314_s10 + $0xcf4] ss:$8 sps:$4 sm:$0xff]  }
 0x201   : > { %9131 = vmatpush1.bf16.msra.mxu0 %v10490_v57  ;;  %8763 = vmatprep.subr.bf16.mxu1 %v10495_v58  ;;  %v12669_v57 = vrot.slane %v12661_v53, %v12319_v9  ;;  %v10571_v58 = vld [vmem:[%s12314_s10 + $0x3f0] ss:$8 sps:$4 sm:$0xff]  }
 0x202   : > { %9132 = vmatprep.subr.bf16.mxu0 %v10498_v59  ;;  %v10574_v59 = vld [vmem:[%s12314_s10 + $0xcf0] ss:$8 sps:$4 sm:$0xff]  }
 0x204   : > { %8764 = vmatpush1.bf16.msra.mxu1 %v10493_v45  ;;  %v10579_v45 = vld [vmem:[%s12314_s10 + $0x404] ss:$8 sps:$4 sm:$0xff]  }
 0x205   : > { %9133 = vmatpush1.bf16.msra.mxu0 %v10496_v60  ;;  %8765 = vmatprep.subr.bf16.mxu1 %v10501_v61  ;;  %v10582_v60 = vld [vmem:[%s12314_s10 + $0xd04] ss:$8 sps:$4 sm:$0xff]   ;;  %v5564_v61 = vcombine.high %v12669_v57, %v12669_v57 }
 0x206   : > { %9134 = vmatprep.subr.bf16.mxu0 %v10504_v62  ;;  %v5546_v62 = vcombine.high %v12592_v51, %v12592_v51  ;;  %v5694_v51 = vcombine.high %v12602_v35, %v12602_v35  ;;  %v10589_v35 = vld [vmem:[%s12314_s10 + $0x420] ss:$8 sps:$4 sm:$0xff]  }
 0x208   : > { %8766 = vmatpush1.bf16.msra.mxu1 %v10499_v63  ;;  %v12681_v63 = vrot.slane %v12581_v20, %v12319_v9  ;;  %v10583_v20 = vld [vmem:[%s12314_s10 + $0x410] ss:$8 sps:$4 sm:$0xff]  }
 0x209   : > { %9135 = vmatpush1.bf16.msra.mxu0 %v10502_v0  ;;  %8767 = vmatprep.subr.bf16.mxu1 %v10507_v1  ;;  %v10577_v0 = vld [vmem:[%s12314_s10 + $0x400] ss:$8 sps:$4 sm:$0xff]  }
 0x20a   : > { %9136 = vmatprep.subr.bf16.mxu0 %v10510_v2  ;;  %v10580_v1 = vld [vmem:[%s12314_s10 + $0xd00] ss:$8 sps:$4 sm:$0xff]   ;;  %v10585_v2 = vld [vmem:[%s12314_s10 + $0x414] ss:$8 sps:$4 sm:$0xff]  }
 0x20c   : > { %8768 = vmatpush1.bf16.msra.mxu1 %v10505_v5  ;;  %v10588_v5 = vld [vmem:[%s12314_s10 + $0xd14] ss:$8 sps:$4 sm:$0xff]  }
 0x20d   : > { %9137 = vmatpush1.bf16.msra.mxu0 %v10508_v7  ;;  %8769 = vmatprep.subr.bf16.mxu1 %v10513_v8  ;;  %v12688_v7 = vrot.slane %v5564_v61, %v12319_v9  ;;  %v10586_v8 = vld [vmem:[%s12314_s10 + $0xd10] ss:$8 sps:$4 sm:$0xff]  }
 0x20e   : > { %9138 = vmatprep.subr.bf16.mxu0 %v10516_v10  ;;  %v10591_v10 = vld [vmem:[%s12314_s10 + $0x424] ss:$8 sps:$4 sm:$0xff]   ;;  %v10655_v61 = vld [vmem:[%s12314_s10 + $0x4d0] ss:$8 sps:$4 sm:$0xff]  }
 0x210   : > { %8770 = vmatpush1.bf16.msra.mxu1 %v10511_v11  ;;  %v10594_v11 = vld [vmem:[%s12314_s10 + $0xd24] ss:$8 sps:$4 sm:$0xff]  }
 0x211   : > { %9139 = vmatpush1.bf16.msra.mxu0 %v10514_v12  ;;  %8771 = vmatprep.subr.bf16.mxu1 %v10519_v15  ;;  %v10592_v12 = vld [vmem:[%s12314_s10 + $0xd20] ss:$8 sps:$4 sm:$0xff]   ;;  %v10597_v15 = vld [vmem:[%s12314_s10 + $0x434] ss:$8 sps:$4 sm:$0xff]  }
 0x212   : > { %9140 = vmatprep.subr.bf16.mxu0 %v10522_v16  ;;  %v10600_v16 = vld [vmem:[%s12314_s10 + $0xd34] ss:$8 sps:$4 sm:$0xff]  }
 0x214   : > { %8772 = vmatpush1.bf16.msra.mxu1 %v10517_v17  ;;  %v10595_v17 = vld [vmem:[%s12314_s10 + $0x430] ss:$8 sps:$4 sm:$0xff]  }
 0x215   : > { %9141 = vmatpush1.bf16.msra.mxu0 %v10520_v18  ;;  %8773 = vmatprep.subr.bf16.mxu1 %v10525_v19  ;;  %v10598_v18 = vld [vmem:[%s12314_s10 + $0xd30] ss:$8 sps:$4 sm:$0xff]   ;;  %v10603_v19 = vld [vmem:[%s12314_s10 + $0x444] ss:$8 sps:$4 sm:$0xff]  }
 0x216   : > { %9142 = vmatprep.subr.bf16.mxu0 %v10528_v21  ;;  %v10606_v21 = vld [vmem:[%s12314_s10 + $0xd44] ss:$8 sps:$4 sm:$0xff]  }
 0x218   : > { %8774 = vmatpush1.bf16.msra.mxu1 %v10523_v22  ;;  %v10601_v22 = vld [vmem:[%s12314_s10 + $0x440] ss:$8 sps:$4 sm:$0xff]  }
 0x219   : > { %9143 = vmatpush1.bf16.msra.mxu0 %v10526_v23  ;;  %8775 = vmatprep.subr.bf16.mxu1 %v10531_v26  ;;  %v10604_v23 = vld [vmem:[%s12314_s10 + $0xd40] ss:$8 sps:$4 sm:$0xff]   ;;  %v10609_v26 = vld [vmem:[%s12314_s10 + $0x454] ss:$8 sps:$4 sm:$0xff]  }
 0x21a   : > { %9144 = vmatprep.subr.bf16.mxu0 %v10534_v27  ;;  %v10612_v27 = vld [vmem:[%s12314_s10 + $0xd54] ss:$8 sps:$4 sm:$0xff]  }
 0x21c   : > { %8776 = vmatpush1.bf16.msra.mxu1 %v10529_v28  ;;  %v10607_v28 = vld [vmem:[%s12314_s10 + $0x450] ss:$8 sps:$4 sm:$0xff]  }
 0x21d   : > { %9145 = vmatpush1.bf16.msra.mxu0 %v10532_v29  ;;  %8777 = vmatprep.subr.bf16.mxu1 %v10537_v14  ;;  %v10610_v29 = vld [vmem:[%s12314_s10 + $0xd50] ss:$8 sps:$4 sm:$0xff]   ;;  %v10615_v14 = vld [vmem:[%s12314_s10 + $0x464] ss:$8 sps:$4 sm:$0xff]  }
 0x21e   : > { %9146 = vmatprep.subr.bf16.mxu0 %v10540_v31  ;;  %v10618_v31 = vld [vmem:[%s12314_s10 + $0xd64] ss:$8 sps:$4 sm:$0xff]  }
 0x220   : > { %8778 = vmatpush1.bf16.msra.mxu1 %v10535_v32  ;;  %v10613_v32 = vld [vmem:[%s12314_s10 + $0x460] ss:$8 sps:$4 sm:$0xff]  }
 0x221   : > { %9147 = vmatpush1.bf16.msra.mxu0 %v10538_v33  ;;  %8779 = vmatprep.subr.bf16.mxu1 %v10543_v13  ;;  %v10616_v33 = vld [vmem:[%s12314_s10 + $0xd60] ss:$8 sps:$4 sm:$0xff]   ;;  %v10621_v13 = vld [vmem:[%s12314_s10 + $0x474] ss:$8 sps:$4 sm:$0xff]  }
 0x222   : > { %9148 = vmatprep.subr.bf16.mxu0 %v10546_v36  ;;  %v10624_v36 = vld [vmem:[%s12314_s10 + $0xd74] ss:$8 sps:$4 sm:$0xff]  }
 0x224   : > { %8780 = vmatpush1.bf16.msra.mxu1 %v10541_v37  ;;  %v10619_v37 = vld [vmem:[%s12314_s10 + $0x470] ss:$8 sps:$4 sm:$0xff]  }
 0x225   : > { %9149 = vmatpush1.bf16.msra.mxu0 %v10544_v4  ;;  %8781 = vmatprep.subr.bf16.mxu1 %v10549_v24  ;;  %v10622_v4 = vld [vmem:[%s12314_s10 + $0xd70] ss:$8 sps:$4 sm:$0xff]   ;;  %v10627_v24 = vld [vmem:[%s12314_s10 + $0x484] ss:$8 sps:$4 sm:$0xff]  }
 0x226   : > { %9150 = vmatprep.subr.bf16.mxu0 %v10552_v38  ;;  %v10630_v38 = vld [vmem:[%s12314_s10 + $0xd84] ss:$8 sps:$4 sm:$0xff]  }
 0x228   : > { %8782 = vmatpush1.bf16.msra.mxu1 %v10547_v39  ;;  %v10625_v39 = vld [vmem:[%s12314_s10 + $0x480] ss:$8 sps:$4 sm:$0xff]  }
 0x229   : > { %9151 = vmatpush1.bf16.msra.mxu0 %v10550_v40  ;;  %8783 = vmatprep.subr.bf16.mxu1 %v10555_v43  ;;  %v10628_v40 = vld [vmem:[%s12314_s10 + $0xd80] ss:$8 sps:$4 sm:$0xff]   ;;  %v10633_v43 = vld [vmem:[%s12314_s10 + $0x494] ss:$8 sps:$4 sm:$0xff]  }
 0x22a   : > { %9152 = vmatprep.subr.bf16.mxu0 %v10558_v44  ;;  %v10636_v44 = vld [vmem:[%s12314_s10 + $0xd94] ss:$8 sps:$4 sm:$0xff]  }
 0x22c   : > { %8784 = vmatpush1.bf16.msra.mxu1 %v10553_v30  ;;  %v10631_v30 = vld [vmem:[%s12314_s10 + $0x490] ss:$8 sps:$4 sm:$0xff]  }
 0x22d   : > { %9153 = vmatpush1.bf16.msra.mxu0 %v10556_v46  ;;  %8785 = vmatprep.subr.bf16.mxu1 %v10561_v47  ;;  %v10634_v46 = vld [vmem:[%s12314_s10 + $0xd90] ss:$8 sps:$4 sm:$0xff]   ;;  %v10639_v47 = vld [vmem:[%s12314_s10 + $0x4a4] ss:$8 sps:$4 sm:$0xff]  }
 0x22e   : > { %9154 = vmatprep.subr.bf16.mxu0 %v10564_v48  ;;  %v10642_v48 = vld [vmem:[%s12314_s10 + $0xda4] ss:$8 sps:$4 sm:$0xff]  }
 0x230   : > { %8786 = vmatpush1.bf16.msra.mxu1 %v10559_v34  ;;  %v10637_v34 = vld [vmem:[%s12314_s10 + $0x4a0] ss:$8 sps:$4 sm:$0xff]  }
 0x231   : > { %9155 = vmatpush1.bf16.msra.mxu0 %v10562_v49  ;;  %8787 = vmatprep.subr.bf16.mxu1 %v10567_v50  ;;  %v10640_v49 = vld [vmem:[%s12314_s10 + $0xda0] ss:$8 sps:$4 sm:$0xff]   ;;  %v10645_v50 = vld [vmem:[%s12314_s10 + $0x4b4] ss:$8 sps:$4 sm:$0xff]  }
 0x232   : > { %9156 = vmatprep.subr.bf16.mxu0 %v10570_v52  ;;  %v10648_v52 = vld [vmem:[%s12314_s10 + $0xdb4] ss:$8 sps:$4 sm:$0xff]  }
 0x234   : > { %8788 = vmatpush1.bf16.msra.mxu1 %v10565_v54  ;;  %v10643_v54 = vld [vmem:[%s12314_s10 + $0x4b0] ss:$8 sps:$4 sm:$0xff]  }
 0x235   : > { %9157 = vmatpush1.bf16.msra.mxu0 %v10568_v55  ;;  %8789 = vmatprep.subr.bf16.mxu1 %v10573_v56  ;;  %v10646_v55 = vld [vmem:[%s12314_s10 + $0xdb0] ss:$8 sps:$4 sm:$0xff]   ;;  %v10651_v56 = vld [vmem:[%s12314_s10 + $0x4c4] ss:$8 sps:$4 sm:$0xff]  }
 0x236   : > { %9158 = vmatprep.subr.bf16.mxu0 %v10576_v42  ;;  %v10654_v42 = vld [vmem:[%s12314_s10 + $0xdc4] ss:$8 sps:$4 sm:$0xff]  }
 0x238   : > { %8790 = vmatpush1.bf16.msra.mxu1 %v10571_v58  ;;  %v10649_v58 = vld [vmem:[%s12314_s10 + $0x4c0] ss:$8 sps:$4 sm:$0xff]  }
 0x239   : > { %9159 = vmatpush1.bf16.msra.mxu0 %v10574_v59  ;;  %8800 = vmatprep.subr.bf16.mxu1 %v10579_v45  ;;  %v10652_v59 = vld [vmem:[%s12314_s10 + $0xdc0] ss:$8 sps:$4 sm:$0xff]   ;;  %v10657_v45 = vld [vmem:[%s12314_s10 + $0x4d4] ss:$8 sps:$4 sm:$0xff]  }
 0x23a   : > { %9169 = vmatprep.subr.bf16.mxu0 %v10582_v60  ;;  %v10660_v60 = vld [vmem:[%s12314_s10 + $0xdd4] ss:$8 sps:$4 sm:$0xff]  }
 0x23b   : > { %8792 = vmatmul.mubr.bf16.vlgmr.msra.gmra.mrb[0].mxu1 %v5546_v62  ;;  %v10658_v62 = vld [vmem:[%s12314_s10 + $0xdd0] ss:$8 sps:$4 sm:$0xff]  }
 0x23c   : > { %9161 = vmatmul.mubr.bf16.vlgmr.msra.gmra.mrb[0].mxu0 %v12681_v63  ;;  %8801 = vmatpush1.bf16.msra.mxu1 %v10577_v0  ;;  %v10663_v0 = vld [vmem:[%s12314_s10 + $0x4e4] ss:$8 sps:$4 sm:$0xff]  }
 0x23d   : > { %9170 = vmatpush1.bf16.msra.mxu0 %v10580_v1  ;;  %8802 = vmatprep.subr.bf16.mxu1 %v10585_v2  ;;  %v10666_v1 = vld [vmem:[%s12314_s10 + $0xde4] ss:$8 sps:$4 sm:$0xff]   ;;  %v5647_v2 = vcombine.high %v12574_v41, %v12574_v41  ;;  %v10670_v41 = vld [vmem:[%s12314_s10 + $0xdf0] ss:$8 sps:$4 sm:$0xff]  }
 0x23e   : > { %9171 = vmatprep.subr.bf16.mxu0 %v10588_v5  ;;  %8832 = vmatprep.mubr.bf16.mxu1 %v12688_v7  ;;  %v10661_v5 = vld [vmem:[%s12314_s10 + $0x4e0] ss:$8 sps:$4 sm:$0xff]  }
 0x23f   : > { %9201 = vmatprep.mubr.bf16.mxu0 %v5694_v51  ;;  %v10664_v51 = vld [vmem:[%s12314_s10 + $0xde0] ss:$8 sps:$4 sm:$0xff]  }
 0x240   : > { %8803 = vmatpush1.bf16.msra.mxu1 %v10583_v20  ;;  %v10669_v20 = vld [vmem:[%s12314_s10 + $0x4f4] ss:$8 sps:$4 sm:$0xff]  }
 0x241   : > { %9172 = vmatpush1.bf16.msra.mxu0 %v10586_v8  ;;  %8804 = vmatprep.subr.bf16.mxu1 %v10591_v10  ;;  %v10672_v8 = vld [vmem:[%s12314_s10 + $0xdf4] ss:$8 sps:$4 sm:$0xff]   ;;  %v12753_v10 = vrot.slane %v5647_v2, %v12319_v9  ;;  %v10739_v2 = vld [vmem:[%s12314_s10 + $0x5b0] ss:$8 sps:$4 sm:$0xff]  }
 0x242   : > { %9173 = vmatprep.subr.bf16.mxu0 %v10594_v11  ;;  %v10667_v11 = vld [vmem:[%s12314_s10 + $0x4f0] ss:$8 sps:$4 sm:$0xff]  }
 0x244   : > { %8805 = vmatpush1.bf16.msra.mxu1 %v10589_v35  ;;  %v10675_v35 = vld [vmem:[%s12314_s10 + $0x504] ss:$8 sps:$4 sm:$0xff]  }
 0x245   : > { %9174 = vmatpush1.bf16.msra.mxu0 %v10592_v12  ;;  %8806 = vmatprep.subr.bf16.mxu1 %v10597_v15  ;;  %v10678_v12 = vld [vmem:[%s12314_s10 + $0xe04] ss:$8 sps:$4 sm:$0xff]   ;;  %v5663_v15 = vcombine.high %v12753_v10, %v12753_v10 }
 0x246   : > { %9175 = vmatprep.subr.bf16.mxu0 %v10600_v16  ;;  %v12763_v16 = vrot.slane %v12669_v57, %v12319_v9 }
 0x247   : > { %v12774_v57 = vrot.slane %v5663_v15, %v12319_v9  ;;  %v10754_v15 = vld [vmem:[%s12314_s10 + $0xed0] ss:$8 sps:$4 sm:$0xff]  }
 0x248   : > { %8807 = vmatpush1.bf16.msra.mxu1 %v10595_v17  ;;  %v5692_v17 = vcombine.high %v12681_v63, %v12681_v63  ;;  %v10679_v63 = vld [vmem:[%s12314_s10 + $0x510] ss:$8 sps:$4 sm:$0xff]  }
 0x249   : > { %9176 = vmatpush1.bf16.msra.mxu0 %v10598_v18  ;;  %8808 = vmatprep.subr.bf16.mxu1 %v10603_v19  ;;  %v10673_v18 = vld [vmem:[%s12314_s10 + $0x500] ss:$8 sps:$4 sm:$0xff]  }
 0x24a   : > { %9177 = vmatprep.subr.bf16.mxu0 %v10606_v21  ;;  %v10676_v19 = vld [vmem:[%s12314_s10 + $0xe00] ss:$8 sps:$4 sm:$0xff]   ;;  %v10681_v21 = vld [vmem:[%s12314_s10 + $0x514] ss:$8 sps:$4 sm:$0xff]  }
 0x24c   : > { %8809 = vmatpush1.bf16.msra.mxu1 %v10601_v22  ;;  %v10684_v22 = vld [vmem:[%s12314_s10 + $0xe14] ss:$8 sps:$4 sm:$0xff]  }
 0x24d   : > { %9178 = vmatpush1.bf16.msra.mxu0 %v10604_v23  ;;  %8810 = vmatprep.subr.bf16.mxu1 %v10609_v26  ;;  %v5596_v23 = vcombine.high %v12688_v7, %v12688_v7  ;;  %v10682_v26 = vld [vmem:[%s12314_s10 + $0xe10] ss:$8 sps:$4 sm:$0xff]   ;;  %v10690_v7 = vld [vmem:[%s12314_s10 + $0xe24] ss:$8 sps:$4 sm:$0xff]  }
 0x24e   : > { %9179 = vmatprep.subr.bf16.mxu0 %v10612_v27  ;;  %v10687_v27 = vld [vmem:[%s12314_s10 + $0x524] ss:$8 sps:$4 sm:$0xff]  }
 0x250   : > { %8811 = vmatpush1.bf16.msra.mxu1 %v10607_v28  ;;  %v10685_v28 = vld [vmem:[%s12314_s10 + $0x520] ss:$8 sps:$4 sm:$0xff]  }
 0x251   : > { %9180 = vmatpush1.bf16.msra.mxu0 %v10610_v29  ;;  %8812 = vmatprep.subr.bf16.mxu1 %v10615_v14  ;;  %v10688_v29 = vld [vmem:[%s12314_s10 + $0xe20] ss:$8 sps:$4 sm:$0xff]   ;;  %v10693_v14 = vld [vmem:[%s12314_s10 + $0x534] ss:$8 sps:$4 sm:$0xff]  }
 0x252   : > { %9181 = vmatprep.subr.bf16.mxu0 %v10618_v31  ;;  %v10696_v31 = vld [vmem:[%s12314_s10 + $0xe34] ss:$8 sps:$4 sm:$0xff]  }
 0x254   : > { %8813 = vmatpush1.bf16.msra.mxu1 %v10613_v32  ;;  %v10691_v32 = vld [vmem:[%s12314_s10 + $0x530] ss:$8 sps:$4 sm:$0xff]  }
 0x255   : > { %9182 = vmatpush1.bf16.msra.mxu0 %v10616_v33  ;;  %8814 = vmatprep.subr.bf16.mxu1 %v10621_v13  ;;  %v10694_v33 = vld [vmem:[%s12314_s10 + $0xe30] ss:$8 sps:$4 sm:$0xff]   ;;  %v10699_v13 = vld [vmem:[%s12314_s10 + $0x544] ss:$8 sps:$4 sm:$0xff]  }
 0x256   : > { %9183 = vmatprep.subr.bf16.mxu0 %v10624_v36  ;;  %v10702_v36 = vld [vmem:[%s12314_s10 + $0xe44] ss:$8 sps:$4 sm:$0xff]  }
 0x258   : > { %8815 = vmatpush1.bf16.msra.mxu1 %v10619_v37  ;;  %v10697_v37 = vld [vmem:[%s12314_s10 + $0x540] ss:$8 sps:$4 sm:$0xff]  }
 0x259   : > { %9184 = vmatpush1.bf16.msra.mxu0 %v10622_v4  ;;  %8816 = vmatprep.subr.bf16.mxu1 %v10627_v24  ;;  %v10700_v4 = vld [vmem:[%s12314_s10 + $0xe40] ss:$8 sps:$4 sm:$0xff]   ;;  %v10705_v24 = vld [vmem:[%s12314_s10 + $0x554] ss:$8 sps:$4 sm:$0xff]  }
 0x25a   : > { %9185 = vmatprep.subr.bf16.mxu0 %v10630_v38  ;;  %v10708_v38 = vld [vmem:[%s12314_s10 + $0xe54] ss:$8 sps:$4 sm:$0xff]  }
 0x25c   : > { %8817 = vmatpush1.bf16.msra.mxu1 %v10625_v39  ;;  %v10703_v39 = vld [vmem:[%s12314_s10 + $0x550] ss:$8 sps:$4 sm:$0xff]  }
 0x25d   : > { %9186 = vmatpush1.bf16.msra.mxu0 %v10628_v40  ;;  %8818 = vmatprep.subr.bf16.mxu1 %v10633_v43  ;;  %v10706_v40 = vld [vmem:[%s12314_s10 + $0xe50] ss:$8 sps:$4 sm:$0xff]   ;;  %v10711_v43 = vld [vmem:[%s12314_s10 + $0x564] ss:$8 sps:$4 sm:$0xff]  }
 0x25e   : > { %9187 = vmatprep.subr.bf16.mxu0 %v10636_v44  ;;  %v10714_v44 = vld [vmem:[%s12314_s10 + $0xe64] ss:$8 sps:$4 sm:$0xff]  }
 0x260   : > { %8819 = vmatpush1.bf16.msra.mxu1 %v10631_v30  ;;  %v10709_v30 = vld [vmem:[%s12314_s10 + $0x560] ss:$8 sps:$4 sm:$0xff]  }
 0x261   : > { %9188 = vmatpush1.bf16.msra.mxu0 %v10634_v46  ;;  %8820 = vmatprep.subr.bf16.mxu1 %v10639_v47  ;;  %v10712_v46 = vld [vmem:[%s12314_s10 + $0xe60] ss:$8 sps:$4 sm:$0xff]   ;;  %v10717_v47 = vld [vmem:[%s12314_s10 + $0x574] ss:$8 sps:$4 sm:$0xff]  }
 0x262   : > { %9189 = vmatprep.subr.bf16.mxu0 %v10642_v48  ;;  %v10720_v48 = vld [vmem:[%s12314_s10 + $0xe74] ss:$8 sps:$4 sm:$0xff]  }
 0x264   : > { %8821 = vmatpush1.bf16.msra.mxu1 %v10637_v34  ;;  %v10715_v34 = vld [vmem:[%s12314_s10 + $0x570] ss:$8 sps:$4 sm:$0xff]  }
 0x265   : > { %9190 = vmatpush1.bf16.msra.mxu0 %v10640_v49  ;;  %8822 = vmatprep.subr.bf16.mxu1 %v10645_v50  ;;  %v10718_v49 = vld [vmem:[%s12314_s10 + $0xe70] ss:$8 sps:$4 sm:$0xff]   ;;  %v10723_v50 = vld [vmem:[%s12314_s10 + $0x584] ss:$8 sps:$4 sm:$0xff]  }
 0x266   : > { %9191 = vmatprep.subr.bf16.mxu0 %v10648_v52  ;;  %v10726_v52 = vld [vmem:[%s12314_s10 + $0xe84] ss:$8 sps:$4 sm:$0xff]  }
 0x268   : > { %8823 = vmatpush1.bf16.msra.mxu1 %v10643_v54  ;;  %v10721_v54 = vld [vmem:[%s12314_s10 + $0x580] ss:$8 sps:$4 sm:$0xff]  }
 0x269   : > { %9192 = vmatpush1.bf16.msra.mxu0 %v10646_v55  ;;  %8824 = vmatprep.subr.bf16.mxu1 %v10651_v56  ;;  %v10724_v55 = vld [vmem:[%s12314_s10 + $0xe80] ss:$8 sps:$4 sm:$0xff]   ;;  %v10729_v56 = vld [vmem:[%s12314_s10 + $0x594] ss:$8 sps:$4 sm:$0xff]  }
 0x26a   : > { %9193 = vmatprep.subr.bf16.mxu0 %v10654_v42  ;;  %v10732_v42 = vld [vmem:[%s12314_s10 + $0xe94] ss:$8 sps:$4 sm:$0xff]  }
 0x26c   : > { %8825 = vmatpush1.bf16.msra.mxu1 %v10649_v58  ;;  %v10727_v58 = vld [vmem:[%s12314_s10 + $0x590] ss:$8 sps:$4 sm:$0xff]  }
 0x26d   : > { %9194 = vmatpush1.bf16.msra.mxu0 %v10652_v59  ;;  %8826 = vmatprep.subr.bf16.mxu1 %v10657_v45  ;;  %v10730_v59 = vld [vmem:[%s12314_s10 + $0xe90] ss:$8 sps:$4 sm:$0xff]   ;;  %v10735_v45 = vld [vmem:[%s12314_s10 + $0x5a4] ss:$8 sps:$4 sm:$0xff]  }
 0x26e   : > { %9195 = vmatprep.subr.bf16.mxu0 %v10660_v60  ;;  %v10738_v60 = vld [vmem:[%s12314_s10 + $0xea4] ss:$8 sps:$4 sm:$0xff]  }
 0x270   : > { %8827 = vmatpush1.bf16.msra.mxu1 %v10655_v61  ;;  %v10733_v61 = vld [vmem:[%s12314_s10 + $0x5a0] ss:$8 sps:$4 sm:$0xff]  }
 0x271   : > { %9196 = vmatpush1.bf16.msra.mxu0 %v10658_v62  ;;  %8828 = vmatprep.subr.bf16.mxu1 %v10663_v0  ;;  %v10736_v62 = vld [vmem:[%s12314_s10 + $0xea0] ss:$8 sps:$4 sm:$0xff]   ;;  %v10741_v0 = vld [vmem:[%s12314_s10 + $0x5b4] ss:$8 sps:$4 sm:$0xff]  }
 0x272   : > { %9197 = vmatprep.subr.bf16.mxu0 %v10666_v1  ;;  %v10744_v1 = vld [vmem:[%s12314_s10 + $0xeb4] ss:$8 sps:$4 sm:$0xff]  }
 0x274   : > { %8829 = vmatpush1.bf16.msra.mxu1 %v10661_v5  ;;  %v10742_v5 = vld [vmem:[%s12314_s10 + $0xeb0] ss:$8 sps:$4 sm:$0xff]  }
 0x275   : > { %9198 = vmatpush1.bf16.msra.mxu0 %v10664_v51  ;;  %8830 = vmatprep.subr.bf16.mxu1 %v10669_v20  ;;  %v10747_v51 = vld [vmem:[%s12314_s10 + $0x5c4] ss:$8 sps:$4 sm:$0xff]  }
 0x276   : > { %9199 = vmatprep.subr.bf16.mxu0 %v10672_v8  ;;  %v10750_v20 = vld [vmem:[%s12314_s10 + $0xec4] ss:$8 sps:$4 sm:$0xff]   ;;  %v10745_v8 = vld [vmem:[%s12314_s10 + $0x5c0] ss:$8 sps:$4 sm:$0xff]  }
 0x278   : > { %8831 = vmatpush1.bf16.msra.mxu1 %v10667_v11  ;;  %v10748_v11 = vld [vmem:[%s12314_s10 + $0xec0] ss:$8 sps:$4 sm:$0xff]  }
 0x279   : > { %9200 = vmatpush1.bf16.msra.mxu0 %v10670_v41  ;;  %8841 = vmatprep.subr.bf16.mxu1 %v10675_v35  ;;  %v10753_v41 = vld [vmem:[%s12314_s10 + $0x5d4] ss:$8 sps:$4 sm:$0xff]  }
 0x27a   : > { %9210 = vmatprep.subr.bf16.mxu0 %v10678_v12  ;;  %v10756_v35 = vld [vmem:[%s12314_s10 + $0xed4] ss:$8 sps:$4 sm:$0xff]   ;;  %v10751_v12 = vld [vmem:[%s12314_s10 + $0x5d0] ss:$8 sps:$4 sm:$0xff]  }
 0x27b   : > { %8833 = vmatmul.mubr.bf16.vlgmr.msra.gmra.mrb[0].mxu1 %v12763_v16 }
 0x27c   : > { %9202 = vmatmul.mubr.bf16.vlgmr.msra.gmra.mrb[0].mxu0 %v5692_v17  ;;  %8842 = vmatpush1.bf16.msra.mxu1 %v10673_v18  ;;  %v10759_v17 = vld [vmem:[%s12314_s10 + $0x5e4] ss:$8 sps:$4 sm:$0xff]  }
 0x27d   : > { %9211 = vmatpush1.bf16.msra.mxu0 %v10676_v19  ;;  %8843 = vmatprep.subr.bf16.mxu1 %v10681_v21  ;;  %v10762_v18 = vld [vmem:[%s12314_s10 + $0xee4] ss:$8 sps:$4 sm:$0xff]   ;;  %v5549_v19 = vcombine.high %v12661_v53, %v12661_v53  ;;  %v10757_v21 = vld [vmem:[%s12314_s10 + $0x5e0] ss:$8 sps:$4 sm:$0xff]   ;;  %v10766_v53 = vld [vmem:[%s12314_s10 + $0xef0] ss:$8 sps:$4 sm:$0xff]  }
 0x27e   : > { %9212 = vmatprep.subr.bf16.mxu0 %v10684_v22  ;;  %8873 = vmatprep.mubr.bf16.mxu1 %v5596_v23  ;;  %v10760_v22 = vld [vmem:[%s12314_s10 + $0xee0] ss:$8 sps:$4 sm:$0xff]   ;;  %v10765_v23 = vld [vmem:[%s12314_s10 + $0x5f4] ss:$8 sps:$4 sm:$0xff]  }
 0x27f   : > { %9242 = vmatprep.mubr.bf16.mxu0 %v12774_v57 }
 0x280   : > { %8844 = vmatpush1.bf16.msra.mxu1 %v10679_v63  ;;  %v10768_v63 = vld [vmem:[%s12314_s10 + $0xef4] ss:$8 sps:$4 sm:$0xff]  }
 0x281   : > { %9213 = vmatpush1.bf16.msra.mxu0 %v10682_v26  ;;  %8845 = vmatprep.subr.bf16.mxu1 %v10687_v27  ;;  %v12837_v26 = vrot.slane %v5549_v19, %v12319_v9  ;;  %v10763_v27 = vld [vmem:[%s12314_s10 + $0x5f0] ss:$8 sps:$4 sm:$0xff]  }
 0x282   : > { %9214 = vmatprep.subr.bf16.mxu0 %v10690_v7  ;;  %v10771_v7 = vld [vmem:[%s12314_s10 + $0x604] ss:$8 sps:$4 sm:$0xff]   ;;  %v10839_v19 = vld [vmem:[%s12314_s10 + $0xfb0] ss:$8 sps:$4 sm:$0xff]  }
 0x284   : > { %8846 = vmatpush1.bf16.msra.mxu1 %v10685_v28  ;;  %v10775_v28 = vld [vmem:[%s12314_s10 + $0xf04] ss:$8 sps:$4 sm:$0xff]  }
 0x285   : > { %9215 = vmatpush1.bf16.msra.mxu0 %v10688_v29  ;;  %8847 = vmatprep.subr.bf16.mxu1 %v10693_v14  ;;  %v5565_v29 = vcombine.high %v12837_v26, %v12837_v26  ;;  %v5594_v14 = vcombine.high %v12763_v16, %v12763_v16  ;;  %v5695_v16 = vcombine.high %v12774_v57, %v12774_v57  ;;  %v10782_v57 = vld [vmem:[%s12314_s10 + $0x620] ss:$8 sps:$4 sm:$0xff]  }
 0x286   : > { %9216 = vmatprep.subr.bf16.mxu0 %v10696_v31  ;;  %v12849_v31 = vrot.slane %v12753_v10, %v12319_v9  ;;  %v10776_v10 = vld [vmem:[%s12314_s10 + $0x610] ss:$8 sps:$4 sm:$0xff]  }
 0x288   : > { %8848 = vmatpush1.bf16.msra.mxu1 %v10691_v32  ;;  %v10769_v32 = vld [vmem:[%s12314_s10 + $0x600] ss:$8 sps:$4 sm:$0xff]  }
 0x289   : > { %9217 = vmatpush1.bf16.msra.mxu0 %v10694_v33  ;;  %8849 = vmatprep.subr.bf16.mxu1 %v10699_v13  ;;  %v10773_v33 = vld [vmem:[%s12314_s10 + $0xf00] ss:$8 sps:$4 sm:$0xff]   ;;  %v10778_v13 = vld [vmem:[%s12314_s10 + $0x614] ss:$8 sps:$4 sm:$0xff]  }
 0x28a   : > { %9218 = vmatprep.subr.bf16.mxu0 %v10702_v36  ;;  %v10781_v36 = vld [vmem:[%s12314_s10 + $0xf14] ss:$8 sps:$4 sm:$0xff]  }
 0x28c   : > { %8850 = vmatpush1.bf16.msra.mxu1 %v10697_v37  ;;  %v12856_v37 = vrot.slane %v5565_v29, %v12319_v9  ;;  %v10856_v29 = vld [vmem:[%s12314_s10 + $0x6e4] ss:$8 sps:$4 sm:$0xff]  }
 0x28d   : > { %9219 = vmatpush1.bf16.msra.mxu0 %v10700_v4  ;;  %8851 = vmatprep.subr.bf16.mxu1 %v10705_v24  ;;  %v10779_v4 = vld [vmem:[%s12314_s10 + $0xf10] ss:$8 sps:$4 sm:$0xff]   ;;  %v10784_v24 = vld [vmem:[%s12314_s10 + $0x624] ss:$8 sps:$4 sm:$0xff]  }
 0x28e   : > { %9220 = vmatprep.subr.bf16.mxu0 %v10708_v38  ;;  %v10787_v38 = vld [vmem:[%s12314_s10 + $0xf24] ss:$8 sps:$4 sm:$0xff]  }
 0x290   : > { %8852 = vmatpush1.bf16.msra.mxu1 %v10703_v39  ;;  %v10785_v39 = vld [vmem:[%s12314_s10 + $0xf20] ss:$8 sps:$4 sm:$0xff]  }
 0x291   : > { %9221 = vmatpush1.bf16.msra.mxu0 %v10706_v40  ;;  %8853 = vmatprep.subr.bf16.mxu1 %v10711_v43  ;;  %v10790_v40 = vld [vmem:[%s12314_s10 + $0x634] ss:$8 sps:$4 sm:$0xff]  }
 0x292   : > { %9222 = vmatprep.subr.bf16.mxu0 %v10714_v44  ;;  %v10793_v43 = vld [vmem:[%s12314_s10 + $0xf34] ss:$8 sps:$4 sm:$0xff]   ;;  %v10788_v44 = vld [vmem:[%s12314_s10 + $0x630] ss:$8 sps:$4 sm:$0xff]  }
 0x294   : > { %8854 = vmatpush1.bf16.msra.mxu1 %v10709_v30  ;;  %v10791_v30 = vld [vmem:[%s12314_s10 + $0xf30] ss:$8 sps:$4 sm:$0xff]  }
 0x295   : > { %9223 = vmatpush1.bf16.msra.mxu0 %v10712_v46  ;;  %8855 = vmatprep.subr.bf16.mxu1 %v10717_v47  ;;  %v10796_v46 = vld [vmem:[%s12314_s10 + $0x644] ss:$8 sps:$4 sm:$0xff]  }
 0x296   : > { %9224 = vmatprep.subr.bf16.mxu0 %v10720_v48  ;;  %v10799_v47 = vld [vmem:[%s12314_s10 + $0xf44] ss:$8 sps:$4 sm:$0xff]   ;;  %v10794_v48 = vld [vmem:[%s12314_s10 + $0x640] ss:$8 sps:$4 sm:$0xff]  }
 0x298   : > { %8856 = vmatpush1.bf16.msra.mxu1 %v10715_v34  ;;  %v10797_v34 = vld [vmem:[%s12314_s10 + $0xf40] ss:$8 sps:$4 sm:$0xff]  }
 0x299   : > { %9225 = vmatpush1.bf16.msra.mxu0 %v10718_v49  ;;  %8857 = vmatprep.subr.bf16.mxu1 %v10723_v50  ;;  %v10802_v49 = vld [vmem:[%s12314_s10 + $0x654] ss:$8 sps:$4 sm:$0xff]  }
 0x29a   : > { %9226 = vmatprep.subr.bf16.mxu0 %v10726_v52  ;;  %v10805_v50 = vld [vmem:[%s12314_s10 + $0xf54] ss:$8 sps:$4 sm:$0xff]   ;;  %v10800_v52 = vld [vmem:[%s12314_s10 + $0x650] ss:$8 sps:$4 sm:$0xff]  }
 0x29c   : > { %8858 = vmatpush1.bf16.msra.mxu1 %v10721_v54  ;;  %v10803_v54 = vld [vmem:[%s12314_s10 + $0xf50] ss:$8 sps:$4 sm:$0xff]  }
 0x29d   : > { %9227 = vmatpush1.bf16.msra.mxu0 %v10724_v55  ;;  %8859 = vmatprep.subr.bf16.mxu1 %v10729_v56  ;;  %v10808_v55 = vld [vmem:[%s12314_s10 + $0x664] ss:$8 sps:$4 sm:$0xff]  }
 0x29e   : > { %9228 = vmatprep.subr.bf16.mxu0 %v10732_v42  ;;  %v10811_v56 = vld [vmem:[%s12314_s10 + $0xf64] ss:$8 sps:$4 sm:$0xff]   ;;  %v10806_v42 = vld [vmem:[%s12314_s10 + $0x660] ss:$8 sps:$4 sm:$0xff]  }
 0x2a0   : > { %8860 = vmatpush1.bf16.msra.mxu1 %v10727_v58  ;;  %v10809_v58 = vld [vmem:[%s12314_s10 + $0xf60] ss:$8 sps:$4 sm:$0xff]  }
 0x2a1   : > { %9229 = vmatpush1.bf16.msra.mxu0 %v10730_v59  ;;  %8861 = vmatprep.subr.bf16.mxu1 %v10735_v45  ;;  %v10814_v59 = vld [vmem:[%s12314_s10 + $0x674] ss:$8 sps:$4 sm:$0xff]  }
 0x2a2   : > { %9230 = vmatprep.subr.bf16.mxu0 %v10738_v60  ;;  %v10817_v45 = vld [vmem:[%s12314_s10 + $0xf74] ss:$8 sps:$4 sm:$0xff]   ;;  %v10812_v60 = vld [vmem:[%s12314_s10 + $0x670] ss:$8 sps:$4 sm:$0xff]  }
 0x2a4   : > { %8862 = vmatpush1.bf16.msra.mxu1 %v10733_v61  ;;  %v10815_v61 = vld [vmem:[%s12314_s10 + $0xf70] ss:$8 sps:$4 sm:$0xff]  }
 0x2a5   : > { %9231 = vmatpush1.bf16.msra.mxu0 %v10736_v62  ;;  %8863 = vmatprep.subr.bf16.mxu1 %v10741_v0  ;;  %v10820_v62 = vld [vmem:[%s12314_s10 + $0x684] ss:$8 sps:$4 sm:$0xff]  }
 0x2a6   : > { %9232 = vmatprep.subr.bf16.mxu0 %v10744_v1  ;;  %v10823_v0 = vld [vmem:[%s12314_s10 + $0xf84] ss:$8 sps:$4 sm:$0xff]   ;;  %v10818_v1 = vld [vmem:[%s12314_s10 + $0x680] ss:$8 sps:$4 sm:$0xff]  }
 0x2a8   : > { %8864 = vmatpush1.bf16.msra.mxu1 %v10739_v2  ;;  %v10821_v2 = vld [vmem:[%s12314_s10 + $0xf80] ss:$8 sps:$4 sm:$0xff]  }
 0x2a9   : > { %9233 = vmatpush1.bf16.msra.mxu0 %v10742_v5  ;;  %8865 = vmatprep.subr.bf16.mxu1 %v10747_v51  ;;  %v10826_v5 = vld [vmem:[%s12314_s10 + $0x694] ss:$8 sps:$4 sm:$0xff]  }
 0x2aa   : > { %9234 = vmatprep.subr.bf16.mxu0 %v10750_v20  ;;  %v10829_v51 = vld [vmem:[%s12314_s10 + $0xf94] ss:$8 sps:$4 sm:$0xff]   ;;  %v10824_v20 = vld [vmem:[%s12314_s10 + $0x690] ss:$8 sps:$4 sm:$0xff]  }
 0x2ac   : > { %8866 = vmatpush1.bf16.msra.mxu1 %v10745_v8  ;;  %v10827_v8 = vld [vmem:[%s12314_s10 + $0xf90] ss:$8 sps:$4 sm:$0xff]  }
 0x2ad   : > { %9235 = vmatpush1.bf16.msra.mxu0 %v10748_v11  ;;  %8867 = vmatprep.subr.bf16.mxu1 %v10753_v41  ;;  %v10832_v11 = vld [vmem:[%s12314_s10 + $0x6a4] ss:$8 sps:$4 sm:$0xff]  }
 0x2ae   : > { %9236 = vmatprep.subr.bf16.mxu0 %v10756_v35  ;;  %v10835_v41 = vld [vmem:[%s12314_s10 + $0xfa4] ss:$8 sps:$4 sm:$0xff]   ;;  %v10830_v35 = vld [vmem:[%s12314_s10 + $0x6a0] ss:$8 sps:$4 sm:$0xff]  }
 0x2b0   : > { %8868 = vmatpush1.bf16.msra.mxu1 %v10751_v12  ;;  %v10833_v12 = vld [vmem:[%s12314_s10 + $0xfa0] ss:$8 sps:$4 sm:$0xff]  }
 0x2b1   : > { %9237 = vmatpush1.bf16.msra.mxu0 %v10754_v15  ;;  %8869 = vmatprep.subr.bf16.mxu1 %v10759_v17  ;;  %v10838_v15 = vld [vmem:[%s12314_s10 + $0x6b4] ss:$8 sps:$4 sm:$0xff]  }
 0x2b2   : > { %9238 = vmatprep.subr.bf16.mxu0 %v10762_v18  ;;  %v10841_v17 = vld [vmem:[%s12314_s10 + $0xfb4] ss:$8 sps:$4 sm:$0xff]   ;;  %v10836_v18 = vld [vmem:[%s12314_s10 + $0x6b0] ss:$8 sps:$4 sm:$0xff]  }
 0x2b4   : > { %8870 = vmatpush1.bf16.msra.mxu1 %v10757_v21  ;;  %v10844_v21 = vld [vmem:[%s12314_s10 + $0x6c4] ss:$8 sps:$4 sm:$0xff]  }
 0x2b5   : > { %9239 = vmatpush1.bf16.msra.mxu0 %v10760_v22  ;;  %8871 = vmatprep.subr.bf16.mxu1 %v10765_v23  ;;  %v10847_v22 = vld [vmem:[%s12314_s10 + $0xfc4] ss:$8 sps:$4 sm:$0xff]   ;;  %v10842_v23 = vld [vmem:[%s12314_s10 + $0x6c0] ss:$8 sps:$4 sm:$0xff]  }
 0x2b6   : > { %9240 = vmatprep.subr.bf16.mxu0 %v10768_v63  ;;  %v10845_v63 = vld [vmem:[%s12314_s10 + $0xfc0] ss:$8 sps:$4 sm:$0xff]  }
 0x2b8   : > { %8872 = vmatpush1.bf16.msra.mxu1 %v10763_v27  ;;  %v10850_v27 = vld [vmem:[%s12314_s10 + $0x6d4] ss:$8 sps:$4 sm:$0xff]  }
 0x2b9   : > { %9241 = vmatpush1.bf16.msra.mxu0 %v10766_v53  ;;  %8882 = vmatprep.subr.bf16.mxu1 %v10771_v7  ;;  %v10853_v53 = vld [vmem:[%s12314_s10 + $0xfd4] ss:$8 sps:$4 sm:$0xff]   ;;  %v10848_v7 = vld [vmem:[%s12314_s10 + $0x6d0] ss:$8 sps:$4 sm:$0xff]  }
 0x2ba   : > { %9251 = vmatprep.subr.bf16.mxu0 %v10775_v28  ;;  %v10851_v28 = vld [vmem:[%s12314_s10 + $0xfd0] ss:$8 sps:$4 sm:$0xff]  }
 0x2bb   : > { %8874 = vmatmul.mubr.bf16.vlgmr.msra.gmra.mrb[0].mxu1 %v5594_v14  ;;  %v10859_v14 = vld [vmem:[%s12314_s10 + $0xfe4] ss:$8 sps:$4 sm:$0xff]  }
 0x2bc   : > { %9243 = vmatmul.mubr.bf16.vlgmr.msra.gmra.mrb[0].mxu0 %v12849_v31  ;;  %8883 = vmatpush1.bf16.msra.mxu1 %v10769_v32  ;;  %v10854_v32 = vld [vmem:[%s12314_s10 + $0x6e0] ss:$8 sps:$4 sm:$0xff]  }
 0x2bd   : > { %9252 = vmatpush1.bf16.msra.mxu0 %v10773_v33  ;;  %8884 = vmatprep.subr.bf16.mxu1 %v10778_v13  ;;  %v10857_v33 = vld [vmem:[%s12314_s10 + $0xfe0] ss:$8 sps:$4 sm:$0xff]   ;;  %v10862_v13 = vld [vmem:[%s12314_s10 + $0x6f4] ss:$8 sps:$4 sm:$0xff]  }
 0x2be   : > { %9253 = vmatprep.subr.bf16.mxu0 %v10781_v36  ;;  %8914 = vmatprep.mubr.bf16.mxu1 %v12856_v37  ;;  %v10865_v36 = vld [vmem:[%s12314_s10 + $0xff4] ss:$8 sps:$4 sm:$0xff]  }
 0x2bf   : > { %9283 = vmatprep.mubr.bf16.mxu0 %v5695_v16  ;;  %v12921_v16 = vld.sshfl [vmem:[%s13105_s0 + $0x20] sm:$0x33 pattern:$0x75316420] }
 0x2c0   : > { %8885 = vmatpush1.bf16.msra.mxu1 %v10776_v10  ;;  %v10860_v10 = vld [vmem:[%s12314_s10 + $0x6f0] ss:$8 sps:$4 sm:$0xff]  }
 0x2c1   : > { %9254 = vmatpush1.bf16.msra.mxu0 %v10779_v4  ;;  %8886 = vmatprep.subr.bf16.mxu1 %v10784_v24  ;;  %v10863_v4 = vld [vmem:[%s12314_s10 + $0xff0] ss:$8 sps:$4 sm:$0xff]   ;;  %v10869_v24 = vld [vmem:[%s12314_s10 + $0x704] ss:$8 sps:$4 sm:$0xff]  }
 0x2c2   : > { %9255 = vmatprep.subr.bf16.mxu0 %v10787_v38  ;;  %v10872_v38 = vld [vmem:[%s12314_s10 + $0x1004] ss:$8 sps:$4 sm:$0xff]  }
 0x2c4   : > { %8887 = vmatpush1.bf16.msra.mxu1 %v10782_v57  ;;  %v5703_v57 = vcombine.high %v12921_v16, %v12921_v16 }
 0x2c5   : > { %9256 = vmatpush1.bf16.msra.mxu0 %v10785_v39  ;;  %8888 = vmatprep.subr.bf16.mxu1 %v10790_v40  ;;  %v12931_v39 = vrot.slane %v12837_v26, %v12319_v9  ;;  %v5693_v40 = vcombine.high %v12849_v31, %v12849_v31  ;;  %v10873_v31 = vld [vmem:[%s12314_s10 + $0x710] ss:$8 sps:$4 sm:$0xff]  }
 0x2c6   : > { %9257 = vmatprep.subr.bf16.mxu0 %v10793_v43  ;;  %v10867_v43 = vld [vmem:[%s12314_s10 + $0x700] ss:$8 sps:$4 sm:$0xff]   ;;  %v12942_v26 = vrot.slane %v5703_v57, %v12319_v9  ;;  %v10953_v57 = vld [vmem:[%s12314_s10 + $0x7e4] ss:$8 sps:$4 sm:$0xff]  }
 0x2c8   : > { %8889 = vmatpush1.bf16.msra.mxu1 %v10788_v44  ;;  %v10870_v44 = vld [vmem:[%s12314_s10 + $0x1000] ss:$8 sps:$4 sm:$0xff]  }
 0x2c9   : > { %9258 = vmatpush1.bf16.msra.mxu0 %v10791_v30  ;;  %8890 = vmatprep.subr.bf16.mxu1 %v10796_v46  ;;  %v10875_v30 = vld [vmem:[%s12314_s10 + $0x714] ss:$8 sps:$4 sm:$0xff]  }
 0x2ca   : > { %9259 = vmatprep.subr.bf16.mxu0 %v10799_v47  ;;  %v10878_v46 = vld [vmem:[%s12314_s10 + $0x1014] ss:$8 sps:$4 sm:$0xff]   ;;  %v5597_v47 = vcombine.high %v12856_v37, %v12856_v37  ;;  %v10884_v37 = vld [vmem:[%s12314_s10 + $0x1024] ss:$8 sps:$4 sm:$0xff]  }
 0x2cc   : > { %8891 = vmatpush1.bf16.msra.mxu1 %v10794_v48  ;;  %v10876_v48 = vld [vmem:[%s12314_s10 + $0x1010] ss:$8 sps:$4 sm:$0xff]  }
 0x2cd   : > { %9260 = vmatpush1.bf16.msra.mxu0 %v10797_v34  ;;  %8892 = vmatprep.subr.bf16.mxu1 %v10802_v49  ;;  %v10881_v34 = vld [vmem:[%s12314_s10 + $0x724] ss:$8 sps:$4 sm:$0xff]   ;;  %v10879_v49 = vld [vmem:[%s12314_s10 + $0x720] ss:$8 sps:$4 sm:$0xff]  }
 0x2ce   : > { %9261 = vmatprep.subr.bf16.mxu0 %v10805_v50  ;;  %v10882_v50 = vld [vmem:[%s12314_s10 + $0x1020] ss:$8 sps:$4 sm:$0xff]  }
 0x2d0   : > { %8893 = vmatpush1.bf16.msra.mxu1 %v10800_v52  ;;  %v10887_v52 = vld [vmem:[%s12314_s10 + $0x734] ss:$8 sps:$4 sm:$0xff]  }
 0x2d1   : > { %9262 = vmatpush1.bf16.msra.mxu0 %v10803_v54  ;;  %8894 = vmatprep.subr.bf16.mxu1 %v10808_v55  ;;  %v10890_v54 = vld [vmem:[%s12314_s10 + $0x1034] ss:$8 sps:$4 sm:$0xff]   ;;  %v10885_v55 = vld [vmem:[%s12314_s10 + $0x730] ss:$8 sps:$4 sm:$0xff]  }
 0x2d2   : > { %9263 = vmatprep.subr.bf16.mxu0 %v10811_v56  ;;  %v10888_v56 = vld [vmem:[%s12314_s10 + $0x1030] ss:$8 sps:$4 sm:$0xff]  }
 0x2d4   : > { %8895 = vmatpush1.bf16.msra.mxu1 %v10806_v42  ;;  %v10893_v42 = vld [vmem:[%s12314_s10 + $0x744] ss:$8 sps:$4 sm:$0xff]  }
 0x2d5   : > { %9264 = vmatpush1.bf16.msra.mxu0 %v10809_v58  ;;  %8896 = vmatprep.subr.bf16.mxu1 %v10814_v59  ;;  %v10896_v58 = vld [vmem:[%s12314_s10 + $0x1044] ss:$8 sps:$4 sm:$0xff]   ;;  %v10891_v59 = vld [vmem:[%s12314_s10 + $0x740] ss:$8 sps:$4 sm:$0xff]  }
 0x2d6   : > { %9265 = vmatprep.subr.bf16.mxu0 %v10817_v45  ;;  %v10894_v45 = vld [vmem:[%s12314_s10 + $0x1040] ss:$8 sps:$4 sm:$0xff]  }
 0x2d8   : > { %8897 = vmatpush1.bf16.msra.mxu1 %v10812_v60  ;;  %v10899_v60 = vld [vmem:[%s12314_s10 + $0x754] ss:$8 sps:$4 sm:$0xff]  }
 0x2d9   : > { %9266 = vmatpush1.bf16.msra.mxu0 %v10815_v61  ;;  %8898 = vmatprep.subr.bf16.mxu1 %v10820_v62  ;;  %v10902_v61 = vld [vmem:[%s12314_s10 + $0x1054] ss:$8 sps:$4 sm:$0xff]   ;;  %v10897_v62 = vld [vmem:[%s12314_s10 + $0x750] ss:$8 sps:$4 sm:$0xff]  }
 0x2da   : > { %9267 = vmatprep.subr.bf16.mxu0 %v10823_v0  ;;  %v10900_v0 = vld [vmem:[%s12314_s10 + $0x1050] ss:$8 sps:$4 sm:$0xff]  }
 0x2dc   : > { %8899 = vmatpush1.bf16.msra.mxu1 %v10818_v1  ;;  %v10905_v1 = vld [vmem:[%s12314_s10 + $0x764] ss:$8 sps:$4 sm:$0xff]  }
 0x2dd   : > { %9268 = vmatpush1.bf16.msra.mxu0 %v10821_v2  ;;  %8900 = vmatprep.subr.bf16.mxu1 %v10826_v5  ;;  %v10908_v2 = vld [vmem:[%s12314_s10 + $0x1064] ss:$8 sps:$4 sm:$0xff]   ;;  %v10903_v5 = vld [vmem:[%s12314_s10 + $0x760] ss:$8 sps:$4 sm:$0xff]  }
 0x2de   : > { %9269 = vmatprep.subr.bf16.mxu0 %v10829_v51  ;;  %v10906_v51 = vld [vmem:[%s12314_s10 + $0x1060] ss:$8 sps:$4 sm:$0xff]  }
 0x2e0   : > { %8901 = vmatpush1.bf16.msra.mxu1 %v10824_v20  ;;  %v10911_v20 = vld [vmem:[%s12314_s10 + $0x774] ss:$8 sps:$4 sm:$0xff]  }
 0x2e1   : > { %9270 = vmatpush1.bf16.msra.mxu0 %v10827_v8  ;;  %8902 = vmatprep.subr.bf16.mxu1 %v10832_v11  ;;  %v10914_v8 = vld [vmem:[%s12314_s10 + $0x1074] ss:$8 sps:$4 sm:$0xff]   ;;  %v10909_v11 = vld [vmem:[%s12314_s10 + $0x770] ss:$8 sps:$4 sm:$0xff]  }
 0x2e2   : > { %9271 = vmatprep.subr.bf16.mxu0 %v10835_v41  ;;  %v10912_v41 = vld [vmem:[%s12314_s10 + $0x1070] ss:$8 sps:$4 sm:$0xff]  }
 0x2e4   : > { %8903 = vmatpush1.bf16.msra.mxu1 %v10830_v35  ;;  %v10917_v35 = vld [vmem:[%s12314_s10 + $0x784] ss:$8 sps:$4 sm:$0xff]  }
 0x2e5   : > { %9272 = vmatpush1.bf16.msra.mxu0 %v10833_v12  ;;  %8904 = vmatprep.subr.bf16.mxu1 %v10838_v15  ;;  %v10920_v12 = vld [vmem:[%s12314_s10 + $0x1084] ss:$8 sps:$4 sm:$0xff]   ;;  %v10915_v15 = vld [vmem:[%s12314_s10 + $0x780] ss:$8 sps:$4 sm:$0xff]  }
 0x2e6   : > { %9273 = vmatprep.subr.bf16.mxu0 %v10841_v17  ;;  %v10918_v17 = vld [vmem:[%s12314_s10 + $0x1080] ss:$8 sps:$4 sm:$0xff]  }
 0x2e8   : > { %8905 = vmatpush1.bf16.msra.mxu1 %v10836_v18  ;;  %v10923_v18 = vld [vmem:[%s12314_s10 + $0x794] ss:$8 sps:$4 sm:$0xff]  }
 0x2e9   : > { %9274 = vmatpush1.bf16.msra.mxu0 %v10839_v19  ;;  %8906 = vmatprep.subr.bf16.mxu1 %v10844_v21  ;;  %v10926_v19 = vld [vmem:[%s12314_s10 + $0x1094] ss:$8 sps:$4 sm:$0xff]   ;;  %v10921_v21 = vld [vmem:[%s12314_s10 + $0x790] ss:$8 sps:$4 sm:$0xff]  }
 0x2ea   : > { %9275 = vmatprep.subr.bf16.mxu0 %v10847_v22  ;;  %v10924_v22 = vld [vmem:[%s12314_s10 + $0x1090] ss:$8 sps:$4 sm:$0xff]  }
 0x2ec   : > { %8907 = vmatpush1.bf16.msra.mxu1 %v10842_v23  ;;  %v10929_v23 = vld [vmem:[%s12314_s10 + $0x7a4] ss:$8 sps:$4 sm:$0xff]  }
 0x2ed   : > { %9276 = vmatpush1.bf16.msra.mxu0 %v10845_v63  ;;  %8908 = vmatprep.subr.bf16.mxu1 %v10850_v27  ;;  %v10932_v63 = vld [vmem:[%s12314_s10 + $0x10a4] ss:$8 sps:$4 sm:$0xff]   ;;  %v10927_v27 = vld [vmem:[%s12314_s10 + $0x7a0] ss:$8 sps:$4 sm:$0xff]  }
 0x2ee   : > { %9277 = vmatprep.subr.bf16.mxu0 %v10853_v53  ;;  %v10930_v53 = vld [vmem:[%s12314_s10 + $0x10a0] ss:$8 sps:$4 sm:$0xff]  }
 0x2f0   : > { %8909 = vmatpush1.bf16.msra.mxu1 %v10848_v7  ;;  %v10935_v7 = vld [vmem:[%s12314_s10 + $0x7b4] ss:$8 sps:$4 sm:$0xff]  }
 0x2f1   : > { %9278 = vmatpush1.bf16.msra.mxu0 %v10851_v28  ;;  %8910 = vmatprep.subr.bf16.mxu1 %v10856_v29  ;;  %v10938_v28 = vld [vmem:[%s12314_s10 + $0x10b4] ss:$8 sps:$4 sm:$0xff]   ;;  %v10933_v29 = vld [vmem:[%s12314_s10 + $0x7b0] ss:$8 sps:$4 sm:$0xff]  }
 0x2f2   : > { %9279 = vmatprep.subr.bf16.mxu0 %v10859_v14  ;;  %v10936_v14 = vld [vmem:[%s12314_s10 + $0x10b0] ss:$8 sps:$4 sm:$0xff]  }
 0x2f4   : > { %8911 = vmatpush1.bf16.msra.mxu1 %v10854_v32  ;;  %v10941_v32 = vld [vmem:[%s12314_s10 + $0x7c4] ss:$8 sps:$4 sm:$0xff]  }
 0x2f5   : > { %9280 = vmatpush1.bf16.msra.mxu0 %v10857_v33  ;;  %8912 = vmatprep.subr.bf16.mxu1 %v10862_v13  ;;  %v10944_v33 = vld [vmem:[%s12314_s10 + $0x10c4] ss:$8 sps:$4 sm:$0xff]   ;;  %v10939_v13 = vld [vmem:[%s12314_s10 + $0x7c0] ss:$8 sps:$4 sm:$0xff]  }
 0x2f6   : > { %9281 = vmatprep.subr.bf16.mxu0 %v10865_v36  ;;  %v10942_v36 = vld [vmem:[%s12314_s10 + $0x10c0] ss:$8 sps:$4 sm:$0xff]  }
 0x2f8   : > { %8913 = vmatpush1.bf16.msra.mxu1 %v10860_v10  ;;  %v10947_v10 = vld [vmem:[%s12314_s10 + $0x7d4] ss:$8 sps:$4 sm:$0xff]  }
 0x2f9   : > { %9282 = vmatpush1.bf16.msra.mxu0 %v10863_v4  ;;  %8923 = vmatprep.subr.bf16.mxu1 %v10869_v24  ;;  %v10950_v4 = vld [vmem:[%s12314_s10 + $0x10d4] ss:$8 sps:$4 sm:$0xff]   ;;  %v10945_v24 = vld [vmem:[%s12314_s10 + $0x7d0] ss:$8 sps:$4 sm:$0xff]  }
 0x2fa   : > { %9292 = vmatprep.subr.bf16.mxu0 %v10872_v38  ;;  %v10948_v38 = vld [vmem:[%s12314_s10 + $0x10d0] ss:$8 sps:$4 sm:$0xff]  }
 0x2fb   : > { %8915 = vmatmul.mubr.bf16.vlgmr.msra.gmra.mrb[0].mxu1 %v12931_v39 }
 0x2fc   : > { %9284 = vmatmul.mubr.bf16.vlgmr.msra.gmra.mrb[0].mxu0 %v5693_v40  ;;  %8924 = vmatpush1.bf16.msra.mxu1 %v10867_v43  ;;  %v10956_v40 = vld [vmem:[%s12314_s10 + $0x10e4] ss:$8 sps:$4 sm:$0xff]   ;;  %v10951_v43 = vld [vmem:[%s12314_s10 + $0x7e0] ss:$8 sps:$4 sm:$0xff]  }
 0x2fd   : > { %9293 = vmatpush1.bf16.msra.mxu0 %v10870_v44  ;;  %8925 = vmatprep.subr.bf16.mxu1 %v10875_v30  ;;  %v10954_v44 = vld [vmem:[%s12314_s10 + $0x10e0] ss:$8 sps:$4 sm:$0xff]   ;;  %v10959_v30 = vld [vmem:[%s12314_s10 + $0x7f4] ss:$8 sps:$4 sm:$0xff]  }
 0x2fe   : > { %9294 = vmatprep.subr.bf16.mxu0 %v10878_v46  ;;  %8955 = vmatprep.mubr.bf16.mxu1 %v5597_v47  ;;  %v10962_v46 = vld [vmem:[%s12314_s10 + $0x10f4] ss:$8 sps:$4 sm:$0xff]   ;;  %v10957_v47 = vld [vmem:[%s12314_s10 + $0x7f0] ss:$8 sps:$4 sm:$0xff]  }
 0x2ff   : > { %9324 = vmatprep.mubr.bf16.mxu0 %v12942_v26 }
 0x300   : > { %8926 = vmatpush1.bf16.msra.mxu1 %v10873_v31  ;;  %v10960_v31 = vld [vmem:[%s12314_s10 + $0x10f0] ss:$8 sps:$4 sm:$0xff]  }
 0x301   : > { %9295 = vmatpush1.bf16.msra.mxu0 %v10876_v48  ;;  %8927 = vmatprep.subr.bf16.mxu1 %v10881_v34  ;;  %v10965_v48 = vld [vmem:[%s12314_s10 + $0x804] ss:$8 sps:$4 sm:$0xff]  }
 0x302   : > { %9296 = vmatprep.subr.bf16.mxu0 %v10884_v37  ;;  %v10968_v34 = vld [vmem:[%s12314_s10 + $0x1104] ss:$8 sps:$4 sm:$0xff]   ;;  %v5595_v37 = vcombine.high %v12931_v39, %v12931_v39  ;;  %v10972_v39 = vld [vmem:[%s12314_s10 + $0x1110] ss:$8 sps:$4 sm:$0xff]  }
 0x304   : > { %8928 = vmatpush1.bf16.msra.mxu1 %v10879_v49  ;;  %v13010_v49 = vrot.slane %v12921_v16, %v12319_v9  ;;  %v10969_v16 = vld [vmem:[%s12314_s10 + $0x810] ss:$8 sps:$4 sm:$0xff]  }
 0x305   : > { %9297 = vmatpush1.bf16.msra.mxu0 %v10882_v50  ;;  %8929 = vmatprep.subr.bf16.mxu1 %v10887_v52  ;;  %v10963_v50 = vld [vmem:[%s12314_s10 + $0x800] ss:$8 sps:$4 sm:$0xff]  }
 0x306   : > { %9298 = vmatprep.subr.bf16.mxu0 %v10890_v54  ;;  %v10966_v52 = vld [vmem:[%s12314_s10 + $0x1100] ss:$8 sps:$4 sm:$0xff]   ;;  %v10971_v54 = vld [vmem:[%s12314_s10 + $0x814] ss:$8 sps:$4 sm:$0xff]  }
 0x308   : > { %8930 = vmatpush1.bf16.msra.mxu1 %v10885_v55  ;;  %v10974_v55 = vld [vmem:[%s12314_s10 + $0x1114] ss:$8 sps:$4 sm:$0xff]  }
 0x309   : > { %9299 = vmatpush1.bf16.msra.mxu0 %v10888_v56  ;;  %8931 = vmatprep.subr.bf16.mxu1 %v10893_v42  ;;  %v5719_v56 = vcombine.high %v12942_v26, %v12942_v26  ;;  %v10977_v42 = vld [vmem:[%s12314_s10 + $0x824] ss:$8 sps:$4 sm:$0xff]   ;;  %v10975_v26 = vld [vmem:[%s12314_s10 + $0x820] ss:$8 sps:$4 sm:$0xff]  }
 0x30a   : > { %9300 = vmatprep.subr.bf16.mxu0 %v10896_v58  ;;  %v10980_v58 = vld [vmem:[%s12314_s10 + $0x1124] ss:$8 sps:$4 sm:$0xff]  }
 0x30c   : > { %8932 = vmatpush1.bf16.msra.mxu1 %v10891_v59  ;;  %v10978_v59 = vld [vmem:[%s12314_s10 + $0x1120] ss:$8 sps:$4 sm:$0xff]  }
 0x30d   : > { %9301 = vmatpush1.bf16.msra.mxu0 %v10894_v45  ;;  %8933 = vmatprep.subr.bf16.mxu1 %v10899_v60  ;;  %v10983_v45 = vld [vmem:[%s12314_s10 + $0x834] ss:$8 sps:$4 sm:$0xff]  }
 0x30e   : > { %9302 = vmatprep.subr.bf16.mxu0 %v10902_v61  ;;  %v10986_v60 = vld [vmem:[%s12314_s10 + $0x1134] ss:$8 sps:$4 sm:$0xff]   ;;  %v10981_v61 = vld [vmem:[%s12314_s10 + $0x830] ss:$8 sps:$4 sm:$0xff]  }
 0x310   : > { %8934 = vmatpush1.bf16.msra.mxu1 %v10897_v62  ;;  %v10989_v62 = vld [vmem:[%s12314_s10 + $0x844] ss:$8 sps:$4 sm:$0xff]  }
 0x311   : > { %9303 = vmatpush1.bf16.msra.mxu0 %v10900_v0  ;;  %8935 = vmatprep.subr.bf16.mxu1 %v10905_v1  ;;  %v10992_v0 = vld [vmem:[%s12314_s10 + $0x1144] ss:$8 sps:$4 sm:$0xff]   ;;  %v10987_v1 = vld [vmem:[%s12314_s10 + $0x840] ss:$8 sps:$4 sm:$0xff]  }
 0x312   : > { %9304 = vmatprep.subr.bf16.mxu0 %v10908_v2  ;;  %v10990_v2 = vld [vmem:[%s12314_s10 + $0x1140] ss:$8 sps:$4 sm:$0xff]  }
 0x314   : > { %8936 = vmatpush1.bf16.msra.mxu1 %v10903_v5  ;;  %v10995_v5 = vld [vmem:[%s12314_s10 + $0x854] ss:$8 sps:$4 sm:$0xff]  }
 0x315   : > { %9305 = vmatpush1.bf16.msra.mxu0 %v10906_v51  ;;  %8937 = vmatprep.subr.bf16.mxu1 %v10911_v20  ;;  %v10998_v51 = vld [vmem:[%s12314_s10 + $0x1154] ss:$8 sps:$4 sm:$0xff]   ;;  %v10993_v20 = vld [vmem:[%s12314_s10 + $0x850] ss:$8 sps:$4 sm:$0xff]  }
 0x316   : > { %9306 = vmatprep.subr.bf16.mxu0 %v10914_v8  ;;  %v10996_v8 = vld [vmem:[%s12314_s10 + $0x1150] ss:$8 sps:$4 sm:$0xff]  }
 0x318   : > { %8938 = vmatpush1.bf16.msra.mxu1 %v10909_v11  ;;  %v11001_v11 = vld [vmem:[%s12314_s10 + $0x864] ss:$8 sps:$4 sm:$0xff]  }
 0x319   : > { %9307 = vmatpush1.bf16.msra.mxu0 %v10912_v41  ;;  %8939 = vmatprep.subr.bf16.mxu1 %v10917_v35  ;;  %v11004_v41 = vld [vmem:[%s12314_s10 + $0x1164] ss:$8 sps:$4 sm:$0xff]   ;;  %v10999_v35 = vld [vmem:[%s12314_s10 + $0x860] ss:$8 sps:$4 sm:$0xff]  }
 0x31a   : > { %9308 = vmatprep.subr.bf16.mxu0 %v10920_v12  ;;  %v11002_v12 = vld [vmem:[%s12314_s10 + $0x1160] ss:$8 sps:$4 sm:$0xff]  }
 0x31c   : > { %8940 = vmatpush1.bf16.msra.mxu1 %v10915_v15  ;;  %v11007_v15 = vld [vmem:[%s12314_s10 + $0x874] ss:$8 sps:$4 sm:$0xff]  }
 0x31d   : > { %9309 = vmatpush1.bf16.msra.mxu0 %v10918_v17  ;;  %8941 = vmatprep.subr.bf16.mxu1 %v10923_v18  ;;  %v11010_v17 = vld [vmem:[%s12314_s10 + $0x1174] ss:$8 sps:$4 sm:$0xff]   ;;  %v11005_v18 = vld [vmem:[%s12314_s10 + $0x870] ss:$8 sps:$4 sm:$0xff]  }
 0x31e   : > { %9310 = vmatprep.subr.bf16.mxu0 %v10926_v19  ;;  %v11008_v19 = vld [vmem:[%s12314_s10 + $0x1170] ss:$8 sps:$4 sm:$0xff]  }
 0x320   : > { %8942 = vmatpush1.bf16.msra.mxu1 %v10921_v21  ;;  %v11013_v21 = vld [vmem:[%s12314_s10 + $0x884] ss:$8 sps:$4 sm:$0xff]  }
 0x321   : > { %9311 = vmatpush1.bf16.msra.mxu0 %v10924_v22  ;;  %8943 = vmatprep.subr.bf16.mxu1 %v10929_v23  ;;  %v11016_v22 = vld [vmem:[%s12314_s10 + $0x1184] ss:$8 sps:$4 sm:$0xff]   ;;  %v11011_v23 = vld [vmem:[%s12314_s10 + $0x880] ss:$8 sps:$4 sm:$0xff]  }
 0x322   : > { %9312 = vmatprep.subr.bf16.mxu0 %v10932_v63  ;;  %v11014_v63 = vld [vmem:[%s12314_s10 + $0x1180] ss:$8 sps:$4 sm:$0xff]  }
 0x324   : > { %8944 = vmatpush1.bf16.msra.mxu1 %v10927_v27  ;;  %v11019_v27 = vld [vmem:[%s12314_s10 + $0x894] ss:$8 sps:$4 sm:$0xff]  }
 0x325   : > { %9313 = vmatpush1.bf16.msra.mxu0 %v10930_v53  ;;  %8945 = vmatprep.subr.bf16.mxu1 %v10935_v7  ;;  %v11022_v53 = vld [vmem:[%s12314_s10 + $0x1194] ss:$8 sps:$4 sm:$0xff]   ;;  %v11017_v7 = vld [vmem:[%s12314_s10 + $0x890] ss:$8 sps:$4 sm:$0xff]  }
 0x326   : > { %9314 = vmatprep.subr.bf16.mxu0 %v10938_v28  ;;  %v11020_v28 = vld [vmem:[%s12314_s10 + $0x1190] ss:$8 sps:$4 sm:$0xff]  }
 0x328   : > { %8946 = vmatpush1.bf16.msra.mxu1 %v10933_v29  ;;  %v11025_v29 = vld [vmem:[%s12314_s10 + $0x8a4] ss:$8 sps:$4 sm:$0xff]  }
 0x329   : > { %9315 = vmatpush1.bf16.msra.mxu0 %v10936_v14  ;;  %8947 = vmatprep.subr.bf16.mxu1 %v10941_v32  ;;  %v11028_v14 = vld [vmem:[%s12314_s10 + $0x11a4] ss:$8 sps:$4 sm:$0xff]   ;;  %v11023_v32 = vld [vmem:[%s12314_s10 + $0x8a0] ss:$8 sps:$4 sm:$0xff]  }
 0x32a   : > { %9316 = vmatprep.subr.bf16.mxu0 %v10944_v33  ;;  %v11026_v33 = vld [vmem:[%s12314_s10 + $0x11a0] ss:$8 sps:$4 sm:$0xff]  }
 0x32c   : > { %8948 = vmatpush1.bf16.msra.mxu1 %v10939_v13  ;;  %v11031_v13 = vld [vmem:[%s12314_s10 + $0x8b4] ss:$8 sps:$4 sm:$0xff]  }
 0x32d   : > { %9317 = vmatpush1.bf16.msra.mxu0 %v10942_v36  ;;  %8949 = vmatprep.subr.bf16.mxu1 %v10947_v10  ;;  %v11034_v36 = vld [vmem:[%s12314_s10 + $0x11b4] ss:$8 sps:$4 sm:$0xff]   ;;  %v11029_v10 = vld [vmem:[%s12314_s10 + $0x8b0] ss:$8 sps:$4 sm:$0xff]  }
 0x32e   : > { %9318 = vmatprep.subr.bf16.mxu0 %v10950_v4  ;;  %v11032_v4 = vld [vmem:[%s12314_s10 + $0x11b0] ss:$8 sps:$4 sm:$0xff]  }
 0x330   : > { %8950 = vmatpush1.bf16.msra.mxu1 %v10945_v24  ;;  %v11037_v24 = vld [vmem:[%s12314_s10 + $0x8c4] ss:$8 sps:$4 sm:$0xff]  }
 0x331   : > { %9319 = vmatpush1.bf16.msra.mxu0 %v10948_v38  ;;  %8951 = vmatprep.subr.bf16.mxu1 %v10953_v57  ;;  %v11040_v38 = vld [vmem:[%s12314_s10 + $0x11c4] ss:$8 sps:$4 sm:$0xff]   ;;  %v11035_v57 = vld [vmem:[%s12314_s10 + $0x8c0] ss:$8 sps:$4 sm:$0xff]  }
 0x332   : > { %9320 = vmatprep.subr.bf16.mxu0 %v10956_v40  ;;  %v11038_v40 = vld [vmem:[%s12314_s10 + $0x11c0] ss:$8 sps:$4 sm:$0xff]  }
 0x334   : > { %8952 = vmatpush1.bf16.msra.mxu1 %v10951_v43  ;;  %v11043_v43 = vld [vmem:[%s12314_s10 + $0x8d4] ss:$8 sps:$4 sm:$0xff]  }
 0x335   : > { %9321 = vmatpush1.bf16.msra.mxu0 %v10954_v44  ;;  %8953 = vmatprep.subr.bf16.mxu1 %v10959_v30  ;;  %v11046_v44 = vld [vmem:[%s12314_s10 + $0x11d4] ss:$8 sps:$4 sm:$0xff]   ;;  %v11041_v30 = vld [vmem:[%s12314_s10 + $0x8d0] ss:$8 sps:$4 sm:$0xff]  }
 0x336   : > { %9322 = vmatprep.subr.bf16.mxu0 %v10962_v46  ;;  %v11044_v46 = vld [vmem:[%s12314_s10 + $0x11d0] ss:$8 sps:$4 sm:$0xff]  }
 0x338   : > { %8954 = vmatpush1.bf16.msra.mxu1 %v10957_v47  ;;  %v11049_v47 = vld [vmem:[%s12314_s10 + $0x8e4] ss:$8 sps:$4 sm:$0xff]  }
 0x339   : > { %9323 = vmatpush1.bf16.msra.mxu0 %v10960_v31  ;;  %8964 = vmatprep.subr.bf16.mxu1 %v10965_v48  ;;  %v11052_v31 = vld [vmem:[%s12314_s10 + $0x11e4] ss:$8 sps:$4 sm:$0xff]   ;;  %v11047_v48 = vld [vmem:[%s12314_s10 + $0x8e0] ss:$8 sps:$4 sm:$0xff]  }
 0x33a   : > { %9333 = vmatprep.subr.bf16.mxu0 %v10968_v34  ;;  %v11050_v34 = vld [vmem:[%s12314_s10 + $0x11e0] ss:$8 sps:$4 sm:$0xff]  }
 0x33b   : > { %8956 = vmatmul.mubr.bf16.vlgmr.msra.gmra.mrb[0].mxu1 %v5595_v37  ;;  %v11055_v37 = vld [vmem:[%s12314_s10 + $0x8f4] ss:$8 sps:$4 sm:$0xff]  }
 0x33c   : > { %9325 = vmatmul.mubr.bf16.vlgmr.msra.gmra.mrb[0].mxu0 %v13010_v49  ;;  %8965 = vmatpush1.bf16.msra.mxu1 %v10963_v50  ;;  %v11058_v50 = vld [vmem:[%s12314_s10 + $0x11f4] ss:$8 sps:$4 sm:$0xff]  }
 0x33d   : > { %9334 = vmatpush1.bf16.msra.mxu0 %v10966_v52  ;;  %8966 = vmatprep.subr.bf16.mxu1 %v10971_v54  ;;  %v11053_v52 = vld [vmem:[%s12314_s10 + $0x8f0] ss:$8 sps:$4 sm:$0xff]  }
 0x33e   : > { %9335 = vmatprep.subr.bf16.mxu0 %v10974_v55  ;;  %8996 = vmatprep.mubr.bf16.mxu1 %v12347_v25  ;;  %v10984_v25 = vld [vmem:[%s12314_s10 + $0x1130] ss:$8 sps:$4 sm:$0xff]   ;;  %v5718_v55 = vcombine.high %v13010_v49, %v13010_v49  ;;  %v9374_v49 = vld [vmem:[%s4902_s25] sm:$0x3] }
 0x33f   : > { %9365 = vmatprep.mubr.bf16.mxu0 %v5719_v56  ;;  %v11056_v54 = vld [vmem:[%s12314_s10 + $0x11f0] ss:$8 sps:$4 sm:$0xff]   ;;  %v9378_v56 = vsub.s32 0, %v12302_v3 }
 0x340   : > { %8967 = vmatpush1.bf16.msra.mxu1 %v10969_v16  ;;  %v9382_v16 = vsub.s32 1, %v12302_v3 }
 0x341   : > { %9336 = vmatpush1.bf16.msra.mxu0 %v10972_v39  ;;  %8968 = vmatprep.subr.bf16.mxu1 %v10977_v42  ;;  %v9388_v39 = vld [vmem:[%s4907_s28] sm:$0x3] }
 0x342   : > { %9337 = vmatprep.subr.bf16.mxu0 %v10980_v58 }
 0x344   : > { %8969 = vmatpush1.bf16.msra.mxu1 %v10975_v26  ;;  %v9383_v26 = vrot.slane %v9374_v49, %v9382_v16 }
 0x345   : > { %9338 = vmatpush1.bf16.msra.mxu0 %v10978_v59  ;;  %8970 = vmatprep.subr.bf16.mxu1 %v10983_v45  ;;  %v9393_v45 = vrot.slane %v9388_v39, %v9378_v56 }
 0x346   : > { %9339 = vmatprep.subr.bf16.mxu0 %v10986_v60 }
 0x348   : > { %8971 = vmatpush1.bf16.msra.mxu1 %v10981_v61 }
 0x349   : > { %9340 = vmatpush1.bf16.msra.mxu0 %v10984_v25  ;;  %8972 = vmatprep.subr.bf16.mxu1 %v10989_v62  ;;  %v9397_v62 = vrot.slane %v9388_v39, %v9382_v16 }
 0x34a   : > { %9341 = vmatprep.subr.bf16.mxu0 %v10992_v0 }
 0x34c   : > { %8973 = vmatpush1.bf16.msra.mxu1 %v10987_v1 }
 0x34d   : > { %9342 = vmatpush1.bf16.msra.mxu0 %v10990_v2  ;;  %8974 = vmatprep.subr.bf16.mxu1 %v10995_v5 }
 0x34e   : > { %9343 = vmatprep.subr.bf16.mxu0 %v10998_v51 }
 0x350   : > { %8975 = vmatpush1.bf16.msra.mxu1 %v10993_v20 }
 0x351   : > { %9344 = vmatpush1.bf16.msra.mxu0 %v10996_v8  ;;  %8976 = vmatprep.subr.bf16.mxu1 %v11001_v11 }
 0x352   : > { %9345 = vmatprep.subr.bf16.mxu0 %v11004_v41 }
 0x354   : > { %8977 = vmatpush1.bf16.msra.mxu1 %v10999_v35 }
 0x355   : > { %9346 = vmatpush1.bf16.msra.mxu0 %v11002_v12  ;;  %8978 = vmatprep.subr.bf16.mxu1 %v11007_v15 }
 0x356   : > { %9347 = vmatprep.subr.bf16.mxu0 %v11010_v17 }
 0x358   : > { %8979 = vmatpush1.bf16.msra.mxu1 %v11005_v18 }
 0x359   : > { %9348 = vmatpush1.bf16.msra.mxu0 %v11008_v19  ;;  %8980 = vmatprep.subr.bf16.mxu1 %v11013_v21 }
 0x35a   : > { %9349 = vmatprep.subr.bf16.mxu0 %v11016_v22 }
 0x35c   : > { %8981 = vmatpush1.bf16.msra.mxu1 %v11011_v23 }
 0x35d   : > { %9350 = vmatpush1.bf16.msra.mxu0 %v11014_v63  ;;  %8982 = vmatprep.subr.bf16.mxu1 %v11019_v27 }
 0x35e   : > { %9351 = vmatprep.subr.bf16.mxu0 %v11022_v53 }
 0x360   : > { %8983 = vmatpush1.bf16.msra.mxu1 %v11017_v7 }
 0x361   : > { %9352 = vmatpush1.bf16.msra.mxu0 %v11020_v28  ;;  %8984 = vmatprep.subr.bf16.mxu1 %v11025_v29 }
 0x362   : > { %9353 = vmatprep.subr.bf16.mxu0 %v11028_v14 }
 0x364   : > { %8985 = vmatpush1.bf16.msra.mxu1 %v11023_v32 }
 0x365   : > { %9354 = vmatpush1.bf16.msra.mxu0 %v11026_v33  ;;  %8986 = vmatprep.subr.bf16.mxu1 %v11031_v13 }
 0x366   : > { %9355 = vmatprep.subr.bf16.mxu0 %v11034_v36 }
 0x368   : > { %8987 = vmatpush1.bf16.msra.mxu1 %v11029_v10 }
 0x369   : > { %9356 = vmatpush1.bf16.msra.mxu0 %v11032_v4  ;;  %8988 = vmatprep.subr.bf16.mxu1 %v11037_v24 }
 0x36a   : > { %9357 = vmatprep.subr.bf16.mxu0 %v11040_v38 }
 0x36c   : > { %8989 = vmatpush1.bf16.msra.mxu1 %v11035_v57 }
 0x36d   : > { %9358 = vmatpush1.bf16.msra.mxu0 %v11038_v40  ;;  %8990 = vmatprep.subr.bf16.mxu1 %v11043_v43 }
 0x36e   : > { %9359 = vmatprep.subr.bf16.mxu0 %v11046_v44 }
 0x370   : > { %8991 = vmatpush1.bf16.msra.mxu1 %v11041_v30 }
 0x371   : > { %9360 = vmatpush1.bf16.msra.mxu0 %v11044_v46  ;;  %8992 = vmatprep.subr.bf16.mxu1 %v11049_v47 }
 0x372   : > { %9361 = vmatprep.subr.bf16.mxu0 %v11052_v31 }
 0x374   : > { %8993 = vmatpush1.bf16.msra.mxu1 %v11047_v48 }
 0x375   : > { %9362 = vmatpush1.bf16.msra.mxu0 %v11050_v34  ;;  %8994 = vmatprep.subr.bf16.mxu1 %v11055_v37 }
 0x376   : > { %9363 = vmatprep.subr.bf16.mxu0 %v11058_v50 }
 0x378   : > { %8995 = vmatpush1.bf16.msra.mxu1 %v11053_v52 }
 0x379   : > { %9364 = vmatpush1.bf16.msra.mxu0 %v11056_v54 }
 0x37b   : > { %8997 = vmatmul.mubr.bf16.vlgmr.msra.gmra.mrb[0].mxu1 %v12411_v6  ;;  %v9379_v6 = vrot.slane %v9374_v49, %v9378_v56 }
 0x37c   : > { %9366 = vmatmul.mubr.bf16.vlgmr.msra.gmra.mrb[0].mxu0 %v5718_v55 }
 0x44e   : > { %v8998_v42 = vpop.f32.mrb[0].mxu1 }
 0x44f   : > { %v9367_v58 = vpop.f32.mrb[0].mxu0  ;;  %v9000_v60 = vpop.f32.mrb[1].mxu1 }
 0x450   : > { %v10098_v59 = vadd.f32 %v9367_v58, %v8998_v42  ;;  %v9369_v61 = vpop.f32.mrb[1].mxu0  ;;  %v9002_v0 = vpop.f32.mrb[2].mxu1 }
 0x451   : > { %v10099_v25 = vadd.f32 %v9369_v61, %v9000_v60  ;;  %v9371_v1 = vpop.f32.mrb[2].mxu0  ;;  %v9003_v5 = vpop.f32.mrb[3].mxu1 }
 0x452   : > { %v9386_v2 = vmul.f32 %v10098_v59, %v9379_v6  ;;  %v9372_v51 = vpop.f32.mrb[3].mxu0 }
 0x453   : > { %v9387_v20 = vmul.f32 %v10099_v25, %v9383_v26 }
 0x454   : > { %v9400_v8 = vadd.f32 %v9393_v45, %v9386_v2 }
 0x455   : > { %v9401_v11 = vadd.f32 %v9397_v62, %v9387_v20 }
 0x457   : > { %v10093_v3 = vpack.c.bf16 %v9401_v11, %v9400_v8 }
 0x459   : > { %v9413_v41 = vrot.slane %v10093_v3, %v12319_v9 }
 0x45b   : > { %10094 = vst.sshfl [vmem:[%s4912_s29] sm:$0x5 pattern:$0x73625140] %v9413_v41 }
 0x45c PF: > { %p11_p9 = scmp.ge.s32.totalorder %s11126_s19, 4   ;;  %s13110_s15 = smov %s11077_s16 }
 0x45d   : > { %s13111_s16 = smov %s11135_s22  ;;  %s13112_s17 = smov %s11126_s19 }
 0x45e   :  { %13 = sbr.rel (!%p11_p9) target bundleno = 2 (0x2), region = 135 }

</bundles_post_ra>
